<compile_context>
chip_gen: v6e
topology: v6e:2x2x1
jax: 0.10.0
libtpu: 0.0.40
codegen_flags: <defaults>
</compile_context>

<pallas_src>
import numpy as np

import jax
import jax.numpy as jnp
from jax.experimental import pallas as pl
from jax.experimental.pallas import tpu as pltpu

# -------- small-but-structurally-faithful config --------
BATCH = 2                   # power of two (in-kernel selector uses & (B-1))
FEATURE_CHANNELS = 64       # stands in for 576
FEATURE_H = 2
FEATURE_W = 10
SEQ = FEATURE_H * FEATURE_W            # 20  (== get_seq_length())
REDUCTION = 16                         # ChannelAttention reduction_ratio
RNN_HIDDEN = 32                        # stands in for 256
NUM_CLASSES = 16
NUM_CLASSES_PADDED = 128               # lane-dense classifier output slab
USE_CHANNEL_ATTENTION = True
USE_SPATIAL_ATTENTION = True

DTYPE = jnp.float32
MXU_DTYPE = jnp.bfloat16               # MXU operand dtype for LSTM/classifier

# timesteps buffered in registers between scratch stores (4*B = 8 rows = one
# sublane tile at B=2)
TBLK = next(b for b in (4, 2, 1) if SEQ % b == 0)


# ============================================================================
# Fused kernel
# ============================================================================

def fused_plate_ocr_kernel(
    x_ref,                                         # (T*B, C) f32, row r = t*B+b
    ca_w1_ref, ca_b1_ref, ca_w2_ref, ca_b2_ref,    # channel attention (f32)
    sa_w_ref, sa_b_ref,                            # spatial attention (f32)
    wih0_ref, b0_ref, whh0_ref,                    # layer 0: (C,8H) bf16, (1,8H) f32, (2H,8H) bf16 blockdiag
    wih1_ref, b1_ref, whh1_ref,                    # layer 1: (2H,8H) bf16, (1,8H) f32, (2H,8H) bf16 blockdiag
    clsw_ref, clsb_ref,                            # classifier (2H,128) bf16, (1,128) f32
    out_ref,                                       # (T*B, 128) f32
    gx_scr,                                        # (T*B, 8H) f32 hoisted gate projections [fwd 4H | bwd 4H]
    seq_scr,                                       # (T*B, 2H) f32 per-layer hidden states [fwd H | bwd H]
):
    B, T, H = BATCH, SEQ, RNN_HIDDEN
    TB = T * B
    G = 4 * H

    f = x_ref[...].astype(jnp.float32)                                  # (TB, C)

    # ---------------- attention (channel then spatial, like nn.Sequential) ---
    if USE_CHANNEL_ATTENTION:
        # AdaptiveAvgPool2d(1) over the T positions of each batch element as a
        # selection matmul; selectors built in-kernel from iota (B is a power
        # of two, so r % B == r & (B-1)) — no extra input DMAs.
        col = jax.lax.broadcasted_iota(jnp.int32, (B, TB), 1)
        row = jax.lax.broadcasted_iota(jnp.int32, (B, TB), 0)
        pool_sel = jnp.where((col & (B - 1)) == row, 1.0, 0.0).astype(jnp.float32)
        pooled = jnp.dot(pool_sel, f,
                         preferred_element_type=jnp.float32) * (1.0 / T)  # (B, C)
        hid = jnp.maximum(
            jnp.dot(pooled, ca_w1_ref[...],
                    preferred_element_type=jnp.float32) + ca_b1_ref[...], 0.0)
        ca = jax.nn.sigmoid(
            jnp.dot(hid, ca_w2_ref[...],
                    preferred_element_type=jnp.float32) + ca_b2_ref[...])  # (B, C)
        erow = jax.lax.broadcasted_iota(jnp.int32, (TB, B), 0)
        ecol = jax.lax.broadcasted_iota(jnp.int32, (TB, B), 1)
        expand_sel = jnp.where((erow & (B - 1)) == ecol, 1.0, 0.0).astype(jnp.float32)
        f = f * jnp.dot(expand_sel, ca,
                        preferred_element_type=jnp.float32)              # (TB, C)

    if USE_SPATIAL_ATTENTION:
        sa = jax.nn.sigmoid(
            jnp.dot(f, sa_w_ref[...],
                    preferred_element_type=jnp.float32) + sa_b_ref[...])   # (TB, 1)
        f = f * sa

    # ---------------- bidirectional 2-layer LSTM -----------------------------
    # g-gate columns of W_ih / W_hh / bias were pre-scaled by 2 at init, so the
    # whole (B, 8H) gate vector needs a single sigmoid pass and the g gate is
    # recovered with tanh(x) = 2*sigmoid(2x) - 1 (no full-width tanh).
    lane8 = jax.lax.broadcasted_iota(jnp.int32, (B, 2 * G), 1)
    g_mask = (((lane8 >= 2 * H) & (lane8 < 3 * H))
              | ((lane8 >= G + 2 * H) & (lane8 < G + 3 * H)))

    n_blk = T // TBLK

    def run_bidir_layer(whh_blk_ref):
        """Both directions in one fully-unrolled time loop.  The per-step
        recurrence is ONE block-diagonal bf16 matmul [h_f|h_b] @ (2H, 8H);
        gx is read and h is written in (8-row) tile-sized blocks."""
        whh_blk = whh_blk_ref[...]                         # (2H, 8H) bf16
        hc = jnp.zeros((B, 2 * H), jnp.float32)            # [h_f | h_b]
        c_f = jnp.zeros((B, H), jnp.float32)
        c_b = jnp.zeros((B, H), jnp.float32)
        for blk in range(n_blk):                           # static unroll
            t0 = blk * TBLK
            r0_f = t0 * B                                  # fwd rows for this block
            r0_b = (T - TBLK - t0) * B                     # bwd rows for this block
            gx_f_blk = gx_scr[pl.ds(r0_f, TBLK * B), pl.ds(0, G)]   # (8, 4H)
            gx_b_blk = gx_scr[pl.ds(r0_b, TBLK * B), pl.ds(G, G)]   # (8, 4H)
            hf_steps = []
            hb_steps = []
            for j in range(TBLK):
                # forward time t0+j; backward time T-1-t0-j lives at block row
                # offset (TBLK-1-j)*B inside gx_b_blk.
                gx_f = gx_f_blk[j * B:(j + 1) * B, :]
                gx_b = gx_b_blk[(TBLK - 1 - j) * B:(TBLK - j) * B, :]
                rec = jnp.dot(hc.astype(MXU_DTYPE), whh_blk,
                              preferred_element_type=jnp.float32)        # (B, 8H)
                gates = rec + jnp.concatenate([gx_f, gx_b], axis=-1)
                s = jax.nn.sigmoid(gates)                  # one EUP pass, full width
                act = jnp.where(g_mask, 2.0 * s - 1.0, s)  # g gate == tanh
                i_f = act[:, 0 * H:1 * H]
                f_f = act[:, 1 * H:2 * H]
                g_f = act[:, 2 * H:3 * H]
                o_f = act[:, 3 * H:4 * H]
                i_b = act[:, G + 0 * H:G + 1 * H]
                f_b = act[:, G + 1 * H:G + 2 * H]
                g_b = act[:, G + 2 * H:G + 3 * H]
                o_b = act[:, G + 3 * H:G + 4 * H]
                c_f = f_f * c_f + i_f * g_f
                c_b = f_b * c_b + i_b * g_b
                tc = jnp.tanh(jnp.concatenate([c_f, c_b], axis=-1))       # (B, 2H)
                hc = jnp.concatenate([o_f, o_b], axis=-1) * tc            # (B, 2H)
                hf_steps.append(hc[:, :H])
                hb_steps.append(hc[:, H:])
            # one (8, H) store per direction per block (time-aligned rows).
            seq_scr[pl.ds(r0_f, TBLK * B), pl.ds(0, H)] = \
                jnp.concatenate(hf_steps, axis=0)
            seq_scr[pl.ds(r0_b, TBLK * B), pl.ds(H, H)] = \
                jnp.concatenate(hb_steps[::-1], axis=0)

    # layer 0: hoisted bf16 input projection for both directions in one matmul.
    gx_scr[...] = (jnp.dot(f.astype(MXU_DTYPE), wih0_ref[...],
                           preferred_element_type=jnp.float32) + b0_ref[...])
    run_bidir_layer(whh0_ref)

    # layer 1: single fused (TB, 2H) @ (2H, 8H) projection of [h_fwd | h_bwd].
    gx_scr[...] = (jnp.dot(seq_scr[...].astype(MXU_DTYPE), wih1_ref[...],
                           preferred_element_type=jnp.float32) + b1_ref[...])
    run_bidir_layer(whh1_ref)
    # inter-layer Dropout(0.2): identity in eval mode.

    # ---------------- classifier (single bf16 dot, lane-dense 128-wide) ------
    logits = (jnp.dot(seq_scr[...].astype(MXU_DTYPE), clsw_ref[...],
                      preferred_element_type=jnp.float32) + clsb_ref[...])
    out_ref[...] = logits.astype(out_ref.dtype)
    # Dropout(0.1) after the Linear: identity in eval mode.


# ============================================================================
# Wrapper
# ============================================================================

@jax.jit
def plate_ocr_forward(x_features_nchw, kp):
    """x_features_nchw: (B, C, fH, fW) backbone feature map (NCHW).
    kp: kernel-format params from prepare_kernel_params().

    Returns logits of shape (T, B, num_classes), matching
    `output.permute(1, 0, 2)` in the PyTorch module (CTC layout).
    """
    B, C, fh, fw = x_features_nchw.shape
    T = fh * fw
    TB = T * B
    H = RNN_HIDDEN

    # features.permute(0, 2, 3, 1).reshape(B, -1, C), laid out time-major
    # (row r = t*B + b) so the recurrence reads/writes contiguous B-row slabs.
    x2 = jnp.transpose(x_features_nchw, (2, 3, 0, 1)).reshape(TB, C).astype(DTYPE)

    out_padded = pl.pallas_call(
        fused_plate_ocr_kernel,
        out_shape=jax.ShapeDtypeStruct((TB, NUM_CLASSES_PADDED), DTYPE),
        scratch_shapes=[
            pltpu.VMEM((TB, 8 * H), jnp.float32),   # hoisted gate projections
            pltpu.VMEM((TB, 2 * H), jnp.float32),   # [fwd | bwd] hidden sequence
        ],
    )(x2,
      kp["ca_w1"], kp["ca_b1"], kp["ca_w2"], kp["ca_b2"],
      kp["sa_w"], kp["sa_b"],
      kp["wih0"], kp["b0"], kp["whh0_blk"],
      kp["wih1"], kp["b1"], kp["whh1_blk"],
      kp["cls_w"], kp["cls_b"])

    # strip lane padding; (T*B, NC) time-major rows reshape to (T, B, NC),
    # which is exactly output.permute(1, 0, 2) of the PyTorch module.
    return out_padded[:, :NUM_CLASSES].reshape(T, B, NUM_CLASSES)


# ============================================================================
# Parameters
# ============================================================================

def init_params(key):
    """Raw (mathematical) parameters, stored f32.  Weights that the kernel
    consumes as bf16 are pre-rounded to bf16-representable values so the
    kernel and the f32 reference share identical weight values."""
    p = {}
    scale = 0.1
    ks = iter(jax.random.split(key, 24))

    def rnd(shape, bf16_round=False):
        w = (scale * jax.random.normal(next(ks), shape)).astype(DTYPE)
        if bf16_round:
            w = w.astype(jnp.bfloat16).astype(DTYPE)
        return w

    C, R, H = FEATURE_CHANNELS, FEATURE_CHANNELS // REDUCTION, RNN_HIDDEN
    G = 4 * H

    # ChannelAttention: Conv2d(C, C//r, 1) -> ReLU -> Conv2d(C//r, C, 1) -> Sigmoid
    # (1x1 convs stored pre-transposed for x @ W)
    p["ca_w1"] = rnd((C, R))
    p["ca_b1"] = rnd((1, R))
    p["ca_w2"] = rnd((R, C))
    p["ca_b2"] = rnd((1, C))
    # SpatialAttention: Conv2d(C, 1, 1) -> Sigmoid
    p["sa_w"] = rnd((C, 1))
    p["sa_b"] = rnd((1, 1))

    # LSTM (2 layers, bidirectional).  Per layer (PyTorch gate order i,f,g,o):
    #   wih : input projection for BOTH directions, columns [fwd 4H | bwd 4H]
    #   b   : combined b_ih + b_hh, same column layout
    #   whh : (2, H, 4H) recurrent weights, [0]=fwd, [1]=bwd
    p["wih0"] = rnd((C, 2 * G), bf16_round=True)           # layer-0 input is C
    p["b0"] = rnd((1, 2 * G)) + rnd((1, 2 * G))
    p["whh0"] = rnd((2, H, G), bf16_round=True)
    p["wih1"] = rnd((2 * H, 2 * G), bf16_round=True)        # layer-1 input is [fwd|bwd]
    p["b1"] = rnd((1, 2 * G)) + rnd((1, 2 * G))
    p["whh1"] = rnd((2, H, G), bf16_round=True)

    # Classifier Linear(2H -> num_classes)
    p["cls_w"] = rnd((2 * H, NUM_CLASSES), bf16_round=True)
    p["cls_b"] = rnd((1, NUM_CLASSES))
    return p


def prepare_kernel_params(p):
    """Kernel-format params: g-gate columns pre-scaled by 2 (for the
    tanh(x) = 2*sigmoid(2x)-1 rewrite), W_hh assembled block-diagonally,
    MXU weights cast to bf16, classifier padded to 128 lanes."""
    H = RNN_HIDDEN
    G = 4 * H
    col = np.arange(2 * G)
    g_cols = jnp.asarray(((col % G) >= 2 * H) & ((col % G) < 3 * H))

    def g_scale(w):
        # exact (power-of-two) scale; keeps bf16-representability.
        return jnp.where(g_cols, w * 2.0, w)

    def block_diag(w2):                         # (2, H, 4H) -> (2H, 8H)
        out = jnp.zeros((2 * H, 2 * G), w2.dtype)
        return out.at[:H, :G].set(w2[0]).at[H:, G:].set(w2[1])

    k = {name: p[name] for name in
         ("ca_w1", "ca_b1", "ca_w2", "ca_b2", "sa_w", "sa_b")}
    k["wih0"] = g_scale(p["wih0"]).astype(MXU_DTYPE)
    k["b0"] = g_scale(p["b0"])
    k["whh0_blk"] = g_scale(block_diag(p["whh0"])).astype(MXU_DTYPE)
    k["wih1"] = g_scale(p["wih1"]).astype(MXU_DTYPE)
    k["b1"] = g_scale(p["b1"])
    k["whh1_blk"] = g_scale(block_diag(p["whh1"])).astype(MXU_DTYPE)
    cls_w = jnp.zeros((2 * H, NUM_CLASSES_PADDED), DTYPE) \
        .at[:, :NUM_CLASSES].set(p["cls_w"])
    cls_b = jnp.zeros((1, NUM_CLASSES_PADDED), DTYPE) \
        .at[:, :NUM_CLASSES].set(p["cls_b"])
    k["cls_w"] = cls_w.astype(MXU_DTYPE)
    k["cls_b"] = cls_b
    return k


# ============================================================================
# Pure-JAX f32 reference (same math, XLA ops) for a correctness check
# ============================================================================

@jax.jit
def reference_forward(x_features_nchw, p):
    B, C, fh, fw = x_features_nchw.shape
    T = fh * fw
    H = RNN_HIDDEN
    G = 4 * H

    f = jnp.transpose(x_features_nchw, (0, 2, 3, 1)).reshape(B, T, C)
    if USE_CHANNEL_ATTENTION:
        pooled = jnp.mean(f, axis=1)                                    # (B, C)
        hid = jnp.maximum(pooled @ p["ca_w1"] + p["ca_b1"], 0.0)
        ca = jax.nn.sigmoid(hid @ p["ca_w2"] + p["ca_b2"])              # (B, C)
        f = f * ca[:, None, :]
    if USE_SPATIAL_ATTENTION:
        sa = jax.nn.sigmoid(jnp.einsum("btc,co->bto", f, p["sa_w"]) + p["sa_b"])
        f = f * sa

    x_tbd = jnp.transpose(f, (1, 0, 2))                                 # (T, B, C)

    def run_dir(x_seq, wih, whh, bias, reverse):
        h = jnp.zeros((x_seq.shape[1], H), jnp.float32)
        c = jnp.zeros_like(h)
        out = [None] * x_seq.shape[0]
        order = range(x_seq.shape[0] - 1, -1, -1) if reverse \
            else range(x_seq.shape[0])
        for t in order:
            g = x_seq[t] @ wih + h @ whh + bias
            i_g = jax.nn.sigmoid(g[:, 0 * H:1 * H])
            f_g = jax.nn.sigmoid(g[:, 1 * H:2 * H])
            g_g = jnp.tanh(g[:, 2 * H:3 * H])
            o_g = jax.nn.sigmoid(g[:, 3 * H:4 * H])
            c = f_g * c + i_g * g_g
            h = o_g * jnp.tanh(c)
            out[t] = h
        return jnp.stack(out, axis=0)                                   # (T, B, H)

    b0 = p["b0"][0]
    h0f = run_dir(x_tbd, p["wih0"][:, :G], p["whh0"][0], b0[:G], False)
    h0b = run_dir(x_tbd, p["wih0"][:, G:], p["whh0"][1], b0[G:], True)
    l1_in = jnp.concatenate([h0f, h0b], axis=-1)                        # (T, B, 2H)

    b1 = p["b1"][0]
    h1f = run_dir(l1_in, p["wih1"][:, :G], p["whh1"][0], b1[:G], False)
    h1b = run_dir(l1_in, p["wih1"][:, G:], p["whh1"][1], b1[G:], True)
    rnn_out = jnp.concatenate([h1f, h1b], axis=-1)                      # (T, B, 2H)

    logits = jnp.einsum("tbh,hn->tbn", rnn_out, p["cls_w"]) + p["cls_b"][0]
    return logits                                                        # (T, B, NC)


# ============================================================================
# Main
# ============================================================================

if __name__ == "__main__":
    key = jax.random.PRNGKey(0)
    k_x, k_p = jax.random.split(key)

    # NCHW feature map standing in for the MobileNetV3-small backbone output
    x = jax.random.normal(
        k_x, (BATCH, FEATURE_CHANNELS, FEATURE_H, FEATURE_W), dtype=DTYPE)
    params = init_params(k_p)
    kparams = prepare_kernel_params(params)

    out = jax.block_until_ready(plate_ocr_forward(x, kparams))

    assert out.shape == (SEQ, BATCH, NUM_CLASSES), out.shape
    assert out.dtype == DTYPE
    assert bool(jnp.all(jnp.isfinite(out)))

    ref = jax.block_until_ready(reference_forward(x, params))
    max_err = float(jnp.max(jnp.abs(out - ref)))
    # The kernel feeds the MXU bf16 operands (per the perf review); vs the
    # all-f32 reference this introduces ~1e-2-level deviations on the logits.
    assert max_err < 5e-2, f"kernel/reference mismatch, max abs err {max_err}"

    print("KERNEL_OK")
</pallas_src>

<mosaic_0001>
module attributes {stable_mosaic.version = 11 : i64} {
  func.func @fused_plate_ocr_kernel(%arg0: memref<40x64xf32, #tpu.memory_space<vmem>>, %arg1: memref<64x4xf32, #tpu.memory_space<vmem>>, %arg2: memref<1x4xf32, #tpu.memory_space<vmem>>, %arg3: memref<4x64xf32, #tpu.memory_space<vmem>>, %arg4: memref<1x64xf32, #tpu.memory_space<vmem>>, %arg5: memref<64x1xf32, #tpu.memory_space<vmem>>, %arg6: memref<1x1xf32, #tpu.memory_space<vmem>>, %arg7: memref<64x256xbf16, #tpu.memory_space<vmem>>, %arg8: memref<1x256xf32, #tpu.memory_space<vmem>>, %arg9: memref<64x256xbf16, #tpu.memory_space<vmem>>, %arg10: memref<64x256xbf16, #tpu.memory_space<vmem>>, %arg11: memref<1x256xf32, #tpu.memory_space<vmem>>, %arg12: memref<64x256xbf16, #tpu.memory_space<vmem>>, %arg13: memref<64x128xbf16, #tpu.memory_space<vmem>>, %arg14: memref<1x128xf32, #tpu.memory_space<vmem>>, %arg15: memref<40x128xf32, #tpu.memory_space<vmem>>, %arg16: memref<40x256xf32, #tpu.memory_space<vmem>>, %arg17: memref<40x64xf32, #tpu.memory_space<vmem>>) attributes {dimension_semantics = [], scalar_prefetch = 0 : i64, scratch_operands = 2 : i64, tpu.core_type = #tpu.core_type<tc>} {
    %c0 = arith.constant 0 : index
    %c0_0 = arith.constant 0 : index
    %0 = vector.load %arg0[%c0, %c0_0] : memref<40x64xf32, #tpu.memory_space<vmem>>, vector<40x64xf32>
    %1 = tpu.iota {dimensions = array<i32: 1>} : vector<2x40xi32>
    %2 = tpu.iota {dimensions = array<i32: 0>} : vector<2x40xi32>
    %c1_i32 = arith.constant 1 : i32
    %3 = vector.broadcast %c1_i32 : i32 to vector<2x40xi32>
    %4 = arith.andi %1, %3 : vector<2x40xi32>
    %5 = arith.cmpi eq, %4, %2 : vector<2x40xi32>
    %cst = arith.constant 1.000000e+00 : f32
    %cst_1 = arith.constant 0.000000e+00 : f32
    %6 = vector.broadcast %cst : f32 to vector<2x40xf32>
    %7 = vector.broadcast %cst_1 : f32 to vector<2x40xf32>
    %8 = arith.select %5, %6, %7 : vector<2x40xi1>, vector<2x40xf32>
    %cst_2 = arith.constant dense<0.000000e+00> : vector<2x64xf32>
    %9 = tpu.matmul %8, %0, %cst_2 {dimension_numbers = #tpu.dot_dimension_numbers<[1], [0], [0], [1], [0, 0, 1, 1], [], []>} : vector<2x40xf32>, vector<40x64xf32>, vector<2x64xf32> -> vector<2x64xf32>
    %cst_3 = arith.constant 5.000000e-02 : f32
    %10 = vector.broadcast %cst_3 : f32 to vector<2x64xf32>
    %11 = arith.mulf %9, %10 : vector<2x64xf32>
    %c0_4 = arith.constant 0 : index
    %c0_5 = arith.constant 0 : index
    %12 = vector.load %arg1[%c0_4, %c0_5] : memref<64x4xf32, #tpu.memory_space<vmem>>, vector<64x4xf32>
    %cst_6 = arith.constant dense<0.000000e+00> : vector<2x4xf32>
    %13 = tpu.matmul %11, %12, %cst_6 {dimension_numbers = #tpu.dot_dimension_numbers<[1], [0], [0], [1], [0, 0, 1, 1], [], []>} : vector<2x64xf32>, vector<64x4xf32>, vector<2x4xf32> -> vector<2x4xf32>
    %c0_7 = arith.constant 0 : index
    %c0_8 = arith.constant 0 : index
    %14 = vector.load %arg2[%c0_7, %c0_8] : memref<1x4xf32, #tpu.memory_space<vmem>>, vector<1x4xf32>
    %15 = vector.broadcast %14 : vector<1x4xf32> to vector<2x4xf32>
    %16 = arith.addf %13, %15 : vector<2x4xf32>
    %cst_9 = arith.constant 0.000000e+00 : f32
    %17 = vector.broadcast %cst_9 : f32 to vector<2x4xf32>
    %18 = arith.maximumf %16, %17 : vector<2x4xf32>
    %c0_10 = arith.constant 0 : index
    %c0_11 = arith.constant 0 : index
    %19 = vector.load %arg3[%c0_10, %c0_11] : memref<4x64xf32, #tpu.memory_space<vmem>>, vector<4x64xf32>
    %cst_12 = arith.constant dense<0.000000e+00> : vector<2x64xf32>
    %20 = tpu.matmul %18, %19, %cst_12 {dimension_numbers = #tpu.dot_dimension_numbers<[1], [0], [0], [1], [0, 0, 1, 1], [], []>} : vector<2x4xf32>, vector<4x64xf32>, vector<2x64xf32> -> vector<2x64xf32>
    %c0_13 = arith.constant 0 : index
    %c0_14 = arith.constant 0 : index
    %21 = vector.load %arg4[%c0_13, %c0_14] : memref<1x64xf32, #tpu.memory_space<vmem>>, vector<1x64xf32>
    %22 = vector.broadcast %21 : vector<1x64xf32> to vector<2x64xf32>
    %23 = arith.addf %20, %22 : vector<2x64xf32>
    %24 = arith.negf %23 : vector<2x64xf32>
    %25 = math.exp %24 : vector<2x64xf32>
    %cst_15 = arith.constant 1.000000e+00 : f32
    %26 = vector.broadcast %cst_15 : f32 to vector<2x64xf32>
    %27 = arith.addf %26, %25 : vector<2x64xf32>
    %28 = arith.divf %26, %27 : vector<2x64xf32>
    %29 = tpu.iota {dimensions = array<i32: 0>} : vector<40x2xi32>
    %30 = tpu.iota {dimensions = array<i32: 1>} : vector<40x2xi32>
    %c1_i32_16 = arith.constant 1 : i32
    %31 = vector.broadcast %c1_i32_16 : i32 to vector<40x2xi32>
    %32 = arith.andi %29, %31 : vector<40x2xi32>
    %33 = arith.cmpi eq, %32, %30 : vector<40x2xi32>
    %cst_17 = arith.constant 1.000000e+00 : f32
    %cst_18 = arith.constant 0.000000e+00 : f32
    %34 = vector.broadcast %cst_17 : f32 to vector<40x2xf32>
    %35 = vector.broadcast %cst_18 : f32 to vector<40x2xf32>
    %36 = arith.select %33, %34, %35 : vector<40x2xi1>, vector<40x2xf32>
    %cst_19 = arith.constant dense<0.000000e+00> : vector<40x64xf32>
    %37 = tpu.matmul %36, %28, %cst_19 {dimension_numbers = #tpu.dot_dimension_numbers<[1], [0], [0], [1], [0, 0, 1, 1], [], []>} : vector<40x2xf32>, vector<2x64xf32>, vector<40x64xf32> -> vector<40x64xf32>
    %38 = arith.mulf %0, %37 : vector<40x64xf32>
    %c0_20 = arith.constant 0 : index
    %c0_21 = arith.constant 0 : index
    %39 = vector.load %arg5[%c0_20, %c0_21] : memref<64x1xf32, #tpu.memory_space<vmem>>, vector<64x1xf32>
    %cst_22 = arith.constant dense<0.000000e+00> : vector<40x1xf32>
    %40 = tpu.matmul %38, %39, %cst_22 {dimension_numbers = #tpu.dot_dimension_numbers<[1], [0], [0], [1], [0, 0, 1, 1], [], []>} : vector<40x64xf32>, vector<64x1xf32>, vector<40x1xf32> -> vector<40x1xf32>
    %c0_23 = arith.constant 0 : index
    %c0_24 = arith.constant 0 : index
    %41 = vector.load %arg6[%c0_23, %c0_24] : memref<1x1xf32, #tpu.memory_space<vmem>>, vector<1x1xf32>
    %42 = vector.broadcast %41 : vector<1x1xf32> to vector<40x1xf32>
    %43 = arith.addf %40, %42 : vector<40x1xf32>
    %44 = arith.negf %43 : vector<40x1xf32>
    %45 = math.exp %44 : vector<40x1xf32>
    %cst_25 = arith.constant 1.000000e+00 : f32
    %46 = vector.broadcast %cst_25 : f32 to vector<40x1xf32>
    %47 = arith.addf %46, %45 : vector<40x1xf32>
    %48 = arith.divf %46, %47 : vector<40x1xf32>
    %49 = vector.broadcast %48 : vector<40x1xf32> to vector<40x64xf32>
    %50 = arith.mulf %38, %49 : vector<40x64xf32>
    %51 = tpu.iota {dimensions = array<i32: 1>} : vector<2x256xi32>
    %c64_i32 = arith.constant 64 : i32
    %52 = vector.broadcast %c64_i32 : i32 to vector<2x256xi32>
    %53 = arith.cmpi sge, %51, %52 : vector<2x256xi32>
    %c96_i32 = arith.constant 96 : i32
    %54 = vector.broadcast %c96_i32 : i32 to vector<2x256xi32>
    %55 = arith.cmpi slt, %51, %54 : vector<2x256xi32>
    %56 = arith.andi %53, %55 : vector<2x256xi1>
    %c192_i32 = arith.constant 192 : i32
    %57 = vector.broadcast %c192_i32 : i32 to vector<2x256xi32>
    %58 = arith.cmpi sge, %51, %57 : vector<2x256xi32>
    %c224_i32 = arith.constant 224 : i32
    %59 = vector.broadcast %c224_i32 : i32 to vector<2x256xi32>
    %60 = arith.cmpi slt, %51, %59 : vector<2x256xi32>
    %61 = arith.andi %58, %60 : vector<2x256xi1>
    %62 = arith.ori %56, %61 : vector<2x256xi1>
    %63 = arith.truncf %50 : vector<40x64xf32> to vector<40x64xbf16>
    %c0_26 = arith.constant 0 : index
    %c0_27 = arith.constant 0 : index
    %64 = vector.load %arg7[%c0_26, %c0_27] : memref<64x256xbf16, #tpu.memory_space<vmem>>, vector<64x256xbf16>
    %cst_28 = arith.constant dense<0.000000e+00> : vector<40x256xf32>
    %65 = tpu.matmul %63, %64, %cst_28 {dimension_numbers = #tpu.dot_dimension_numbers<[1], [0], [0], [1], [0, 0, 1, 1], [], []>} : vector<40x64xbf16>, vector<64x256xbf16>, vector<40x256xf32> -> vector<40x256xf32>
    %c0_29 = arith.constant 0 : index
    %c0_30 = arith.constant 0 : index
    %66 = vector.load %arg8[%c0_29, %c0_30] : memref<1x256xf32, #tpu.memory_space<vmem>>, vector<1x256xf32>
    %67 = vector.broadcast %66 : vector<1x256xf32> to vector<40x256xf32>
    %68 = arith.addf %65, %67 : vector<40x256xf32>
    %c0_31 = arith.constant 0 : index
    %c0_32 = arith.constant 0 : index
    %69 = vector.load %arg16[%c0_31, %c0_32] : memref<40x256xf32, #tpu.memory_space<vmem>>, vector<40x256xf32>
    tpu.vector_store %arg16[%c0_31, %c0_32], %68 {strides = array<i32>} : memref<40x256xf32, #tpu.memory_space<vmem>>, vector<40x256xf32>,
    %c0_33 = arith.constant 0 : index
    %c0_34 = arith.constant 0 : index
    %70 = vector.load %arg9[%c0_33, %c0_34] : memref<64x256xbf16, #tpu.memory_space<vmem>>, vector<64x256xbf16>
    %cst_35 = arith.constant 0.000000e+00 : f32
    %71 = vector.broadcast %cst_35 : f32 to vector<2x64xf32>
    %cst_36 = arith.constant 0.000000e+00 : f32
    %72 = vector.broadcast %cst_36 : f32 to vector<2x32xf32>
    %cst_37 = arith.constant 0.000000e+00 : f32
    %73 = vector.broadcast %cst_37 : f32 to vector<2x32xf32>
    %c0_38 = arith.constant 0 : index
    %c0_39 = arith.constant 0 : index
    %74 = vector.load %arg16[%c0_38, %c0_39] : memref<40x256xf32, #tpu.memory_space<vmem>>, vector<8x128xf32>
    %c32 = arith.constant 32 : index
    %c128 = arith.constant 128 : index
    %75 = vector.load %arg16[%c32, %c128] : memref<40x256xf32, #tpu.memory_space<vmem>>, vector<8x128xf32>
    %76 = vector.extract_strided_slice %74 {offsets = [0, 0], sizes = [2, 128], strides = [1, 1]} : vector<8x128xf32> to vector<2x128xf32>
    %77 = vector.extract_strided_slice %75 {offsets = [6, 0], sizes = [2, 128], strides = [1, 1]} : vector<8x128xf32> to vector<2x128xf32>
    %78 = arith.truncf %71 : vector<2x64xf32> to vector<2x64xbf16>
    %cst_40 = arith.constant dense<0.000000e+00> : vector<2x256xf32>
    %79 = tpu.matmul %78, %70, %cst_40 {dimension_numbers = #tpu.dot_dimension_numbers<[1], [0], [0], [1], [0, 0, 1, 1], [], []>} : vector<2x64xbf16>, vector<64x256xbf16>, vector<2x256xf32> -> vector<2x256xf32>
    %80 = tpu.concatenate %76, %77 in 1 : vector<2x128xf32>, vector<2x128xf32> -> vector<2x256xf32>
    %81 = arith.addf %79, %80 : vector<2x256xf32>
    %82 = arith.negf %81 : vector<2x256xf32>
    %83 = math.exp %82 : vector<2x256xf32>
    %cst_41 = arith.constant 1.000000e+00 : f32
    %84 = vector.broadcast %cst_41 : f32 to vector<2x256xf32>
    %85 = arith.addf %84, %83 : vector<2x256xf32>
    %86 = arith.divf %84, %85 : vector<2x256xf32>
    %cst_42 = arith.constant 2.000000e+00 : f32
    %87 = vector.broadcast %cst_42 : f32 to vector<2x256xf32>
    %88 = arith.mulf %87, %86 : vector<2x256xf32>
    %cst_43 = arith.constant 1.000000e+00 : f32
    %89 = vector.broadcast %cst_43 : f32 to vector<2x256xf32>
    %90 = arith.subf %88, %89 : vector<2x256xf32>
    %91 = arith.select %62, %90, %86 : vector<2x256xi1>, vector<2x256xf32>
    %92 = vector.extract_strided_slice %91 {offsets = [0, 0], sizes = [2, 32], strides = [1, 1]} : vector<2x256xf32> to vector<2x32xf32>
    %93 = vector.extract_strided_slice %91 {offsets = [0, 32], sizes = [2, 32], strides = [1, 1]} : vector<2x256xf32> to vector<2x32xf32>
    %94 = vector.extract_strided_slice %91 {offsets = [0, 64], sizes = [2, 32], strides = [1, 1]} : vector<2x256xf32> to vector<2x32xf32>
    %95 = vector.extract_strided_slice %91 {offsets = [0, 96], sizes = [2, 32], strides = [1, 1]} : vector<2x256xf32> to vector<2x32xf32>
    %96 = vector.extract_strided_slice %91 {offsets = [0, 128], sizes = [2, 32], strides = [1, 1]} : vector<2x256xf32> to vector<2x32xf32>
    %97 = vector.extract_strided_slice %91 {offsets = [0, 160], sizes = [2, 32], strides = [1, 1]} : vector<2x256xf32> to vector<2x32xf32>
    %98 = vector.extract_strided_slice %91 {offsets = [0, 192], sizes = [2, 32], strides = [1, 1]} : vector<2x256xf32> to vector<2x32xf32>
    %99 = vector.extract_strided_slice %91 {offsets = [0, 224], sizes = [2, 32], strides = [1, 1]} : vector<2x256xf32> to vector<2x32xf32>
    %100 = arith.mulf %93, %72 : vector<2x32xf32>
    %101 = arith.mulf %92, %94 : vector<2x32xf32>
    %102 = arith.addf %100, %101 : vector<2x32xf32>
    %103 = arith.mulf %97, %73 : vector<2x32xf32>
    %104 = arith.mulf %96, %98 : vector<2x32xf32>
    %105 = arith.addf %103, %104 : vector<2x32xf32>
    %106 = tpu.concatenate %102, %105 in 1 : vector<2x32xf32>, vector<2x32xf32> -> vector<2x64xf32>
    %107 = math.tanh %106 : vector<2x64xf32>
    %108 = tpu.concatenate %95, %99 in 1 : vector<2x32xf32>, vector<2x32xf32> -> vector<2x64xf32>
    %109 = arith.mulf %108, %107 : vector<2x64xf32>
    %110 = vector.extract_strided_slice %109 {offsets = [0, 0], sizes = [2, 32], strides = [1, 1]} : vector<2x64xf32> to vector<2x32xf32>
    %111 = vector.extract_strided_slice %109 {offsets = [0, 32], sizes = [2, 32], strides = [1, 1]} : vector<2x64xf32> to vector<2x32xf32>
    %112 = vector.extract_strided_slice %74 {offsets = [2, 0], sizes = [2, 128], strides = [1, 1]} : vector<8x128xf32> to vector<2x128xf32>
    %113 = vector.extract_strided_slice %75 {offsets = [4, 0], sizes = [2, 128], strides = [1, 1]} : vector<8x128xf32> to vector<2x128xf32>
    %114 = arith.truncf %109 : vector<2x64xf32> to vector<2x64xbf16>
    %cst_44 = arith.constant dense<0.000000e+00> : vector<2x256xf32>
    %115 = tpu.matmul %114, %70, %cst_44 {dimension_numbers = #tpu.dot_dimension_numbers<[1], [0], [0], [1], [0, 0, 1, 1], [], []>} : vector<2x64xbf16>, vector<64x256xbf16>, vector<2x256xf32> -> vector<2x256xf32>
    %116 = tpu.concatenate %112, %113 in 1 : vector<2x128xf32>, vector<2x128xf32> -> vector<2x256xf32>
    %117 = arith.addf %115, %116 : vector<2x256xf32>
    %118 = arith.negf %117 : vector<2x256xf32>
    %119 = math.exp %118 : vector<2x256xf32>
    %cst_45 = arith.constant 1.000000e+00 : f32
    %120 = vector.broadcast %cst_45 : f32 to vector<2x256xf32>
    %121 = arith.addf %120, %119 : vector<2x256xf32>
    %122 = arith.divf %120, %121 : vector<2x256xf32>
    %cst_46 = arith.constant 2.000000e+00 : f32
    %123 = vector.broadcast %cst_46 : f32 to vector<2x256xf32>
    %124 = arith.mulf %123, %122 : vector<2x256xf32>
    %cst_47 = arith.constant 1.000000e+00 : f32
    %125 = vector.broadcast %cst_47 : f32 to vector<2x256xf32>
    %126 = arith.subf %124, %125 : vector<2x256xf32>
    %127 = arith.select %62, %126, %122 : vector<2x256xi1>, vector<2x256xf32>
    %128 = vector.extract_strided_slice %127 {offsets = [0, 0], sizes = [2, 32], strides = [1, 1]} : vector<2x256xf32> to vector<2x32xf32>
    %129 = vector.extract_strided_slice %127 {offsets = [0, 32], sizes = [2, 32], strides = [1, 1]} : vector<2x256xf32> to vector<2x32xf32>
    %130 = vector.extract_strided_slice %127 {offsets = [0, 64], sizes = [2, 32], strides = [1, 1]} : vector<2x256xf32> to vector<2x32xf32>
    %131 = vector.extract_strided_slice %127 {offsets = [0, 96], sizes = [2, 32], strides = [1, 1]} : vector<2x256xf32> to vector<2x32xf32>
    %132 = vector.extract_strided_slice %127 {offsets = [0, 128], sizes = [2, 32], strides = [1, 1]} : vector<2x256xf32> to vector<2x32xf32>
    %133 = vector.extract_strided_slice %127 {offsets = [0, 160], sizes = [2, 32], strides = [1, 1]} : vector<2x256xf32> to vector<2x32xf32>
    %134 = vector.extract_strided_slice %127 {offsets = [0, 192], sizes = [2, 32], strides = [1, 1]} : vector<2x256xf32> to vector<2x32xf32>
    %135 = vector.extract_strided_slice %127 {offsets = [0, 224], sizes = [2, 32], strides = [1, 1]} : vector<2x256xf32> to vector<2x32xf32>
    %136 = arith.mulf %129, %102 : vector<2x32xf32>
    %137 = arith.mulf %128, %130 : vector<2x32xf32>
    %138 = arith.addf %136, %137 : vector<2x32xf32>
    %139 = arith.mulf %133, %105 : vector<2x32xf32>
    %140 = arith.mulf %132, %134 : vector<2x32xf32>
    %141 = arith.addf %139, %140 : vector<2x32xf32>
    %142 = tpu.concatenate %138, %141 in 1 : vector<2x32xf32>, vector<2x32xf32> -> vector<2x64xf32>
    %143 = math.tanh %142 : vector<2x64xf32>
    %144 = tpu.concatenate %131, %135 in 1 : vector<2x32xf32>, vector<2x32xf32> -> vector<2x64xf32>
    %145 = arith.mulf %144, %143 : vector<2x64xf32>
    %146 = vector.extract_strided_slice %145 {offsets = [0, 0], sizes = [2, 32], strides = [1, 1]} : vector<2x64xf32> to vector<2x32xf32>
    %147 = vector.extract_strided_slice %145 {offsets = [0, 32], sizes = [2, 32], strides = [1, 1]} : vector<2x64xf32> to vector<2x32xf32>
    %148 = vector.extract_strided_slice %74 {offsets = [4, 0], sizes = [2, 128], strides = [1, 1]} : vector<8x128xf32> to vector<2x128xf32>
    %149 = vector.extract_strided_slice %75 {offsets = [2, 0], sizes = [2, 128], strides = [1, 1]} : vector<8x128xf32> to vector<2x128xf32>
    %150 = arith.truncf %145 : vector<2x64xf32> to vector<2x64xbf16>
    %cst_48 = arith.constant dense<0.000000e+00> : vector<2x256xf32>
    %151 = tpu.matmul %150, %70, %cst_48 {dimension_numbers = #tpu.dot_dimension_numbers<[1], [0], [0], [1], [0, 0, 1, 1], [], []>} : vector<2x64xbf16>, vector<64x256xbf16>, vector<2x256xf32> -> vector<2x256xf32>
    %152 = tpu.concatenate %148, %149 in 1 : vector<2x128xf32>, vector<2x128xf32> -> vector<2x256xf32>
    %153 = arith.addf %151, %152 : vector<2x256xf32>
    %154 = arith.negf %153 : vector<2x256xf32>
    %155 = math.exp %154 : vector<2x256xf32>
    %cst_49 = arith.constant 1.000000e+00 : f32
    %156 = vector.broadcast %cst_49 : f32 to vector<2x256xf32>
    %157 = arith.addf %156, %155 : vector<2x256xf32>
    %158 = arith.divf %156, %157 : vector<2x256xf32>
    %cst_50 = arith.constant 2.000000e+00 : f32
    %159 = vector.broadcast %cst_50 : f32 to vector<2x256xf32>
    %160 = arith.mulf %159, %158 : vector<2x256xf32>
    %cst_51 = arith.constant 1.000000e+00 : f32
    %161 = vector.broadcast %cst_51 : f32 to vector<2x256xf32>
    %162 = arith.subf %160, %161 : vector<2x256xf32>
    %163 = arith.select %62, %162, %158 : vector<2x256xi1>, vector<2x256xf32>
    %164 = vector.extract_strided_slice %163 {offsets = [0, 0], sizes = [2, 32], strides = [1, 1]} : vector<2x256xf32> to vector<2x32xf32>
    %165 = vector.extract_strided_slice %163 {offsets = [0, 32], sizes = [2, 32], strides = [1, 1]} : vector<2x256xf32> to vector<2x32xf32>
    %166 = vector.extract_strided_slice %163 {offsets = [0, 64], sizes = [2, 32], strides = [1, 1]} : vector<2x256xf32> to vector<2x32xf32>
    %167 = vector.extract_strided_slice %163 {offsets = [0, 96], sizes = [2, 32], strides = [1, 1]} : vector<2x256xf32> to vector<2x32xf32>
    %168 = vector.extract_strided_slice %163 {offsets = [0, 128], sizes = [2, 32], strides = [1, 1]} : vector<2x256xf32> to vector<2x32xf32>
    %169 = vector.extract_strided_slice %163 {offsets = [0, 160], sizes = [2, 32], strides = [1, 1]} : vector<2x256xf32> to vector<2x32xf32>
    %170 = vector.extract_strided_slice %163 {offsets = [0, 192], sizes = [2, 32], strides = [1, 1]} : vector<2x256xf32> to vector<2x32xf32>
    %171 = vector.extract_strided_slice %163 {offsets = [0, 224], sizes = [2, 32], strides = [1, 1]} : vector<2x256xf32> to vector<2x32xf32>
    %172 = arith.mulf %165, %138 : vector<2x32xf32>
    %173 = arith.mulf %164, %166 : vector<2x32xf32>
    %174 = arith.addf %172, %173 : vector<2x32xf32>
    %175 = arith.mulf %169, %141 : vector<2x32xf32>
    %176 = arith.mulf %168, %170 : vector<2x32xf32>
    %177 = arith.addf %175, %176 : vector<2x32xf32>
    %178 = tpu.concatenate %174, %177 in 1 : vector<2x32xf32>, vector<2x32xf32> -> vector<2x64xf32>
    %179 = math.tanh %178 : vector<2x64xf32>
    %180 = tpu.concatenate %167, %171 in 1 : vector<2x32xf32>, vector<2x32xf32> -> vector<2x64xf32>
    %181 = arith.mulf %180, %179 : vector<2x64xf32>
    %182 = vector.extract_strided_slice %181 {offsets = [0, 0], sizes = [2, 32], strides = [1, 1]} : vector<2x64xf32> to vector<2x32xf32>
    %183 = vector.extract_strided_slice %181 {offsets = [0, 32], sizes = [2, 32], strides = [1, 1]} : vector<2x64xf32> to vector<2x32xf32>
    %184 = vector.extract_strided_slice %74 {offsets = [6, 0], sizes = [2, 128], strides = [1, 1]} : vector<8x128xf32> to vector<2x128xf32>
    %185 = vector.extract_strided_slice %75 {offsets = [0, 0], sizes = [2, 128], strides = [1, 1]} : vector<8x128xf32> to vector<2x128xf32>
    %186 = arith.truncf %181 : vector<2x64xf32> to vector<2x64xbf16>
    %cst_52 = arith.constant dense<0.000000e+00> : vector<2x256xf32>
    %187 = tpu.matmul %186, %70, %cst_52 {dimension_numbers = #tpu.dot_dimension_numbers<[1], [0], [0], [1], [0, 0, 1, 1], [], []>} : vector<2x64xbf16>, vector<64x256xbf16>, vector<2x256xf32> -> vector<2x256xf32>
    %188 = tpu.concatenate %184, %185 in 1 : vector<2x128xf32>, vector<2x128xf32> -> vector<2x256xf32>
    %189 = arith.addf %187, %188 : vector<2x256xf32>
    %190 = arith.negf %189 : vector<2x256xf32>
    %191 = math.exp %190 : vector<2x256xf32>
    %cst_53 = arith.constant 1.000000e+00 : f32
    %192 = vector.broadcast %cst_53 : f32 to vector<2x256xf32>
    %193 = arith.addf %192, %191 : vector<2x256xf32>
    %194 = arith.divf %192, %193 : vector<2x256xf32>
    %cst_54 = arith.constant 2.000000e+00 : f32
    %195 = vector.broadcast %cst_54 : f32 to vector<2x256xf32>
    %196 = arith.mulf %195, %194 : vector<2x256xf32>
    %cst_55 = arith.constant 1.000000e+00 : f32
    %197 = vector.broadcast %cst_55 : f32 to vector<2x256xf32>
    %198 = arith.subf %196, %197 : vector<2x256xf32>
    %199 = arith.select %62, %198, %194 : vector<2x256xi1>, vector<2x256xf32>
    %200 = vector.extract_strided_slice %199 {offsets = [0, 0], sizes = [2, 32], strides = [1, 1]} : vector<2x256xf32> to vector<2x32xf32>
    %201 = vector.extract_strided_slice %199 {offsets = [0, 32], sizes = [2, 32], strides = [1, 1]} : vector<2x256xf32> to vector<2x32xf32>
    %202 = vector.extract_strided_slice %199 {offsets = [0, 64], sizes = [2, 32], strides = [1, 1]} : vector<2x256xf32> to vector<2x32xf32>
    %203 = vector.extract_strided_slice %199 {offsets = [0, 96], sizes = [2, 32], strides = [1, 1]} : vector<2x256xf32> to vector<2x32xf32>
    %204 = vector.extract_strided_slice %199 {offsets = [0, 128], sizes = [2, 32], strides = [1, 1]} : vector<2x256xf32> to vector<2x32xf32>
    %205 = vector.extract_strided_slice %199 {offsets = [0, 160], sizes = [2, 32], strides = [1, 1]} : vector<2x256xf32> to vector<2x32xf32>
    %206 = vector.extract_strided_slice %199 {offsets = [0, 192], sizes = [2, 32], strides = [1, 1]} : vector<2x256xf32> to vector<2x32xf32>
    %207 = vector.extract_strided_slice %199 {offsets = [0, 224], sizes = [2, 32], strides = [1, 1]} : vector<2x256xf32> to vector<2x32xf32>
    %208 = arith.mulf %201, %174 : vector<2x32xf32>
    %209 = arith.mulf %200, %202 : vector<2x32xf32>
    %210 = arith.addf %208, %209 : vector<2x32xf32>
    %211 = arith.mulf %205, %177 : vector<2x32xf32>
    %212 = arith.mulf %204, %206 : vector<2x32xf32>
    %213 = arith.addf %211, %212 : vector<2x32xf32>
    %214 = tpu.concatenate %210, %213 in 1 : vector<2x32xf32>, vector<2x32xf32> -> vector<2x64xf32>
    %215 = math.tanh %214 : vector<2x64xf32>
    %216 = tpu.concatenate %203, %207 in 1 : vector<2x32xf32>, vector<2x32xf32> -> vector<2x64xf32>
    %217 = arith.mulf %216, %215 : vector<2x64xf32>
    %218 = vector.extract_strided_slice %217 {offsets = [0, 0], sizes = [2, 32], strides = [1, 1]} : vector<2x64xf32> to vector<2x32xf32>
    %219 = vector.extract_strided_slice %217 {offsets = [0, 32], sizes = [2, 32], strides = [1, 1]} : vector<2x64xf32> to vector<2x32xf32>
    %220 = tpu.concatenate %110, %146, %182, %218 in 0 : vector<2x32xf32>, vector<2x32xf32>, vector<2x32xf32>, vector<2x32xf32> -> vector<8x32xf32>
    %c0_56 = arith.constant 0 : index
    %c0_57 = arith.constant 0 : index
    %221 = vector.load %arg17[%c0_56, %c0_57] : memref<40x64xf32, #tpu.memory_space<vmem>>, vector<8x32xf32>
    tpu.vector_store %arg17[%c0_56, %c0_57], %220 {strides = array<i32>} : memref<40x64xf32, #tpu.memory_space<vmem>>, vector<8x32xf32>,
    %222 = tpu.concatenate %219, %183, %147, %111 in 0 : vector<2x32xf32>, vector<2x32xf32>, vector<2x32xf32>, vector<2x32xf32> -> vector<8x32xf32>
    %c32_58 = arith.constant 32 : index
    %c32_59 = arith.constant 32 : index
    %223 = vector.load %arg17[%c32_58, %c32_59] : memref<40x64xf32, #tpu.memory_space<vmem>>, vector<8x32xf32>
    tpu.vector_store %arg17[%c32_58, %c32_59], %222 {strides = array<i32>} : memref<40x64xf32, #tpu.memory_space<vmem>>, vector<8x32xf32>,
    %c8 = arith.constant 8 : index
    %c0_60 = arith.constant 0 : index
    %224 = vector.load %arg16[%c8, %c0_60] : memref<40x256xf32, #tpu.memory_space<vmem>>, vector<8x128xf32>
    %c24 = arith.constant 24 : index
    %c128_61 = arith.constant 128 : index
    %225 = vector.load %arg16[%c24, %c128_61] : memref<40x256xf32, #tpu.memory_space<vmem>>, vector<8x128xf32>
    %226 = vector.extract_strided_slice %224 {offsets = [0, 0], sizes = [2, 128], strides = [1, 1]} : vector<8x128xf32> to vector<2x128xf32>
    %227 = vector.extract_strided_slice %225 {offsets = [6, 0], sizes = [2, 128], strides = [1, 1]} : vector<8x128xf32> to vector<2x128xf32>
    %228 = arith.truncf %217 : vector<2x64xf32> to vector<2x64xbf16>
    %cst_62 = arith.constant dense<0.000000e+00> : vector<2x256xf32>
    %229 = tpu.matmul %228, %70, %cst_62 {dimension_numbers = #tpu.dot_dimension_numbers<[1], [0], [0], [1], [0, 0, 1, 1], [], []>} : vector<2x64xbf16>, vector<64x256xbf16>, vector<2x256xf32> -> vector<2x256xf32>
    %230 = tpu.concatenate %226, %227 in 1 : vector<2x128xf32>, vector<2x128xf32> -> vector<2x256xf32>
    %231 = arith.addf %229, %230 : vector<2x256xf32>
    %232 = arith.negf %231 : vector<2x256xf32>
    %233 = math.exp %232 : vector<2x256xf32>
    %cst_63 = arith.constant 1.000000e+00 : f32
    %234 = vector.broadcast %cst_63 : f32 to vector<2x256xf32>
    %235 = arith.addf %234, %233 : vector<2x256xf32>
    %236 = arith.divf %234, %235 : vector<2x256xf32>
    %cst_64 = arith.constant 2.000000e+00 : f32
    %237 = vector.broadcast %cst_64 : f32 to vector<2x256xf32>
    %238 = arith.mulf %237, %236 : vector<2x256xf32>
    %cst_65 = arith.constant 1.000000e+00 : f32
    %239 = vector.broadcast %cst_65 : f32 to vector<2x256xf32>
    %240 = arith.subf %238, %239 : vector<2x256xf32>
    %241 = arith.select %62, %240, %236 : vector<2x256xi1>, vector<2x256xf32>
    %242 = vector.extract_strided_slice %241 {offsets = [0, 0], sizes = [2, 32], strides = [1, 1]} : vector<2x256xf32> to vector<2x32xf32>
    %243 = vector.extract_strided_slice %241 {offsets = [0, 32], sizes = [2, 32], strides = [1, 1]} : vector<2x256xf32> to vector<2x32xf32>
    %244 = vector.extract_strided_slice %241 {offsets = [0, 64], sizes = [2, 32], strides = [1, 1]} : vector<2x256xf32> to vector<2x32xf32>
    %245 = vector.extract_strided_slice %241 {offsets = [0, 96], sizes = [2, 32], strides = [1, 1]} : vector<2x256xf32> to vector<2x32xf32>
    %246 = vector.extract_strided_slice %241 {offsets = [0, 128], sizes = [2, 32], strides = [1, 1]} : vector<2x256xf32> to vector<2x32xf32>
    %247 = vector.extract_strided_slice %241 {offsets = [0, 160], sizes = [2, 32], strides = [1, 1]} : vector<2x256xf32> to vector<2x32xf32>
    %248 = vector.extract_strided_slice %241 {offsets = [0, 192], sizes = [2, 32], strides = [1, 1]} : vector<2x256xf32> to vector<2x32xf32>
    %249 = vector.extract_strided_slice %241 {offsets = [0, 224], sizes = [2, 32], strides = [1, 1]} : vector<2x256xf32> to vector<2x32xf32>
    %250 = arith.mulf %243, %210 : vector<2x32xf32>
    %251 = arith.mulf %242, %244 : vector<2x32xf32>
    %252 = arith.addf %250, %251 : vector<2x32xf32>
    %253 = arith.mulf %247, %213 : vector<2x32xf32>
    %254 = arith.mulf %246, %248 : vector<2x32xf32>
    %255 = arith.addf %253, %254 : vector<2x32xf32>
    %256 = tpu.concatenate %252, %255 in 1 : vector<2x32xf32>, vector<2x32xf32> -> vector<2x64xf32>
    %257 = math.tanh %256 : vector<2x64xf32>
    %258 = tpu.concatenate %245, %249 in 1 : vector<2x32xf32>, vector<2x32xf32> -> vector<2x64xf32>
    %259 = arith.mulf %258, %257 : vector<2x64xf32>
    %260 = vector.extract_strided_slice %259 {offsets = [0, 0], sizes = [2, 32], strides = [1, 1]} : vector<2x64xf32> to vector<2x32xf32>
    %261 = vector.extract_strided_slice %259 {offsets = [0, 32], sizes = [2, 32], strides = [1, 1]} : vector<2x64xf32> to vector<2x32xf32>
    %262 = vector.extract_strided_slice %224 {offsets = [2, 0], sizes = [2, 128], strides = [1, 1]} : vector<8x128xf32> to vector<2x128xf32>
    %263 = vector.extract_strided_slice %225 {offsets = [4, 0], sizes = [2, 128], strides = [1, 1]} : vector<8x128xf32> to vector<2x128xf32>
    %264 = arith.truncf %259 : vector<2x64xf32> to vector<2x64xbf16>
    %cst_66 = arith.constant dense<0.000000e+00> : vector<2x256xf32>
    %265 = tpu.matmul %264, %70, %cst_66 {dimension_numbers = #tpu.dot_dimension_numbers<[1], [0], [0], [1], [0, 0, 1, 1], [], []>} : vector<2x64xbf16>, vector<64x256xbf16>, vector<2x256xf32> -> vector<2x256xf32>
    %266 = tpu.concatenate %262, %263 in 1 : vector<2x128xf32>, vector<2x128xf32> -> vector<2x256xf32>
    %267 = arith.addf %265, %266 : vector<2x256xf32>
    %268 = arith.negf %267 : vector<2x256xf32>
    %269 = math.exp %268 : vector<2x256xf32>
    %cst_67 = arith.constant 1.000000e+00 : f32
    %270 = vector.broadcast %cst_67 : f32 to vector<2x256xf32>
    %271 = arith.addf %270, %269 : vector<2x256xf32>
    %272 = arith.divf %270, %271 : vector<2x256xf32>
    %cst_68 = arith.constant 2.000000e+00 : f32
    %273 = vector.broadcast %cst_68 : f32 to vector<2x256xf32>
    %274 = arith.mulf %273, %272 : vector<2x256xf32>
    %cst_69 = arith.constant 1.000000e+00 : f32
    %275 = vector.broadcast %cst_69 : f32 to vector<2x256xf32>
    %276 = arith.subf %274, %275 : vector<2x256xf32>
    %277 = arith.select %62, %276, %272 : vector<2x256xi1>, vector<2x256xf32>
    %278 = vector.extract_strided_slice %277 {offsets = [0, 0], sizes = [2, 32], strides = [1, 1]} : vector<2x256xf32> to vector<2x32xf32>
    %279 = vector.extract_strided_slice %277 {offsets = [0, 32], sizes = [2, 32], strides = [1, 1]} : vector<2x256xf32> to vector<2x32xf32>
    %280 = vector.extract_strided_slice %277 {offsets = [0, 64], sizes = [2, 32], strides = [1, 1]} : vector<2x256xf32> to vector<2x32xf32>
    %281 = vector.extract_strided_slice %277 {offsets = [0, 96], sizes = [2, 32], strides = [1, 1]} : vector<2x256xf32> to vector<2x32xf32>
    %282 = vector.extract_strided_slice %277 {offsets = [0, 128], sizes = [2, 32], strides = [1, 1]} : vector<2x256xf32> to vector<2x32xf32>
    %283 = vector.extract_strided_slice %277 {offsets = [0, 160], sizes = [2, 32], strides = [1, 1]} : vector<2x256xf32> to vector<2x32xf32>
    %284 = vector.extract_strided_slice %277 {offsets = [0, 192], sizes = [2, 32], strides = [1, 1]} : vector<2x256xf32> to vector<2x32xf32>
    %285 = vector.extract_strided_slice %277 {offsets = [0, 224], sizes = [2, 32], strides = [1, 1]} : vector<2x256xf32> to vector<2x32xf32>
    %286 = arith.mulf %279, %252 : vector<2x32xf32>
    %287 = arith.mulf %278, %280 : vector<2x32xf32>
    %288 = arith.addf %286, %287 : vector<2x32xf32>
    %289 = arith.mulf %283, %255 : vector<2x32xf32>
    %290 = arith.mulf %282, %284 : vector<2x32xf32>
    %291 = arith.addf %289, %290 : vector<2x32xf32>
    %292 = tpu.concatenate %288, %291 in 1 : vector<2x32xf32>, vector<2x32xf32> -> vector<2x64xf32>
    %293 = math.tanh %292 : vector<2x64xf32>
    %294 = tpu.concatenate %281, %285 in 1 : vector<2x32xf32>, vector<2x32xf32> -> vector<2x64xf32>
    %295 = arith.mulf %294, %293 : vector<2x64xf32>
    %296 = vector.extract_strided_slice %295 {offsets = [0, 0], sizes = [2, 32], strides = [1, 1]} : vector<2x64xf32> to vector<2x32xf32>
    %297 = vector.extract_strided_slice %295 {offsets = [0, 32], sizes = [2, 32], strides = [1, 1]} : vector<2x64xf32> to vector<2x32xf32>
    %298 = vector.extract_strided_slice %224 {offsets = [4, 0], sizes = [2, 128], strides = [1, 1]} : vector<8x128xf32> to vector<2x128xf32>
    %299 = vector.extract_strided_slice %225 {offsets = [2, 0], sizes = [2, 128], strides = [1, 1]} : vector<8x128xf32> to vector<2x128xf32>
    %300 = arith.truncf %295 : vector<2x64xf32> to vector<2x64xbf16>
    %cst_70 = arith.constant dense<0.000000e+00> : vector<2x256xf32>
    %301 = tpu.matmul %300, %70, %cst_70 {dimension_numbers = #tpu.dot_dimension_numbers<[1], [0], [0], [1], [0, 0, 1, 1], [], []>} : vector<2x64xbf16>, vector<64x256xbf16>, vector<2x256xf32> -> vector<2x256xf32>
    %302 = tpu.concatenate %298, %299 in 1 : vector<2x128xf32>, vector<2x128xf32> -> vector<2x256xf32>
    %303 = arith.addf %301, %302 : vector<2x256xf32>
    %304 = arith.negf %303 : vector<2x256xf32>
    %305 = math.exp %304 : vector<2x256xf32>
    %cst_71 = arith.constant 1.000000e+00 : f32
    %306 = vector.broadcast %cst_71 : f32 to vector<2x256xf32>
    %307 = arith.addf %306, %305 : vector<2x256xf32>
    %308 = arith.divf %306, %307 : vector<2x256xf32>
    %cst_72 = arith.constant 2.000000e+00 : f32
    %309 = vector.broadcast %cst_72 : f32 to vector<2x256xf32>
    %310 = arith.mulf %309, %308 : vector<2x256xf32>
    %cst_73 = arith.constant 1.000000e+00 : f32
    %311 = vector.broadcast %cst_73 : f32 to vector<2x256xf32>
    %312 = arith.subf %310, %311 : vector<2x256xf32>
    %313 = arith.select %62, %312, %308 : vector<2x256xi1>, vector<2x256xf32>
    %314 = vector.extract_strided_slice %313 {offsets = [0, 0], sizes = [2, 32], strides = [1, 1]} : vector<2x256xf32> to vector<2x32xf32>
    %315 = vector.extract_strided_slice %313 {offsets = [0, 32], sizes = [2, 32], strides = [1, 1]} : vector<2x256xf32> to vector<2x32xf32>
    %316 = vector.extract_strided_slice %313 {offsets = [0, 64], sizes = [2, 32], strides = [1, 1]} : vector<2x256xf32> to vector<2x32xf32>
    %317 = vector.extract_strided_slice %313 {offsets = [0, 96], sizes = [2, 32], strides = [1, 1]} : vector<2x256xf32> to vector<2x32xf32>
    %318 = vector.extract_strided_slice %313 {offsets = [0, 128], sizes = [2, 32], strides = [1, 1]} : vector<2x256xf32> to vector<2x32xf32>
    %319 = vector.extract_strided_slice %313 {offsets = [0, 160], sizes = [2, 32], strides = [1, 1]} : vector<2x256xf32> to vector<2x32xf32>
    %320 = vector.extract_strided_slice %313 {offsets = [0, 192], sizes = [2, 32], strides = [1, 1]} : vector<2x256xf32> to vector<2x32xf32>
    %321 = vector.extract_strided_slice %313 {offsets = [0, 224], sizes = [2, 32], strides = [1, 1]} : vector<2x256xf32> to vector<2x32xf32>
    %322 = arith.mulf %315, %288 : vector<2x32xf32>
    %323 = arith.mulf %314, %316 : vector<2x32xf32>
    %324 = arith.addf %322, %323 : vector<2x32xf32>
    %325 = arith.mulf %319, %291 : vector<2x32xf32>
    %326 = arith.mulf %318, %320 : vector<2x32xf32>
    %327 = arith.addf %325, %326 : vector<2x32xf32>
    %328 = tpu.concatenate %324, %327 in 1 : vector<2x32xf32>, vector<2x32xf32> -> vector<2x64xf32>
    %329 = math.tanh %328 : vector<2x64xf32>
    %330 = tpu.concatenate %317, %321 in 1 : vector<2x32xf32>, vector<2x32xf32> -> vector<2x64xf32>
    %331 = arith.mulf %330, %329 : vector<2x64xf32>
    %332 = vector.extract_strided_slice %331 {offsets = [0, 0], sizes = [2, 32], strides = [1, 1]} : vector<2x64xf32> to vector<2x32xf32>
    %333 = vector.extract_strided_slice %331 {offsets = [0, 32], sizes = [2, 32], strides = [1, 1]} : vector<2x64xf32> to vector<2x32xf32>
    %334 = vector.extract_strided_slice %224 {offsets = [6, 0], sizes = [2, 128], strides = [1, 1]} : vector<8x128xf32> to vector<2x128xf32>
    %335 = vector.extract_strided_slice %225 {offsets = [0, 0], sizes = [2, 128], strides = [1, 1]} : vector<8x128xf32> to vector<2x128xf32>
    %336 = arith.truncf %331 : vector<2x64xf32> to vector<2x64xbf16>
    %cst_74 = arith.constant dense<0.000000e+00> : vector<2x256xf32>
    %337 = tpu.matmul %336, %70, %cst_74 {dimension_numbers = #tpu.dot_dimension_numbers<[1], [0], [0], [1], [0, 0, 1, 1], [], []>} : vector<2x64xbf16>, vector<64x256xbf16>, vector<2x256xf32> -> vector<2x256xf32>
    %338 = tpu.concatenate %334, %335 in 1 : vector<2x128xf32>, vector<2x128xf32> -> vector<2x256xf32>
    %339 = arith.addf %337, %338 : vector<2x256xf32>
    %340 = arith.negf %339 : vector<2x256xf32>
    %341 = math.exp %340 : vector<2x256xf32>
    %cst_75 = arith.constant 1.000000e+00 : f32
    %342 = vector.broadcast %cst_75 : f32 to vector<2x256xf32>
    %343 = arith.addf %342, %341 : vector<2x256xf32>
    %344 = arith.divf %342, %343 : vector<2x256xf32>
    %cst_76 = arith.constant 2.000000e+00 : f32
    %345 = vector.broadcast %cst_76 : f32 to vector<2x256xf32>
    %346 = arith.mulf %345, %344 : vector<2x256xf32>
    %cst_77 = arith.constant 1.000000e+00 : f32
    %347 = vector.broadcast %cst_77 : f32 to vector<2x256xf32>
    %348 = arith.subf %346, %347 : vector<2x256xf32>
    %349 = arith.select %62, %348, %344 : vector<2x256xi1>, vector<2x256xf32>
    %350 = vector.extract_strided_slice %349 {offsets = [0, 0], sizes = [2, 32], strides = [1, 1]} : vector<2x256xf32> to vector<2x32xf32>
    %351 = vector.extract_strided_slice %349 {offsets = [0, 32], sizes = [2, 32], strides = [1, 1]} : vector<2x256xf32> to vector<2x32xf32>
    %352 = vector.extract_strided_slice %349 {offsets = [0, 64], sizes = [2, 32], strides = [1, 1]} : vector<2x256xf32> to vector<2x32xf32>
    %353 = vector.extract_strided_slice %349 {offsets = [0, 96], sizes = [2, 32], strides = [1, 1]} : vector<2x256xf32> to vector<2x32xf32>
    %354 = vector.extract_strided_slice %349 {offsets = [0, 128], sizes = [2, 32], strides = [1, 1]} : vector<2x256xf32> to vector<2x32xf32>
    %355 = vector.extract_strided_slice %349 {offsets = [0, 160], sizes = [2, 32], strides = [1, 1]} : vector<2x256xf32> to vector<2x32xf32>
    %356 = vector.extract_strided_slice %349 {offsets = [0, 192], sizes = [2, 32], strides = [1, 1]} : vector<2x256xf32> to vector<2x32xf32>
    %357 = vector.extract_strided_slice %349 {offsets = [0, 224], sizes = [2, 32], strides = [1, 1]} : vector<2x256xf32> to vector<2x32xf32>
    %358 = arith.mulf %351, %324 : vector<2x32xf32>
    %359 = arith.mulf %350, %352 : vector<2x32xf32>
    %360 = arith.addf %358, %359 : vector<2x32xf32>
    %361 = arith.mulf %355, %327 : vector<2x32xf32>
    %362 = arith.mulf %354, %356 : vector<2x32xf32>
    %363 = arith.addf %361, %362 : vector<2x32xf32>
    %364 = tpu.concatenate %360, %363 in 1 : vector<2x32xf32>, vector<2x32xf32> -> vector<2x64xf32>
    %365 = math.tanh %364 : vector<2x64xf32>
    %366 = tpu.concatenate %353, %357 in 1 : vector<2x32xf32>, vector<2x32xf32> -> vector<2x64xf32>
    %367 = arith.mulf %366, %365 : vector<2x64xf32>
    %368 = vector.extract_strided_slice %367 {offsets = [0, 0], sizes = [2, 32], strides = [1, 1]} : vector<2x64xf32> to vector<2x32xf32>
    %369 = vector.extract_strided_slice %367 {offsets = [0, 32], sizes = [2, 32], strides = [1, 1]} : vector<2x64xf32> to vector<2x32xf32>
    %370 = tpu.concatenate %260, %296, %332, %368 in 0 : vector<2x32xf32>, vector<2x32xf32>, vector<2x32xf32>, vector<2x32xf32> -> vector<8x32xf32>
    %c8_78 = arith.constant 8 : index
    %c0_79 = arith.constant 0 : index
    %371 = vector.load %arg17[%c8_78, %c0_79] : memref<40x64xf32, #tpu.memory_space<vmem>>, vector<8x32xf32>
    tpu.vector_store %arg17[%c8_78, %c0_79], %370 {strides = array<i32>} : memref<40x64xf32, #tpu.memory_space<vmem>>, vector<8x32xf32>,
    %372 = tpu.concatenate %369, %333, %297, %261 in 0 : vector<2x32xf32>, vector<2x32xf32>, vector<2x32xf32>, vector<2x32xf32> -> vector<8x32xf32>
    %c24_80 = arith.constant 24 : index
    %c32_81 = arith.constant 32 : index
    %373 = vector.load %arg17[%c24_80, %c32_81] : memref<40x64xf32, #tpu.memory_space<vmem>>, vector<8x32xf32>
    tpu.vector_store %arg17[%c24_80, %c32_81], %372 {strides = array<i32>} : memref<40x64xf32, #tpu.memory_space<vmem>>, vector<8x32xf32>,
    %c16 = arith.constant 16 : index
    %c0_82 = arith.constant 0 : index
    %374 = vector.load %arg16[%c16, %c0_82] : memref<40x256xf32, #tpu.memory_space<vmem>>, vector<8x128xf32>
    %c16_83 = arith.constant 16 : index
    %c128_84 = arith.constant 128 : index
    %375 = vector.load %arg16[%c16_83, %c128_84] : memref<40x256xf32, #tpu.memory_space<vmem>>, vector<8x128xf32>
    %376 = vector.extract_strided_slice %374 {offsets = [0, 0], sizes = [2, 128], strides = [1, 1]} : vector<8x128xf32> to vector<2x128xf32>
    %377 = vector.extract_strided_slice %375 {offsets = [6, 0], sizes = [2, 128], strides = [1, 1]} : vector<8x128xf32> to vector<2x128xf32>
    %378 = arith.truncf %367 : vector<2x64xf32> to vector<2x64xbf16>
    %cst_85 = arith.constant dense<0.000000e+00> : vector<2x256xf32>
    %379 = tpu.matmul %378, %70, %cst_85 {dimension_numbers = #tpu.dot_dimension_numbers<[1], [0], [0], [1], [0, 0, 1, 1], [], []>} : vector<2x64xbf16>, vector<64x256xbf16>, vector<2x256xf32> -> vector<2x256xf32>
    %380 = tpu.concatenate %376, %377 in 1 : vector<2x128xf32>, vector<2x128xf32> -> vector<2x256xf32>
    %381 = arith.addf %379, %380 : vector<2x256xf32>
    %382 = arith.negf %381 : vector<2x256xf32>
    %383 = math.exp %382 : vector<2x256xf32>
    %cst_86 = arith.constant 1.000000e+00 : f32
    %384 = vector.broadcast %cst_86 : f32 to vector<2x256xf32>
    %385 = arith.addf %384, %383 : vector<2x256xf32>
    %386 = arith.divf %384, %385 : vector<2x256xf32>
    %cst_87 = arith.constant 2.000000e+00 : f32
    %387 = vector.broadcast %cst_87 : f32 to vector<2x256xf32>
    %388 = arith.mulf %387, %386 : vector<2x256xf32>
    %cst_88 = arith.constant 1.000000e+00 : f32
    %389 = vector.broadcast %cst_88 : f32 to vector<2x256xf32>
    %390 = arith.subf %388, %389 : vector<2x256xf32>
    %391 = arith.select %62, %390, %386 : vector<2x256xi1>, vector<2x256xf32>
    %392 = vector.extract_strided_slice %391 {offsets = [0, 0], sizes = [2, 32], strides = [1, 1]} : vector<2x256xf32> to vector<2x32xf32>
    %393 = vector.extract_strided_slice %391 {offsets = [0, 32], sizes = [2, 32], strides = [1, 1]} : vector<2x256xf32> to vector<2x32xf32>
    %394 = vector.extract_strided_slice %391 {offsets = [0, 64], sizes = [2, 32], strides = [1, 1]} : vector<2x256xf32> to vector<2x32xf32>
    %395 = vector.extract_strided_slice %391 {offsets = [0, 96], sizes = [2, 32], strides = [1, 1]} : vector<2x256xf32> to vector<2x32xf32>
    %396 = vector.extract_strided_slice %391 {offsets = [0, 128], sizes = [2, 32], strides = [1, 1]} : vector<2x256xf32> to vector<2x32xf32>
    %397 = vector.extract_strided_slice %391 {offsets = [0, 160], sizes = [2, 32], strides = [1, 1]} : vector<2x256xf32> to vector<2x32xf32>
    %398 = vector.extract_strided_slice %391 {offsets = [0, 192], sizes = [2, 32], strides = [1, 1]} : vector<2x256xf32> to vector<2x32xf32>
    %399 = vector.extract_strided_slice %391 {offsets = [0, 224], sizes = [2, 32], strides = [1, 1]} : vector<2x256xf32> to vector<2x32xf32>
    %400 = arith.mulf %393, %360 : vector<2x32xf32>
    %401 = arith.mulf %392, %394 : vector<2x32xf32>
    %402 = arith.addf %400, %401 : vector<2x32xf32>
    %403 = arith.mulf %397, %363 : vector<2x32xf32>
    %404 = arith.mulf %396, %398 : vector<2x32xf32>
    %405 = arith.addf %403, %404 : vector<2x32xf32>
    %406 = tpu.concatenate %402, %405 in 1 : vector<2x32xf32>, vector<2x32xf32> -> vector<2x64xf32>
    %407 = math.tanh %406 : vector<2x64xf32>
    %408 = tpu.concatenate %395, %399 in 1 : vector<2x32xf32>, vector<2x32xf32> -> vector<2x64xf32>
    %409 = arith.mulf %408, %407 : vector<2x64xf32>
    %410 = vector.extract_strided_slice %409 {offsets = [0, 0], sizes = [2, 32], strides = [1, 1]} : vector<2x64xf32> to vector<2x32xf32>
    %411 = vector.extract_strided_slice %409 {offsets = [0, 32], sizes = [2, 32], strides = [1, 1]} : vector<2x64xf32> to vector<2x32xf32>
    %412 = vector.extract_strided_slice %374 {offsets = [2, 0], sizes = [2, 128], strides = [1, 1]} : vector<8x128xf32> to vector<2x128xf32>
    %413 = vector.extract_strided_slice %375 {offsets = [4, 0], sizes = [2, 128], strides = [1, 1]} : vector<8x128xf32> to vector<2x128xf32>
    %414 = arith.truncf %409 : vector<2x64xf32> to vector<2x64xbf16>
    %cst_89 = arith.constant dense<0.000000e+00> : vector<2x256xf32>
    %415 = tpu.matmul %414, %70, %cst_89 {dimension_numbers = #tpu.dot_dimension_numbers<[1], [0], [0], [1], [0, 0, 1, 1], [], []>} : vector<2x64xbf16>, vector<64x256xbf16>, vector<2x256xf32> -> vector<2x256xf32>
    %416 = tpu.concatenate %412, %413 in 1 : vector<2x128xf32>, vector<2x128xf32> -> vector<2x256xf32>
    %417 = arith.addf %415, %416 : vector<2x256xf32>
    %418 = arith.negf %417 : vector<2x256xf32>
    %419 = math.exp %418 : vector<2x256xf32>
    %cst_90 = arith.constant 1.000000e+00 : f32
    %420 = vector.broadcast %cst_90 : f32 to vector<2x256xf32>
    %421 = arith.addf %420, %419 : vector<2x256xf32>
    %422 = arith.divf %420, %421 : vector<2x256xf32>
    %cst_91 = arith.constant 2.000000e+00 : f32
    %423 = vector.broadcast %cst_91 : f32 to vector<2x256xf32>
    %424 = arith.mulf %423, %422 : vector<2x256xf32>
    %cst_92 = arith.constant 1.000000e+00 : f32
    %425 = vector.broadcast %cst_92 : f32 to vector<2x256xf32>
    %426 = arith.subf %424, %425 : vector<2x256xf32>
    %427 = arith.select %62, %426, %422 : vector<2x256xi1>, vector<2x256xf32>
    %428 = vector.extract_strided_slice %427 {offsets = [0, 0], sizes = [2, 32], strides = [1, 1]} : vector<2x256xf32> to vector<2x32xf32>
    %429 = vector.extract_strided_slice %427 {offsets = [0, 32], sizes = [2, 32], strides = [1, 1]} : vector<2x256xf32> to vector<2x32xf32>
    %430 = vector.extract_strided_slice %427 {offsets = [0, 64], sizes = [2, 32], strides = [1, 1]} : vector<2x256xf32> to vector<2x32xf32>
    %431 = vector.extract_strided_slice %427 {offsets = [0, 96], sizes = [2, 32], strides = [1, 1]} : vector<2x256xf32> to vector<2x32xf32>
    %432 = vector.extract_strided_slice %427 {offsets = [0, 128], sizes = [2, 32], strides = [1, 1]} : vector<2x256xf32> to vector<2x32xf32>
    %433 = vector.extract_strided_slice %427 {offsets = [0, 160], sizes = [2, 32], strides = [1, 1]} : vector<2x256xf32> to vector<2x32xf32>
    %434 = vector.extract_strided_slice %427 {offsets = [0, 192], sizes = [2, 32], strides = [1, 1]} : vector<2x256xf32> to vector<2x32xf32>
    %435 = vector.extract_strided_slice %427 {offsets = [0, 224], sizes = [2, 32], strides = [1, 1]} : vector<2x256xf32> to vector<2x32xf32>
    %436 = arith.mulf %429, %402 : vector<2x32xf32>
    %437 = arith.mulf %428, %430 : vector<2x32xf32>
    %438 = arith.addf %436, %437 : vector<2x32xf32>
    %439 = arith.mulf %433, %405 : vector<2x32xf32>
    %440 = arith.mulf %432, %434 : vector<2x32xf32>
    %441 = arith.addf %439, %440 : vector<2x32xf32>
    %442 = tpu.concatenate %438, %441 in 1 : vector<2x32xf32>, vector<2x32xf32> -> vector<2x64xf32>
    %443 = math.tanh %442 : vector<2x64xf32>
    %444 = tpu.concatenate %431, %435 in 1 : vector<2x32xf32>, vector<2x32xf32> -> vector<2x64xf32>
    %445 = arith.mulf %444, %443 : vector<2x64xf32>
    %446 = vector.extract_strided_slice %445 {offsets = [0, 0], sizes = [2, 32], strides = [1, 1]} : vector<2x64xf32> to vector<2x32xf32>
    %447 = vector.extract_strided_slice %445 {offsets = [0, 32], sizes = [2, 32], strides = [1, 1]} : vector<2x64xf32> to vector<2x32xf32>
    %448 = vector.extract_strided_slice %374 {offsets = [4, 0], sizes = [2, 128], strides = [1, 1]} : vector<8x128xf32> to vector<2x128xf32>
    %449 = vector.extract_strided_slice %375 {offsets = [2, 0], sizes = [2, 128], strides = [1, 1]} : vector<8x128xf32> to vector<2x128xf32>
    %450 = arith.truncf %445 : vector<2x64xf32> to vector<2x64xbf16>
    %cst_93 = arith.constant dense<0.000000e+00> : vector<2x256xf32>
    %451 = tpu.matmul %450, %70, %cst_93 {dimension_numbers = #tpu.dot_dimension_numbers<[1], [0], [0], [1], [0, 0, 1, 1], [], []>} : vector<2x64xbf16>, vector<64x256xbf16>, vector<2x256xf32> -> vector<2x256xf32>
    %452 = tpu.concatenate %448, %449 in 1 : vector<2x128xf32>, vector<2x128xf32> -> vector<2x256xf32>
    %453 = arith.addf %451, %452 : vector<2x256xf32>
    %454 = arith.negf %453 : vector<2x256xf32>
    %455 = math.exp %454 : vector<2x256xf32>
    %cst_94 = arith.constant 1.000000e+00 : f32
    %456 = vector.broadcast %cst_94 : f32 to vector<2x256xf32>
    %457 = arith.addf %456, %455 : vector<2x256xf32>
    %458 = arith.divf %456, %457 : vector<2x256xf32>
    %cst_95 = arith.constant 2.000000e+00 : f32
    %459 = vector.broadcast %cst_95 : f32 to vector<2x256xf32>
    %460 = arith.mulf %459, %458 : vector<2x256xf32>
    %cst_96 = arith.constant 1.000000e+00 : f32
    %461 = vector.broadcast %cst_96 : f32 to vector<2x256xf32>
    %462 = arith.subf %460, %461 : vector<2x256xf32>
    %463 = arith.select %62, %462, %458 : vector<2x256xi1>, vector<2x256xf32>
    %464 = vector.extract_strided_slice %463 {offsets = [0, 0], sizes = [2, 32], strides = [1, 1]} : vector<2x256xf32> to vector<2x32xf32>
    %465 = vector.extract_strided_slice %463 {offsets = [0, 32], sizes = [2, 32], strides = [1, 1]} : vector<2x256xf32> to vector<2x32xf32>
    %466 = vector.extract_strided_slice %463 {offsets = [0, 64], sizes = [2, 32], strides = [1, 1]} : vector<2x256xf32> to vector<2x32xf32>
    %467 = vector.extract_strided_slice %463 {offsets = [0, 96], sizes = [2, 32], strides = [1, 1]} : vector<2x256xf32> to vector<2x32xf32>
    %468 = vector.extract_strided_slice %463 {offsets = [0, 128], sizes = [2, 32], strides = [1, 1]} : vector<2x256xf32> to vector<2x32xf32>
    %469 = vector.extract_strided_slice %463 {offsets = [0, 160], sizes = [2, 32], strides = [1, 1]} : vector<2x256xf32> to vector<2x32xf32>
    %470 = vector.extract_strided_slice %463 {offsets = [0, 192], sizes = [2, 32], strides = [1, 1]} : vector<2x256xf32> to vector<2x32xf32>
    %471 = vector.extract_strided_slice %463 {offsets = [0, 224], sizes = [2, 32], strides = [1, 1]} : vector<2x256xf32> to vector<2x32xf32>
    %472 = arith.mulf %465, %438 : vector<2x32xf32>
    %473 = arith.mulf %464, %466 : vector<2x32xf32>
    %474 = arith.addf %472, %473 : vector<2x32xf32>
    %475 = arith.mulf %469, %441 : vector<2x32xf32>
    %476 = arith.mulf %468, %470 : vector<2x32xf32>
    %477 = arith.addf %475, %476 : vector<2x32xf32>
    %478 = tpu.concatenate %474, %477 in 1 : vector<2x32xf32>, vector<2x32xf32> -> vector<2x64xf32>
    %479 = math.tanh %478 : vector<2x64xf32>
    %480 = tpu.concatenate %467, %471 in 1 : vector<2x32xf32>, vector<2x32xf32> -> vector<2x64xf32>
    %481 = arith.mulf %480, %479 : vector<2x64xf32>
    %482 = vector.extract_strided_slice %481 {offsets = [0, 0], sizes = [2, 32], strides = [1, 1]} : vector<2x64xf32> to vector<2x32xf32>
    %483 = vector.extract_strided_slice %481 {offsets = [0, 32], sizes = [2, 32], strides = [1, 1]} : vector<2x64xf32> to vector<2x32xf32>
    %484 = vector.extract_strided_slice %374 {offsets = [6, 0], sizes = [2, 128], strides = [1, 1]} : vector<8x128xf32> to vector<2x128xf32>
    %485 = vector.extract_strided_slice %375 {offsets = [0, 0], sizes = [2, 128], strides = [1, 1]} : vector<8x128xf32> to vector<2x128xf32>
    %486 = arith.truncf %481 : vector<2x64xf32> to vector<2x64xbf16>
    %cst_97 = arith.constant dense<0.000000e+00> : vector<2x256xf32>
    %487 = tpu.matmul %486, %70, %cst_97 {dimension_numbers = #tpu.dot_dimension_numbers<[1], [0], [0], [1], [0, 0, 1, 1], [], []>} : vector<2x64xbf16>, vector<64x256xbf16>, vector<2x256xf32> -> vector<2x256xf32>
    %488 = tpu.concatenate %484, %485 in 1 : vector<2x128xf32>, vector<2x128xf32> -> vector<2x256xf32>
    %489 = arith.addf %487, %488 : vector<2x256xf32>
    %490 = arith.negf %489 : vector<2x256xf32>
    %491 = math.exp %490 : vector<2x256xf32>
    %cst_98 = arith.constant 1.000000e+00 : f32
    %492 = vector.broadcast %cst_98 : f32 to vector<2x256xf32>
    %493 = arith.addf %492, %491 : vector<2x256xf32>
    %494 = arith.divf %492, %493 : vector<2x256xf32>
    %cst_99 = arith.constant 2.000000e+00 : f32
    %495 = vector.broadcast %cst_99 : f32 to vector<2x256xf32>
    %496 = arith.mulf %495, %494 : vector<2x256xf32>
    %cst_100 = arith.constant 1.000000e+00 : f32
    %497 = vector.broadcast %cst_100 : f32 to vector<2x256xf32>
    %498 = arith.subf %496, %497 : vector<2x256xf32>
    %499 = arith.select %62, %498, %494 : vector<2x256xi1>, vector<2x256xf32>
    %500 = vector.extract_strided_slice %499 {offsets = [0, 0], sizes = [2, 32], strides = [1, 1]} : vector<2x256xf32> to vector<2x32xf32>
    %501 = vector.extract_strided_slice %499 {offsets = [0, 32], sizes = [2, 32], strides = [1, 1]} : vector<2x256xf32> to vector<2x32xf32>
    %502 = vector.extract_strided_slice %499 {offsets = [0, 64], sizes = [2, 32], strides = [1, 1]} : vector<2x256xf32> to vector<2x32xf32>
    %503 = vector.extract_strided_slice %499 {offsets = [0, 96], sizes = [2, 32], strides = [1, 1]} : vector<2x256xf32> to vector<2x32xf32>
    %504 = vector.extract_strided_slice %499 {offsets = [0, 128], sizes = [2, 32], strides = [1, 1]} : vector<2x256xf32> to vector<2x32xf32>
    %505 = vector.extract_strided_slice %499 {offsets = [0, 160], sizes = [2, 32], strides = [1, 1]} : vector<2x256xf32> to vector<2x32xf32>
    %506 = vector.extract_strided_slice %499 {offsets = [0, 192], sizes = [2, 32], strides = [1, 1]} : vector<2x256xf32> to vector<2x32xf32>
    %507 = vector.extract_strided_slice %499 {offsets = [0, 224], sizes = [2, 32], strides = [1, 1]} : vector<2x256xf32> to vector<2x32xf32>
    %508 = arith.mulf %501, %474 : vector<2x32xf32>
    %509 = arith.mulf %500, %502 : vector<2x32xf32>
    %510 = arith.addf %508, %509 : vector<2x32xf32>
    %511 = arith.mulf %505, %477 : vector<2x32xf32>
    %512 = arith.mulf %504, %506 : vector<2x32xf32>
    %513 = arith.addf %511, %512 : vector<2x32xf32>
    %514 = tpu.concatenate %510, %513 in 1 : vector<2x32xf32>, vector<2x32xf32> -> vector<2x64xf32>
    %515 = math.tanh %514 : vector<2x64xf32>
    %516 = tpu.concatenate %503, %507 in 1 : vector<2x32xf32>, vector<2x32xf32> -> vector<2x64xf32>
    %517 = arith.mulf %516, %515 : vector<2x64xf32>
    %518 = vector.extract_strided_slice %517 {offsets = [0, 0], sizes = [2, 32], strides = [1, 1]} : vector<2x64xf32> to vector<2x32xf32>
    %519 = vector.extract_strided_slice %517 {offsets = [0, 32], sizes = [2, 32], strides = [1, 1]} : vector<2x64xf32> to vector<2x32xf32>
    %520 = tpu.concatenate %410, %446, %482, %518 in 0 : vector<2x32xf32>, vector<2x32xf32>, vector<2x32xf32>, vector<2x32xf32> -> vector<8x32xf32>
    %c16_101 = arith.constant 16 : index
    %c0_102 = arith.constant 0 : index
    %521 = vector.load %arg17[%c16_101, %c0_102] : memref<40x64xf32, #tpu.memory_space<vmem>>, vector<8x32xf32>
    tpu.vector_store %arg17[%c16_101, %c0_102], %520 {strides = array<i32>} : memref<40x64xf32, #tpu.memory_space<vmem>>, vector<8x32xf32>,
    %522 = tpu.concatenate %519, %483, %447, %411 in 0 : vector<2x32xf32>, vector<2x32xf32>, vector<2x32xf32>, vector<2x32xf32> -> vector<8x32xf32>
    %c16_103 = arith.constant 16 : index
    %c32_104 = arith.constant 32 : index
    %523 = vector.load %arg17[%c16_103, %c32_104] : memref<40x64xf32, #tpu.memory_space<vmem>>, vector<8x32xf32>
    tpu.vector_store %arg17[%c16_103, %c32_104], %522 {strides = array<i32>} : memref<40x64xf32, #tpu.memory_space<vmem>>, vector<8x32xf32>,
    %c24_105 = arith.constant 24 : index
    %c0_106 = arith.constant 0 : index
    %524 = vector.load %arg16[%c24_105, %c0_106] : memref<40x256xf32, #tpu.memory_space<vmem>>, vector<8x128xf32>
    %c8_107 = arith.constant 8 : index
    %c128_108 = arith.constant 128 : index
    %525 = vector.load %arg16[%c8_107, %c128_108] : memref<40x256xf32, #tpu.memory_space<vmem>>, vector<8x128xf32>
    %526 = vector.extract_strided_slice %524 {offsets = [0, 0], sizes = [2, 128], strides = [1, 1]} : vector<8x128xf32> to vector<2x128xf32>
    %527 = vector.extract_strided_slice %525 {offsets = [6, 0], sizes = [2, 128], strides = [1, 1]} : vector<8x128xf32> to vector<2x128xf32>
    %528 = arith.truncf %517 : vector<2x64xf32> to vector<2x64xbf16>
    %cst_109 = arith.constant dense<0.000000e+00> : vector<2x256xf32>
    %529 = tpu.matmul %528, %70, %cst_109 {dimension_numbers = #tpu.dot_dimension_numbers<[1], [0], [0], [1], [0, 0, 1, 1], [], []>} : vector<2x64xbf16>, vector<64x256xbf16>, vector<2x256xf32> -> vector<2x256xf32>
    %530 = tpu.concatenate %526, %527 in 1 : vector<2x128xf32>, vector<2x128xf32> -> vector<2x256xf32>
    %531 = arith.addf %529, %530 : vector<2x256xf32>
    %532 = arith.negf %531 : vector<2x256xf32>
    %533 = math.exp %532 : vector<2x256xf32>
    %cst_110 = arith.constant 1.000000e+00 : f32
    %534 = vector.broadcast %cst_110 : f32 to vector<2x256xf32>
    %535 = arith.addf %534, %533 : vector<2x256xf32>
    %536 = arith.divf %534, %535 : vector<2x256xf32>
    %cst_111 = arith.constant 2.000000e+00 : f32
    %537 = vector.broadcast %cst_111 : f32 to vector<2x256xf32>
    %538 = arith.mulf %537, %536 : vector<2x256xf32>
    %cst_112 = arith.constant 1.000000e+00 : f32
    %539 = vector.broadcast %cst_112 : f32 to vector<2x256xf32>
    %540 = arith.subf %538, %539 : vector<2x256xf32>
    %541 = arith.select %62, %540, %536 : vector<2x256xi1>, vector<2x256xf32>
    %542 = vector.extract_strided_slice %541 {offsets = [0, 0], sizes = [2, 32], strides = [1, 1]} : vector<2x256xf32> to vector<2x32xf32>
    %543 = vector.extract_strided_slice %541 {offsets = [0, 32], sizes = [2, 32], strides = [1, 1]} : vector<2x256xf32> to vector<2x32xf32>
    %544 = vector.extract_strided_slice %541 {offsets = [0, 64], sizes = [2, 32], strides = [1, 1]} : vector<2x256xf32> to vector<2x32xf32>
    %545 = vector.extract_strided_slice %541 {offsets = [0, 96], sizes = [2, 32], strides = [1, 1]} : vector<2x256xf32> to vector<2x32xf32>
    %546 = vector.extract_strided_slice %541 {offsets = [0, 128], sizes = [2, 32], strides = [1, 1]} : vector<2x256xf32> to vector<2x32xf32>
    %547 = vector.extract_strided_slice %541 {offsets = [0, 160], sizes = [2, 32], strides = [1, 1]} : vector<2x256xf32> to vector<2x32xf32>
    %548 = vector.extract_strided_slice %541 {offsets = [0, 192], sizes = [2, 32], strides = [1, 1]} : vector<2x256xf32> to vector<2x32xf32>
    %549 = vector.extract_strided_slice %541 {offsets = [0, 224], sizes = [2, 32], strides = [1, 1]} : vector<2x256xf32> to vector<2x32xf32>
    %550 = arith.mulf %543, %510 : vector<2x32xf32>
    %551 = arith.mulf %542, %544 : vector<2x32xf32>
    %552 = arith.addf %550, %551 : vector<2x32xf32>
    %553 = arith.mulf %547, %513 : vector<2x32xf32>
    %554 = arith.mulf %546, %548 : vector<2x32xf32>
    %555 = arith.addf %553, %554 : vector<2x32xf32>
    %556 = tpu.concatenate %552, %555 in 1 : vector<2x32xf32>, vector<2x32xf32> -> vector<2x64xf32>
    %557 = math.tanh %556 : vector<2x64xf32>
    %558 = tpu.concatenate %545, %549 in 1 : vector<2x32xf32>, vector<2x32xf32> -> vector<2x64xf32>
    %559 = arith.mulf %558, %557 : vector<2x64xf32>
    %560 = vector.extract_strided_slice %559 {offsets = [0, 0], sizes = [2, 32], strides = [1, 1]} : vector<2x64xf32> to vector<2x32xf32>
    %561 = vector.extract_strided_slice %559 {offsets = [0, 32], sizes = [2, 32], strides = [1, 1]} : vector<2x64xf32> to vector<2x32xf32>
    %562 = vector.extract_strided_slice %524 {offsets = [2, 0], sizes = [2, 128], strides = [1, 1]} : vector<8x128xf32> to vector<2x128xf32>
    %563 = vector.extract_strided_slice %525 {offsets = [4, 0], sizes = [2, 128], strides = [1, 1]} : vector<8x128xf32> to vector<2x128xf32>
    %564 = arith.truncf %559 : vector<2x64xf32> to vector<2x64xbf16>
    %cst_113 = arith.constant dense<0.000000e+00> : vector<2x256xf32>
    %565 = tpu.matmul %564, %70, %cst_113 {dimension_numbers = #tpu.dot_dimension_numbers<[1], [0], [0], [1], [0, 0, 1, 1], [], []>} : vector<2x64xbf16>, vector<64x256xbf16>, vector<2x256xf32> -> vector<2x256xf32>
    %566 = tpu.concatenate %562, %563 in 1 : vector<2x128xf32>, vector<2x128xf32> -> vector<2x256xf32>
    %567 = arith.addf %565, %566 : vector<2x256xf32>
    %568 = arith.negf %567 : vector<2x256xf32>
    %569 = math.exp %568 : vector<2x256xf32>
    %cst_114 = arith.constant 1.000000e+00 : f32
    %570 = vector.broadcast %cst_114 : f32 to vector<2x256xf32>
    %571 = arith.addf %570, %569 : vector<2x256xf32>
    %572 = arith.divf %570, %571 : vector<2x256xf32>
    %cst_115 = arith.constant 2.000000e+00 : f32
    %573 = vector.broadcast %cst_115 : f32 to vector<2x256xf32>
    %574 = arith.mulf %573, %572 : vector<2x256xf32>
    %cst_116 = arith.constant 1.000000e+00 : f32
    %575 = vector.broadcast %cst_116 : f32 to vector<2x256xf32>
    %576 = arith.subf %574, %575 : vector<2x256xf32>
    %577 = arith.select %62, %576, %572 : vector<2x256xi1>, vector<2x256xf32>
    %578 = vector.extract_strided_slice %577 {offsets = [0, 0], sizes = [2, 32], strides = [1, 1]} : vector<2x256xf32> to vector<2x32xf32>
    %579 = vector.extract_strided_slice %577 {offsets = [0, 32], sizes = [2, 32], strides = [1, 1]} : vector<2x256xf32> to vector<2x32xf32>
    %580 = vector.extract_strided_slice %577 {offsets = [0, 64], sizes = [2, 32], strides = [1, 1]} : vector<2x256xf32> to vector<2x32xf32>
    %581 = vector.extract_strided_slice %577 {offsets = [0, 96], sizes = [2, 32], strides = [1, 1]} : vector<2x256xf32> to vector<2x32xf32>
    %582 = vector.extract_strided_slice %577 {offsets = [0, 128], sizes = [2, 32], strides = [1, 1]} : vector<2x256xf32> to vector<2x32xf32>
    %583 = vector.extract_strided_slice %577 {offsets = [0, 160], sizes = [2, 32], strides = [1, 1]} : vector<2x256xf32> to vector<2x32xf32>
    %584 = vector.extract_strided_slice %577 {offsets = [0, 192], sizes = [2, 32], strides = [1, 1]} : vector<2x256xf32> to vector<2x32xf32>
    %585 = vector.extract_strided_slice %577 {offsets = [0, 224], sizes = [2, 32], strides = [1, 1]} : vector<2x256xf32> to vector<2x32xf32>
    %586 = arith.mulf %579, %552 : vector<2x32xf32>
    %587 = arith.mulf %578, %580 : vector<2x32xf32>
    %588 = arith.addf %586, %587 : vector<2x32xf32>
    %589 = arith.mulf %583, %555 : vector<2x32xf32>
    %590 = arith.mulf %582, %584 : vector<2x32xf32>
    %591 = arith.addf %589, %590 : vector<2x32xf32>
    %592 = tpu.concatenate %588, %591 in 1 : vector<2x32xf32>, vector<2x32xf32> -> vector<2x64xf32>
    %593 = math.tanh %592 : vector<2x64xf32>
    %594 = tpu.concatenate %581, %585 in 1 : vector<2x32xf32>, vector<2x32xf32> -> vector<2x64xf32>
    %595 = arith.mulf %594, %593 : vector<2x64xf32>
    %596 = vector.extract_strided_slice %595 {offsets = [0, 0], sizes = [2, 32], strides = [1, 1]} : vector<2x64xf32> to vector<2x32xf32>
    %597 = vector.extract_strided_slice %595 {offsets = [0, 32], sizes = [2, 32], strides = [1, 1]} : vector<2x64xf32> to vector<2x32xf32>
    %598 = vector.extract_strided_slice %524 {offsets = [4, 0], sizes = [2, 128], strides = [1, 1]} : vector<8x128xf32> to vector<2x128xf32>
    %599 = vector.extract_strided_slice %525 {offsets = [2, 0], sizes = [2, 128], strides = [1, 1]} : vector<8x128xf32> to vector<2x128xf32>
    %600 = arith.truncf %595 : vector<2x64xf32> to vector<2x64xbf16>
    %cst_117 = arith.constant dense<0.000000e+00> : vector<2x256xf32>
    %601 = tpu.matmul %600, %70, %cst_117 {dimension_numbers = #tpu.dot_dimension_numbers<[1], [0], [0], [1], [0, 0, 1, 1], [], []>} : vector<2x64xbf16>, vector<64x256xbf16>, vector<2x256xf32> -> vector<2x256xf32>
    %602 = tpu.concatenate %598, %599 in 1 : vector<2x128xf32>, vector<2x128xf32> -> vector<2x256xf32>
    %603 = arith.addf %601, %602 : vector<2x256xf32>
    %604 = arith.negf %603 : vector<2x256xf32>
    %605 = math.exp %604 : vector<2x256xf32>
    %cst_118 = arith.constant 1.000000e+00 : f32
    %606 = vector.broadcast %cst_118 : f32 to vector<2x256xf32>
    %607 = arith.addf %606, %605 : vector<2x256xf32>
    %608 = arith.divf %606, %607 : vector<2x256xf32>
    %cst_119 = arith.constant 2.000000e+00 : f32
    %609 = vector.broadcast %cst_119 : f32 to vector<2x256xf32>
    %610 = arith.mulf %609, %608 : vector<2x256xf32>
    %cst_120 = arith.constant 1.000000e+00 : f32
    %611 = vector.broadcast %cst_120 : f32 to vector<2x256xf32>
    %612 = arith.subf %610, %611 : vector<2x256xf32>
    %613 = arith.select %62, %612, %608 : vector<2x256xi1>, vector<2x256xf32>
    %614 = vector.extract_strided_slice %613 {offsets = [0, 0], sizes = [2, 32], strides = [1, 1]} : vector<2x256xf32> to vector<2x32xf32>
    %615 = vector.extract_strided_slice %613 {offsets = [0, 32], sizes = [2, 32], strides = [1, 1]} : vector<2x256xf32> to vector<2x32xf32>
    %616 = vector.extract_strided_slice %613 {offsets = [0, 64], sizes = [2, 32], strides = [1, 1]} : vector<2x256xf32> to vector<2x32xf32>
    %617 = vector.extract_strided_slice %613 {offsets = [0, 96], sizes = [2, 32], strides = [1, 1]} : vector<2x256xf32> to vector<2x32xf32>
    %618 = vector.extract_strided_slice %613 {offsets = [0, 128], sizes = [2, 32], strides = [1, 1]} : vector<2x256xf32> to vector<2x32xf32>
    %619 = vector.extract_strided_slice %613 {offsets = [0, 160], sizes = [2, 32], strides = [1, 1]} : vector<2x256xf32> to vector<2x32xf32>
    %620 = vector.extract_strided_slice %613 {offsets = [0, 192], sizes = [2, 32], strides = [1, 1]} : vector<2x256xf32> to vector<2x32xf32>
    %621 = vector.extract_strided_slice %613 {offsets = [0, 224], sizes = [2, 32], strides = [1, 1]} : vector<2x256xf32> to vector<2x32xf32>
    %622 = arith.mulf %615, %588 : vector<2x32xf32>
    %623 = arith.mulf %614, %616 : vector<2x32xf32>
    %624 = arith.addf %622, %623 : vector<2x32xf32>
    %625 = arith.mulf %619, %591 : vector<2x32xf32>
    %626 = arith.mulf %618, %620 : vector<2x32xf32>
    %627 = arith.addf %625, %626 : vector<2x32xf32>
    %628 = tpu.concatenate %624, %627 in 1 : vector<2x32xf32>, vector<2x32xf32> -> vector<2x64xf32>
    %629 = math.tanh %628 : vector<2x64xf32>
    %630 = tpu.concatenate %617, %621 in 1 : vector<2x32xf32>, vector<2x32xf32> -> vector<2x64xf32>
    %631 = arith.mulf %630, %629 : vector<2x64xf32>
    %632 = vector.extract_strided_slice %631 {offsets = [0, 0], sizes = [2, 32], strides = [1, 1]} : vector<2x64xf32> to vector<2x32xf32>
    %633 = vector.extract_strided_slice %631 {offsets = [0, 32], sizes = [2, 32], strides = [1, 1]} : vector<2x64xf32> to vector<2x32xf32>
    %634 = vector.extract_strided_slice %524 {offsets = [6, 0], sizes = [2, 128], strides = [1, 1]} : vector<8x128xf32> to vector<2x128xf32>
    %635 = vector.extract_strided_slice %525 {offsets = [0, 0], sizes = [2, 128], strides = [1, 1]} : vector<8x128xf32> to vector<2x128xf32>
    %636 = arith.truncf %631 : vector<2x64xf32> to vector<2x64xbf16>
    %cst_121 = arith.constant dense<0.000000e+00> : vector<2x256xf32>
    %637 = tpu.matmul %636, %70, %cst_121 {dimension_numbers = #tpu.dot_dimension_numbers<[1], [0], [0], [1], [0, 0, 1, 1], [], []>} : vector<2x64xbf16>, vector<64x256xbf16>, vector<2x256xf32> -> vector<2x256xf32>
    %638 = tpu.concatenate %634, %635 in 1 : vector<2x128xf32>, vector<2x128xf32> -> vector<2x256xf32>
    %639 = arith.addf %637, %638 : vector<2x256xf32>
    %640 = arith.negf %639 : vector<2x256xf32>
    %641 = math.exp %640 : vector<2x256xf32>
    %cst_122 = arith.constant 1.000000e+00 : f32
    %642 = vector.broadcast %cst_122 : f32 to vector<2x256xf32>
    %643 = arith.addf %642, %641 : vector<2x256xf32>
    %644 = arith.divf %642, %643 : vector<2x256xf32>
    %cst_123 = arith.constant 2.000000e+00 : f32
    %645 = vector.broadcast %cst_123 : f32 to vector<2x256xf32>
    %646 = arith.mulf %645, %644 : vector<2x256xf32>
    %cst_124 = arith.constant 1.000000e+00 : f32
    %647 = vector.broadcast %cst_124 : f32 to vector<2x256xf32>
    %648 = arith.subf %646, %647 : vector<2x256xf32>
    %649 = arith.select %62, %648, %644 : vector<2x256xi1>, vector<2x256xf32>
    %650 = vector.extract_strided_slice %649 {offsets = [0, 0], sizes = [2, 32], strides = [1, 1]} : vector<2x256xf32> to vector<2x32xf32>
    %651 = vector.extract_strided_slice %649 {offsets = [0, 32], sizes = [2, 32], strides = [1, 1]} : vector<2x256xf32> to vector<2x32xf32>
    %652 = vector.extract_strided_slice %649 {offsets = [0, 64], sizes = [2, 32], strides = [1, 1]} : vector<2x256xf32> to vector<2x32xf32>
    %653 = vector.extract_strided_slice %649 {offsets = [0, 96], sizes = [2, 32], strides = [1, 1]} : vector<2x256xf32> to vector<2x32xf32>
    %654 = vector.extract_strided_slice %649 {offsets = [0, 128], sizes = [2, 32], strides = [1, 1]} : vector<2x256xf32> to vector<2x32xf32>
    %655 = vector.extract_strided_slice %649 {offsets = [0, 160], sizes = [2, 32], strides = [1, 1]} : vector<2x256xf32> to vector<2x32xf32>
    %656 = vector.extract_strided_slice %649 {offsets = [0, 192], sizes = [2, 32], strides = [1, 1]} : vector<2x256xf32> to vector<2x32xf32>
    %657 = vector.extract_strided_slice %649 {offsets = [0, 224], sizes = [2, 32], strides = [1, 1]} : vector<2x256xf32> to vector<2x32xf32>
    %658 = arith.mulf %651, %624 : vector<2x32xf32>
    %659 = arith.mulf %650, %652 : vector<2x32xf32>
    %660 = arith.addf %658, %659 : vector<2x32xf32>
    %661 = arith.mulf %655, %627 : vector<2x32xf32>
    %662 = arith.mulf %654, %656 : vector<2x32xf32>
    %663 = arith.addf %661, %662 : vector<2x32xf32>
    %664 = tpu.concatenate %660, %663 in 1 : vector<2x32xf32>, vector<2x32xf32> -> vector<2x64xf32>
    %665 = math.tanh %664 : vector<2x64xf32>
    %666 = tpu.concatenate %653, %657 in 1 : vector<2x32xf32>, vector<2x32xf32> -> vector<2x64xf32>
    %667 = arith.mulf %666, %665 : vector<2x64xf32>
    %668 = vector.extract_strided_slice %667 {offsets = [0, 0], sizes = [2, 32], strides = [1, 1]} : vector<2x64xf32> to vector<2x32xf32>
    %669 = vector.extract_strided_slice %667 {offsets = [0, 32], sizes = [2, 32], strides = [1, 1]} : vector<2x64xf32> to vector<2x32xf32>
    %670 = tpu.concatenate %560, %596, %632, %668 in 0 : vector<2x32xf32>, vector<2x32xf32>, vector<2x32xf32>, vector<2x32xf32> -> vector<8x32xf32>
    %c24_125 = arith.constant 24 : index
    %c0_126 = arith.constant 0 : index
    %671 = vector.load %arg17[%c24_125, %c0_126] : memref<40x64xf32, #tpu.memory_space<vmem>>, vector<8x32xf32>
    tpu.vector_store %arg17[%c24_125, %c0_126], %670 {strides = array<i32>} : memref<40x64xf32, #tpu.memory_space<vmem>>, vector<8x32xf32>,
    %672 = tpu.concatenate %669, %633, %597, %561 in 0 : vector<2x32xf32>, vector<2x32xf32>, vector<2x32xf32>, vector<2x32xf32> -> vector<8x32xf32>
    %c8_127 = arith.constant 8 : index
    %c32_128 = arith.constant 32 : index
    %673 = vector.load %arg17[%c8_127, %c32_128] : memref<40x64xf32, #tpu.memory_space<vmem>>, vector<8x32xf32>
    tpu.vector_store %arg17[%c8_127, %c32_128], %672 {strides = array<i32>} : memref<40x64xf32, #tpu.memory_space<vmem>>, vector<8x32xf32>,
    %c32_129 = arith.constant 32 : index
    %c0_130 = arith.constant 0 : index
    %674 = vector.load %arg16[%c32_129, %c0_130] : memref<40x256xf32, #tpu.memory_space<vmem>>, vector<8x128xf32>
    %c0_131 = arith.constant 0 : index
    %c128_132 = arith.constant 128 : index
    %675 = vector.load %arg16[%c0_131, %c128_132] : memref<40x256xf32, #tpu.memory_space<vmem>>, vector<8x128xf32>
    %676 = vector.extract_strided_slice %674 {offsets = [0, 0], sizes = [2, 128], strides = [1, 1]} : vector<8x128xf32> to vector<2x128xf32>
    %677 = vector.extract_strided_slice %675 {offsets = [6, 0], sizes = [2, 128], strides = [1, 1]} : vector<8x128xf32> to vector<2x128xf32>
    %678 = arith.truncf %667 : vector<2x64xf32> to vector<2x64xbf16>
    %cst_133 = arith.constant dense<0.000000e+00> : vector<2x256xf32>
    %679 = tpu.matmul %678, %70, %cst_133 {dimension_numbers = #tpu.dot_dimension_numbers<[1], [0], [0], [1], [0, 0, 1, 1], [], []>} : vector<2x64xbf16>, vector<64x256xbf16>, vector<2x256xf32> -> vector<2x256xf32>
    %680 = tpu.concatenate %676, %677 in 1 : vector<2x128xf32>, vector<2x128xf32> -> vector<2x256xf32>
    %681 = arith.addf %679, %680 : vector<2x256xf32>
    %682 = arith.negf %681 : vector<2x256xf32>
    %683 = math.exp %682 : vector<2x256xf32>
    %cst_134 = arith.constant 1.000000e+00 : f32
    %684 = vector.broadcast %cst_134 : f32 to vector<2x256xf32>
    %685 = arith.addf %684, %683 : vector<2x256xf32>
    %686 = arith.divf %684, %685 : vector<2x256xf32>
    %cst_135 = arith.constant 2.000000e+00 : f32
    %687 = vector.broadcast %cst_135 : f32 to vector<2x256xf32>
    %688 = arith.mulf %687, %686 : vector<2x256xf32>
    %cst_136 = arith.constant 1.000000e+00 : f32
    %689 = vector.broadcast %cst_136 : f32 to vector<2x256xf32>
    %690 = arith.subf %688, %689 : vector<2x256xf32>
    %691 = arith.select %62, %690, %686 : vector<2x256xi1>, vector<2x256xf32>
    %692 = vector.extract_strided_slice %691 {offsets = [0, 0], sizes = [2, 32], strides = [1, 1]} : vector<2x256xf32> to vector<2x32xf32>
    %693 = vector.extract_strided_slice %691 {offsets = [0, 32], sizes = [2, 32], strides = [1, 1]} : vector<2x256xf32> to vector<2x32xf32>
    %694 = vector.extract_strided_slice %691 {offsets = [0, 64], sizes = [2, 32], strides = [1, 1]} : vector<2x256xf32> to vector<2x32xf32>
    %695 = vector.extract_strided_slice %691 {offsets = [0, 96], sizes = [2, 32], strides = [1, 1]} : vector<2x256xf32> to vector<2x32xf32>
    %696 = vector.extract_strided_slice %691 {offsets = [0, 128], sizes = [2, 32], strides = [1, 1]} : vector<2x256xf32> to vector<2x32xf32>
    %697 = vector.extract_strided_slice %691 {offsets = [0, 160], sizes = [2, 32], strides = [1, 1]} : vector<2x256xf32> to vector<2x32xf32>
    %698 = vector.extract_strided_slice %691 {offsets = [0, 192], sizes = [2, 32], strides = [1, 1]} : vector<2x256xf32> to vector<2x32xf32>
    %699 = vector.extract_strided_slice %691 {offsets = [0, 224], sizes = [2, 32], strides = [1, 1]} : vector<2x256xf32> to vector<2x32xf32>
    %700 = arith.mulf %693, %660 : vector<2x32xf32>
    %701 = arith.mulf %692, %694 : vector<2x32xf32>
    %702 = arith.addf %700, %701 : vector<2x32xf32>
    %703 = arith.mulf %697, %663 : vector<2x32xf32>
    %704 = arith.mulf %696, %698 : vector<2x32xf32>
    %705 = arith.addf %703, %704 : vector<2x32xf32>
    %706 = tpu.concatenate %702, %705 in 1 : vector<2x32xf32>, vector<2x32xf32> -> vector<2x64xf32>
    %707 = math.tanh %706 : vector<2x64xf32>
    %708 = tpu.concatenate %695, %699 in 1 : vector<2x32xf32>, vector<2x32xf32> -> vector<2x64xf32>
    %709 = arith.mulf %708, %707 : vector<2x64xf32>
    %710 = vector.extract_strided_slice %709 {offsets = [0, 0], sizes = [2, 32], strides = [1, 1]} : vector<2x64xf32> to vector<2x32xf32>
    %711 = vector.extract_strided_slice %709 {offsets = [0, 32], sizes = [2, 32], strides = [1, 1]} : vector<2x64xf32> to vector<2x32xf32>
    %712 = vector.extract_strided_slice %674 {offsets = [2, 0], sizes = [2, 128], strides = [1, 1]} : vector<8x128xf32> to vector<2x128xf32>
    %713 = vector.extract_strided_slice %675 {offsets = [4, 0], sizes = [2, 128], strides = [1, 1]} : vector<8x128xf32> to vector<2x128xf32>
    %714 = arith.truncf %709 : vector<2x64xf32> to vector<2x64xbf16>
    %cst_137 = arith.constant dense<0.000000e+00> : vector<2x256xf32>
    %715 = tpu.matmul %714, %70, %cst_137 {dimension_numbers = #tpu.dot_dimension_numbers<[1], [0], [0], [1], [0, 0, 1, 1], [], []>} : vector<2x64xbf16>, vector<64x256xbf16>, vector<2x256xf32> -> vector<2x256xf32>
    %716 = tpu.concatenate %712, %713 in 1 : vector<2x128xf32>, vector<2x128xf32> -> vector<2x256xf32>
    %717 = arith.addf %715, %716 : vector<2x256xf32>
    %718 = arith.negf %717 : vector<2x256xf32>
    %719 = math.exp %718 : vector<2x256xf32>
    %cst_138 = arith.constant 1.000000e+00 : f32
    %720 = vector.broadcast %cst_138 : f32 to vector<2x256xf32>
    %721 = arith.addf %720, %719 : vector<2x256xf32>
    %722 = arith.divf %720, %721 : vector<2x256xf32>
    %cst_139 = arith.constant 2.000000e+00 : f32
    %723 = vector.broadcast %cst_139 : f32 to vector<2x256xf32>
    %724 = arith.mulf %723, %722 : vector<2x256xf32>
    %cst_140 = arith.constant 1.000000e+00 : f32
    %725 = vector.broadcast %cst_140 : f32 to vector<2x256xf32>
    %726 = arith.subf %724, %725 : vector<2x256xf32>
    %727 = arith.select %62, %726, %722 : vector<2x256xi1>, vector<2x256xf32>
    %728 = vector.extract_strided_slice %727 {offsets = [0, 0], sizes = [2, 32], strides = [1, 1]} : vector<2x256xf32> to vector<2x32xf32>
    %729 = vector.extract_strided_slice %727 {offsets = [0, 32], sizes = [2, 32], strides = [1, 1]} : vector<2x256xf32> to vector<2x32xf32>
    %730 = vector.extract_strided_slice %727 {offsets = [0, 64], sizes = [2, 32], strides = [1, 1]} : vector<2x256xf32> to vector<2x32xf32>
    %731 = vector.extract_strided_slice %727 {offsets = [0, 96], sizes = [2, 32], strides = [1, 1]} : vector<2x256xf32> to vector<2x32xf32>
    %732 = vector.extract_strided_slice %727 {offsets = [0, 128], sizes = [2, 32], strides = [1, 1]} : vector<2x256xf32> to vector<2x32xf32>
    %733 = vector.extract_strided_slice %727 {offsets = [0, 160], sizes = [2, 32], strides = [1, 1]} : vector<2x256xf32> to vector<2x32xf32>
    %734 = vector.extract_strided_slice %727 {offsets = [0, 192], sizes = [2, 32], strides = [1, 1]} : vector<2x256xf32> to vector<2x32xf32>
    %735 = vector.extract_strided_slice %727 {offsets = [0, 224], sizes = [2, 32], strides = [1, 1]} : vector<2x256xf32> to vector<2x32xf32>
    %736 = arith.mulf %729, %702 : vector<2x32xf32>
    %737 = arith.mulf %728, %730 : vector<2x32xf32>
    %738 = arith.addf %736, %737 : vector<2x32xf32>
    %739 = arith.mulf %733, %705 : vector<2x32xf32>
    %740 = arith.mulf %732, %734 : vector<2x32xf32>
    %741 = arith.addf %739, %740 : vector<2x32xf32>
    %742 = tpu.concatenate %738, %741 in 1 : vector<2x32xf32>, vector<2x32xf32> -> vector<2x64xf32>
    %743 = math.tanh %742 : vector<2x64xf32>
    %744 = tpu.concatenate %731, %735 in 1 : vector<2x32xf32>, vector<2x32xf32> -> vector<2x64xf32>
    %745 = arith.mulf %744, %743 : vector<2x64xf32>
    %746 = vector.extract_strided_slice %745 {offsets = [0, 0], sizes = [2, 32], strides = [1, 1]} : vector<2x64xf32> to vector<2x32xf32>
    %747 = vector.extract_strided_slice %745 {offsets = [0, 32], sizes = [2, 32], strides = [1, 1]} : vector<2x64xf32> to vector<2x32xf32>
    %748 = vector.extract_strided_slice %674 {offsets = [4, 0], sizes = [2, 128], strides = [1, 1]} : vector<8x128xf32> to vector<2x128xf32>
    %749 = vector.extract_strided_slice %675 {offsets = [2, 0], sizes = [2, 128], strides = [1, 1]} : vector<8x128xf32> to vector<2x128xf32>
    %750 = arith.truncf %745 : vector<2x64xf32> to vector<2x64xbf16>
    %cst_141 = arith.constant dense<0.000000e+00> : vector<2x256xf32>
    %751 = tpu.matmul %750, %70, %cst_141 {dimension_numbers = #tpu.dot_dimension_numbers<[1], [0], [0], [1], [0, 0, 1, 1], [], []>} : vector<2x64xbf16>, vector<64x256xbf16>, vector<2x256xf32> -> vector<2x256xf32>
    %752 = tpu.concatenate %748, %749 in 1 : vector<2x128xf32>, vector<2x128xf32> -> vector<2x256xf32>
    %753 = arith.addf %751, %752 : vector<2x256xf32>
    %754 = arith.negf %753 : vector<2x256xf32>
    %755 = math.exp %754 : vector<2x256xf32>
    %cst_142 = arith.constant 1.000000e+00 : f32
    %756 = vector.broadcast %cst_142 : f32 to vector<2x256xf32>
    %757 = arith.addf %756, %755 : vector<2x256xf32>
    %758 = arith.divf %756, %757 : vector<2x256xf32>
    %cst_143 = arith.constant 2.000000e+00 : f32
    %759 = vector.broadcast %cst_143 : f32 to vector<2x256xf32>
    %760 = arith.mulf %759, %758 : vector<2x256xf32>
    %cst_144 = arith.constant 1.000000e+00 : f32
    %761 = vector.broadcast %cst_144 : f32 to vector<2x256xf32>
    %762 = arith.subf %760, %761 : vector<2x256xf32>
    %763 = arith.select %62, %762, %758 : vector<2x256xi1>, vector<2x256xf32>
    %764 = vector.extract_strided_slice %763 {offsets = [0, 0], sizes = [2, 32], strides = [1, 1]} : vector<2x256xf32> to vector<2x32xf32>
    %765 = vector.extract_strided_slice %763 {offsets = [0, 32], sizes = [2, 32], strides = [1, 1]} : vector<2x256xf32> to vector<2x32xf32>
    %766 = vector.extract_strided_slice %763 {offsets = [0, 64], sizes = [2, 32], strides = [1, 1]} : vector<2x256xf32> to vector<2x32xf32>
    %767 = vector.extract_strided_slice %763 {offsets = [0, 96], sizes = [2, 32], strides = [1, 1]} : vector<2x256xf32> to vector<2x32xf32>
    %768 = vector.extract_strided_slice %763 {offsets = [0, 128], sizes = [2, 32], strides = [1, 1]} : vector<2x256xf32> to vector<2x32xf32>
    %769 = vector.extract_strided_slice %763 {offsets = [0, 160], sizes = [2, 32], strides = [1, 1]} : vector<2x256xf32> to vector<2x32xf32>
    %770 = vector.extract_strided_slice %763 {offsets = [0, 192], sizes = [2, 32], strides = [1, 1]} : vector<2x256xf32> to vector<2x32xf32>
    %771 = vector.extract_strided_slice %763 {offsets = [0, 224], sizes = [2, 32], strides = [1, 1]} : vector<2x256xf32> to vector<2x32xf32>
    %772 = arith.mulf %765, %738 : vector<2x32xf32>
    %773 = arith.mulf %764, %766 : vector<2x32xf32>
    %774 = arith.addf %772, %773 : vector<2x32xf32>
    %775 = arith.mulf %769, %741 : vector<2x32xf32>
    %776 = arith.mulf %768, %770 : vector<2x32xf32>
    %777 = arith.addf %775, %776 : vector<2x32xf32>
    %778 = tpu.concatenate %774, %777 in 1 : vector<2x32xf32>, vector<2x32xf32> -> vector<2x64xf32>
    %779 = math.tanh %778 : vector<2x64xf32>
    %780 = tpu.concatenate %767, %771 in 1 : vector<2x32xf32>, vector<2x32xf32> -> vector<2x64xf32>
    %781 = arith.mulf %780, %779 : vector<2x64xf32>
    %782 = vector.extract_strided_slice %781 {offsets = [0, 0], sizes = [2, 32], strides = [1, 1]} : vector<2x64xf32> to vector<2x32xf32>
    %783 = vector.extract_strided_slice %781 {offsets = [0, 32], sizes = [2, 32], strides = [1, 1]} : vector<2x64xf32> to vector<2x32xf32>
    %784 = vector.extract_strided_slice %674 {offsets = [6, 0], sizes = [2, 128], strides = [1, 1]} : vector<8x128xf32> to vector<2x128xf32>
    %785 = vector.extract_strided_slice %675 {offsets = [0, 0], sizes = [2, 128], strides = [1, 1]} : vector<8x128xf32> to vector<2x128xf32>
    %786 = arith.truncf %781 : vector<2x64xf32> to vector<2x64xbf16>
    %cst_145 = arith.constant dense<0.000000e+00> : vector<2x256xf32>
    %787 = tpu.matmul %786, %70, %cst_145 {dimension_numbers = #tpu.dot_dimension_numbers<[1], [0], [0], [1], [0, 0, 1, 1], [], []>} : vector<2x64xbf16>, vector<64x256xbf16>, vector<2x256xf32> -> vector<2x256xf32>
    %788 = tpu.concatenate %784, %785 in 1 : vector<2x128xf32>, vector<2x128xf32> -> vector<2x256xf32>
    %789 = arith.addf %787, %788 : vector<2x256xf32>
    %790 = arith.negf %789 : vector<2x256xf32>
    %791 = math.exp %790 : vector<2x256xf32>
    %cst_146 = arith.constant 1.000000e+00 : f32
    %792 = vector.broadcast %cst_146 : f32 to vector<2x256xf32>
    %793 = arith.addf %792, %791 : vector<2x256xf32>
    %794 = arith.divf %792, %793 : vector<2x256xf32>
    %cst_147 = arith.constant 2.000000e+00 : f32
    %795 = vector.broadcast %cst_147 : f32 to vector<2x256xf32>
    %796 = arith.mulf %795, %794 : vector<2x256xf32>
    %cst_148 = arith.constant 1.000000e+00 : f32
    %797 = vector.broadcast %cst_148 : f32 to vector<2x256xf32>
    %798 = arith.subf %796, %797 : vector<2x256xf32>
    %799 = arith.select %62, %798, %794 : vector<2x256xi1>, vector<2x256xf32>
    %800 = vector.extract_strided_slice %799 {offsets = [0, 0], sizes = [2, 32], strides = [1, 1]} : vector<2x256xf32> to vector<2x32xf32>
    %801 = vector.extract_strided_slice %799 {offsets = [0, 32], sizes = [2, 32], strides = [1, 1]} : vector<2x256xf32> to vector<2x32xf32>
    %802 = vector.extract_strided_slice %799 {offsets = [0, 64], sizes = [2, 32], strides = [1, 1]} : vector<2x256xf32> to vector<2x32xf32>
    %803 = vector.extract_strided_slice %799 {offsets = [0, 96], sizes = [2, 32], strides = [1, 1]} : vector<2x256xf32> to vector<2x32xf32>
    %804 = vector.extract_strided_slice %799 {offsets = [0, 128], sizes = [2, 32], strides = [1, 1]} : vector<2x256xf32> to vector<2x32xf32>
    %805 = vector.extract_strided_slice %799 {offsets = [0, 160], sizes = [2, 32], strides = [1, 1]} : vector<2x256xf32> to vector<2x32xf32>
    %806 = vector.extract_strided_slice %799 {offsets = [0, 192], sizes = [2, 32], strides = [1, 1]} : vector<2x256xf32> to vector<2x32xf32>
    %807 = vector.extract_strided_slice %799 {offsets = [0, 224], sizes = [2, 32], strides = [1, 1]} : vector<2x256xf32> to vector<2x32xf32>
    %808 = arith.mulf %801, %774 : vector<2x32xf32>
    %809 = arith.mulf %800, %802 : vector<2x32xf32>
    %810 = arith.addf %808, %809 : vector<2x32xf32>
    %811 = arith.mulf %805, %777 : vector<2x32xf32>
    %812 = arith.mulf %804, %806 : vector<2x32xf32>
    %813 = arith.addf %811, %812 : vector<2x32xf32>
    %814 = tpu.concatenate %810, %813 in 1 : vector<2x32xf32>, vector<2x32xf32> -> vector<2x64xf32>
    %815 = math.tanh %814 : vector<2x64xf32>
    %816 = tpu.concatenate %803, %807 in 1 : vector<2x32xf32>, vector<2x32xf32> -> vector<2x64xf32>
    %817 = arith.mulf %816, %815 : vector<2x64xf32>
    %818 = vector.extract_strided_slice %817 {offsets = [0, 0], sizes = [2, 32], strides = [1, 1]} : vector<2x64xf32> to vector<2x32xf32>
    %819 = vector.extract_strided_slice %817 {offsets = [0, 32], sizes = [2, 32], strides = [1, 1]} : vector<2x64xf32> to vector<2x32xf32>
    %820 = tpu.concatenate %710, %746, %782, %818 in 0 : vector<2x32xf32>, vector<2x32xf32>, vector<2x32xf32>, vector<2x32xf32> -> vector<8x32xf32>
    %c32_149 = arith.constant 32 : index
    %c0_150 = arith.constant 0 : index
    %821 = vector.load %arg17[%c32_149, %c0_150] : memref<40x64xf32, #tpu.memory_space<vmem>>, vector<8x32xf32>
    tpu.vector_store %arg17[%c32_149, %c0_150], %820 {strides = array<i32>} : memref<40x64xf32, #tpu.memory_space<vmem>>, vector<8x32xf32>,
    %822 = tpu.concatenate %819, %783, %747, %711 in 0 : vector<2x32xf32>, vector<2x32xf32>, vector<2x32xf32>, vector<2x32xf32> -> vector<8x32xf32>
    %c0_151 = arith.constant 0 : index
    %c32_152 = arith.constant 32 : index
    %823 = vector.load %arg17[%c0_151, %c32_152] : memref<40x64xf32, #tpu.memory_space<vmem>>, vector<8x32xf32>
    tpu.vector_store %arg17[%c0_151, %c32_152], %822 {strides = array<i32>} : memref<40x64xf32, #tpu.memory_space<vmem>>, vector<8x32xf32>,
    %c0_153 = arith.constant 0 : index
    %c0_154 = arith.constant 0 : index
    %824 = vector.load %arg17[%c0_153, %c0_154] : memref<40x64xf32, #tpu.memory_space<vmem>>, vector<40x64xf32>
    %825 = arith.truncf %824 : vector<40x64xf32> to vector<40x64xbf16>
    %c0_155 = arith.constant 0 : index
    %c0_156 = arith.constant 0 : index
    %826 = vector.load %arg10[%c0_155, %c0_156] : memref<64x256xbf16, #tpu.memory_space<vmem>>, vector<64x256xbf16>
    %cst_157 = arith.constant dense<0.000000e+00> : vector<40x256xf32>
    %827 = tpu.matmul %825, %826, %cst_157 {dimension_numbers = #tpu.dot_dimension_numbers<[1], [0], [0], [1], [0, 0, 1, 1], [], []>} : vector<40x64xbf16>, vector<64x256xbf16>, vector<40x256xf32> -> vector<40x256xf32>
    %c0_158 = arith.constant 0 : index
    %c0_159 = arith.constant 0 : index
    %828 = vector.load %arg11[%c0_158, %c0_159] : memref<1x256xf32, #tpu.memory_space<vmem>>, vector<1x256xf32>
    %829 = vector.broadcast %828 : vector<1x256xf32> to vector<40x256xf32>
    %830 = arith.addf %827, %829 : vector<40x256xf32>
    %c0_160 = arith.constant 0 : index
    %c0_161 = arith.constant 0 : index
    %831 = vector.load %arg16[%c0_160, %c0_161] : memref<40x256xf32, #tpu.memory_space<vmem>>, vector<40x256xf32>
    tpu.vector_store %arg16[%c0_160, %c0_161], %830 {strides = array<i32>} : memref<40x256xf32, #tpu.memory_space<vmem>>, vector<40x256xf32>,
    %c0_162 = arith.constant 0 : index
    %c0_163 = arith.constant 0 : index
    %832 = vector.load %arg12[%c0_162, %c0_163] : memref<64x256xbf16, #tpu.memory_space<vmem>>, vector<64x256xbf16>
    %cst_164 = arith.constant 0.000000e+00 : f32
    %833 = vector.broadcast %cst_164 : f32 to vector<2x64xf32>
    %cst_165 = arith.constant 0.000000e+00 : f32
    %834 = vector.broadcast %cst_165 : f32 to vector<2x32xf32>
    %cst_166 = arith.constant 0.000000e+00 : f32
    %835 = vector.broadcast %cst_166 : f32 to vector<2x32xf32>
    %c0_167 = arith.constant 0 : index
    %c0_168 = arith.constant 0 : index
    %836 = vector.load %arg16[%c0_167, %c0_168] : memref<40x256xf32, #tpu.memory_space<vmem>>, vector<8x128xf32>
    %c32_169 = arith.constant 32 : index
    %c128_170 = arith.constant 128 : index
    %837 = vector.load %arg16[%c32_169, %c128_170] : memref<40x256xf32, #tpu.memory_space<vmem>>, vector<8x128xf32>
    %838 = vector.extract_strided_slice %836 {offsets = [0, 0], sizes = [2, 128], strides = [1, 1]} : vector<8x128xf32> to vector<2x128xf32>
    %839 = vector.extract_strided_slice %837 {offsets = [6, 0], sizes = [2, 128], strides = [1, 1]} : vector<8x128xf32> to vector<2x128xf32>
    %840 = arith.truncf %833 : vector<2x64xf32> to vector<2x64xbf16>
    %cst_171 = arith.constant dense<0.000000e+00> : vector<2x256xf32>
    %841 = tpu.matmul %840, %832, %cst_171 {dimension_numbers = #tpu.dot_dimension_numbers<[1], [0], [0], [1], [0, 0, 1, 1], [], []>} : vector<2x64xbf16>, vector<64x256xbf16>, vector<2x256xf32> -> vector<2x256xf32>
    %842 = tpu.concatenate %838, %839 in 1 : vector<2x128xf32>, vector<2x128xf32> -> vector<2x256xf32>
    %843 = arith.addf %841, %842 : vector<2x256xf32>
    %844 = arith.negf %843 : vector<2x256xf32>
    %845 = math.exp %844 : vector<2x256xf32>
    %cst_172 = arith.constant 1.000000e+00 : f32
    %846 = vector.broadcast %cst_172 : f32 to vector<2x256xf32>
    %847 = arith.addf %846, %845 : vector<2x256xf32>
    %848 = arith.divf %846, %847 : vector<2x256xf32>
    %cst_173 = arith.constant 2.000000e+00 : f32
    %849 = vector.broadcast %cst_173 : f32 to vector<2x256xf32>
    %850 = arith.mulf %849, %848 : vector<2x256xf32>
    %cst_174 = arith.constant 1.000000e+00 : f32
    %851 = vector.broadcast %cst_174 : f32 to vector<2x256xf32>
    %852 = arith.subf %850, %851 : vector<2x256xf32>
    %853 = arith.select %62, %852, %848 : vector<2x256xi1>, vector<2x256xf32>
    %854 = vector.extract_strided_slice %853 {offsets = [0, 0], sizes = [2, 32], strides = [1, 1]} : vector<2x256xf32> to vector<2x32xf32>
    %855 = vector.extract_strided_slice %853 {offsets = [0, 32], sizes = [2, 32], strides = [1, 1]} : vector<2x256xf32> to vector<2x32xf32>
    %856 = vector.extract_strided_slice %853 {offsets = [0, 64], sizes = [2, 32], strides = [1, 1]} : vector<2x256xf32> to vector<2x32xf32>
    %857 = vector.extract_strided_slice %853 {offsets = [0, 96], sizes = [2, 32], strides = [1, 1]} : vector<2x256xf32> to vector<2x32xf32>
    %858 = vector.extract_strided_slice %853 {offsets = [0, 128], sizes = [2, 32], strides = [1, 1]} : vector<2x256xf32> to vector<2x32xf32>
    %859 = vector.extract_strided_slice %853 {offsets = [0, 160], sizes = [2, 32], strides = [1, 1]} : vector<2x256xf32> to vector<2x32xf32>
    %860 = vector.extract_strided_slice %853 {offsets = [0, 192], sizes = [2, 32], strides = [1, 1]} : vector<2x256xf32> to vector<2x32xf32>
    %861 = vector.extract_strided_slice %853 {offsets = [0, 224], sizes = [2, 32], strides = [1, 1]} : vector<2x256xf32> to vector<2x32xf32>
    %862 = arith.mulf %855, %834 : vector<2x32xf32>
    %863 = arith.mulf %854, %856 : vector<2x32xf32>
    %864 = arith.addf %862, %863 : vector<2x32xf32>
    %865 = arith.mulf %859, %835 : vector<2x32xf32>
    %866 = arith.mulf %858, %860 : vector<2x32xf32>
    %867 = arith.addf %865, %866 : vector<2x32xf32>
    %868 = tpu.concatenate %864, %867 in 1 : vector<2x32xf32>, vector<2x32xf32> -> vector<2x64xf32>
    %869 = math.tanh %868 : vector<2x64xf32>
    %870 = tpu.concatenate %857, %861 in 1 : vector<2x32xf32>, vector<2x32xf32> -> vector<2x64xf32>
    %871 = arith.mulf %870, %869 : vector<2x64xf32>
    %872 = vector.extract_strided_slice %871 {offsets = [0, 0], sizes = [2, 32], strides = [1, 1]} : vector<2x64xf32> to vector<2x32xf32>
    %873 = vector.extract_strided_slice %871 {offsets = [0, 32], sizes = [2, 32], strides = [1, 1]} : vector<2x64xf32> to vector<2x32xf32>
    %874 = vector.extract_strided_slice %836 {offsets = [2, 0], sizes = [2, 128], strides = [1, 1]} : vector<8x128xf32> to vector<2x128xf32>
    %875 = vector.extract_strided_slice %837 {offsets = [4, 0], sizes = [2, 128], strides = [1, 1]} : vector<8x128xf32> to vector<2x128xf32>
    %876 = arith.truncf %871 : vector<2x64xf32> to vector<2x64xbf16>
    %cst_175 = arith.constant dense<0.000000e+00> : vector<2x256xf32>
    %877 = tpu.matmul %876, %832, %cst_175 {dimension_numbers = #tpu.dot_dimension_numbers<[1], [0], [0], [1], [0, 0, 1, 1], [], []>} : vector<2x64xbf16>, vector<64x256xbf16>, vector<2x256xf32> -> vector<2x256xf32>
    %878 = tpu.concatenate %874, %875 in 1 : vector<2x128xf32>, vector<2x128xf32> -> vector<2x256xf32>
    %879 = arith.addf %877, %878 : vector<2x256xf32>
    %880 = arith.negf %879 : vector<2x256xf32>
    %881 = math.exp %880 : vector<2x256xf32>
    %cst_176 = arith.constant 1.000000e+00 : f32
    %882 = vector.broadcast %cst_176 : f32 to vector<2x256xf32>
    %883 = arith.addf %882, %881 : vector<2x256xf32>
    %884 = arith.divf %882, %883 : vector<2x256xf32>
    %cst_177 = arith.constant 2.000000e+00 : f32
    %885 = vector.broadcast %cst_177 : f32 to vector<2x256xf32>
    %886 = arith.mulf %885, %884 : vector<2x256xf32>
    %cst_178 = arith.constant 1.000000e+00 : f32
    %887 = vector.broadcast %cst_178 : f32 to vector<2x256xf32>
    %888 = arith.subf %886, %887 : vector<2x256xf32>
    %889 = arith.select %62, %888, %884 : vector<2x256xi1>, vector<2x256xf32>
    %890 = vector.extract_strided_slice %889 {offsets = [0, 0], sizes = [2, 32], strides = [1, 1]} : vector<2x256xf32> to vector<2x32xf32>
    %891 = vector.extract_strided_slice %889 {offsets = [0, 32], sizes = [2, 32], strides = [1, 1]} : vector<2x256xf32> to vector<2x32xf32>
    %892 = vector.extract_strided_slice %889 {offsets = [0, 64], sizes = [2, 32], strides = [1, 1]} : vector<2x256xf32> to vector<2x32xf32>
    %893 = vector.extract_strided_slice %889 {offsets = [0, 96], sizes = [2, 32], strides = [1, 1]} : vector<2x256xf32> to vector<2x32xf32>
    %894 = vector.extract_strided_slice %889 {offsets = [0, 128], sizes = [2, 32], strides = [1, 1]} : vector<2x256xf32> to vector<2x32xf32>
    %895 = vector.extract_strided_slice %889 {offsets = [0, 160], sizes = [2, 32], strides = [1, 1]} : vector<2x256xf32> to vector<2x32xf32>
    %896 = vector.extract_strided_slice %889 {offsets = [0, 192], sizes = [2, 32], strides = [1, 1]} : vector<2x256xf32> to vector<2x32xf32>
    %897 = vector.extract_strided_slice %889 {offsets = [0, 224], sizes = [2, 32], strides = [1, 1]} : vector<2x256xf32> to vector<2x32xf32>
    %898 = arith.mulf %891, %864 : vector<2x32xf32>
    %899 = arith.mulf %890, %892 : vector<2x32xf32>
    %900 = arith.addf %898, %899 : vector<2x32xf32>
    %901 = arith.mulf %895, %867 : vector<2x32xf32>
    %902 = arith.mulf %894, %896 : vector<2x32xf32>
    %903 = arith.addf %901, %902 : vector<2x32xf32>
    %904 = tpu.concatenate %900, %903 in 1 : vector<2x32xf32>, vector<2x32xf32> -> vector<2x64xf32>
    %905 = math.tanh %904 : vector<2x64xf32>
    %906 = tpu.concatenate %893, %897 in 1 : vector<2x32xf32>, vector<2x32xf32> -> vector<2x64xf32>
    %907 = arith.mulf %906, %905 : vector<2x64xf32>
    %908 = vector.extract_strided_slice %907 {offsets = [0, 0], sizes = [2, 32], strides = [1, 1]} : vector<2x64xf32> to vector<2x32xf32>
    %909 = vector.extract_strided_slice %907 {offsets = [0, 32], sizes = [2, 32], strides = [1, 1]} : vector<2x64xf32> to vector<2x32xf32>
    %910 = vector.extract_strided_slice %836 {offsets = [4, 0], sizes = [2, 128], strides = [1, 1]} : vector<8x128xf32> to vector<2x128xf32>
    %911 = vector.extract_strided_slice %837 {offsets = [2, 0], sizes = [2, 128], strides = [1, 1]} : vector<8x128xf32> to vector<2x128xf32>
    %912 = arith.truncf %907 : vector<2x64xf32> to vector<2x64xbf16>
    %cst_179 = arith.constant dense<0.000000e+00> : vector<2x256xf32>
    %913 = tpu.matmul %912, %832, %cst_179 {dimension_numbers = #tpu.dot_dimension_numbers<[1], [0], [0], [1], [0, 0, 1, 1], [], []>} : vector<2x64xbf16>, vector<64x256xbf16>, vector<2x256xf32> -> vector<2x256xf32>
    %914 = tpu.concatenate %910, %911 in 1 : vector<2x128xf32>, vector<2x128xf32> -> vector<2x256xf32>
    %915 = arith.addf %913, %914 : vector<2x256xf32>
    %916 = arith.negf %915 : vector<2x256xf32>
    %917 = math.exp %916 : vector<2x256xf32>
    %cst_180 = arith.constant 1.000000e+00 : f32
    %918 = vector.broadcast %cst_180 : f32 to vector<2x256xf32>
    %919 = arith.addf %918, %917 : vector<2x256xf32>
    %920 = arith.divf %918, %919 : vector<2x256xf32>
    %cst_181 = arith.constant 2.000000e+00 : f32
    %921 = vector.broadcast %cst_181 : f32 to vector<2x256xf32>
    %922 = arith.mulf %921, %920 : vector<2x256xf32>
    %cst_182 = arith.constant 1.000000e+00 : f32
    %923 = vector.broadcast %cst_182 : f32 to vector<2x256xf32>
    %924 = arith.subf %922, %923 : vector<2x256xf32>
    %925 = arith.select %62, %924, %920 : vector<2x256xi1>, vector<2x256xf32>
    %926 = vector.extract_strided_slice %925 {offsets = [0, 0], sizes = [2, 32], strides = [1, 1]} : vector<2x256xf32> to vector<2x32xf32>
    %927 = vector.extract_strided_slice %925 {offsets = [0, 32], sizes = [2, 32], strides = [1, 1]} : vector<2x256xf32> to vector<2x32xf32>
    %928 = vector.extract_strided_slice %925 {offsets = [0, 64], sizes = [2, 32], strides = [1, 1]} : vector<2x256xf32> to vector<2x32xf32>
    %929 = vector.extract_strided_slice %925 {offsets = [0, 96], sizes = [2, 32], strides = [1, 1]} : vector<2x256xf32> to vector<2x32xf32>
    %930 = vector.extract_strided_slice %925 {offsets = [0, 128], sizes = [2, 32], strides = [1, 1]} : vector<2x256xf32> to vector<2x32xf32>
    %931 = vector.extract_strided_slice %925 {offsets = [0, 160], sizes = [2, 32], strides = [1, 1]} : vector<2x256xf32> to vector<2x32xf32>
    %932 = vector.extract_strided_slice %925 {offsets = [0, 192], sizes = [2, 32], strides = [1, 1]} : vector<2x256xf32> to vector<2x32xf32>
    %933 = vector.extract_strided_slice %925 {offsets = [0, 224], sizes = [2, 32], strides = [1, 1]} : vector<2x256xf32> to vector<2x32xf32>
    %934 = arith.mulf %927, %900 : vector<2x32xf32>
    %935 = arith.mulf %926, %928 : vector<2x32xf32>
    %936 = arith.addf %934, %935 : vector<2x32xf32>
    %937 = arith.mulf %931, %903 : vector<2x32xf32>
    %938 = arith.mulf %930, %932 : vector<2x32xf32>
    %939 = arith.addf %937, %938 : vector<2x32xf32>
    %940 = tpu.concatenate %936, %939 in 1 : vector<2x32xf32>, vector<2x32xf32> -> vector<2x64xf32>
    %941 = math.tanh %940 : vector<2x64xf32>
    %942 = tpu.concatenate %929, %933 in 1 : vector<2x32xf32>, vector<2x32xf32> -> vector<2x64xf32>
    %943 = arith.mulf %942, %941 : vector<2x64xf32>
    %944 = vector.extract_strided_slice %943 {offsets = [0, 0], sizes = [2, 32], strides = [1, 1]} : vector<2x64xf32> to vector<2x32xf32>
    %945 = vector.extract_strided_slice %943 {offsets = [0, 32], sizes = [2, 32], strides = [1, 1]} : vector<2x64xf32> to vector<2x32xf32>
    %946 = vector.extract_strided_slice %836 {offsets = [6, 0], sizes = [2, 128], strides = [1, 1]} : vector<8x128xf32> to vector<2x128xf32>
    %947 = vector.extract_strided_slice %837 {offsets = [0, 0], sizes = [2, 128], strides = [1, 1]} : vector<8x128xf32> to vector<2x128xf32>
    %948 = arith.truncf %943 : vector<2x64xf32> to vector<2x64xbf16>
    %cst_183 = arith.constant dense<0.000000e+00> : vector<2x256xf32>
    %949 = tpu.matmul %948, %832, %cst_183 {dimension_numbers = #tpu.dot_dimension_numbers<[1], [0], [0], [1], [0, 0, 1, 1], [], []>} : vector<2x64xbf16>, vector<64x256xbf16>, vector<2x256xf32> -> vector<2x256xf32>
    %950 = tpu.concatenate %946, %947 in 1 : vector<2x128xf32>, vector<2x128xf32> -> vector<2x256xf32>
    %951 = arith.addf %949, %950 : vector<2x256xf32>
    %952 = arith.negf %951 : vector<2x256xf32>
    %953 = math.exp %952 : vector<2x256xf32>
    %cst_184 = arith.constant 1.000000e+00 : f32
    %954 = vector.broadcast %cst_184 : f32 to vector<2x256xf32>
    %955 = arith.addf %954, %953 : vector<2x256xf32>
    %956 = arith.divf %954, %955 : vector<2x256xf32>
    %cst_185 = arith.constant 2.000000e+00 : f32
    %957 = vector.broadcast %cst_185 : f32 to vector<2x256xf32>
    %958 = arith.mulf %957, %956 : vector<2x256xf32>
    %cst_186 = arith.constant 1.000000e+00 : f32
    %959 = vector.broadcast %cst_186 : f32 to vector<2x256xf32>
    %960 = arith.subf %958, %959 : vector<2x256xf32>
    %961 = arith.select %62, %960, %956 : vector<2x256xi1>, vector<2x256xf32>
    %962 = vector.extract_strided_slice %961 {offsets = [0, 0], sizes = [2, 32], strides = [1, 1]} : vector<2x256xf32> to vector<2x32xf32>
    %963 = vector.extract_strided_slice %961 {offsets = [0, 32], sizes = [2, 32], strides = [1, 1]} : vector<2x256xf32> to vector<2x32xf32>
    %964 = vector.extract_strided_slice %961 {offsets = [0, 64], sizes = [2, 32], strides = [1, 1]} : vector<2x256xf32> to vector<2x32xf32>
    %965 = vector.extract_strided_slice %961 {offsets = [0, 96], sizes = [2, 32], strides = [1, 1]} : vector<2x256xf32> to vector<2x32xf32>
    %966 = vector.extract_strided_slice %961 {offsets = [0, 128], sizes = [2, 32], strides = [1, 1]} : vector<2x256xf32> to vector<2x32xf32>
    %967 = vector.extract_strided_slice %961 {offsets = [0, 160], sizes = [2, 32], strides = [1, 1]} : vector<2x256xf32> to vector<2x32xf32>
    %968 = vector.extract_strided_slice %961 {offsets = [0, 192], sizes = [2, 32], strides = [1, 1]} : vector<2x256xf32> to vector<2x32xf32>
    %969 = vector.extract_strided_slice %961 {offsets = [0, 224], sizes = [2, 32], strides = [1, 1]} : vector<2x256xf32> to vector<2x32xf32>
    %970 = arith.mulf %963, %936 : vector<2x32xf32>
    %971 = arith.mulf %962, %964 : vector<2x32xf32>
    %972 = arith.addf %970, %971 : vector<2x32xf32>
    %973 = arith.mulf %967, %939 : vector<2x32xf32>
    %974 = arith.mulf %966, %968 : vector<2x32xf32>
    %975 = arith.addf %973, %974 : vector<2x32xf32>
    %976 = tpu.concatenate %972, %975 in 1 : vector<2x32xf32>, vector<2x32xf32> -> vector<2x64xf32>
    %977 = math.tanh %976 : vector<2x64xf32>
    %978 = tpu.concatenate %965, %969 in 1 : vector<2x32xf32>, vector<2x32xf32> -> vector<2x64xf32>
    %979 = arith.mulf %978, %977 : vector<2x64xf32>
    %980 = vector.extract_strided_slice %979 {offsets = [0, 0], sizes = [2, 32], strides = [1, 1]} : vector<2x64xf32> to vector<2x32xf32>
    %981 = vector.extract_strided_slice %979 {offsets = [0, 32], sizes = [2, 32], strides = [1, 1]} : vector<2x64xf32> to vector<2x32xf32>
    %982 = tpu.concatenate %872, %908, %944, %980 in 0 : vector<2x32xf32>, vector<2x32xf32>, vector<2x32xf32>, vector<2x32xf32> -> vector<8x32xf32>
    %c0_187 = arith.constant 0 : index
    %c0_188 = arith.constant 0 : index
    %983 = vector.load %arg17[%c0_187, %c0_188] : memref<40x64xf32, #tpu.memory_space<vmem>>, vector<8x32xf32>
    tpu.vector_store %arg17[%c0_187, %c0_188], %982 {strides = array<i32>} : memref<40x64xf32, #tpu.memory_space<vmem>>, vector<8x32xf32>,
    %984 = tpu.concatenate %981, %945, %909, %873 in 0 : vector<2x32xf32>, vector<2x32xf32>, vector<2x32xf32>, vector<2x32xf32> -> vector<8x32xf32>
    %c32_189 = arith.constant 32 : index
    %c32_190 = arith.constant 32 : index
    %985 = vector.load %arg17[%c32_189, %c32_190] : memref<40x64xf32, #tpu.memory_space<vmem>>, vector<8x32xf32>
    tpu.vector_store %arg17[%c32_189, %c32_190], %984 {strides = array<i32>} : memref<40x64xf32, #tpu.memory_space<vmem>>, vector<8x32xf32>,
    %c8_191 = arith.constant 8 : index
    %c0_192 = arith.constant 0 : index
    %986 = vector.load %arg16[%c8_191, %c0_192] : memref<40x256xf32, #tpu.memory_space<vmem>>, vector<8x128xf32>
    %c24_193 = arith.constant 24 : index
    %c128_194 = arith.constant 128 : index
    %987 = vector.load %arg16[%c24_193, %c128_194] : memref<40x256xf32, #tpu.memory_space<vmem>>, vector<8x128xf32>
    %988 = vector.extract_strided_slice %986 {offsets = [0, 0], sizes = [2, 128], strides = [1, 1]} : vector<8x128xf32> to vector<2x128xf32>
    %989 = vector.extract_strided_slice %987 {offsets = [6, 0], sizes = [2, 128], strides = [1, 1]} : vector<8x128xf32> to vector<2x128xf32>
    %990 = arith.truncf %979 : vector<2x64xf32> to vector<2x64xbf16>
    %cst_195 = arith.constant dense<0.000000e+00> : vector<2x256xf32>
    %991 = tpu.matmul %990, %832, %cst_195 {dimension_numbers = #tpu.dot_dimension_numbers<[1], [0], [0], [1], [0, 0, 1, 1], [], []>} : vector<2x64xbf16>, vector<64x256xbf16>, vector<2x256xf32> -> vector<2x256xf32>
    %992 = tpu.concatenate %988, %989 in 1 : vector<2x128xf32>, vector<2x128xf32> -> vector<2x256xf32>
    %993 = arith.addf %991, %992 : vector<2x256xf32>
    %994 = arith.negf %993 : vector<2x256xf32>
    %995 = math.exp %994 : vector<2x256xf32>
    %cst_196 = arith.constant 1.000000e+00 : f32
    %996 = vector.broadcast %cst_196 : f32 to vector<2x256xf32>
    %997 = arith.addf %996, %995 : vector<2x256xf32>
    %998 = arith.divf %996, %997 : vector<2x256xf32>
    %cst_197 = arith.constant 2.000000e+00 : f32
    %999 = vector.broadcast %cst_197 : f32 to vector<2x256xf32>
    %1000 = arith.mulf %999, %998 : vector<2x256xf32>
    %cst_198 = arith.constant 1.000000e+00 : f32
    %1001 = vector.broadcast %cst_198 : f32 to vector<2x256xf32>
    %1002 = arith.subf %1000, %1001 : vector<2x256xf32>
    %1003 = arith.select %62, %1002, %998 : vector<2x256xi1>, vector<2x256xf32>
    %1004 = vector.extract_strided_slice %1003 {offsets = [0, 0], sizes = [2, 32], strides = [1, 1]} : vector<2x256xf32> to vector<2x32xf32>
    %1005 = vector.extract_strided_slice %1003 {offsets = [0, 32], sizes = [2, 32], strides = [1, 1]} : vector<2x256xf32> to vector<2x32xf32>
    %1006 = vector.extract_strided_slice %1003 {offsets = [0, 64], sizes = [2, 32], strides = [1, 1]} : vector<2x256xf32> to vector<2x32xf32>
    %1007 = vector.extract_strided_slice %1003 {offsets = [0, 96], sizes = [2, 32], strides = [1, 1]} : vector<2x256xf32> to vector<2x32xf32>
    %1008 = vector.extract_strided_slice %1003 {offsets = [0, 128], sizes = [2, 32], strides = [1, 1]} : vector<2x256xf32> to vector<2x32xf32>
    %1009 = vector.extract_strided_slice %1003 {offsets = [0, 160], sizes = [2, 32], strides = [1, 1]} : vector<2x256xf32> to vector<2x32xf32>
    %1010 = vector.extract_strided_slice %1003 {offsets = [0, 192], sizes = [2, 32], strides = [1, 1]} : vector<2x256xf32> to vector<2x32xf32>
    %1011 = vector.extract_strided_slice %1003 {offsets = [0, 224], sizes = [2, 32], strides = [1, 1]} : vector<2x256xf32> to vector<2x32xf32>
    %1012 = arith.mulf %1005, %972 : vector<2x32xf32>
    %1013 = arith.mulf %1004, %1006 : vector<2x32xf32>
    %1014 = arith.addf %1012, %1013 : vector<2x32xf32>
    %1015 = arith.mulf %1009, %975 : vector<2x32xf32>
    %1016 = arith.mulf %1008, %1010 : vector<2x32xf32>
    %1017 = arith.addf %1015, %1016 : vector<2x32xf32>
    %1018 = tpu.concatenate %1014, %1017 in 1 : vector<2x32xf32>, vector<2x32xf32> -> vector<2x64xf32>
    %1019 = math.tanh %1018 : vector<2x64xf32>
    %1020 = tpu.concatenate %1007, %1011 in 1 : vector<2x32xf32>, vector<2x32xf32> -> vector<2x64xf32>
    %1021 = arith.mulf %1020, %1019 : vector<2x64xf32>
    %1022 = vector.extract_strided_slice %1021 {offsets = [0, 0], sizes = [2, 32], strides = [1, 1]} : vector<2x64xf32> to vector<2x32xf32>
    %1023 = vector.extract_strided_slice %1021 {offsets = [0, 32], sizes = [2, 32], strides = [1, 1]} : vector<2x64xf32> to vector<2x32xf32>
    %1024 = vector.extract_strided_slice %986 {offsets = [2, 0], sizes = [2, 128], strides = [1, 1]} : vector<8x128xf32> to vector<2x128xf32>
    %1025 = vector.extract_strided_slice %987 {offsets = [4, 0], sizes = [2, 128], strides = [1, 1]} : vector<8x128xf32> to vector<2x128xf32>
    %1026 = arith.truncf %1021 : vector<2x64xf32> to vector<2x64xbf16>
    %cst_199 = arith.constant dense<0.000000e+00> : vector<2x256xf32>
    %1027 = tpu.matmul %1026, %832, %cst_199 {dimension_numbers = #tpu.dot_dimension_numbers<[1], [0], [0], [1], [0, 0, 1, 1], [], []>} : vector<2x64xbf16>, vector<64x256xbf16>, vector<2x256xf32> -> vector<2x256xf32>
    %1028 = tpu.concatenate %1024, %1025 in 1 : vector<2x128xf32>, vector<2x128xf32> -> vector<2x256xf32>
    %1029 = arith.addf %1027, %1028 : vector<2x256xf32>
    %1030 = arith.negf %1029 : vector<2x256xf32>
    %1031 = math.exp %1030 : vector<2x256xf32>
    %cst_200 = arith.constant 1.000000e+00 : f32
    %1032 = vector.broadcast %cst_200 : f32 to vector<2x256xf32>
    %1033 = arith.addf %1032, %1031 : vector<2x256xf32>
    %1034 = arith.divf %1032, %1033 : vector<2x256xf32>
    %cst_201 = arith.constant 2.000000e+00 : f32
    %1035 = vector.broadcast %cst_201 : f32 to vector<2x256xf32>
    %1036 = arith.mulf %1035, %1034 : vector<2x256xf32>
    %cst_202 = arith.constant 1.000000e+00 : f32
    %1037 = vector.broadcast %cst_202 : f32 to vector<2x256xf32>
    %1038 = arith.subf %1036, %1037 : vector<2x256xf32>
    %1039 = arith.select %62, %1038, %1034 : vector<2x256xi1>, vector<2x256xf32>
    %1040 = vector.extract_strided_slice %1039 {offsets = [0, 0], sizes = [2, 32], strides = [1, 1]} : vector<2x256xf32> to vector<2x32xf32>
    %1041 = vector.extract_strided_slice %1039 {offsets = [0, 32], sizes = [2, 32], strides = [1, 1]} : vector<2x256xf32> to vector<2x32xf32>
    %1042 = vector.extract_strided_slice %1039 {offsets = [0, 64], sizes = [2, 32], strides = [1, 1]} : vector<2x256xf32> to vector<2x32xf32>
    %1043 = vector.extract_strided_slice %1039 {offsets = [0, 96], sizes = [2, 32], strides = [1, 1]} : vector<2x256xf32> to vector<2x32xf32>
    %1044 = vector.extract_strided_slice %1039 {offsets = [0, 128], sizes = [2, 32], strides = [1, 1]} : vector<2x256xf32> to vector<2x32xf32>
    %1045 = vector.extract_strided_slice %1039 {offsets = [0, 160], sizes = [2, 32], strides = [1, 1]} : vector<2x256xf32> to vector<2x32xf32>
    %1046 = vector.extract_strided_slice %1039 {offsets = [0, 192], sizes = [2, 32], strides = [1, 1]} : vector<2x256xf32> to vector<2x32xf32>
    %1047 = vector.extract_strided_slice %1039 {offsets = [0, 224], sizes = [2, 32], strides = [1, 1]} : vector<2x256xf32> to vector<2x32xf32>
    %1048 = arith.mulf %1041, %1014 : vector<2x32xf32>
    %1049 = arith.mulf %1040, %1042 : vector<2x32xf32>
    %1050 = arith.addf %1048, %1049 : vector<2x32xf32>
    %1051 = arith.mulf %1045, %1017 : vector<2x32xf32>
    %1052 = arith.mulf %1044, %1046 : vector<2x32xf32>
    %1053 = arith.addf %1051, %1052 : vector<2x32xf32>
    %1054 = tpu.concatenate %1050, %1053 in 1 : vector<2x32xf32>, vector<2x32xf32> -> vector<2x64xf32>
    %1055 = math.tanh %1054 : vector<2x64xf32>
    %1056 = tpu.concatenate %1043, %1047 in 1 : vector<2x32xf32>, vector<2x32xf32> -> vector<2x64xf32>
    %1057 = arith.mulf %1056, %1055 : vector<2x64xf32>
    %1058 = vector.extract_strided_slice %1057 {offsets = [0, 0], sizes = [2, 32], strides = [1, 1]} : vector<2x64xf32> to vector<2x32xf32>
    %1059 = vector.extract_strided_slice %1057 {offsets = [0, 32], sizes = [2, 32], strides = [1, 1]} : vector<2x64xf32> to vector<2x32xf32>
    %1060 = vector.extract_strided_slice %986 {offsets = [4, 0], sizes = [2, 128], strides = [1, 1]} : vector<8x128xf32> to vector<2x128xf32>
    %1061 = vector.extract_strided_slice %987 {offsets = [2, 0], sizes = [2, 128], strides = [1, 1]} : vector<8x128xf32> to vector<2x128xf32>
    %1062 = arith.truncf %1057 : vector<2x64xf32> to vector<2x64xbf16>
    %cst_203 = arith.constant dense<0.000000e+00> : vector<2x256xf32>
    %1063 = tpu.matmul %1062, %832, %cst_203 {dimension_numbers = #tpu.dot_dimension_numbers<[1], [0], [0], [1], [0, 0, 1, 1], [], []>} : vector<2x64xbf16>, vector<64x256xbf16>, vector<2x256xf32> -> vector<2x256xf32>
    %1064 = tpu.concatenate %1060, %1061 in 1 : vector<2x128xf32>, vector<2x128xf32> -> vector<2x256xf32>
    %1065 = arith.addf %1063, %1064 : vector<2x256xf32>
    %1066 = arith.negf %1065 : vector<2x256xf32>
    %1067 = math.exp %1066 : vector<2x256xf32>
    %cst_204 = arith.constant 1.000000e+00 : f32
    %1068 = vector.broadcast %cst_204 : f32 to vector<2x256xf32>
    %1069 = arith.addf %1068, %1067 : vector<2x256xf32>
    %1070 = arith.divf %1068, %1069 : vector<2x256xf32>
    %cst_205 = arith.constant 2.000000e+00 : f32
    %1071 = vector.broadcast %cst_205 : f32 to vector<2x256xf32>
    %1072 = arith.mulf %1071, %1070 : vector<2x256xf32>
    %cst_206 = arith.constant 1.000000e+00 : f32
    %1073 = vector.broadcast %cst_206 : f32 to vector<2x256xf32>
    %1074 = arith.subf %1072, %1073 : vector<2x256xf32>
    %1075 = arith.select %62, %1074, %1070 : vector<2x256xi1>, vector<2x256xf32>
    %1076 = vector.extract_strided_slice %1075 {offsets = [0, 0], sizes = [2, 32], strides = [1, 1]} : vector<2x256xf32> to vector<2x32xf32>
    %1077 = vector.extract_strided_slice %1075 {offsets = [0, 32], sizes = [2, 32], strides = [1, 1]} : vector<2x256xf32> to vector<2x32xf32>
    %1078 = vector.extract_strided_slice %1075 {offsets = [0, 64], sizes = [2, 32], strides = [1, 1]} : vector<2x256xf32> to vector<2x32xf32>
    %1079 = vector.extract_strided_slice %1075 {offsets = [0, 96], sizes = [2, 32], strides = [1, 1]} : vector<2x256xf32> to vector<2x32xf32>
    %1080 = vector.extract_strided_slice %1075 {offsets = [0, 128], sizes = [2, 32], strides = [1, 1]} : vector<2x256xf32> to vector<2x32xf32>
    %1081 = vector.extract_strided_slice %1075 {offsets = [0, 160], sizes = [2, 32], strides = [1, 1]} : vector<2x256xf32> to vector<2x32xf32>
    %1082 = vector.extract_strided_slice %1075 {offsets = [0, 192], sizes = [2, 32], strides = [1, 1]} : vector<2x256xf32> to vector<2x32xf32>
    %1083 = vector.extract_strided_slice %1075 {offsets = [0, 224], sizes = [2, 32], strides = [1, 1]} : vector<2x256xf32> to vector<2x32xf32>
    %1084 = arith.mulf %1077, %1050 : vector<2x32xf32>
    %1085 = arith.mulf %1076, %1078 : vector<2x32xf32>
    %1086 = arith.addf %1084, %1085 : vector<2x32xf32>
    %1087 = arith.mulf %1081, %1053 : vector<2x32xf32>
    %1088 = arith.mulf %1080, %1082 : vector<2x32xf32>
    %1089 = arith.addf %1087, %1088 : vector<2x32xf32>
    %1090 = tpu.concatenate %1086, %1089 in 1 : vector<2x32xf32>, vector<2x32xf32> -> vector<2x64xf32>
    %1091 = math.tanh %1090 : vector<2x64xf32>
    %1092 = tpu.concatenate %1079, %1083 in 1 : vector<2x32xf32>, vector<2x32xf32> -> vector<2x64xf32>
    %1093 = arith.mulf %1092, %1091 : vector<2x64xf32>
    %1094 = vector.extract_strided_slice %1093 {offsets = [0, 0], sizes = [2, 32], strides = [1, 1]} : vector<2x64xf32> to vector<2x32xf32>
    %1095 = vector.extract_strided_slice %1093 {offsets = [0, 32], sizes = [2, 32], strides = [1, 1]} : vector<2x64xf32> to vector<2x32xf32>
    %1096 = vector.extract_strided_slice %986 {offsets = [6, 0], sizes = [2, 128], strides = [1, 1]} : vector<8x128xf32> to vector<2x128xf32>
    %1097 = vector.extract_strided_slice %987 {offsets = [0, 0], sizes = [2, 128], strides = [1, 1]} : vector<8x128xf32> to vector<2x128xf32>
    %1098 = arith.truncf %1093 : vector<2x64xf32> to vector<2x64xbf16>
    %cst_207 = arith.constant dense<0.000000e+00> : vector<2x256xf32>
    %1099 = tpu.matmul %1098, %832, %cst_207 {dimension_numbers = #tpu.dot_dimension_numbers<[1], [0], [0], [1], [0, 0, 1, 1], [], []>} : vector<2x64xbf16>, vector<64x256xbf16>, vector<2x256xf32> -> vector<2x256xf32>
    %1100 = tpu.concatenate %1096, %1097 in 1 : vector<2x128xf32>, vector<2x128xf32> -> vector<2x256xf32>
    %1101 = arith.addf %1099, %1100 : vector<2x256xf32>
    %1102 = arith.negf %1101 : vector<2x256xf32>
    %1103 = math.exp %1102 : vector<2x256xf32>
    %cst_208 = arith.constant 1.000000e+00 : f32
    %1104 = vector.broadcast %cst_208 : f32 to vector<2x256xf32>
    %1105 = arith.addf %1104, %1103 : vector<2x256xf32>
    %1106 = arith.divf %1104, %1105 : vector<2x256xf32>
    %cst_209 = arith.constant 2.000000e+00 : f32
    %1107 = vector.broadcast %cst_209 : f32 to vector<2x256xf32>
    %1108 = arith.mulf %1107, %1106 : vector<2x256xf32>
    %cst_210 = arith.constant 1.000000e+00 : f32
    %1109 = vector.broadcast %cst_210 : f32 to vector<2x256xf32>
    %1110 = arith.subf %1108, %1109 : vector<2x256xf32>
    %1111 = arith.select %62, %1110, %1106 : vector<2x256xi1>, vector<2x256xf32>
    %1112 = vector.extract_strided_slice %1111 {offsets = [0, 0], sizes = [2, 32], strides = [1, 1]} : vector<2x256xf32> to vector<2x32xf32>
    %1113 = vector.extract_strided_slice %1111 {offsets = [0, 32], sizes = [2, 32], strides = [1, 1]} : vector<2x256xf32> to vector<2x32xf32>
    %1114 = vector.extract_strided_slice %1111 {offsets = [0, 64], sizes = [2, 32], strides = [1, 1]} : vector<2x256xf32> to vector<2x32xf32>
    %1115 = vector.extract_strided_slice %1111 {offsets = [0, 96], sizes = [2, 32], strides = [1, 1]} : vector<2x256xf32> to vector<2x32xf32>
    %1116 = vector.extract_strided_slice %1111 {offsets = [0, 128], sizes = [2, 32], strides = [1, 1]} : vector<2x256xf32> to vector<2x32xf32>
    %1117 = vector.extract_strided_slice %1111 {offsets = [0, 160], sizes = [2, 32], strides = [1, 1]} : vector<2x256xf32> to vector<2x32xf32>
    %1118 = vector.extract_strided_slice %1111 {offsets = [0, 192], sizes = [2, 32], strides = [1, 1]} : vector<2x256xf32> to vector<2x32xf32>
    %1119 = vector.extract_strided_slice %1111 {offsets = [0, 224], sizes = [2, 32], strides = [1, 1]} : vector<2x256xf32> to vector<2x32xf32>
    %1120 = arith.mulf %1113, %1086 : vector<2x32xf32>
    %1121 = arith.mulf %1112, %1114 : vector<2x32xf32>
    %1122 = arith.addf %1120, %1121 : vector<2x32xf32>
    %1123 = arith.mulf %1117, %1089 : vector<2x32xf32>
    %1124 = arith.mulf %1116, %1118 : vector<2x32xf32>
    %1125 = arith.addf %1123, %1124 : vector<2x32xf32>
    %1126 = tpu.concatenate %1122, %1125 in 1 : vector<2x32xf32>, vector<2x32xf32> -> vector<2x64xf32>
    %1127 = math.tanh %1126 : vector<2x64xf32>
    %1128 = tpu.concatenate %1115, %1119 in 1 : vector<2x32xf32>, vector<2x32xf32> -> vector<2x64xf32>
    %1129 = arith.mulf %1128, %1127 : vector<2x64xf32>
    %1130 = vector.extract_strided_slice %1129 {offsets = [0, 0], sizes = [2, 32], strides = [1, 1]} : vector<2x64xf32> to vector<2x32xf32>
    %1131 = vector.extract_strided_slice %1129 {offsets = [0, 32], sizes = [2, 32], strides = [1, 1]} : vector<2x64xf32> to vector<2x32xf32>
    %1132 = tpu.concatenate %1022, %1058, %1094, %1130 in 0 : vector<2x32xf32>, vector<2x32xf32>, vector<2x32xf32>, vector<2x32xf32> -> vector<8x32xf32>
    %c8_211 = arith.constant 8 : index
    %c0_212 = arith.constant 0 : index
    %1133 = vector.load %arg17[%c8_211, %c0_212] : memref<40x64xf32, #tpu.memory_space<vmem>>, vector<8x32xf32>
    tpu.vector_store %arg17[%c8_211, %c0_212], %1132 {strides = array<i32>} : memref<40x64xf32, #tpu.memory_space<vmem>>, vector<8x32xf32>,
    %1134 = tpu.concatenate %1131, %1095, %1059, %1023 in 0 : vector<2x32xf32>, vector<2x32xf32>, vector<2x32xf32>, vector<2x32xf32> -> vector<8x32xf32>
    %c24_213 = arith.constant 24 : index
    %c32_214 = arith.constant 32 : index
    %1135 = vector.load %arg17[%c24_213, %c32_214] : memref<40x64xf32, #tpu.memory_space<vmem>>, vector<8x32xf32>
    tpu.vector_store %arg17[%c24_213, %c32_214], %1134 {strides = array<i32>} : memref<40x64xf32, #tpu.memory_space<vmem>>, vector<8x32xf32>,
    %c16_215 = arith.constant 16 : index
    %c0_216 = arith.constant 0 : index
    %1136 = vector.load %arg16[%c16_215, %c0_216] : memref<40x256xf32, #tpu.memory_space<vmem>>, vector<8x128xf32>
    %c16_217 = arith.constant 16 : index
    %c128_218 = arith.constant 128 : index
    %1137 = vector.load %arg16[%c16_217, %c128_218] : memref<40x256xf32, #tpu.memory_space<vmem>>, vector<8x128xf32>
    %1138 = vector.extract_strided_slice %1136 {offsets = [0, 0], sizes = [2, 128], strides = [1, 1]} : vector<8x128xf32> to vector<2x128xf32>
    %1139 = vector.extract_strided_slice %1137 {offsets = [6, 0], sizes = [2, 128], strides = [1, 1]} : vector<8x128xf32> to vector<2x128xf32>
    %1140 = arith.truncf %1129 : vector<2x64xf32> to vector<2x64xbf16>
    %cst_219 = arith.constant dense<0.000000e+00> : vector<2x256xf32>
    %1141 = tpu.matmul %1140, %832, %cst_219 {dimension_numbers = #tpu.dot_dimension_numbers<[1], [0], [0], [1], [0, 0, 1, 1], [], []>} : vector<2x64xbf16>, vector<64x256xbf16>, vector<2x256xf32> -> vector<2x256xf32>
    %1142 = tpu.concatenate %1138, %1139 in 1 : vector<2x128xf32>, vector<2x128xf32> -> vector<2x256xf32>
    %1143 = arith.addf %1141, %1142 : vector<2x256xf32>
    %1144 = arith.negf %1143 : vector<2x256xf32>
    %1145 = math.exp %1144 : vector<2x256xf32>
    %cst_220 = arith.constant 1.000000e+00 : f32
    %1146 = vector.broadcast %cst_220 : f32 to vector<2x256xf32>
    %1147 = arith.addf %1146, %1145 : vector<2x256xf32>
    %1148 = arith.divf %1146, %1147 : vector<2x256xf32>
    %cst_221 = arith.constant 2.000000e+00 : f32
    %1149 = vector.broadcast %cst_221 : f32 to vector<2x256xf32>
    %1150 = arith.mulf %1149, %1148 : vector<2x256xf32>
    %cst_222 = arith.constant 1.000000e+00 : f32
    %1151 = vector.broadcast %cst_222 : f32 to vector<2x256xf32>
    %1152 = arith.subf %1150, %1151 : vector<2x256xf32>
    %1153 = arith.select %62, %1152, %1148 : vector<2x256xi1>, vector<2x256xf32>
    %1154 = vector.extract_strided_slice %1153 {offsets = [0, 0], sizes = [2, 32], strides = [1, 1]} : vector<2x256xf32> to vector<2x32xf32>
    %1155 = vector.extract_strided_slice %1153 {offsets = [0, 32], sizes = [2, 32], strides = [1, 1]} : vector<2x256xf32> to vector<2x32xf32>
    %1156 = vector.extract_strided_slice %1153 {offsets = [0, 64], sizes = [2, 32], strides = [1, 1]} : vector<2x256xf32> to vector<2x32xf32>
    %1157 = vector.extract_strided_slice %1153 {offsets = [0, 96], sizes = [2, 32], strides = [1, 1]} : vector<2x256xf32> to vector<2x32xf32>
    %1158 = vector.extract_strided_slice %1153 {offsets = [0, 128], sizes = [2, 32], strides = [1, 1]} : vector<2x256xf32> to vector<2x32xf32>
    %1159 = vector.extract_strided_slice %1153 {offsets = [0, 160], sizes = [2, 32], strides = [1, 1]} : vector<2x256xf32> to vector<2x32xf32>
    %1160 = vector.extract_strided_slice %1153 {offsets = [0, 192], sizes = [2, 32], strides = [1, 1]} : vector<2x256xf32> to vector<2x32xf32>
    %1161 = vector.extract_strided_slice %1153 {offsets = [0, 224], sizes = [2, 32], strides = [1, 1]} : vector<2x256xf32> to vector<2x32xf32>
    %1162 = arith.mulf %1155, %1122 : vector<2x32xf32>
    %1163 = arith.mulf %1154, %1156 : vector<2x32xf32>
    %1164 = arith.addf %1162, %1163 : vector<2x32xf32>
    %1165 = arith.mulf %1159, %1125 : vector<2x32xf32>
    %1166 = arith.mulf %1158, %1160 : vector<2x32xf32>
    %1167 = arith.addf %1165, %1166 : vector<2x32xf32>
    %1168 = tpu.concatenate %1164, %1167 in 1 : vector<2x32xf32>, vector<2x32xf32> -> vector<2x64xf32>
    %1169 = math.tanh %1168 : vector<2x64xf32>
    %1170 = tpu.concatenate %1157, %1161 in 1 : vector<2x32xf32>, vector<2x32xf32> -> vector<2x64xf32>
    %1171 = arith.mulf %1170, %1169 : vector<2x64xf32>
    %1172 = vector.extract_strided_slice %1171 {offsets = [0, 0], sizes = [2, 32], strides = [1, 1]} : vector<2x64xf32> to vector<2x32xf32>
    %1173 = vector.extract_strided_slice %1171 {offsets = [0, 32], sizes = [2, 32], strides = [1, 1]} : vector<2x64xf32> to vector<2x32xf32>
    %1174 = vector.extract_strided_slice %1136 {offsets = [2, 0], sizes = [2, 128], strides = [1, 1]} : vector<8x128xf32> to vector<2x128xf32>
    %1175 = vector.extract_strided_slice %1137 {offsets = [4, 0], sizes = [2, 128], strides = [1, 1]} : vector<8x128xf32> to vector<2x128xf32>
    %1176 = arith.truncf %1171 : vector<2x64xf32> to vector<2x64xbf16>
    %cst_223 = arith.constant dense<0.000000e+00> : vector<2x256xf32>
    %1177 = tpu.matmul %1176, %832, %cst_223 {dimension_numbers = #tpu.dot_dimension_numbers<[1], [0], [0], [1], [0, 0, 1, 1], [], []>} : vector<2x64xbf16>, vector<64x256xbf16>, vector<2x256xf32> -> vector<2x256xf32>
    %1178 = tpu.concatenate %1174, %1175 in 1 : vector<2x128xf32>, vector<2x128xf32> -> vector<2x256xf32>
    %1179 = arith.addf %1177, %1178 : vector<2x256xf32>
    %1180 = arith.negf %1179 : vector<2x256xf32>
    %1181 = math.exp %1180 : vector<2x256xf32>
    %cst_224 = arith.constant 1.000000e+00 : f32
    %1182 = vector.broadcast %cst_224 : f32 to vector<2x256xf32>
    %1183 = arith.addf %1182, %1181 : vector<2x256xf32>
    %1184 = arith.divf %1182, %1183 : vector<2x256xf32>
    %cst_225 = arith.constant 2.000000e+00 : f32
    %1185 = vector.broadcast %cst_225 : f32 to vector<2x256xf32>
    %1186 = arith.mulf %1185, %1184 : vector<2x256xf32>
    %cst_226 = arith.constant 1.000000e+00 : f32
    %1187 = vector.broadcast %cst_226 : f32 to vector<2x256xf32>
    %1188 = arith.subf %1186, %1187 : vector<2x256xf32>
    %1189 = arith.select %62, %1188, %1184 : vector<2x256xi1>, vector<2x256xf32>
    %1190 = vector.extract_strided_slice %1189 {offsets = [0, 0], sizes = [2, 32], strides = [1, 1]} : vector<2x256xf32> to vector<2x32xf32>
    %1191 = vector.extract_strided_slice %1189 {offsets = [0, 32], sizes = [2, 32], strides = [1, 1]} : vector<2x256xf32> to vector<2x32xf32>
    %1192 = vector.extract_strided_slice %1189 {offsets = [0, 64], sizes = [2, 32], strides = [1, 1]} : vector<2x256xf32> to vector<2x32xf32>
    %1193 = vector.extract_strided_slice %1189 {offsets = [0, 96], sizes = [2, 32], strides = [1, 1]} : vector<2x256xf32> to vector<2x32xf32>
    %1194 = vector.extract_strided_slice %1189 {offsets = [0, 128], sizes = [2, 32], strides = [1, 1]} : vector<2x256xf32> to vector<2x32xf32>
    %1195 = vector.extract_strided_slice %1189 {offsets = [0, 160], sizes = [2, 32], strides = [1, 1]} : vector<2x256xf32> to vector<2x32xf32>
    %1196 = vector.extract_strided_slice %1189 {offsets = [0, 192], sizes = [2, 32], strides = [1, 1]} : vector<2x256xf32> to vector<2x32xf32>
    %1197 = vector.extract_strided_slice %1189 {offsets = [0, 224], sizes = [2, 32], strides = [1, 1]} : vector<2x256xf32> to vector<2x32xf32>
    %1198 = arith.mulf %1191, %1164 : vector<2x32xf32>
    %1199 = arith.mulf %1190, %1192 : vector<2x32xf32>
    %1200 = arith.addf %1198, %1199 : vector<2x32xf32>
    %1201 = arith.mulf %1195, %1167 : vector<2x32xf32>
    %1202 = arith.mulf %1194, %1196 : vector<2x32xf32>
    %1203 = arith.addf %1201, %1202 : vector<2x32xf32>
    %1204 = tpu.concatenate %1200, %1203 in 1 : vector<2x32xf32>, vector<2x32xf32> -> vector<2x64xf32>
    %1205 = math.tanh %1204 : vector<2x64xf32>
    %1206 = tpu.concatenate %1193, %1197 in 1 : vector<2x32xf32>, vector<2x32xf32> -> vector<2x64xf32>
    %1207 = arith.mulf %1206, %1205 : vector<2x64xf32>
    %1208 = vector.extract_strided_slice %1207 {offsets = [0, 0], sizes = [2, 32], strides = [1, 1]} : vector<2x64xf32> to vector<2x32xf32>
    %1209 = vector.extract_strided_slice %1207 {offsets = [0, 32], sizes = [2, 32], strides = [1, 1]} : vector<2x64xf32> to vector<2x32xf32>
    %1210 = vector.extract_strided_slice %1136 {offsets = [4, 0], sizes = [2, 128], strides = [1, 1]} : vector<8x128xf32> to vector<2x128xf32>
    %1211 = vector.extract_strided_slice %1137 {offsets = [2, 0], sizes = [2, 128], strides = [1, 1]} : vector<8x128xf32> to vector<2x128xf32>
    %1212 = arith.truncf %1207 : vector<2x64xf32> to vector<2x64xbf16>
    %cst_227 = arith.constant dense<0.000000e+00> : vector<2x256xf32>
    %1213 = tpu.matmul %1212, %832, %cst_227 {dimension_numbers = #tpu.dot_dimension_numbers<[1], [0], [0], [1], [0, 0, 1, 1], [], []>} : vector<2x64xbf16>, vector<64x256xbf16>, vector<2x256xf32> -> vector<2x256xf32>
    %1214 = tpu.concatenate %1210, %1211 in 1 : vector<2x128xf32>, vector<2x128xf32> -> vector<2x256xf32>
    %1215 = arith.addf %1213, %1214 : vector<2x256xf32>
    %1216 = arith.negf %1215 : vector<2x256xf32>
    %1217 = math.exp %1216 : vector<2x256xf32>
    %cst_228 = arith.constant 1.000000e+00 : f32
    %1218 = vector.broadcast %cst_228 : f32 to vector<2x256xf32>
    %1219 = arith.addf %1218, %1217 : vector<2x256xf32>
    %1220 = arith.divf %1218, %1219 : vector<2x256xf32>
    %cst_229 = arith.constant 2.000000e+00 : f32
    %1221 = vector.broadcast %cst_229 : f32 to vector<2x256xf32>
    %1222 = arith.mulf %1221, %1220 : vector<2x256xf32>
    %cst_230 = arith.constant 1.000000e+00 : f32
    %1223 = vector.broadcast %cst_230 : f32 to vector<2x256xf32>
    %1224 = arith.subf %1222, %1223 : vector<2x256xf32>
    %1225 = arith.select %62, %1224, %1220 : vector<2x256xi1>, vector<2x256xf32>
    %1226 = vector.extract_strided_slice %1225 {offsets = [0, 0], sizes = [2, 32], strides = [1, 1]} : vector<2x256xf32> to vector<2x32xf32>
    %1227 = vector.extract_strided_slice %1225 {offsets = [0, 32], sizes = [2, 32], strides = [1, 1]} : vector<2x256xf32> to vector<2x32xf32>
    %1228 = vector.extract_strided_slice %1225 {offsets = [0, 64], sizes = [2, 32], strides = [1, 1]} : vector<2x256xf32> to vector<2x32xf32>
    %1229 = vector.extract_strided_slice %1225 {offsets = [0, 96], sizes = [2, 32], strides = [1, 1]} : vector<2x256xf32> to vector<2x32xf32>
    %1230 = vector.extract_strided_slice %1225 {offsets = [0, 128], sizes = [2, 32], strides = [1, 1]} : vector<2x256xf32> to vector<2x32xf32>
    %1231 = vector.extract_strided_slice %1225 {offsets = [0, 160], sizes = [2, 32], strides = [1, 1]} : vector<2x256xf32> to vector<2x32xf32>
    %1232 = vector.extract_strided_slice %1225 {offsets = [0, 192], sizes = [2, 32], strides = [1, 1]} : vector<2x256xf32> to vector<2x32xf32>
    %1233 = vector.extract_strided_slice %1225 {offsets = [0, 224], sizes = [2, 32], strides = [1, 1]} : vector<2x256xf32> to vector<2x32xf32>
    %1234 = arith.mulf %1227, %1200 : vector<2x32xf32>
    %1235 = arith.mulf %1226, %1228 : vector<2x32xf32>
    %1236 = arith.addf %1234, %1235 : vector<2x32xf32>
    %1237 = arith.mulf %1231, %1203 : vector<2x32xf32>
    %1238 = arith.mulf %1230, %1232 : vector<2x32xf32>
    %1239 = arith.addf %1237, %1238 : vector<2x32xf32>
    %1240 = tpu.concatenate %1236, %1239 in 1 : vector<2x32xf32>, vector<2x32xf32> -> vector<2x64xf32>
    %1241 = math.tanh %1240 : vector<2x64xf32>
    %1242 = tpu.concatenate %1229, %1233 in 1 : vector<2x32xf32>, vector<2x32xf32> -> vector<2x64xf32>
    %1243 = arith.mulf %1242, %1241 : vector<2x64xf32>
    %1244 = vector.extract_strided_slice %1243 {offsets = [0, 0], sizes = [2, 32], strides = [1, 1]} : vector<2x64xf32> to vector<2x32xf32>
    %1245 = vector.extract_strided_slice %1243 {offsets = [0, 32], sizes = [2, 32], strides = [1, 1]} : vector<2x64xf32> to vector<2x32xf32>
    %1246 = vector.extract_strided_slice %1136 {offsets = [6, 0], sizes = [2, 128], strides = [1, 1]} : vector<8x128xf32> to vector<2x128xf32>
    %1247 = vector.extract_strided_slice %1137 {offsets = [0, 0], sizes = [2, 128], strides = [1, 1]} : vector<8x128xf32> to vector<2x128xf32>
    %1248 = arith.truncf %1243 : vector<2x64xf32> to vector<2x64xbf16>
    %cst_231 = arith.constant dense<0.000000e+00> : vector<2x256xf32>
    %1249 = tpu.matmul %1248, %832, %cst_231 {dimension_numbers = #tpu.dot_dimension_numbers<[1], [0], [0], [1], [0, 0, 1, 1], [], []>} : vector<2x64xbf16>, vector<64x256xbf16>, vector<2x256xf32> -> vector<2x256xf32>
    %1250 = tpu.concatenate %1246, %1247 in 1 : vector<2x128xf32>, vector<2x128xf32> -> vector<2x256xf32>
    %1251 = arith.addf %1249, %1250 : vector<2x256xf32>
    %1252 = arith.negf %1251 : vector<2x256xf32>
    %1253 = math.exp %1252 : vector<2x256xf32>
    %cst_232 = arith.constant 1.000000e+00 : f32
    %1254 = vector.broadcast %cst_232 : f32 to vector<2x256xf32>
    %1255 = arith.addf %1254, %1253 : vector<2x256xf32>
    %1256 = arith.divf %1254, %1255 : vector<2x256xf32>
    %cst_233 = arith.constant 2.000000e+00 : f32
    %1257 = vector.broadcast %cst_233 : f32 to vector<2x256xf32>
    %1258 = arith.mulf %1257, %1256 : vector<2x256xf32>
    %cst_234 = arith.constant 1.000000e+00 : f32
    %1259 = vector.broadcast %cst_234 : f32 to vector<2x256xf32>
    %1260 = arith.subf %1258, %1259 : vector<2x256xf32>
    %1261 = arith.select %62, %1260, %1256 : vector<2x256xi1>, vector<2x256xf32>
    %1262 = vector.extract_strided_slice %1261 {offsets = [0, 0], sizes = [2, 32], strides = [1, 1]} : vector<2x256xf32> to vector<2x32xf32>
    %1263 = vector.extract_strided_slice %1261 {offsets = [0, 32], sizes = [2, 32], strides = [1, 1]} : vector<2x256xf32> to vector<2x32xf32>
    %1264 = vector.extract_strided_slice %1261 {offsets = [0, 64], sizes = [2, 32], strides = [1, 1]} : vector<2x256xf32> to vector<2x32xf32>
    %1265 = vector.extract_strided_slice %1261 {offsets = [0, 96], sizes = [2, 32], strides = [1, 1]} : vector<2x256xf32> to vector<2x32xf32>
    %1266 = vector.extract_strided_slice %1261 {offsets = [0, 128], sizes = [2, 32], strides = [1, 1]} : vector<2x256xf32> to vector<2x32xf32>
    %1267 = vector.extract_strided_slice %1261 {offsets = [0, 160], sizes = [2, 32], strides = [1, 1]} : vector<2x256xf32> to vector<2x32xf32>
    %1268 = vector.extract_strided_slice %1261 {offsets = [0, 192], sizes = [2, 32], strides = [1, 1]} : vector<2x256xf32> to vector<2x32xf32>
    %1269 = vector.extract_strided_slice %1261 {offsets = [0, 224], sizes = [2, 32], strides = [1, 1]} : vector<2x256xf32> to vector<2x32xf32>
    %1270 = arith.mulf %1263, %1236 : vector<2x32xf32>
    %1271 = arith.mulf %1262, %1264 : vector<2x32xf32>
    %1272 = arith.addf %1270, %1271 : vector<2x32xf32>
    %1273 = arith.mulf %1267, %1239 : vector<2x32xf32>
    %1274 = arith.mulf %1266, %1268 : vector<2x32xf32>
    %1275 = arith.addf %1273, %1274 : vector<2x32xf32>
    %1276 = tpu.concatenate %1272, %1275 in 1 : vector<2x32xf32>, vector<2x32xf32> -> vector<2x64xf32>
    %1277 = math.tanh %1276 : vector<2x64xf32>
    %1278 = tpu.concatenate %1265, %1269 in 1 : vector<2x32xf32>, vector<2x32xf32> -> vector<2x64xf32>
    %1279 = arith.mulf %1278, %1277 : vector<2x64xf32>
    %1280 = vector.extract_strided_slice %1279 {offsets = [0, 0], sizes = [2, 32], strides = [1, 1]} : vector<2x64xf32> to vector<2x32xf32>
    %1281 = vector.extract_strided_slice %1279 {offsets = [0, 32], sizes = [2, 32], strides = [1, 1]} : vector<2x64xf32> to vector<2x32xf32>
    %1282 = tpu.concatenate %1172, %1208, %1244, %1280 in 0 : vector<2x32xf32>, vector<2x32xf32>, vector<2x32xf32>, vector<2x32xf32> -> vector<8x32xf32>
    %c16_235 = arith.constant 16 : index
    %c0_236 = arith.constant 0 : index
    %1283 = vector.load %arg17[%c16_235, %c0_236] : memref<40x64xf32, #tpu.memory_space<vmem>>, vector<8x32xf32>
    tpu.vector_store %arg17[%c16_235, %c0_236], %1282 {strides = array<i32>} : memref<40x64xf32, #tpu.memory_space<vmem>>, vector<8x32xf32>,
    %1284 = tpu.concatenate %1281, %1245, %1209, %1173 in 0 : vector<2x32xf32>, vector<2x32xf32>, vector<2x32xf32>, vector<2x32xf32> -> vector<8x32xf32>
    %c16_237 = arith.constant 16 : index
    %c32_238 = arith.constant 32 : index
    %1285 = vector.load %arg17[%c16_237, %c32_238] : memref<40x64xf32, #tpu.memory_space<vmem>>, vector<8x32xf32>
    tpu.vector_store %arg17[%c16_237, %c32_238], %1284 {strides = array<i32>} : memref<40x64xf32, #tpu.memory_space<vmem>>, vector<8x32xf32>,
    %c24_239 = arith.constant 24 : index
    %c0_240 = arith.constant 0 : index
    %1286 = vector.load %arg16[%c24_239, %c0_240] : memref<40x256xf32, #tpu.memory_space<vmem>>, vector<8x128xf32>
    %c8_241 = arith.constant 8 : index
    %c128_242 = arith.constant 128 : index
    %1287 = vector.load %arg16[%c8_241, %c128_242] : memref<40x256xf32, #tpu.memory_space<vmem>>, vector<8x128xf32>
    %1288 = vector.extract_strided_slice %1286 {offsets = [0, 0], sizes = [2, 128], strides = [1, 1]} : vector<8x128xf32> to vector<2x128xf32>
    %1289 = vector.extract_strided_slice %1287 {offsets = [6, 0], sizes = [2, 128], strides = [1, 1]} : vector<8x128xf32> to vector<2x128xf32>
    %1290 = arith.truncf %1279 : vector<2x64xf32> to vector<2x64xbf16>
    %cst_243 = arith.constant dense<0.000000e+00> : vector<2x256xf32>
    %1291 = tpu.matmul %1290, %832, %cst_243 {dimension_numbers = #tpu.dot_dimension_numbers<[1], [0], [0], [1], [0, 0, 1, 1], [], []>} : vector<2x64xbf16>, vector<64x256xbf16>, vector<2x256xf32> -> vector<2x256xf32>
    %1292 = tpu.concatenate %1288, %1289 in 1 : vector<2x128xf32>, vector<2x128xf32> -> vector<2x256xf32>
    %1293 = arith.addf %1291, %1292 : vector<2x256xf32>
    %1294 = arith.negf %1293 : vector<2x256xf32>
    %1295 = math.exp %1294 : vector<2x256xf32>
    %cst_244 = arith.constant 1.000000e+00 : f32
    %1296 = vector.broadcast %cst_244 : f32 to vector<2x256xf32>
    %1297 = arith.addf %1296, %1295 : vector<2x256xf32>
    %1298 = arith.divf %1296, %1297 : vector<2x256xf32>
    %cst_245 = arith.constant 2.000000e+00 : f32
    %1299 = vector.broadcast %cst_245 : f32 to vector<2x256xf32>
    %1300 = arith.mulf %1299, %1298 : vector<2x256xf32>
    %cst_246 = arith.constant 1.000000e+00 : f32
    %1301 = vector.broadcast %cst_246 : f32 to vector<2x256xf32>
    %1302 = arith.subf %1300, %1301 : vector<2x256xf32>
    %1303 = arith.select %62, %1302, %1298 : vector<2x256xi1>, vector<2x256xf32>
    %1304 = vector.extract_strided_slice %1303 {offsets = [0, 0], sizes = [2, 32], strides = [1, 1]} : vector<2x256xf32> to vector<2x32xf32>
    %1305 = vector.extract_strided_slice %1303 {offsets = [0, 32], sizes = [2, 32], strides = [1, 1]} : vector<2x256xf32> to vector<2x32xf32>
    %1306 = vector.extract_strided_slice %1303 {offsets = [0, 64], sizes = [2, 32], strides = [1, 1]} : vector<2x256xf32> to vector<2x32xf32>
    %1307 = vector.extract_strided_slice %1303 {offsets = [0, 96], sizes = [2, 32], strides = [1, 1]} : vector<2x256xf32> to vector<2x32xf32>
    %1308 = vector.extract_strided_slice %1303 {offsets = [0, 128], sizes = [2, 32], strides = [1, 1]} : vector<2x256xf32> to vector<2x32xf32>
    %1309 = vector.extract_strided_slice %1303 {offsets = [0, 160], sizes = [2, 32], strides = [1, 1]} : vector<2x256xf32> to vector<2x32xf32>
    %1310 = vector.extract_strided_slice %1303 {offsets = [0, 192], sizes = [2, 32], strides = [1, 1]} : vector<2x256xf32> to vector<2x32xf32>
    %1311 = vector.extract_strided_slice %1303 {offsets = [0, 224], sizes = [2, 32], strides = [1, 1]} : vector<2x256xf32> to vector<2x32xf32>
    %1312 = arith.mulf %1305, %1272 : vector<2x32xf32>
    %1313 = arith.mulf %1304, %1306 : vector<2x32xf32>
    %1314 = arith.addf %1312, %1313 : vector<2x32xf32>
    %1315 = arith.mulf %1309, %1275 : vector<2x32xf32>
    %1316 = arith.mulf %1308, %1310 : vector<2x32xf32>
    %1317 = arith.addf %1315, %1316 : vector<2x32xf32>
    %1318 = tpu.concatenate %1314, %1317 in 1 : vector<2x32xf32>, vector<2x32xf32> -> vector<2x64xf32>
    %1319 = math.tanh %1318 : vector<2x64xf32>
    %1320 = tpu.concatenate %1307, %1311 in 1 : vector<2x32xf32>, vector<2x32xf32> -> vector<2x64xf32>
    %1321 = arith.mulf %1320, %1319 : vector<2x64xf32>
    %1322 = vector.extract_strided_slice %1321 {offsets = [0, 0], sizes = [2, 32], strides = [1, 1]} : vector<2x64xf32> to vector<2x32xf32>
    %1323 = vector.extract_strided_slice %1321 {offsets = [0, 32], sizes = [2, 32], strides = [1, 1]} : vector<2x64xf32> to vector<2x32xf32>
    %1324 = vector.extract_strided_slice %1286 {offsets = [2, 0], sizes = [2, 128], strides = [1, 1]} : vector<8x128xf32> to vector<2x128xf32>
    %1325 = vector.extract_strided_slice %1287 {offsets = [4, 0], sizes = [2, 128], strides = [1, 1]} : vector<8x128xf32> to vector<2x128xf32>
    %1326 = arith.truncf %1321 : vector<2x64xf32> to vector<2x64xbf16>
    %cst_247 = arith.constant dense<0.000000e+00> : vector<2x256xf32>
    %1327 = tpu.matmul %1326, %832, %cst_247 {dimension_numbers = #tpu.dot_dimension_numbers<[1], [0], [0], [1], [0, 0, 1, 1], [], []>} : vector<2x64xbf16>, vector<64x256xbf16>, vector<2x256xf32> -> vector<2x256xf32>
    %1328 = tpu.concatenate %1324, %1325 in 1 : vector<2x128xf32>, vector<2x128xf32> -> vector<2x256xf32>
    %1329 = arith.addf %1327, %1328 : vector<2x256xf32>
    %1330 = arith.negf %1329 : vector<2x256xf32>
    %1331 = math.exp %1330 : vector<2x256xf32>
    %cst_248 = arith.constant 1.000000e+00 : f32
    %1332 = vector.broadcast %cst_248 : f32 to vector<2x256xf32>
    %1333 = arith.addf %1332, %1331 : vector<2x256xf32>
    %1334 = arith.divf %1332, %1333 : vector<2x256xf32>
    %cst_249 = arith.constant 2.000000e+00 : f32
    %1335 = vector.broadcast %cst_249 : f32 to vector<2x256xf32>
    %1336 = arith.mulf %1335, %1334 : vector<2x256xf32>
    %cst_250 = arith.constant 1.000000e+00 : f32
    %1337 = vector.broadcast %cst_250 : f32 to vector<2x256xf32>
    %1338 = arith.subf %1336, %1337 : vector<2x256xf32>
    %1339 = arith.select %62, %1338, %1334 : vector<2x256xi1>, vector<2x256xf32>
    %1340 = vector.extract_strided_slice %1339 {offsets = [0, 0], sizes = [2, 32], strides = [1, 1]} : vector<2x256xf32> to vector<2x32xf32>
    %1341 = vector.extract_strided_slice %1339 {offsets = [0, 32], sizes = [2, 32], strides = [1, 1]} : vector<2x256xf32> to vector<2x32xf32>
    %1342 = vector.extract_strided_slice %1339 {offsets = [0, 64], sizes = [2, 32], strides = [1, 1]} : vector<2x256xf32> to vector<2x32xf32>
    %1343 = vector.extract_strided_slice %1339 {offsets = [0, 96], sizes = [2, 32], strides = [1, 1]} : vector<2x256xf32> to vector<2x32xf32>
    %1344 = vector.extract_strided_slice %1339 {offsets = [0, 128], sizes = [2, 32], strides = [1, 1]} : vector<2x256xf32> to vector<2x32xf32>
    %1345 = vector.extract_strided_slice %1339 {offsets = [0, 160], sizes = [2, 32], strides = [1, 1]} : vector<2x256xf32> to vector<2x32xf32>
    %1346 = vector.extract_strided_slice %1339 {offsets = [0, 192], sizes = [2, 32], strides = [1, 1]} : vector<2x256xf32> to vector<2x32xf32>
    %1347 = vector.extract_strided_slice %1339 {offsets = [0, 224], sizes = [2, 32], strides = [1, 1]} : vector<2x256xf32> to vector<2x32xf32>
    %1348 = arith.mulf %1341, %1314 : vector<2x32xf32>
    %1349 = arith.mulf %1340, %1342 : vector<2x32xf32>
    %1350 = arith.addf %1348, %1349 : vector<2x32xf32>
    %1351 = arith.mulf %1345, %1317 : vector<2x32xf32>
    %1352 = arith.mulf %1344, %1346 : vector<2x32xf32>
    %1353 = arith.addf %1351, %1352 : vector<2x32xf32>
    %1354 = tpu.concatenate %1350, %1353 in 1 : vector<2x32xf32>, vector<2x32xf32> -> vector<2x64xf32>
    %1355 = math.tanh %1354 : vector<2x64xf32>
    %1356 = tpu.concatenate %1343, %1347 in 1 : vector<2x32xf32>, vector<2x32xf32> -> vector<2x64xf32>
    %1357 = arith.mulf %1356, %1355 : vector<2x64xf32>
    %1358 = vector.extract_strided_slice %1357 {offsets = [0, 0], sizes = [2, 32], strides = [1, 1]} : vector<2x64xf32> to vector<2x32xf32>
    %1359 = vector.extract_strided_slice %1357 {offsets = [0, 32], sizes = [2, 32], strides = [1, 1]} : vector<2x64xf32> to vector<2x32xf32>
    %1360 = vector.extract_strided_slice %1286 {offsets = [4, 0], sizes = [2, 128], strides = [1, 1]} : vector<8x128xf32> to vector<2x128xf32>
    %1361 = vector.extract_strided_slice %1287 {offsets = [2, 0], sizes = [2, 128], strides = [1, 1]} : vector<8x128xf32> to vector<2x128xf32>
    %1362 = arith.truncf %1357 : vector<2x64xf32> to vector<2x64xbf16>
    %cst_251 = arith.constant dense<0.000000e+00> : vector<2x256xf32>
    %1363 = tpu.matmul %1362, %832, %cst_251 {dimension_numbers = #tpu.dot_dimension_numbers<[1], [0], [0], [1], [0, 0, 1, 1], [], []>} : vector<2x64xbf16>, vector<64x256xbf16>, vector<2x256xf32> -> vector<2x256xf32>
    %1364 = tpu.concatenate %1360, %1361 in 1 : vector<2x128xf32>, vector<2x128xf32> -> vector<2x256xf32>
    %1365 = arith.addf %1363, %1364 : vector<2x256xf32>
    %1366 = arith.negf %1365 : vector<2x256xf32>
    %1367 = math.exp %1366 : vector<2x256xf32>
    %cst_252 = arith.constant 1.000000e+00 : f32
    %1368 = vector.broadcast %cst_252 : f32 to vector<2x256xf32>
    %1369 = arith.addf %1368, %1367 : vector<2x256xf32>
    %1370 = arith.divf %1368, %1369 : vector<2x256xf32>
    %cst_253 = arith.constant 2.000000e+00 : f32
    %1371 = vector.broadcast %cst_253 : f32 to vector<2x256xf32>
    %1372 = arith.mulf %1371, %1370 : vector<2x256xf32>
    %cst_254 = arith.constant 1.000000e+00 : f32
    %1373 = vector.broadcast %cst_254 : f32 to vector<2x256xf32>
    %1374 = arith.subf %1372, %1373 : vector<2x256xf32>
    %1375 = arith.select %62, %1374, %1370 : vector<2x256xi1>, vector<2x256xf32>
    %1376 = vector.extract_strided_slice %1375 {offsets = [0, 0], sizes = [2, 32], strides = [1, 1]} : vector<2x256xf32> to vector<2x32xf32>
    %1377 = vector.extract_strided_slice %1375 {offsets = [0, 32], sizes = [2, 32], strides = [1, 1]} : vector<2x256xf32> to vector<2x32xf32>
    %1378 = vector.extract_strided_slice %1375 {offsets = [0, 64], sizes = [2, 32], strides = [1, 1]} : vector<2x256xf32> to vector<2x32xf32>
    %1379 = vector.extract_strided_slice %1375 {offsets = [0, 96], sizes = [2, 32], strides = [1, 1]} : vector<2x256xf32> to vector<2x32xf32>
    %1380 = vector.extract_strided_slice %1375 {offsets = [0, 128], sizes = [2, 32], strides = [1, 1]} : vector<2x256xf32> to vector<2x32xf32>
    %1381 = vector.extract_strided_slice %1375 {offsets = [0, 160], sizes = [2, 32], strides = [1, 1]} : vector<2x256xf32> to vector<2x32xf32>
    %1382 = vector.extract_strided_slice %1375 {offsets = [0, 192], sizes = [2, 32], strides = [1, 1]} : vector<2x256xf32> to vector<2x32xf32>
    %1383 = vector.extract_strided_slice %1375 {offsets = [0, 224], sizes = [2, 32], strides = [1, 1]} : vector<2x256xf32> to vector<2x32xf32>
    %1384 = arith.mulf %1377, %1350 : vector<2x32xf32>
    %1385 = arith.mulf %1376, %1378 : vector<2x32xf32>
    %1386 = arith.addf %1384, %1385 : vector<2x32xf32>
    %1387 = arith.mulf %1381, %1353 : vector<2x32xf32>
    %1388 = arith.mulf %1380, %1382 : vector<2x32xf32>
    %1389 = arith.addf %1387, %1388 : vector<2x32xf32>
    %1390 = tpu.concatenate %1386, %1389 in 1 : vector<2x32xf32>, vector<2x32xf32> -> vector<2x64xf32>
    %1391 = math.tanh %1390 : vector<2x64xf32>
    %1392 = tpu.concatenate %1379, %1383 in 1 : vector<2x32xf32>, vector<2x32xf32> -> vector<2x64xf32>
    %1393 = arith.mulf %1392, %1391 : vector<2x64xf32>
    %1394 = vector.extract_strided_slice %1393 {offsets = [0, 0], sizes = [2, 32], strides = [1, 1]} : vector<2x64xf32> to vector<2x32xf32>
    %1395 = vector.extract_strided_slice %1393 {offsets = [0, 32], sizes = [2, 32], strides = [1, 1]} : vector<2x64xf32> to vector<2x32xf32>
    %1396 = vector.extract_strided_slice %1286 {offsets = [6, 0], sizes = [2, 128], strides = [1, 1]} : vector<8x128xf32> to vector<2x128xf32>
    %1397 = vector.extract_strided_slice %1287 {offsets = [0, 0], sizes = [2, 128], strides = [1, 1]} : vector<8x128xf32> to vector<2x128xf32>
    %1398 = arith.truncf %1393 : vector<2x64xf32> to vector<2x64xbf16>
    %cst_255 = arith.constant dense<0.000000e+00> : vector<2x256xf32>
    %1399 = tpu.matmul %1398, %832, %cst_255 {dimension_numbers = #tpu.dot_dimension_numbers<[1], [0], [0], [1], [0, 0, 1, 1], [], []>} : vector<2x64xbf16>, vector<64x256xbf16>, vector<2x256xf32> -> vector<2x256xf32>
    %1400 = tpu.concatenate %1396, %1397 in 1 : vector<2x128xf32>, vector<2x128xf32> -> vector<2x256xf32>
    %1401 = arith.addf %1399, %1400 : vector<2x256xf32>
    %1402 = arith.negf %1401 : vector<2x256xf32>
    %1403 = math.exp %1402 : vector<2x256xf32>
    %cst_256 = arith.constant 1.000000e+00 : f32
    %1404 = vector.broadcast %cst_256 : f32 to vector<2x256xf32>
    %1405 = arith.addf %1404, %1403 : vector<2x256xf32>
    %1406 = arith.divf %1404, %1405 : vector<2x256xf32>
    %cst_257 = arith.constant 2.000000e+00 : f32
    %1407 = vector.broadcast %cst_257 : f32 to vector<2x256xf32>
    %1408 = arith.mulf %1407, %1406 : vector<2x256xf32>
    %cst_258 = arith.constant 1.000000e+00 : f32
    %1409 = vector.broadcast %cst_258 : f32 to vector<2x256xf32>
    %1410 = arith.subf %1408, %1409 : vector<2x256xf32>
    %1411 = arith.select %62, %1410, %1406 : vector<2x256xi1>, vector<2x256xf32>
    %1412 = vector.extract_strided_slice %1411 {offsets = [0, 0], sizes = [2, 32], strides = [1, 1]} : vector<2x256xf32> to vector<2x32xf32>
    %1413 = vector.extract_strided_slice %1411 {offsets = [0, 32], sizes = [2, 32], strides = [1, 1]} : vector<2x256xf32> to vector<2x32xf32>
    %1414 = vector.extract_strided_slice %1411 {offsets = [0, 64], sizes = [2, 32], strides = [1, 1]} : vector<2x256xf32> to vector<2x32xf32>
    %1415 = vector.extract_strided_slice %1411 {offsets = [0, 96], sizes = [2, 32], strides = [1, 1]} : vector<2x256xf32> to vector<2x32xf32>
    %1416 = vector.extract_strided_slice %1411 {offsets = [0, 128], sizes = [2, 32], strides = [1, 1]} : vector<2x256xf32> to vector<2x32xf32>
    %1417 = vector.extract_strided_slice %1411 {offsets = [0, 160], sizes = [2, 32], strides = [1, 1]} : vector<2x256xf32> to vector<2x32xf32>
    %1418 = vector.extract_strided_slice %1411 {offsets = [0, 192], sizes = [2, 32], strides = [1, 1]} : vector<2x256xf32> to vector<2x32xf32>
    %1419 = vector.extract_strided_slice %1411 {offsets = [0, 224], sizes = [2, 32], strides = [1, 1]} : vector<2x256xf32> to vector<2x32xf32>
    %1420 = arith.mulf %1413, %1386 : vector<2x32xf32>
    %1421 = arith.mulf %1412, %1414 : vector<2x32xf32>
    %1422 = arith.addf %1420, %1421 : vector<2x32xf32>
    %1423 = arith.mulf %1417, %1389 : vector<2x32xf32>
    %1424 = arith.mulf %1416, %1418 : vector<2x32xf32>
    %1425 = arith.addf %1423, %1424 : vector<2x32xf32>
    %1426 = tpu.concatenate %1422, %1425 in 1 : vector<2x32xf32>, vector<2x32xf32> -> vector<2x64xf32>
    %1427 = math.tanh %1426 : vector<2x64xf32>
    %1428 = tpu.concatenate %1415, %1419 in 1 : vector<2x32xf32>, vector<2x32xf32> -> vector<2x64xf32>
    %1429 = arith.mulf %1428, %1427 : vector<2x64xf32>
    %1430 = vector.extract_strided_slice %1429 {offsets = [0, 0], sizes = [2, 32], strides = [1, 1]} : vector<2x64xf32> to vector<2x32xf32>
    %1431 = vector.extract_strided_slice %1429 {offsets = [0, 32], sizes = [2, 32], strides = [1, 1]} : vector<2x64xf32> to vector<2x32xf32>
    %1432 = tpu.concatenate %1322, %1358, %1394, %1430 in 0 : vector<2x32xf32>, vector<2x32xf32>, vector<2x32xf32>, vector<2x32xf32> -> vector<8x32xf32>
    %c24_259 = arith.constant 24 : index
    %c0_260 = arith.constant 0 : index
    %1433 = vector.load %arg17[%c24_259, %c0_260] : memref<40x64xf32, #tpu.memory_space<vmem>>, vector<8x32xf32>
    tpu.vector_store %arg17[%c24_259, %c0_260], %1432 {strides = array<i32>} : memref<40x64xf32, #tpu.memory_space<vmem>>, vector<8x32xf32>,
    %1434 = tpu.concatenate %1431, %1395, %1359, %1323 in 0 : vector<2x32xf32>, vector<2x32xf32>, vector<2x32xf32>, vector<2x32xf32> -> vector<8x32xf32>
    %c8_261 = arith.constant 8 : index
    %c32_262 = arith.constant 32 : index
    %1435 = vector.load %arg17[%c8_261, %c32_262] : memref<40x64xf32, #tpu.memory_space<vmem>>, vector<8x32xf32>
    tpu.vector_store %arg17[%c8_261, %c32_262], %1434 {strides = array<i32>} : memref<40x64xf32, #tpu.memory_space<vmem>>, vector<8x32xf32>,
    %c32_263 = arith.constant 32 : index
    %c0_264 = arith.constant 0 : index
    %1436 = vector.load %arg16[%c32_263, %c0_264] : memref<40x256xf32, #tpu.memory_space<vmem>>, vector<8x128xf32>
    %c0_265 = arith.constant 0 : index
    %c128_266 = arith.constant 128 : index
    %1437 = vector.load %arg16[%c0_265, %c128_266] : memref<40x256xf32, #tpu.memory_space<vmem>>, vector<8x128xf32>
    %1438 = vector.extract_strided_slice %1436 {offsets = [0, 0], sizes = [2, 128], strides = [1, 1]} : vector<8x128xf32> to vector<2x128xf32>
    %1439 = vector.extract_strided_slice %1437 {offsets = [6, 0], sizes = [2, 128], strides = [1, 1]} : vector<8x128xf32> to vector<2x128xf32>
    %1440 = arith.truncf %1429 : vector<2x64xf32> to vector<2x64xbf16>
    %cst_267 = arith.constant dense<0.000000e+00> : vector<2x256xf32>
    %1441 = tpu.matmul %1440, %832, %cst_267 {dimension_numbers = #tpu.dot_dimension_numbers<[1], [0], [0], [1], [0, 0, 1, 1], [], []>} : vector<2x64xbf16>, vector<64x256xbf16>, vector<2x256xf32> -> vector<2x256xf32>
    %1442 = tpu.concatenate %1438, %1439 in 1 : vector<2x128xf32>, vector<2x128xf32> -> vector<2x256xf32>
    %1443 = arith.addf %1441, %1442 : vector<2x256xf32>
    %1444 = arith.negf %1443 : vector<2x256xf32>
    %1445 = math.exp %1444 : vector<2x256xf32>
    %cst_268 = arith.constant 1.000000e+00 : f32
    %1446 = vector.broadcast %cst_268 : f32 to vector<2x256xf32>
    %1447 = arith.addf %1446, %1445 : vector<2x256xf32>
    %1448 = arith.divf %1446, %1447 : vector<2x256xf32>
    %cst_269 = arith.constant 2.000000e+00 : f32
    %1449 = vector.broadcast %cst_269 : f32 to vector<2x256xf32>
    %1450 = arith.mulf %1449, %1448 : vector<2x256xf32>
    %cst_270 = arith.constant 1.000000e+00 : f32
    %1451 = vector.broadcast %cst_270 : f32 to vector<2x256xf32>
    %1452 = arith.subf %1450, %1451 : vector<2x256xf32>
    %1453 = arith.select %62, %1452, %1448 : vector<2x256xi1>, vector<2x256xf32>
    %1454 = vector.extract_strided_slice %1453 {offsets = [0, 0], sizes = [2, 32], strides = [1, 1]} : vector<2x256xf32> to vector<2x32xf32>
    %1455 = vector.extract_strided_slice %1453 {offsets = [0, 32], sizes = [2, 32], strides = [1, 1]} : vector<2x256xf32> to vector<2x32xf32>
    %1456 = vector.extract_strided_slice %1453 {offsets = [0, 64], sizes = [2, 32], strides = [1, 1]} : vector<2x256xf32> to vector<2x32xf32>
    %1457 = vector.extract_strided_slice %1453 {offsets = [0, 96], sizes = [2, 32], strides = [1, 1]} : vector<2x256xf32> to vector<2x32xf32>
    %1458 = vector.extract_strided_slice %1453 {offsets = [0, 128], sizes = [2, 32], strides = [1, 1]} : vector<2x256xf32> to vector<2x32xf32>
    %1459 = vector.extract_strided_slice %1453 {offsets = [0, 160], sizes = [2, 32], strides = [1, 1]} : vector<2x256xf32> to vector<2x32xf32>
    %1460 = vector.extract_strided_slice %1453 {offsets = [0, 192], sizes = [2, 32], strides = [1, 1]} : vector<2x256xf32> to vector<2x32xf32>
    %1461 = vector.extract_strided_slice %1453 {offsets = [0, 224], sizes = [2, 32], strides = [1, 1]} : vector<2x256xf32> to vector<2x32xf32>
    %1462 = arith.mulf %1455, %1422 : vector<2x32xf32>
    %1463 = arith.mulf %1454, %1456 : vector<2x32xf32>
    %1464 = arith.addf %1462, %1463 : vector<2x32xf32>
    %1465 = arith.mulf %1459, %1425 : vector<2x32xf32>
    %1466 = arith.mulf %1458, %1460 : vector<2x32xf32>
    %1467 = arith.addf %1465, %1466 : vector<2x32xf32>
    %1468 = tpu.concatenate %1464, %1467 in 1 : vector<2x32xf32>, vector<2x32xf32> -> vector<2x64xf32>
    %1469 = math.tanh %1468 : vector<2x64xf32>
    %1470 = tpu.concatenate %1457, %1461 in 1 : vector<2x32xf32>, vector<2x32xf32> -> vector<2x64xf32>
    %1471 = arith.mulf %1470, %1469 : vector<2x64xf32>
    %1472 = vector.extract_strided_slice %1471 {offsets = [0, 0], sizes = [2, 32], strides = [1, 1]} : vector<2x64xf32> to vector<2x32xf32>
    %1473 = vector.extract_strided_slice %1471 {offsets = [0, 32], sizes = [2, 32], strides = [1, 1]} : vector<2x64xf32> to vector<2x32xf32>
    %1474 = vector.extract_strided_slice %1436 {offsets = [2, 0], sizes = [2, 128], strides = [1, 1]} : vector<8x128xf32> to vector<2x128xf32>
    %1475 = vector.extract_strided_slice %1437 {offsets = [4, 0], sizes = [2, 128], strides = [1, 1]} : vector<8x128xf32> to vector<2x128xf32>
    %1476 = arith.truncf %1471 : vector<2x64xf32> to vector<2x64xbf16>
    %cst_271 = arith.constant dense<0.000000e+00> : vector<2x256xf32>
    %1477 = tpu.matmul %1476, %832, %cst_271 {dimension_numbers = #tpu.dot_dimension_numbers<[1], [0], [0], [1], [0, 0, 1, 1], [], []>} : vector<2x64xbf16>, vector<64x256xbf16>, vector<2x256xf32> -> vector<2x256xf32>
    %1478 = tpu.concatenate %1474, %1475 in 1 : vector<2x128xf32>, vector<2x128xf32> -> vector<2x256xf32>
    %1479 = arith.addf %1477, %1478 : vector<2x256xf32>
    %1480 = arith.negf %1479 : vector<2x256xf32>
    %1481 = math.exp %1480 : vector<2x256xf32>
    %cst_272 = arith.constant 1.000000e+00 : f32
    %1482 = vector.broadcast %cst_272 : f32 to vector<2x256xf32>
    %1483 = arith.addf %1482, %1481 : vector<2x256xf32>
    %1484 = arith.divf %1482, %1483 : vector<2x256xf32>
    %cst_273 = arith.constant 2.000000e+00 : f32
    %1485 = vector.broadcast %cst_273 : f32 to vector<2x256xf32>
    %1486 = arith.mulf %1485, %1484 : vector<2x256xf32>
    %cst_274 = arith.constant 1.000000e+00 : f32
    %1487 = vector.broadcast %cst_274 : f32 to vector<2x256xf32>
    %1488 = arith.subf %1486, %1487 : vector<2x256xf32>
    %1489 = arith.select %62, %1488, %1484 : vector<2x256xi1>, vector<2x256xf32>
    %1490 = vector.extract_strided_slice %1489 {offsets = [0, 0], sizes = [2, 32], strides = [1, 1]} : vector<2x256xf32> to vector<2x32xf32>
    %1491 = vector.extract_strided_slice %1489 {offsets = [0, 32], sizes = [2, 32], strides = [1, 1]} : vector<2x256xf32> to vector<2x32xf32>
    %1492 = vector.extract_strided_slice %1489 {offsets = [0, 64], sizes = [2, 32], strides = [1, 1]} : vector<2x256xf32> to vector<2x32xf32>
    %1493 = vector.extract_strided_slice %1489 {offsets = [0, 96], sizes = [2, 32], strides = [1, 1]} : vector<2x256xf32> to vector<2x32xf32>
    %1494 = vector.extract_strided_slice %1489 {offsets = [0, 128], sizes = [2, 32], strides = [1, 1]} : vector<2x256xf32> to vector<2x32xf32>
    %1495 = vector.extract_strided_slice %1489 {offsets = [0, 160], sizes = [2, 32], strides = [1, 1]} : vector<2x256xf32> to vector<2x32xf32>
    %1496 = vector.extract_strided_slice %1489 {offsets = [0, 192], sizes = [2, 32], strides = [1, 1]} : vector<2x256xf32> to vector<2x32xf32>
    %1497 = vector.extract_strided_slice %1489 {offsets = [0, 224], sizes = [2, 32], strides = [1, 1]} : vector<2x256xf32> to vector<2x32xf32>
    %1498 = arith.mulf %1491, %1464 : vector<2x32xf32>
    %1499 = arith.mulf %1490, %1492 : vector<2x32xf32>
    %1500 = arith.addf %1498, %1499 : vector<2x32xf32>
    %1501 = arith.mulf %1495, %1467 : vector<2x32xf32>
    %1502 = arith.mulf %1494, %1496 : vector<2x32xf32>
    %1503 = arith.addf %1501, %1502 : vector<2x32xf32>
    %1504 = tpu.concatenate %1500, %1503 in 1 : vector<2x32xf32>, vector<2x32xf32> -> vector<2x64xf32>
    %1505 = math.tanh %1504 : vector<2x64xf32>
    %1506 = tpu.concatenate %1493, %1497 in 1 : vector<2x32xf32>, vector<2x32xf32> -> vector<2x64xf32>
    %1507 = arith.mulf %1506, %1505 : vector<2x64xf32>
    %1508 = vector.extract_strided_slice %1507 {offsets = [0, 0], sizes = [2, 32], strides = [1, 1]} : vector<2x64xf32> to vector<2x32xf32>
    %1509 = vector.extract_strided_slice %1507 {offsets = [0, 32], sizes = [2, 32], strides = [1, 1]} : vector<2x64xf32> to vector<2x32xf32>
    %1510 = vector.extract_strided_slice %1436 {offsets = [4, 0], sizes = [2, 128], strides = [1, 1]} : vector<8x128xf32> to vector<2x128xf32>
    %1511 = vector.extract_strided_slice %1437 {offsets = [2, 0], sizes = [2, 128], strides = [1, 1]} : vector<8x128xf32> to vector<2x128xf32>
    %1512 = arith.truncf %1507 : vector<2x64xf32> to vector<2x64xbf16>
    %cst_275 = arith.constant dense<0.000000e+00> : vector<2x256xf32>
    %1513 = tpu.matmul %1512, %832, %cst_275 {dimension_numbers = #tpu.dot_dimension_numbers<[1], [0], [0], [1], [0, 0, 1, 1], [], []>} : vector<2x64xbf16>, vector<64x256xbf16>, vector<2x256xf32> -> vector<2x256xf32>
    %1514 = tpu.concatenate %1510, %1511 in 1 : vector<2x128xf32>, vector<2x128xf32> -> vector<2x256xf32>
    %1515 = arith.addf %1513, %1514 : vector<2x256xf32>
    %1516 = arith.negf %1515 : vector<2x256xf32>
    %1517 = math.exp %1516 : vector<2x256xf32>
    %cst_276 = arith.constant 1.000000e+00 : f32
    %1518 = vector.broadcast %cst_276 : f32 to vector<2x256xf32>
    %1519 = arith.addf %1518, %1517 : vector<2x256xf32>
    %1520 = arith.divf %1518, %1519 : vector<2x256xf32>
    %cst_277 = arith.constant 2.000000e+00 : f32
    %1521 = vector.broadcast %cst_277 : f32 to vector<2x256xf32>
    %1522 = arith.mulf %1521, %1520 : vector<2x256xf32>
    %cst_278 = arith.constant 1.000000e+00 : f32
    %1523 = vector.broadcast %cst_278 : f32 to vector<2x256xf32>
    %1524 = arith.subf %1522, %1523 : vector<2x256xf32>
    %1525 = arith.select %62, %1524, %1520 : vector<2x256xi1>, vector<2x256xf32>
    %1526 = vector.extract_strided_slice %1525 {offsets = [0, 0], sizes = [2, 32], strides = [1, 1]} : vector<2x256xf32> to vector<2x32xf32>
    %1527 = vector.extract_strided_slice %1525 {offsets = [0, 32], sizes = [2, 32], strides = [1, 1]} : vector<2x256xf32> to vector<2x32xf32>
    %1528 = vector.extract_strided_slice %1525 {offsets = [0, 64], sizes = [2, 32], strides = [1, 1]} : vector<2x256xf32> to vector<2x32xf32>
    %1529 = vector.extract_strided_slice %1525 {offsets = [0, 96], sizes = [2, 32], strides = [1, 1]} : vector<2x256xf32> to vector<2x32xf32>
    %1530 = vector.extract_strided_slice %1525 {offsets = [0, 128], sizes = [2, 32], strides = [1, 1]} : vector<2x256xf32> to vector<2x32xf32>
    %1531 = vector.extract_strided_slice %1525 {offsets = [0, 160], sizes = [2, 32], strides = [1, 1]} : vector<2x256xf32> to vector<2x32xf32>
    %1532 = vector.extract_strided_slice %1525 {offsets = [0, 192], sizes = [2, 32], strides = [1, 1]} : vector<2x256xf32> to vector<2x32xf32>
    %1533 = vector.extract_strided_slice %1525 {offsets = [0, 224], sizes = [2, 32], strides = [1, 1]} : vector<2x256xf32> to vector<2x32xf32>
    %1534 = arith.mulf %1527, %1500 : vector<2x32xf32>
    %1535 = arith.mulf %1526, %1528 : vector<2x32xf32>
    %1536 = arith.addf %1534, %1535 : vector<2x32xf32>
    %1537 = arith.mulf %1531, %1503 : vector<2x32xf32>
    %1538 = arith.mulf %1530, %1532 : vector<2x32xf32>
    %1539 = arith.addf %1537, %1538 : vector<2x32xf32>
    %1540 = tpu.concatenate %1536, %1539 in 1 : vector<2x32xf32>, vector<2x32xf32> -> vector<2x64xf32>
    %1541 = math.tanh %1540 : vector<2x64xf32>
    %1542 = tpu.concatenate %1529, %1533 in 1 : vector<2x32xf32>, vector<2x32xf32> -> vector<2x64xf32>
    %1543 = arith.mulf %1542, %1541 : vector<2x64xf32>
    %1544 = vector.extract_strided_slice %1543 {offsets = [0, 0], sizes = [2, 32], strides = [1, 1]} : vector<2x64xf32> to vector<2x32xf32>
    %1545 = vector.extract_strided_slice %1543 {offsets = [0, 32], sizes = [2, 32], strides = [1, 1]} : vector<2x64xf32> to vector<2x32xf32>
    %1546 = vector.extract_strided_slice %1436 {offsets = [6, 0], sizes = [2, 128], strides = [1, 1]} : vector<8x128xf32> to vector<2x128xf32>
    %1547 = vector.extract_strided_slice %1437 {offsets = [0, 0], sizes = [2, 128], strides = [1, 1]} : vector<8x128xf32> to vector<2x128xf32>
    %1548 = arith.truncf %1543 : vector<2x64xf32> to vector<2x64xbf16>
    %cst_279 = arith.constant dense<0.000000e+00> : vector<2x256xf32>
    %1549 = tpu.matmul %1548, %832, %cst_279 {dimension_numbers = #tpu.dot_dimension_numbers<[1], [0], [0], [1], [0, 0, 1, 1], [], []>} : vector<2x64xbf16>, vector<64x256xbf16>, vector<2x256xf32> -> vector<2x256xf32>
    %1550 = tpu.concatenate %1546, %1547 in 1 : vector<2x128xf32>, vector<2x128xf32> -> vector<2x256xf32>
    %1551 = arith.addf %1549, %1550 : vector<2x256xf32>
    %1552 = arith.negf %1551 : vector<2x256xf32>
    %1553 = math.exp %1552 : vector<2x256xf32>
    %cst_280 = arith.constant 1.000000e+00 : f32
    %1554 = vector.broadcast %cst_280 : f32 to vector<2x256xf32>
    %1555 = arith.addf %1554, %1553 : vector<2x256xf32>
    %1556 = arith.divf %1554, %1555 : vector<2x256xf32>
    %cst_281 = arith.constant 2.000000e+00 : f32
    %1557 = vector.broadcast %cst_281 : f32 to vector<2x256xf32>
    %1558 = arith.mulf %1557, %1556 : vector<2x256xf32>
    %cst_282 = arith.constant 1.000000e+00 : f32
    %1559 = vector.broadcast %cst_282 : f32 to vector<2x256xf32>
    %1560 = arith.subf %1558, %1559 : vector<2x256xf32>
    %1561 = arith.select %62, %1560, %1556 : vector<2x256xi1>, vector<2x256xf32>
    %1562 = vector.extract_strided_slice %1561 {offsets = [0, 0], sizes = [2, 32], strides = [1, 1]} : vector<2x256xf32> to vector<2x32xf32>
    %1563 = vector.extract_strided_slice %1561 {offsets = [0, 32], sizes = [2, 32], strides = [1, 1]} : vector<2x256xf32> to vector<2x32xf32>
    %1564 = vector.extract_strided_slice %1561 {offsets = [0, 64], sizes = [2, 32], strides = [1, 1]} : vector<2x256xf32> to vector<2x32xf32>
    %1565 = vector.extract_strided_slice %1561 {offsets = [0, 96], sizes = [2, 32], strides = [1, 1]} : vector<2x256xf32> to vector<2x32xf32>
    %1566 = vector.extract_strided_slice %1561 {offsets = [0, 128], sizes = [2, 32], strides = [1, 1]} : vector<2x256xf32> to vector<2x32xf32>
    %1567 = vector.extract_strided_slice %1561 {offsets = [0, 160], sizes = [2, 32], strides = [1, 1]} : vector<2x256xf32> to vector<2x32xf32>
    %1568 = vector.extract_strided_slice %1561 {offsets = [0, 192], sizes = [2, 32], strides = [1, 1]} : vector<2x256xf32> to vector<2x32xf32>
    %1569 = vector.extract_strided_slice %1561 {offsets = [0, 224], sizes = [2, 32], strides = [1, 1]} : vector<2x256xf32> to vector<2x32xf32>
    %1570 = arith.mulf %1563, %1536 : vector<2x32xf32>
    %1571 = arith.mulf %1562, %1564 : vector<2x32xf32>
    %1572 = arith.addf %1570, %1571 : vector<2x32xf32>
    %1573 = arith.mulf %1567, %1539 : vector<2x32xf32>
    %1574 = arith.mulf %1566, %1568 : vector<2x32xf32>
    %1575 = arith.addf %1573, %1574 : vector<2x32xf32>
    %1576 = tpu.concatenate %1572, %1575 in 1 : vector<2x32xf32>, vector<2x32xf32> -> vector<2x64xf32>
    %1577 = math.tanh %1576 : vector<2x64xf32>
    %1578 = tpu.concatenate %1565, %1569 in 1 : vector<2x32xf32>, vector<2x32xf32> -> vector<2x64xf32>
    %1579 = arith.mulf %1578, %1577 : vector<2x64xf32>
    %1580 = vector.extract_strided_slice %1579 {offsets = [0, 0], sizes = [2, 32], strides = [1, 1]} : vector<2x64xf32> to vector<2x32xf32>
    %1581 = vector.extract_strided_slice %1579 {offsets = [0, 32], sizes = [2, 32], strides = [1, 1]} : vector<2x64xf32> to vector<2x32xf32>
    %1582 = tpu.concatenate %1472, %1508, %1544, %1580 in 0 : vector<2x32xf32>, vector<2x32xf32>, vector<2x32xf32>, vector<2x32xf32> -> vector<8x32xf32>
    %c32_283 = arith.constant 32 : index
    %c0_284 = arith.constant 0 : index
    %1583 = vector.load %arg17[%c32_283, %c0_284] : memref<40x64xf32, #tpu.memory_space<vmem>>, vector<8x32xf32>
    tpu.vector_store %arg17[%c32_283, %c0_284], %1582 {strides = array<i32>} : memref<40x64xf32, #tpu.memory_space<vmem>>, vector<8x32xf32>,
    %1584 = tpu.concatenate %1581, %1545, %1509, %1473 in 0 : vector<2x32xf32>, vector<2x32xf32>, vector<2x32xf32>, vector<2x32xf32> -> vector<8x32xf32>
    %c0_285 = arith.constant 0 : index
    %c32_286 = arith.constant 32 : index
    %1585 = vector.load %arg17[%c0_285, %c32_286] : memref<40x64xf32, #tpu.memory_space<vmem>>, vector<8x32xf32>
    tpu.vector_store %arg17[%c0_285, %c32_286], %1584 {strides = array<i32>} : memref<40x64xf32, #tpu.memory_space<vmem>>, vector<8x32xf32>,
    %c0_287 = arith.constant 0 : index
    %c0_288 = arith.constant 0 : index
    %1586 = vector.load %arg17[%c0_287, %c0_288] : memref<40x64xf32, #tpu.memory_space<vmem>>, vector<40x64xf32>
    %1587 = arith.truncf %1586 : vector<40x64xf32> to vector<40x64xbf16>
    %c0_289 = arith.constant 0 : index
    %c0_290 = arith.constant 0 : index
    %1588 = vector.load %arg13[%c0_289, %c0_290] : memref<64x128xbf16, #tpu.memory_space<vmem>>, vector<64x128xbf16>
    %cst_291 = arith.constant dense<0.000000e+00> : vector<40x128xf32>
    %1589 = tpu.matmul %1587, %1588, %cst_291 {dimension_numbers = #tpu.dot_dimension_numbers<[1], [0], [0], [1], [0, 0, 1, 1], [], []>} : vector<40x64xbf16>, vector<64x128xbf16>, vector<40x128xf32> -> vector<40x128xf32>
    %c0_292 = arith.constant 0 : index
    %c0_293 = arith.constant 0 : index
    %1590 = vector.load %arg14[%c0_292, %c0_293] : memref<1x128xf32, #tpu.memory_space<vmem>>, vector<1x128xf32>
    %1591 = vector.broadcast %1590 : vector<1x128xf32> to vector<40x128xf32>
    %1592 = arith.addf %1589, %1591 : vector<40x128xf32>
    %c0_294 = arith.constant 0 : index
    %c0_295 = arith.constant 0 : index
    %1593 = vector.load %arg15[%c0_294, %c0_295] : memref<40x128xf32, #tpu.memory_space<vmem>>, vector<40x128xf32>
    tpu.vector_store %arg15[%c0_294, %c0_295], %1592 {strides = array<i32>} : memref<40x128xf32, #tpu.memory_space<vmem>>, vector<40x128xf32>,
    return
  }
}

</mosaic_0001>

<bundles_post_ra>
// kernel: plate_ocr_forward.1
= control target key start
LH: loop header
LB: loop body
LE: loop exit
PB: predicated region body
PF: predicated region fallthrough
CT: control target
= control target key end

     0   :  { %s8607_s0 = inlined_call_operand.vmem [shape: f32[40,64], index: 0, kind: input, shape index: {}]   ;;  %s8608_s1 = inlined_call_operand.vmem [shape: f32[64,4], index: 1, kind: input, shape index: {}]   ;;  %s8609_s2 = inlined_call_operand.hbm [shape: f32[1,4], index: 2, kind: input, shape index: {}]   ;;  %s8610_s3 = inlined_call_operand.vmem [shape: f32[4,64], index: 3, kind: input, shape index: {}]   ;;  %s8611_s4 = inlined_call_operand.hbm [shape: f32[1,64], index: 4, kind: input, shape index: {}]   ;;  %s8612_s5 = inlined_call_operand.vmem [shape: f32[64,1], index: 5, kind: input, shape index: {}]   ;;  %s8613_s6 = inlined_call_operand.<no memory space> [shape: f32[1,1], index: 6, kind: input, shape index: {}]   ;;  %s8614_s7 = inlined_call_operand.vmem [shape: bf16[64,256], index: 7, kind: input, shape index: {}]   ;;  %s8615_s8 = inlined_call_operand.hbm [shape: f32[1,256], index: 8, kind: input, shape index: {}]   ;;  %s8616_s9 = inlined_call_operand.vmem [shape: bf16[64,256], index: 9, kind: input, shape index: {}]   ;;  %s8617_s10 = inlined_call_operand.vmem [shape: bf16[64,256], index: 10, kind: input, shape index: {}]   ;;  %s8618_s11 = inlined_call_operand.hbm [shape: f32[1,256], index: 11, kind: input, shape index: {}]   ;;  %s8619_s12 = inlined_call_operand.hbm [shape: bf16[64,256], index: 12, kind: input, shape index: {}]   ;;  %s8620_s13 = inlined_call_operand.vmem [shape: bf16[64,128], index: 13, kind: input, shape index: {}]   ;;  %s8621_s14 = inlined_call_operand.hbm [shape: f32[1,128], index: 14, kind: input, shape index: {}]   ;;  %s8622_s15 = inlined_call_operand.vmem [shape: f32[40,128], index: 15, kind: output, shape index: {}]  }
   0x1   :  { %v20_v0 = vstv %s8613_s6 }
   0x2   :  { %21 = vst [vmem:[#allocation4] sm:$0x1] %v20_v0 }
   0x3   :  { %22 = vsyncpa [#allocation6], 0 }
   0x4   :  { %23 = vsyncpa [#allocation8], 0 }
   0x5   :  { %24 = vsyncpa [#allocation11], 0 }
   0x6   :  { %25 = vsyncpa [#allocation14], 0  ;;  %s6570_s20 = smov [#allocation7]   ;;  %s6571_s22 = smov [#allocation10]  }
   0x7   :  { %s48_s21 = sshll.u32 %s6570_s20, 4  ;;  %s78_s23 = sshll.u32 %s6571_s22, 4  ;;  %s49_s21 = int_to_ptr.vmem [resolvable:$true] %s48_s21  ;;  %s79_s23 = int_to_ptr.vmem [resolvable:$true] %s78_s23 }
   0x8   :  { %s6450_s24 = scalar_lea.vmem %s49_s21, 16  ;;  %s6454_s25 = scalar_lea.vmem %s49_s21, 32 }
   0x9   :  { %p6451_p0 = scmp.ne.s32.totalorder %s49_s21, %s6450_s24  ;;  %p6455_p1 = scmp.lt.s32.totalorder %s49_s21, %s49_s21 }
   0xa   :  { %p6456_p2 = scmp.lt.s32.totalorder %s6454_s25, %s6450_s24 }
   0xc   :  { %p6457_p3 = por %p6456_p2, %p6455_p1 }
   0xe   :  { %p6458_p4 = pnand %p6457_p3, %p6451_p0 }
  0x10   :  { %6461 = shalt.err (!%p6458_p4)
}
  0x11   :  { %51 = dma.hbm_to_vmem [thread:$0]  %s8611_s4, 16, %s49_s21, [#allocation8]  }
  0x12   :  { %s6470_s27 = scalar_lea.vmem %s79_s23, 32  ;;  %p6475_p6 = scmp.lt.s32.totalorder %s79_s23, %s79_s23 }
  0x13   :  { %p6471_p5 = scmp.ne.s32.totalorder %s79_s23, %s6470_s27  ;;  %p6476_p7 = scmp.lt.s32.totalorder %s6470_s27, %s6470_s27 }
  0x15   :  { %p6477_p8 = por %p6476_p7, %p6475_p6 }
  0x17   :  { %p6478_p9 = pnand %p6477_p8, %p6471_p5 }
  0x19   :  { %6481 = shalt.err (!%p6478_p9)
}
  0x1a   :  { %81 = dma.hbm_to_vmem [thread:$0]  %s8618_s11, 32, %s79_s23, [#allocation11]  }
  0x1b   :  { %s6572_s30 = smov [#allocation5]   ;;  %s6573_s17 = smov [#allocation9]  }
  0x1c   :  { %s36_s16 = sshll.u32 %s6572_s30, 4  ;;  %s64_s18 = sshll.u32 %s6573_s17, 4  ;;  %s37_s16 = int_to_ptr.vmem [resolvable:$true] %s36_s16  ;;  %s65_s18 = int_to_ptr.vmem [resolvable:$true] %s64_s18 }
  0x1d   :  { %s6490_s19 = scalar_lea.vmem %s37_s16, 16  ;;  %s6494_s4 = scalar_lea.vmem %s37_s16, 32 }
  0x1e   :  { %p6491_p10 = scmp.ne.s32.totalorder %s37_s16, %s6490_s19  ;;  %p6495_p11 = scmp.lt.s32.totalorder %s37_s16, %s37_s16 }
  0x1f   :  { %p6496_p12 = scmp.lt.s32.totalorder %s6494_s4, %s6490_s19 }
  0x21   :  { %p6497_p13 = por %p6496_p12, %p6495_p11 }
  0x23   :  { %p6498_p0 = pnand %p6497_p13, %p6491_p10 }
  0x25   :  { %6501 = shalt.err (!%p6498_p0)
}
  0x26   :  { %39 = dma.hbm_to_vmem [thread:$0]  %s8609_s2, 16, %s37_s16, [#allocation6]  }
  0x27   :  { %s6510_s22 = scalar_lea.vmem %s65_s18, 32  ;;  %p6515_p2 = scmp.lt.s32.totalorder %s65_s18, %s65_s18 }
  0x28   :  { %p6511_p1 = scmp.ne.s32.totalorder %s65_s18, %s6510_s22  ;;  %p6516_p3 = scmp.lt.s32.totalorder %s6510_s22, %s6510_s22 }
  0x2a   :  { %p6517_p4 = por %p6516_p3, %p6515_p2 }
  0x2c   :  { %p6518_p5 = pnand %p6517_p4, %p6511_p1 }
  0x2e   :  { %6521 = shalt.err (!%p6518_p5)
}
  0x2f   :  { %67 = dma.hbm_to_vmem [thread:$0]  %s8615_s8, 32, %s65_s18, [#allocation8]  }
  0x30   :  { %s6574_s24 = smov [#allocation12]  }
  0x31   :  { %s87_s25 = sshll.u32 %s6574_s24, 4  ;;  %s88_s25 = int_to_ptr.vmem [resolvable:$true] %s87_s25 }
  0x32   :  { %s6530_s6 = scalar_lea.vmem %s88_s25, 1024  ;;  %p6535_p7 = scmp.lt.s32.totalorder %s88_s25, %s88_s25 }
  0x33   :  { %p6531_p6 = scmp.ne.s32.totalorder %s88_s25, %s6530_s6  ;;  %p6536_p8 = scmp.lt.s32.totalorder %s6530_s6, %s6530_s6 }
  0x35   :  { %p6537_p9 = por %p6536_p8, %p6535_p7 }
  0x37   :  { %p6538_p10 = pnand %p6537_p9, %p6531_p6 }
  0x39   :  { %6541 = shalt.err (!%p6538_p10)
}
  0x3a   :  { %s6575_s2 = smov 128   ;;  %s6576_s26 = smov 8  }
  0x3b   :  { %93 = dma.hbm_to_vmem [thread:$0]  %s8619_s12, 1024, %s88_s25, [#allocation11], %s6575_s2, %s6575_s2, %s6576_s26  }
  0x3c   :  { %s6577_s29 = smov [#allocation13]  }
  0x3d   :  { %s102_s30 = sshll.u32 %s6577_s29, 4  ;;  %s103_s30 = int_to_ptr.vmem [resolvable:$true] %s102_s30 }
  0x3e   :  { %s6550_s8 = scalar_lea.vmem %s103_s30, 16  ;;  %s6554_s16 = scalar_lea.vmem %s103_s30, 32 }
  0x3f   :  { %p6551_p11 = scmp.ne.s32.totalorder %s103_s30, %s6550_s8  ;;  %p6555_p12 = scmp.lt.s32.totalorder %s103_s30, %s103_s30 }
  0x40   :  { %p6556_p13 = scmp.lt.s32.totalorder %s6554_s16, %s6550_s8 }
  0x42   :  { %p6557_p0 = por %p6556_p13, %p6555_p12 }
  0x44   :  { %p6558_p1 = pnand %p6557_p0, %p6551_p11 }
  0x46   :  { %6561 = shalt.err (!%p6558_p1)
}
  0x47   :  { %105 = dma.hbm_to_vmem [thread:$0]  %s8621_s14, 16, %s103_s30, [#allocation14]  }
  0x48   :  { %6562 = dma.done.wait [#allocation6], 16  }
  0x49   :  { %6563 = vsyncadd [#allocation6], 4294967280 }
  0x4a   :  { %6564 = dma.done.wait [#allocation8], 48  }
  0x4b   :  { %6565 = vsyncadd [#allocation8], 4294967248 }
  0x4c   :  { %6566 = dma.done.wait [#allocation11], 1056  }
  0x4d   :  { %6567 = vsyncadd [#allocation11], 4294966240 }
  0x4e   :  { %6568 = dma.done.wait [#allocation14], 16  }
  0x4f   :  { %6569 = vsyncadd [#allocation14], 4294967280  ;;  %v130_v1 = vlaneseq  ;;  %v6578_v2 = vmov 0.0   ;;  %vm6579_vm0 = vmmov 0   ;;  %v6696_v4 = vld [vmem:[%s8607_s0 + $0x20] sm:$0xff]  ;;  %v6701_v5 = vld [vmem:[%s8607_s0 + $0x18] sm:$0xff] }
  0x50   :  { %5814 = vmatprep.subr.mxu1 %v6578_v2  ;;  %5824 = vmatprep.mubr.msk.f32.mxu1 %vm6579_vm0, %v6578_v2  ;;  %v6711_v8 = vld [vmem:[%s8607_s0 + $0x10] sm:$0xff]  ;;  %v6717_v9 = vld [vmem:[%s8607_s0 + $0x8] sm:$0xff]  ;;  %v6723_v10 = vld [vmem:[%s8607_s0] sm:$0xff]  ;;  %vm137_vm2 = vcmask 326656   ;;  %vm227_vm3 = vcmask 523264   ;;  %vm314_vm4 = vcmask 1043456  }
  0x51   :  { %5846 = vmatprep.subr.mxu0 %v6578_v2  ;;  %5848 = vmatprep.mubr.msk.f32.mxu0 %vm6579_vm0, %v6578_v2  ;;  %v6691_v3 = vand.u32 127, %v130_v1  ;;  %v6703_v6 = vshrl.u32 %v130_v1, 7  ;;  %v219_v11 = vld [vmem:[%s8608_s1 + $0x38] sm:$0xff]  ;;  %v218_v13 = vld [vmem:[%s8608_s1 + $0x30] sm:$0xff]  ;;  %v217_v14 = vld [vmem:[%s8608_s1 + $0x28] sm:$0xff]  ;;  %vm310_vm5 = vcmask 31744  }
  0x52   :  { %5815 = vmatpush3.msra.mxu1 %v6696_v4  ;;  %v216_v15 = vld [vmem:[%s8608_s1 + $0x20] sm:$0xff]  ;;  %v215_v16 = vld [vmem:[%s8608_s1 + $0x18] sm:$0xff]  ;;  %v214_v17 = vld [vmem:[%s8608_s1 + $0x10] sm:$0xff]  ;;  %vm429_vm7 = vcmask 1041408   ;;  %vm413_vm8 = vcmask 15360   ;;  %s6582_s14 = smov 32  }
  0x53   :  { %v134_v7 = vand.u32 1, %v6691_v3  ;;  %5816 = vmatprep.subr.mxu1 %v6578_v2  ;;  %v213_v18 = vld [vmem:[%s8608_s1 + $0x8] sm:$0xff]  ;;  %v212_v19 = vld [vmem:[%s8608_s1] sm:$0xff]  ;;  %v535_v29 = vld [vmem:[%s8612_s5 + $0x38] sm:$0xff]  ;;  %v398_v42 = vand.u32 1, %v6703_v6  ;;  %v394_v43 = vadd.s32 8, %v6703_v6 }
  0x54   :  { %5817 = vmatpush3.msra.mxu1 %v6701_v5  ;;  %v302_v23 = vld [vmem:[%s8610_s3] sm:$0xf]  ;;  %v5504_v24 = vld [vmem:[#allocation5] ss:$0 sm:$0xff]  ;;  %v534_v30 = vld [vmem:[%s8612_s5 + $0x30] sm:$0xff]  ;;  %v395_v45 = vadd.s32 16, %v6703_v6 }
  0x55   :  { %5818 = vmatprep.subr.mxu1 %v6578_v2  ;;  %vm135_vm1 = vcmp.eq.s32.totalorder %v134_v7, %v6703_v6  ;;  %5847 = vmatpush3.msk.msra.mxu0 %vm314_vm4, %v302_v23  ;;  %v533_v31 = vld [vmem:[%s8612_s5 + $0x28] sm:$0xff]  ;;  %v532_v32 = vld [vmem:[%s8612_s5 + $0x20] sm:$0xff]  ;;  %v531_v33 = vld [vmem:[%s8612_s5 + $0x18] sm:$0xff]  ;;  %vm403_vm6 = vcmp.eq.s32.totalorder %v398_v42, %v6691_v3  ;;  %v399_v44 = vand.u32 1, %v394_v43  ;;  %v396_v49 = vadd.s32 24, %v6703_v6  ;;  %s6583_s19 = smov 96  }
  0x56   :  { %5819 = vmatpush3.msra.mxu1 %v6711_v8  ;;  %v136_v12 = vsel %vm135_vm1, 1.0, %v6578_v2  ;;  %5851 = vmatprep.subr.mxu0 %v6578_v2  ;;  %v530_v34 = vld [vmem:[%s8612_s5 + $0x10] sm:$0xff]  ;;  %v5506_v35 = vld [vmem:[#allocation7] ss:$0 sm:$0xff]  ;;  %v408_v46 = vsel %vm403_vm6, 1.0, %v6578_v2  ;;  %v400_v48 = vand.u32 1, %v395_v45 }
  0x57   :  { %5820 = vmatprep.subr.mxu1 %v6578_v2  ;;  %vm404_vm9 = vcmp.eq.s32.totalorder %v399_v44, %v6691_v3  ;;  %v401_v51 = vand.u32 1, %v396_v49  ;;  %v397_v52 = vadd.s32 32, %v6703_v6  ;;  %v529_v57 = vld [vmem:[%s8612_s5 + $0x8] sm:$0xff]  ;;  %v528_v58 = vld [vmem:[%s8612_s5] sm:$0xff]  ;;  %vm709_vm13 = vcmp.ge.s32.totalorder %v6691_v3, 64 }
  0x58   :  { %5821 = vmatpush3.msra.mxu1 %v6717_v9  ;;  %v409_v50 = vsel %vm404_vm9, 1.0, %v6578_v2  ;;  %vm405_vm10 = vcmp.eq.s32.totalorder %v400_v48, %v6691_v3  ;;  %v5516_v23 = vld [vmem:[#allocation4] ss:$0 sm:$0xff]  ;;  %vm711_vm14 = vcmp.lt.s32.totalorder %v6691_v3, 96  ;;  %vm1007_vm6 = vcmask 261120  }
  0x59   :  { %5822 = vmatprep.subr.mxu1 %v6578_v2  ;;  %v410_v53 = vsel %vm405_vm10, 1.0, %v6578_v2  ;;  %vm406_vm11 = vcmp.eq.s32.totalorder %v401_v51, %v6691_v3  ;;  %v402_v54 = vand.u32 1, %v397_v52  ;;  %v5951_v52 = vld [vmem:[%s8614_s7 + $0x14] ss:$8 sps:$4 sm:$0xff]   ;;  %vm7009_vm15 = vmand %vm709_vm13, %vm711_vm14  ;;  %vm1341_vm9 = vcmask 523520  }
  0x5a   :  { %5823 = vmatpush3.msra.mxu1 %v6723_v10  ;;  %v411_v55 = vsel %vm406_vm11, 1.0, %v6578_v2 }
  0x5b   :  { %5825 = vmatmul.mubr.msk.f32.vlgmr.msra.gmra.mxu1 %vm137_vm2, %v136_v12  ;;  %5827 = vmatprep.subr.mxu1 %v6578_v2  ;;  %vm407_vm12 = vcmp.eq.s32.totalorder %v402_v54, %v6691_v3 }
  0x5c   :  { %5828 = vmatpush3.msra.mxu1 %v219_v11  ;;  %5843 = vmatprep.mubr.msk.f32.mxu1 %vm6579_vm0, %v6578_v2  ;;  %v412_v56 = vsel %vm407_vm12, 1.0, %v6578_v2 }
  0x5d   :  { %5829 = vmatprep.subr.mxu1 %v6578_v2 }
  0x5e   :  { %5830 = vmatpush3.msra.mxu1 %v218_v13 }
  0x5f   :  { %5831 = vmatprep.subr.mxu1 %v6578_v2 }
  0x60   :  { %5832 = vmatpush3.msra.mxu1 %v217_v14 }
  0x61   :  { %5833 = vmatprep.subr.mxu1 %v6578_v2 }
  0x62   :  { %5834 = vmatpush3.msra.mxu1 %v216_v15  ;;  %v6580_v15 = vmov 0  }
  0x63   :  { %5835 = vmatprep.subr.mxu1 %v6578_v2  ;;  %5933 = vset.pattern.permute.xlu0 %v6580_v15 }
  0x64   :  { %5836 = vmatpush3.msra.mxu1 %v215_v16  ;;  %5934 = vset.pattern.permute.xlu1 %v6580_v15  ;;  %v6883_v16 = vld [vmem:[%s8616_s9 + $0x34] ss:$8 sps:$4 sm:$0xff]  }
  0x65   :  { %5837 = vmatprep.subr.mxu1 %v6578_v2 }
  0x66   :  { %5838 = vmatpush3.msra.mxu1 %v214_v17  ;;  %v6888_v17 = vld [vmem:[%s8616_s9 + $0x30] ss:$8 sps:$4 sm:$0xff]  }
  0x67   :  { %5839 = vmatprep.subr.mxu1 %v6578_v2 }
  0x68   :  { %5840 = vmatpush3.msra.mxu1 %v213_v18  ;;  %v5943_v18 = vld [vmem:[%s8614_s7 + $0x24] ss:$8 sps:$4 sm:$0xff]  }
  0x69   :  { %5841 = vmatprep.subr.mxu1 %v6578_v2 }
  0x6a   :  { %5842 = vmatpush3.msra.mxu1 %v212_v19  ;;  %v6897_v19 = vld [vmem:[%s8616_s9 + $0x24] ss:$8 sps:$4 sm:$0xff]  }
  0x6b   :  { %5868 = vmatprep.subr.mxu1 %v6578_v2 }
 0x11b   :  { %v207_v20 = vpop.f32.mrf.mxu1 }
 0x11c   :  { %v211_v21 = vmul.f32 0.05, %v207_v20  ;;  %v5941_v20 = vld [vmem:[%s8614_s7 + $0x20] ss:$8 sps:$4 sm:$0xff]  }
 0x11d   :  { %v5826_v22 = vpop.f32.mrf.mxu1 }
 0x11e   :  { %5844 = vmatmul.mubr.msk.f32.vlgmr.msra.gmra.mxu1 %vm227_vm3, %v211_v21  ;;  %v6906_v21 = vld [vmem:[%s8616_s9 + $0x20] ss:$8 sps:$4 sm:$0xff]   ;;  %v6912_v22 = vld [vmem:[%s8616_s9 + $0x14] ss:$8 sps:$4 sm:$0xff]  }
 0x11f   :  { %5884 = vmatprep.mubr.msk.f32.mxu1 %vm6579_vm0, %v6578_v2  ;;  %5869 = vmatpush3.msra.mxu1 %v535_v29 }
 0x120   :  { %5870 = vmatprep.subr.mxu1 %v6578_v2 }
 0x121   :  { %5871 = vmatpush3.msra.mxu1 %v534_v30 }
 0x122   :  { %5872 = vmatprep.subr.mxu1 %v6578_v2 }
 0x123   :  { %5873 = vmatpush3.msra.mxu1 %v533_v31 }
 0x124   :  { %5874 = vmatprep.subr.mxu1 %v6578_v2 }
 0x125   :  { %5875 = vmatpush3.msra.mxu1 %v532_v32 }
 0x126   :  { %5876 = vmatprep.subr.mxu1 %v6578_v2 }
 0x127   :  { %5877 = vmatpush3.msra.mxu1 %v531_v33 }
 0x128   :  { %5878 = vmatprep.subr.mxu1 %v6578_v2 }
 0x129   :  { %5879 = vmatpush3.msra.mxu1 %v530_v34 }
 0x12a   :  { %5880 = vmatprep.subr.mxu1 %v6578_v2 }
 0x12b   :  { %5881 = vmatpush3.msra.mxu1 %v529_v57 }
 0x12c   :  { %5882 = vmatprep.subr.mxu1 %v6578_v2 }
 0x12d   :  { %5883 = vmatpush3.msra.mxu1 %v528_v58  ;;  %v5957_v58 = vld [vmem:[%s8614_s7 + $0x4] ss:$8 sps:$4 sm:$0xff]  }
 0x12e   :  { %930 = vmatprep.subr.bf16.mxu1 %v6883_v16 }
 0x1de   :  { %v297_v25 = vpop.f32.mrf.mxu1 }
 0x1df   :  { %v298_v26 = vadd.f32 %v5504_v24, %v297_v25 }
 0x1e0   :  { %v5845_v27 = vpop.f32.mrf.mxu1 }
 0x1e1   :  { %v301_v28 = vmax.f32 %v298_v26, 0.0 }
 0x1e3   :  { %5849 = vmatmul.mubr.msk.f32.vlgmr.msra.gmra.mxu0 %vm310_vm5, %v301_v28 }
 0x1e4   :  { %5853 = vmatprep.mubr.msk.f32.mxu0 %vm6579_vm0, %v6578_v2 }
 0x2a3   :  { %v384_v36 = vpop.f32.mrf.mxu0 }
 0x2a4   :  { %v385_v37 = vadd.f32 %v5506_v35, %v384_v36 }
 0x2a5   :  { %v5850_v38 = vpop.f32.mrf.mxu0 }
 0x2a6   :  { %v5509_v39 = vmul.f32 -1.442695, %v385_v37 }
 0x2a8   :  { %5987 = vpow2.f32 %v5509_v39 }
 0x2b5   :  { %v5988_v40 = vpop.eup %5987 }
 0x2b6   :  { %v391_v41 = vadd.f32 1.0, %v5988_v40 }
 0x2b8   :  { %5989 = vrcp.f32 %v391_v41 }
 0x2c5   :  { %v5990_v47 = vpop.eup %5989 }
 0x2c6   :  { %5852 = vmatpush3.msk.msra.mxu0 %vm429_vm7, %v5990_v47 }
 0x2c7   :  { %5854 = vmatmul.mubr.msk.f32.vlgmr.msra.gmra.mxu0 %vm413_vm8, %v408_v46 }
 0x2c8   :  { %5856 = vmatprep.mubr.msk.f32.mxu0 %vm6579_vm0, %v6578_v2 }
 0x2cb   :  { %5857 = vmatmul.mubr.msk.f32.gmra.mxu0 %vm413_vm8, %v409_v50  ;;  %v6919_v50 = vld [vmem:[%s8616_s9 + $0x10] ss:$8 sps:$4 sm:$0xff]  }
 0x2cc   :  { %5859 = vmatprep.mubr.msk.f32.mxu0 %vm6579_vm0, %v6578_v2 }
 0x2cf   :  { %5860 = vmatmul.mubr.msk.f32.gmra.mxu0 %vm413_vm8, %v410_v53  ;;  %v6928_v53 = vld [vmem:[%s8616_s9 + $0x4] ss:$8 sps:$4 sm:$0xff]  }
 0x2d0   :  { %5862 = vmatprep.mubr.msk.f32.mxu0 %vm6579_vm0, %v6578_v2 }
 0x2d3   :  { %5863 = vmatmul.mubr.msk.f32.gmra.mxu0 %vm413_vm8, %v411_v55  ;;  %v5949_v55 = vld [vmem:[%s8614_s7 + $0x10] ss:$8 sps:$4 sm:$0xff]  }
 0x2d4   :  { %5865 = vmatprep.mubr.msk.f32.mxu0 %vm6579_vm0, %v6578_v2 }
 0x2d7   :  { %5866 = vmatmul.mubr.msk.f32.gmra.mxu0 %vm413_vm8, %v412_v56  ;;  %v6936_v56 = vld [vmem:[%s8616_s9] ss:$8 sps:$4 sm:$0xff]   ;;  %vm1328_vm8 = vcmask 1045504  }
 0x2d8   :  { %827 = vmatprep.mubr.bf16.mxu0 %v6580_v15 }
 0x387   :  { %v499_v59 = vpop.f32.mrf.mxu0 }
 0x388   :  { %v6838_v60 = vmul.f32 %v499_v59, %v6723_v10 }
 0x389   :  { %v5855_v61 = vpop.f32.mrf.mxu0 }
 0x38a   :  { %5885 = vmatmul.mubr.msk.f32.vlgmr.msra.gmra.mxu1 %vm227_vm3, %v6838_v60  ;;  %v5955_v61 = vld [vmem:[%s8614_s7] ss:$8 sps:$4 sm:$0xff]  }
 0x38b   :  { %v504_v62 = vpop.f32.mrf.mxu0  ;;  %5887 = vmatprep.mubr.msk.f32.mxu1 %vm6579_vm0, %v6578_v2  ;;  %931 = vmatpush1.bf16.msra.mxu1 %v6888_v17 }
 0x38c   :  { %v6845_v63 = vmul.f32 %v504_v62, %v6717_v9  ;;  %932 = vmatprep.subr.bf16.mxu1 %v6897_v19 }
 0x38d   :  { %v5858_v0 = vpop.f32.mrf.mxu0 }
 0x38e   :  { %5888 = vmatmul.mubr.msk.f32.gmra.mxu1 %vm227_vm3, %v6845_v63 }
 0x38f   :  { %v509_v1 = vpop.f32.mrf.mxu0  ;;  %5890 = vmatprep.mubr.msk.f32.mxu1 %vm6579_vm0, %v6578_v2  ;;  %933 = vmatpush1.bf16.msra.mxu1 %v6906_v21 }
 0x390   :  { %v6852_v7 = vmul.f32 %v509_v1, %v6711_v8  ;;  %934 = vmatprep.subr.bf16.mxu1 %v6912_v22 }
 0x391   :  { %v5861_v10 = vpop.f32.mrf.mxu0 }
 0x392   :  { %5891 = vmatmul.mubr.msk.f32.gmra.mxu1 %vm227_vm3, %v6852_v7 }
 0x393   :  { %v514_v11 = vpop.f32.mrf.mxu0  ;;  %5893 = vmatprep.mubr.msk.f32.mxu1 %vm6579_vm0, %v6578_v2  ;;  %935 = vmatpush1.bf16.msra.mxu1 %v6919_v50 }
 0x394   :  { %v6859_v9 = vmul.f32 %v514_v11, %v6701_v5  ;;  %v5935_v5 = vld [vmem:[%s8614_s7 + $0x30] ss:$8 sps:$4 sm:$0xff]   ;;  %936 = vmatprep.subr.bf16.mxu1 %v6928_v53 }
 0x395   :  { %v5864_v12 = vpop.f32.mrf.mxu0 }
 0x396   :  { %5894 = vmatmul.mubr.msk.f32.gmra.mxu1 %vm227_vm3, %v6859_v9 }
 0x397   :  { %v519_v13 = vpop.f32.mrf.mxu0  ;;  %5896 = vmatprep.mubr.msk.f32.mxu1 %vm6579_vm0, %v6578_v2  ;;  %937 = vmatpush1.bf16.msra.mxu1 %v6936_v56 }
 0x398   :  { %v6866_v8 = vmul.f32 %v519_v13, %v6696_v4  ;;  %v5937_v4 = vld [vmem:[%s8614_s7 + $0x34] ss:$8 sps:$4 sm:$0xff]   ;;  %1133 = vmatprep.subr.bf16.mxu1 %v6883_v16  ;;  %s6581_s7 = smov 64  }
 0x399   :  { %v5867_v14 = vpop.f32.mrf.mxu0  ;;  %803 = vmatprep.subr.bf16.mxu0 %v5937_v4 }
 0x39a   :  { %5897 = vmatmul.mubr.msk.f32.gmra.mxu1 %vm227_vm3, %v6866_v8  ;;  %804 = vmatpush1.bf16.msra.mxu0 %v5935_v5 }
 0x39b   :  { %954 = vmatprep.mubr.bf16.mxu1 %v6580_v15  ;;  %805 = vmatprep.subr.bf16.mxu0 %v5943_v18 }
 0x39e   :  { %806 = vmatpush1.bf16.msra.mxu0 %v5941_v20  ;;  %955 = vmatmul.mubr.bf16.vlgmr.msra.gmra.mxu1 %v6580_v15 }
 0x39f   :  { %807 = vmatprep.subr.bf16.mxu0 %v5951_v52  ;;  %1134 = vmatpush1.bf16.msra.mxu1 %v6888_v17 }
 0x3a0   :  { %1135 = vmatprep.subr.bf16.mxu1 %v6897_v19  ;;  %1157 = vmatprep.mubr.bf16.mxu1 %v6580_v15 }
 0x3a2   :  { %808 = vmatpush1.bf16.msra.mxu0 %v5949_v55 }
 0x3a3   :  { %809 = vmatprep.subr.bf16.mxu0 %v5957_v58  ;;  %1136 = vmatpush1.bf16.msra.mxu1 %v6906_v21 }
 0x3a4   :  { %1137 = vmatprep.subr.bf16.mxu1 %v6912_v22 }
 0x3a6   :  { %810 = vmatpush1.bf16.msra.mxu0 %v5955_v61 }
 0x3a7   :  { %1033 = vmatprep.subr.bf16.mxu0 %v6883_v16  ;;  %1138 = vmatpush1.bf16.msra.mxu1 %v6919_v50 }
 0x3a8   :  { %1139 = vmatprep.subr.bf16.mxu1 %v6928_v53 }
 0x3ab   :  { %1140 = vmatpush1.bf16.msra.mxu1 %v6936_v56 }
 0x3ac   :  { %1360 = vmatprep.subr.bf16.mxu1 %v6883_v16 }
 0x44a   :  { %v624_v24 = vpop.f32.mrf.mxu1 }
 0x44b   :  { %v625_v25 = vadd.f32 %v5516_v23, %v624_v24 }
 0x44c   :  { %v5886_v26 = vpop.f32.mrf.mxu1 }
 0x44d   :  { %v5522_v27 = vmul.f32 -1.442695, %v625_v25 }
 0x44e   :  { %v629_v28 = vpop.f32.mrf.mxu1 }
 0x44f   :  { %5991 = vpow2.f32 %v5522_v27  ;;  %v630_v29 = vadd.f32 %v5516_v23, %v629_v28 }
 0x450   :  { %v5889_v30 = vpop.f32.mrf.mxu1 }
 0x451   :  { %v5523_v31 = vmul.f32 -1.442695, %v630_v29  ;;  %v738_v29 = vsub.s32 0, %v6703_v6  ;;  %v734_v30 = vld [vmem:[#allocation9] sm:$0x3] }
 0x452   :  { %v634_v32 = vpop.f32.mrf.mxu1 }
 0x453   :  { %5993 = vpow2.f32 %v5523_v31  ;;  %v635_v33 = vadd.f32 %v5516_v23, %v634_v32  ;;  %v739_v31 = vrot.slane %v734_v30, %v738_v29 }
 0x454   :  { %v5892_v34 = vpop.f32.mrf.mxu1 }
 0x455   :  { %v5524_v35 = vmul.f32 -1.442695, %v635_v33 }
 0x456   :  { %v639_v36 = vpop.f32.mrf.mxu1 }
 0x457   :  { %5995 = vpow2.f32 %v5524_v35  ;;  %v640_v37 = vadd.f32 %v5516_v23, %v639_v36 }
 0x458   :  { %v5895_v38 = vpop.f32.mrf.mxu1 }
 0x459   :  { %v5525_v39 = vmul.f32 -1.442695, %v640_v37 }
 0x45a   :  { %v644_v40 = vpop.f32.mrf.mxu1 }
 0x45b   :  { %5997 = vpow2.f32 %v5525_v39  ;;  %v645_v41 = vadd.f32 %v5516_v23, %v644_v40 }
 0x45c   :  { %v5992_v42 = vpop.eup %5991  ;;  %v5898_v43 = vpop.f32.mrf.mxu1 }
 0x45d   :  { %v663_v44 = vadd.f32 1.0, %v5992_v42  ;;  %v5526_v45 = vmul.f32 -1.442695, %v645_v41 }
 0x45f   :  { %5999 = vrcp.f32 %v663_v44 }
 0x460   :  { %v5994_v46 = vpop.eup %5993  ;;  %6001 = vpow2.f32 %v5526_v45 }
 0x461   :  { %v664_v47 = vadd.f32 1.0, %v5994_v46 }
 0x463   :  { %6003 = vrcp.f32 %v664_v47 }
 0x464   :  { %v5996_v48 = vpop.eup %5995 }
 0x465   :  { %v665_v49 = vadd.f32 1.0, %v5996_v48 }
 0x467   :  { %6005 = vrcp.f32 %v665_v49 }
 0x468   :  { %v5998_v51 = vpop.eup %5997 }
 0x469   :  { %v666_v54 = vadd.f32 1.0, %v5998_v51 }
 0x46b   :  { %6007 = vrcp.f32 %v666_v54 }
 0x46c   :  { %v6000_v57 = vpop.eup %5999 }
 0x46d   :  { %v6002_v59 = vpop.eup %6001  ;;  %680 = vperm.xlu0 %5933, %v6000_v57  }
 0x46e   :  { %v667_v62 = vadd.f32 1.0, %v6002_v59 }
 0x470   :  { %v6004_v0 = vpop.eup %6003  ;;  %6009 = vrcp.f32 %v667_v62 }
 0x471   :  { %685 = vperm.xlu0 %5933, %v6004_v0  }
 0x474   :  { %v6006_v1 = vpop.eup %6005 }
 0x475   :  { %690 = vperm.xlu1 %5934, %v6006_v1  }
 0x478   :  { %v6008_v10 = vpop.eup %6007 }
 0x479   :  { %695 = vperm.xlu1 %5934, %v6008_v10  }
 0x47d   :  { %v6010_v11 = vpop.eup %6009 }
 0x47e   :  { %700 = vperm.xlu0 %5933, %v6010_v11  }
 0x4e8   :  { %v681_v12 = vpop.permute.xlu0 %680 }
 0x4e9   :  { %v703_v14 = vmul.f32 %v681_v12, %v6838_v60 }
 0x4ec   :  { %v686_v13 = vpop.permute.xlu0 %685 }
 0x4ed   :  { %v704_v5 = vmul.f32 %v686_v13, %v6845_v63 }
 0x4ef   :  { %v723_v4 = vpack.c.bf16 %v704_v5, %v703_v14 }
 0x4f0   :  { %v691_v18 = vpop.permute.xlu1 %690 }
 0x4f1   :  { %5535 = vmatmul.mubr.msk.bf16.vlgmr.msra.gmra.mxu0 %vm227_vm3, %v723_v4  ;;  %v705_v23 = vmul.f32 %v691_v18, %v6852_v7 }
 0x4f2   :  { %837 = vmatprep.mubr.bf16.mxu0 %v6580_v15  ;;  %1034 = vmatpush1.bf16.msra.mxu0 %v6888_v17 }
 0x4f3   :  { %1035 = vmatprep.subr.bf16.mxu0 %v6897_v19 }
 0x4f4   :  { %v696_v20 = vpop.permute.xlu1 %695 }
 0x4f5   :  { %v706_v24 = vmul.f32 %v696_v20, %v6859_v9  ;;  %v956_v9 = vpop.f32.mrf.mxu1  ;;  %v708_v20 = vadd.s32 128, %v6691_v3 }
 0x4f6   :  { %1036 = vmatpush1.bf16.msra.mxu0 %v6906_v21 }
 0x4f7   :  { %v724_v60 = vpack.c.bf16 %v706_v24, %v705_v23  ;;  %1037 = vmatprep.subr.bf16.mxu0 %v6912_v22  ;;  %v958_v26 = vpop.f32.mrf.mxu1  ;;  %vm716_vm1 = vcmp.ge.s32.totalorder %v708_v20, 192  ;;  %vm718_vm2 = vcmp.lt.s32.totalorder %v708_v20, 224 }
 0x4f8   :  { %vm7017_vm5 = vmand %vm716_vm1, %vm718_vm2 }
 0x4f9   :  { %v701_v63 = vpop.permute.xlu0 %700  ;;  %5536 = vmatmul.mubr.msk.bf16.gmra.mxu0 %vm227_vm3, %v724_v60  ;;  %v960_v27 = vpop.f32.mrf.mxu1  ;;  %v5983_v60 = vld [vmem:[%s8620_s13 + $0x18] sm:$0xff]  }
 0x4fa   :  { %847 = vmatprep.mubr.bf16.mxu0 %v6580_v15  ;;  %1038 = vmatpush1.bf16.msra.mxu0 %v6919_v50  ;;  %v707_v25 = vmul.f32 %v701_v63, %v6866_v8  ;;  %v742_v8 = vsub.s32 1, %v6703_v6 }
 0x4fb   :  { %1039 = vmatprep.subr.bf16.mxu0 %v6928_v53  ;;  %v961_v28 = vpop.f32.mrf.mxu1 }
 0x4fc   :  { %v725_v7 = vpack.c.bf16 %v707_v25, %v707_v25  ;;  %v743_v32 = vrot.slane %v734_v30, %v742_v8 }
 0x4fe   :  { %1040 = vmatpush1.bf16.msra.mxu0 %v6936_v56 }
 0x4ff   :  { %1233 = vmatprep.subr.bf16.mxu0 %v6883_v16 }
 0x501   :  { %5537 = vmatmul.mubr.msk.bf16.gmra.mxu0 %vm227_vm3, %v725_v7 }
 0x502   :  { %1057 = vmatprep.mubr.bf16.mxu0 %v6580_v15 }
 0x5b1   :  { %v829_v33 = vpop.f32.mrf.mxu0 }
 0x5b2   :  { %v6983_v34 = vadd.f32 %v829_v33, %v739_v31 }
 0x5b3   :  { %v831_v35 = vpop.f32.mrf.mxu0 }
 0x5b4   :  { %v957_v36 = vadd.f32 %v956_v9, %v6983_v34  ;;  %v6986_v37 = vadd.f32 %v831_v35, %v743_v32 }
 0x5b5   :  { %v833_v38 = vpop.f32.mrf.mxu0 }
 0x5b6   :  { %v5546_v39 = vmul.f32 -1.442695, %v957_v36  ;;  %v6988_v40 = vadd.f32 %v833_v38, %v739_v31 }
 0x5b7   :  { %v835_v41 = vpop.f32.mrf.mxu0 }
 0x5b8   :  { %6011 = vpow2.f32 %v5546_v39  ;;  %v6990_v42 = vadd.f32 %v835_v41, %v743_v32 }
 0x5b9   :  { %v839_v43 = vpop.f32.mrf.mxu0 }
 0x5ba   :  { %v6992_v44 = vadd.f32 %v839_v43, %v739_v31 }
 0x5bb   :  { %v841_v45 = vpop.f32.mrf.mxu0 }
 0x5bc   :  { %v6994_v46 = vadd.f32 %v841_v45, %v743_v32 }
 0x5bd   :  { %v843_v47 = vpop.f32.mrf.mxu0 }
 0x5be   :  { %v6996_v48 = vadd.f32 %v843_v47, %v739_v31 }
 0x5bf   :  { %v845_v49 = vpop.f32.mrf.mxu0 }
 0x5c0   :  { %v6998_v51 = vadd.f32 %v845_v49, %v743_v32  ;;  %v1018_v49 = vrot.slane %v6983_v34, 2 }
 0x5c1   :  { %v849_v52 = vpop.f32.mrf.mxu0 }
 0x5c2   :  { %v7000_v54 = vadd.f32 %v849_v52, %v739_v31 }
 0x5c3   :  { %v851_v55 = vpop.f32.mrf.mxu0 }
 0x5c4   :  { %v7002_v57 = vadd.f32 %v851_v55, %v743_v32 }
 0x5c5   :  { %v6012_v58 = vpop.eup %6011  ;;  %v853_v59 = vpop.f32.mrf.mxu0 }
 0x5c6   :  { %v969_v61 = vadd.f32 1.0, %v6012_v58  ;;  %v877_v62 = vrot.slane %v7002_v57, 6  ;;  %v1016_v47 = vrot.slane %v7002_v57, 2 }
 0x5c7   :  { %v854_v0 = vpop.f32.mrf.mxu0 }
 0x5c8   :  { %6013 = vrcp.f32 %v969_v61  ;;  %v959_v1 = vadd.f32 %v958_v26, %v877_v62  ;;  %v1019_v58 = vrot.slane %v1016_v47, 2 }
 0x5ca   :  { %v5547_v10 = vmul.f32 -1.442695, %v959_v1 }
 0x5cc   :  { %6015 = vpow2.f32 %v5547_v10 }
 0x5d5   :  { %v6014_v11 = vpop.eup %6013 }
 0x5d6   :  { %v975_v12 = vmul.f32 2.0, %v6014_v11 }
 0x5d8   :  { %v5548_v14 = vadd.f32 -1.0, %v975_v12 }
 0x5d9   :  { %v6016_v5 = vpop.eup %6015 }
 0x5da   :  { %v970_v4 = vadd.f32 1.0, %v6016_v5  ;;  %v979_v18 = vsel %vm7009_vm15, %v5548_v14, %v6014_v11 }
 0x5db   :  { %983 = vrot.lane.b32.xlu1 %v979_v18, %s6581_s7  ;;  %v981_v27 = vmul.f32 0.0, %v979_v18 }
 0x5dc   :  { %6017 = vrcp.f32 %v970_v4 }
 0x5e9   :  { %v6018_v23 = vpop.eup %6017 }
 0x5ea   :  { %v976_v24 = vmul.f32 2.0, %v6018_v23 }
 0x5ec   :  { %v5549_v63 = vadd.f32 -1.0, %v976_v24 }
 0x5ee   :  { %v980_v25 = vsel %vm7017_vm5, %v5549_v63, %v6018_v23 }
 0x5ef   :  { %994 = vrot.lane.b32.xlu0 %v980_v25, %s6581_s7  ;;  %v992_v32 = vmul.f32 0.0, %v980_v25 }
 0x64d   :  { %v984_v7 = vpop.permute.xlu1 %983 }
 0x64e   :  { %v986_v9 = vmul.f32 %v984_v7, %v979_v18 }
 0x650   :  { %988 = vrot.lane.b32.xlu1 %v986_v9, %s6582_s14 }
 0x661   :  { %v995_v3 = vpop.permute.xlu0 %994 }
 0x662   :  { %v997_v26 = vmul.f32 %v995_v3, %v980_v25 }
 0x664   :  { %999 = vrot.lane.b32.xlu0 %v997_v26, %s6582_s14 }
 0x668   :  { %1010 = vrot.lane.b32.xlu0 %v979_v18, %s6582_s14 }
 0x6c2   :  { %v989_v28 = vpop.permute.xlu1 %988 }
 0x6c3   :  { %v991_v30 = vadd.f32 %v989_v28, %v981_v27 }
 0x6c5   :  { %1004 = vrot.lane.b32.xlu1 %v991_v30, %s6583_s19 }
 0x6d6   :  { %v1000_v31 = vpop.permute.xlu0 %999 }
 0x6d7   :  { %v1002_v33 = vadd.f32 %v1000_v31, %v992_v32 }
 0x6da   :  { %v1011_v38 = vpop.permute.xlu0 %1010 }
 0x6db   :  { %v1013_v41 = vsel %vm1007_vm6, %v1011_v38, %v995_v3 }
 0x737   :  { %v1005_v35 = vpop.permute.xlu1 %1004 }
 0x738   :  { %v1008_v36 = vsel %vm1007_vm6, %v1005_v35, %v1002_v33 }
 0x739   :  { %6019 = vtanh.f32 %v1008_v36 }
 0x746   :  { %v6020_v39 = vpop.eup %6019 }
 0x747   :  { %v7030_v43 = vmul.f32 %v6020_v39, %v1013_v41 }
 0x749   :  { %v1015_v45 = vpack.c.bf16 %v7030_v43, %v7030_v43 }
 0x74b   :  { %5550 = vmatmul.mubr.msk.bf16.vlgmr.msra.gmra.mxu0 %vm227_vm3, %v1015_v45 }
 0x74c   :  { %1234 = vmatpush1.bf16.msra.mxu0 %v6888_v17  ;;  %1257 = vmatprep.mubr.bf16.mxu0 %v6580_v15 }
 0x74d   :  { %1235 = vmatprep.subr.bf16.mxu0 %v6897_v19 }
 0x750   :  { %1236 = vmatpush1.bf16.msra.mxu0 %v6906_v21 }
 0x751   :  { %1237 = vmatprep.subr.bf16.mxu0 %v6912_v22 }
 0x754   :  { %1238 = vmatpush1.bf16.msra.mxu0 %v6919_v50 }
 0x755   :  { %1239 = vmatprep.subr.bf16.mxu0 %v6928_v53 }
 0x758   :  { %1240 = vmatpush1.bf16.msra.mxu0 %v6936_v56 }
 0x759   :  { %1462 = vmatprep.subr.bf16.mxu0 %v6883_v16 }
 0x80b   :  { %v1059_v52 = vpop.f32.mrf.mxu0 }
 0x80c   :  { %v1060_v55 = vadd.f32 %v1059_v52, %v1018_v49 }
 0x80d   :  { %v1061_v59 = vpop.f32.mrf.mxu0 }
 0x80e   :  { %v5551_v61 = vmul.f32 -1.442695, %v1060_v55  ;;  %v1062_v0 = vadd.f32 %v1061_v59, %v1019_v58 }
 0x80f   :  { %v1063_v1 = vpop.f32.mrf.mxu0 }
 0x810   :  { %6021 = vpow2.f32 %v5551_v61  ;;  %v5552_v10 = vmul.f32 -1.442695, %v1062_v0  ;;  %v1119_v0 = vrot.slane %v877_v62, 4 }
 0x811   :  { %v1064_v11 = vpop.f32.mrf.mxu0 }
 0x812   :  { %6023 = vpow2.f32 %v5552_v10 }
 0x81d   :  { %v6022_v12 = vpop.eup %6021 }
 0x81e   :  { %v1072_v14 = vadd.f32 1.0, %v6022_v12 }
 0x81f   :  { %v6024_v5 = vpop.eup %6023 }
 0x820   :  { %6025 = vrcp.f32 %v1072_v14  ;;  %v1073_v4 = vadd.f32 1.0, %v6024_v5 }
 0x822   :  { %6027 = vrcp.f32 %v1073_v4 }
 0x82d   :  { %v6026_v18 = vpop.eup %6025 }
 0x82e   :  { %v1078_v20 = vmul.f32 2.0, %v6026_v18 }
 0x82f   :  { %v6028_v23 = vpop.eup %6027 }
 0x830   :  { %v5553_v24 = vadd.f32 -1.0, %v1078_v20  ;;  %v1079_v63 = vmul.f32 2.0, %v6028_v23 }
 0x832   :  { %v1082_v25 = vsel %vm7009_vm15, %v5553_v24, %v6026_v18  ;;  %v5554_v7 = vadd.f32 -1.0, %v1079_v63 }
 0x833   :  { %1086 = vrot.lane.b32.xlu1 %v1082_v25, %s6581_s7  ;;  %v1084_v31 = vmul.f32 %v1082_v25, %v991_v30 }
 0x834   :  { %v1083_v9 = vsel %vm7017_vm5, %v5554_v7, %v6028_v23 }
 0x835   :  { %1097 = vrot.lane.b32.xlu0 %v1083_v9, %s6581_s7  ;;  %v1095_v38 = vmul.f32 %v1083_v9, %v1002_v33  ;;  %v1118_v33 = vrot.slane %v6983_v34, 4 }
 0x8a5   :  { %v1087_v3 = vpop.permute.xlu1 %1086 }
 0x8a6   :  { %v1089_v26 = vmul.f32 %v1087_v3, %v1082_v25 }
 0x8a7   :  { %v1098_v27 = vpop.permute.xlu0 %1097 }
 0x8a8   :  { %v1100_v28 = vmul.f32 %v1098_v27, %v1083_v9  ;;  %1091 = vrot.lane.b32.xlu1 %v1089_v26, %s6582_s14 }
 0x8aa   :  { %1102 = vrot.lane.b32.xlu0 %v1100_v28, %s6582_s14 }
 0x8ae   :  { %1112 = vrot.lane.b32.xlu0 %v1082_v25, %s6582_s14 }
 0x91a   :  { %v1092_v32 = vpop.permute.xlu1 %1091 }
 0x91b   :  { %v1094_v35 = vadd.f32 %v1092_v32, %v1084_v31 }
 0x91c   :  { %v1103_v36 = vpop.permute.xlu0 %1102 }
 0x91d   :  { %1107 = vrot.lane.b32.xlu1 %v1094_v35, %s6583_s19  ;;  %v1105_v39 = vadd.f32 %v1103_v36, %v1095_v38 }
 0x920   :  { %v1113_v49 = vpop.permute.xlu0 %1112 }
 0x921   :  { %v1115_v55 = vsel %vm1007_vm6, %v1113_v49, %v1098_v27 }
 0x98f   :  { %v1108_v41 = vpop.permute.xlu1 %1107 }
 0x990   :  { %v1110_v45 = vsel %vm1007_vm6, %v1108_v41, %v1105_v39 }
 0x991   :  { %6029 = vtanh.f32 %v1110_v45 }
 0x99e   :  { %v6030_v52 = vpop.eup %6029 }
 0x99f   :  { %v7060_v58 = vmul.f32 %v6030_v52, %v1115_v55 }
 0x9a1   :  { %v1117_v30 = vpack.c.bf16 %v7060_v58, %v7060_v58 }
 0x9a3   :  { %5555 = vmatmul.mubr.msk.bf16.vlgmr.msra.gmra.mxu1 %vm227_vm3, %v1117_v30 }
 0x9a4   :  { %1361 = vmatpush1.bf16.msra.mxu1 %v6888_v17  ;;  %1384 = vmatprep.mubr.bf16.mxu1 %v6580_v15 }
 0x9a5   :  { %1362 = vmatprep.subr.bf16.mxu1 %v6897_v19 }
 0x9a8   :  { %1363 = vmatpush1.bf16.msra.mxu1 %v6906_v21 }
 0x9a9   :  { %1364 = vmatprep.subr.bf16.mxu1 %v6912_v22 }
 0x9ac   :  { %1365 = vmatpush1.bf16.msra.mxu1 %v6919_v50 }
 0x9ad   :  { %1366 = vmatprep.subr.bf16.mxu1 %v6928_v53 }
 0x9b0   :  { %1367 = vmatpush1.bf16.msra.mxu1 %v6936_v56 }
 0x9b1   :  { %1562 = vmatprep.subr.bf16.mxu1 %v6883_v16 }
 0xa63   :  { %v1159_v59 = vpop.f32.mrf.mxu1 }
 0xa64   :  { %v1160_v61 = vadd.f32 %v1159_v59, %v1118_v33 }
 0xa65   :  { %v1161_v1 = vpop.f32.mrf.mxu1 }
 0xa66   :  { %v5556_v10 = vmul.f32 -1.442695, %v1160_v61  ;;  %v1162_v11 = vadd.f32 %v1161_v1, %v1119_v0  ;;  %v1318_v61 = vrot.slane %v7060_v58, 6 }
 0xa67   :  { %v1163_v12 = vpop.f32.mrf.mxu1 }
 0xa68   :  { %6031 = vpow2.f32 %v5556_v10  ;;  %v5557_v14 = vmul.f32 -1.442695, %v1162_v11  ;;  %v1326_v10 = vsel %vm429_vm7, %v7030_v43, %v1318_v61  ;;  %v1218_v12 = vrot.slane %v6983_v34, 6 }
 0xa69   :  { %v1164_v5 = vpop.f32.mrf.mxu1 }
 0xa6a   :  { %6033 = vpow2.f32 %v5557_v14 }
 0xa75   :  { %v6032_v4 = vpop.eup %6031 }
 0xa76   :  { %v1172_v18 = vadd.f32 1.0, %v6032_v4  ;;  %v1219_v4 = vrot.slane %v1016_v47, 6 }
 0xa77   :  { %v6034_v20 = vpop.eup %6033 }
 0xa78   :  { %6035 = vrcp.f32 %v1172_v18  ;;  %v1173_v23 = vadd.f32 1.0, %v6034_v20 }
 0xa7a   :  { %6037 = vrcp.f32 %v1173_v23 }
 0xa85   :  { %v6036_v24 = vpop.eup %6035 }
 0xa86   :  { %v1178_v63 = vmul.f32 2.0, %v6036_v24 }
 0xa87   :  { %v6038_v25 = vpop.eup %6037 }
 0xa88   :  { %v5558_v7 = vadd.f32 -1.0, %v1178_v63  ;;  %v1179_v9 = vmul.f32 2.0, %v6038_v25 }
 0xa8a   :  { %v1182_v62 = vsel %vm7009_vm15, %v5558_v7, %v6036_v24  ;;  %v5559_v3 = vadd.f32 -1.0, %v1179_v9 }
 0xa8b   :  { %1186 = vrot.lane.b32.xlu1 %v1182_v62, %s6581_s7  ;;  %v1184_v36 = vmul.f32 %v1182_v62, %v1094_v35 }
 0xa8c   :  { %v1183_v26 = vsel %vm7017_vm5, %v5559_v3, %v6038_v25 }
 0xa8d   :  { %1197 = vrot.lane.b32.xlu0 %v1183_v26, %s6581_s7  ;;  %v1195_v49 = vmul.f32 %v1183_v26, %v1105_v39 }
 0xafd   :  { %v1187_v27 = vpop.permute.xlu1 %1186 }
 0xafe   :  { %v1189_v28 = vmul.f32 %v1187_v27, %v1182_v62 }
 0xaff   :  { %v1198_v31 = vpop.permute.xlu0 %1197 }
 0xb00   :  { %v1200_v32 = vmul.f32 %v1198_v31, %v1183_v26  ;;  %1191 = vrot.lane.b32.xlu1 %v1189_v28, %s6582_s14 }
 0xb02   :  { %1202 = vrot.lane.b32.xlu0 %v1200_v32, %s6582_s14 }
 0xb06   :  { %1212 = vrot.lane.b32.xlu0 %v1182_v62, %s6582_s14 }
 0xb72   :  { %v1192_v38 = vpop.permute.xlu1 %1191 }
 0xb73   :  { %v1194_v41 = vadd.f32 %v1192_v38, %v1184_v36 }
 0xb74   :  { %v1203_v45 = vpop.permute.xlu0 %1202 }
 0xb75   :  { %1207 = vrot.lane.b32.xlu1 %v1194_v41, %s6583_s19  ;;  %v7087_v52 = vadd.f32 %v1203_v45, %v1195_v49 }
 0xb78   :  { %v1213_v33 = vpop.permute.xlu0 %1212 }
 0xb79   :  { %v1215_v0 = vsel %vm1007_vm6, %v1213_v33, %v1198_v31 }
 0xbe7   :  { %v1208_v55 = vpop.permute.xlu1 %1207 }
 0xbe8   :  { %v1210_v30 = vsel %vm1007_vm6, %v1208_v55, %v7087_v52 }
 0xbe9   :  { %6039 = vtanh.f32 %v1210_v30 }
 0xbf6   :  { %v6040_v59 = vpop.eup %6039 }
 0xbf7   :  { %v7093_v35 = vmul.f32 %v6040_v59, %v1215_v0 }
 0xbf9   :  { %v1321_v1 = vrot.slane %v7093_v35, 4  ;;  %v1217_v39 = vpack.c.bf16 %v7093_v35, %v7093_v35 }
 0xbfb   :  { %v7101_v11 = vsel %vm314_vm4, %v1326_v10, %v1321_v1  ;;  %5560 = vmatmul.mubr.msk.bf16.vlgmr.msra.gmra.mxu0 %vm227_vm3, %v1217_v39 }
 0xbfc   :  { %1463 = vmatpush1.bf16.msra.mxu0 %v6888_v17  ;;  %1486 = vmatprep.mubr.bf16.mxu0 %v6580_v15 }
 0xbfd   :  { %1464 = vmatprep.subr.bf16.mxu0 %v6897_v19 }
 0xc00   :  { %1465 = vmatpush1.bf16.msra.mxu0 %v6906_v21 }
 0xc01   :  { %1466 = vmatprep.subr.bf16.mxu0 %v6912_v22 }
 0xc04   :  { %1467 = vmatpush1.bf16.msra.mxu0 %v6919_v50 }
 0xc05   :  { %1468 = vmatprep.subr.bf16.mxu0 %v6928_v53 }
 0xc08   :  { %1469 = vmatpush1.bf16.msra.mxu0 %v6936_v56 }
 0xc09   :  { %1662 = vmatprep.subr.bf16.mxu0 %v6883_v16 }
 0xcbb   :  { %v1259_v14 = vpop.f32.mrf.mxu0 }
 0xcbc   :  { %v1260_v5 = vadd.f32 %v1259_v14, %v1218_v12  ;;  %v1331_v14 = vrot.slane %v7093_v35, 6  ;;  %v1347_v35 = vrot.slane %v6998_v51, 6 }
 0xcbd   :  { %v1261_v18 = vpop.f32.mrf.mxu0 }
 0xcbe   :  { %v5561_v20 = vmul.f32 -1.442695, %v1260_v5  ;;  %v1262_v23 = vadd.f32 %v1261_v18, %v1219_v4  ;;  %v1336_v4 = vrot.slane %v7030_v43, 2  ;;  %v1333_v18 = vrot.slane %v7060_v58, 4 }
 0xcbf   :  { %v1263_v24 = vpop.f32.mrf.mxu0 }
 0xcc0   :  { %6041 = vpow2.f32 %v5561_v20  ;;  %v5562_v63 = vmul.f32 -1.442695, %v1262_v23 }
 0xcc1   :  { %v1264_v25 = vpop.f32.mrf.mxu0 }
 0xcc2   :  { %6043 = vpow2.f32 %v5562_v63 }
 0xccd   :  { %v6042_v7 = vpop.eup %6041 }
 0xcce   :  { %v1272_v9 = vadd.f32 1.0, %v6042_v7 }
 0xccf   :  { %v6044_v62 = vpop.eup %6043 }
 0xcd0   :  { %6045 = vrcp.f32 %v1272_v9  ;;  %v1273_v3 = vadd.f32 1.0, %v6044_v62 }
 0xcd2   :  { %6047 = vrcp.f32 %v1273_v3 }
 0xcdd   :  { %v6046_v34 = vpop.eup %6045 }
 0xcde   :  { %v1278_v26 = vmul.f32 2.0, %v6046_v34 }
 0xcdf   :  { %v6048_v27 = vpop.eup %6047 }
 0xce0   :  { %v5563_v28 = vadd.f32 -1.0, %v1278_v26  ;;  %v1279_v57 = vmul.f32 2.0, %v6048_v27 }
 0xce2   :  { %v1282_v47 = vsel %vm7009_vm15, %v5563_v28, %v6046_v34  ;;  %v5564_v31 = vadd.f32 -1.0, %v1279_v57 }
 0xce3   :  { %1286 = vrot.lane.b32.xlu1 %v1282_v47, %s6581_s7  ;;  %v1284_v55 = vmul.f32 %v1282_v47, %v1194_v41 }
 0xce4   :  { %v1283_v32 = vsel %vm7017_vm5, %v5564_v31, %v6048_v27 }
 0xce5   :  { %1297 = vrot.lane.b32.xlu0 %v1283_v32, %s6581_s7  ;;  %v1295_v61 = vmul.f32 %v1283_v32, %v7087_v52 }
 0xd55   :  { %v1287_v36 = vpop.permute.xlu1 %1286 }
 0xd56   :  { %v1289_v38 = vmul.f32 %v1287_v36, %v1282_v47 }
 0xd57   :  { %v1298_v45 = vpop.permute.xlu0 %1297 }
 0xd58   :  { %v1300_v49 = vmul.f32 %v1298_v45, %v1283_v32  ;;  %1291 = vrot.lane.b32.xlu1 %v1289_v38, %s6582_s14 }
 0xd5a   :  { %1302 = vrot.lane.b32.xlu0 %v1300_v49, %s6582_s14 }
 0xd5e   :  { %1312 = vrot.lane.b32.xlu0 %v1282_v47, %s6582_s14 }
 0xdca   :  { %v1292_v30 = vpop.permute.xlu1 %1291 }
 0xdcb   :  { %v7125_v33 = vadd.f32 %v1292_v30, %v1284_v55 }
 0xdcc   :  { %v1303_v59 = vpop.permute.xlu0 %1302 }
 0xdcd   :  { %1307 = vrot.lane.b32.xlu1 %v7125_v33, %s6583_s19  ;;  %v7130_v0 = vadd.f32 %v1303_v59, %v1295_v61 }
 0xdd0   :  { %v1313_v10 = vpop.permute.xlu0 %1312 }
 0xdd1   :  { %v1315_v41 = vsel %vm1007_vm6, %v1313_v10, %v1298_v45 }
 0xe3f   :  { %v1308_v1 = vpop.permute.xlu1 %1307 }
 0xe40   :  { %v1310_v39 = vsel %vm1007_vm6, %v1308_v1, %v7130_v0 }
 0xe41   :  { %6049 = vtanh.f32 %v1310_v39 }
 0xe4e   :  { %v6050_v12 = vpop.eup %6049 }
 0xe4f   :  { %v1316_v5 = vmul.f32 %v6050_v12, %v1315_v41 }
 0xe51   :  { %v1324_v52 = vrot.slane %v1316_v5, 2  ;;  %v1338_v20 = vsel %vm429_vm7, %v1316_v5, %v1331_v14  ;;  %v1345_v23 = vpack.c.bf16 %v1316_v5, %v1316_v5 }
 0xe52   :  { %v1339_v24 = vsel %vm314_vm4, %v1338_v20, %v1333_v18 }
 0xe53   :  { %v1329_v63 = vsel %vm1328_vm8, %v7101_v11, %v1324_v52  ;;  %v1340_v25 = vsel %vm1328_vm8, %v1339_v24, %v1336_v4  ;;  %5565 = vmatmul.mubr.msk.bf16.vlgmr.msra.gmra.mxu1 %vm227_vm3, %v1345_v23 }
 0xe54   :  { %1330 = vst.msk [vmem:[#allocation3] sm:$0xff] %vm1007_vm6, %v1329_v63  ;;  %1563 = vmatpush1.bf16.msra.mxu1 %v6888_v17  ;;  %1586 = vmatprep.mubr.bf16.mxu1 %v6580_v15 }
 0xe55   :  { %1342 = vst.msk [vmem:[#allocation3 + $0x20] sm:$0xff] %vm1341_vm9, %v1340_v25  ;;  %1564 = vmatprep.subr.bf16.mxu1 %v6897_v19 }
 0xe58   :  { %1565 = vmatpush1.bf16.msra.mxu1 %v6906_v21 }
 0xe59   :  { %1566 = vmatprep.subr.bf16.mxu1 %v6912_v22 }
 0xe5c   :  { %1567 = vmatpush1.bf16.msra.mxu1 %v6919_v50 }
 0xe5d   :  { %1568 = vmatprep.subr.bf16.mxu1 %v6928_v53 }
 0xe60   :  { %1569 = vmatpush1.bf16.msra.mxu1 %v6936_v56 }
 0xe61   :  { %1787 = vmatprep.subr.bf16.mxu1 %v6883_v16 }
 0xf13   :  { %v1386_v43 = vpop.f32.mrf.mxu1 }
 0xf14   :  { %v1387_v58 = vadd.f32 %v1386_v43, %v6988_v40 }
 0xf15   :  { %v1388_v11 = vpop.f32.mrf.mxu1 }
 0xf16   :  { %v5566_v7 = vmul.f32 -1.442695, %v1387_v58  ;;  %v1389_v9 = vadd.f32 %v1388_v11, %v1347_v35 }
 0xf17   :  { %v1390_v62 = vpop.f32.mrf.mxu1 }
 0xf18   :  { %6051 = vpow2.f32 %v5566_v7  ;;  %v5567_v3 = vmul.f32 -1.442695, %v1389_v9 }
 0xf19   :  { %v1391_v34 = vpop.f32.mrf.mxu1 }
 0xf1a   :  { %6053 = vpow2.f32 %v5567_v3 }
 0xf25   :  { %v6052_v26 = vpop.eup %6051 }
 0xf26   :  { %v1399_v27 = vadd.f32 1.0, %v6052_v26 }
 0xf27   :  { %v6054_v28 = vpop.eup %6053 }
 0xf28   :  { %6055 = vrcp.f32 %v1399_v27  ;;  %v1400_v57 = vadd.f32 1.0, %v6054_v28 }
 0xf2a   :  { %6057 = vrcp.f32 %v1400_v57 }
 0xf35   :  { %v6056_v47 = vpop.eup %6055 }
 0xf36   :  { %v1405_v31 = vmul.f32 2.0, %v6056_v47 }
 0xf37   :  { %v6058_v32 = vpop.eup %6057 }
 0xf38   :  { %v5568_v36 = vadd.f32 -1.0, %v1405_v31  ;;  %v1406_v38 = vmul.f32 2.0, %v6058_v32 }
 0xf3a   :  { %v1409_v45 = vsel %vm7009_vm15, %v5568_v36, %v6056_v47  ;;  %v5569_v49 = vadd.f32 -1.0, %v1406_v38 }
 0xf3b   :  { %1413 = vrot.lane.b32.xlu1 %v1409_v45, %s6581_s7  ;;  %v1411_v39 = vmul.f32 %v1409_v45, %v7125_v33 }
 0xf3c   :  { %v1410_v55 = vsel %vm7017_vm5, %v5569_v49, %v6058_v32 }
 0xf3d   :  { %1424 = vrot.lane.b32.xlu0 %v1410_v55, %s6581_s7  ;;  %v1422_v14 = vmul.f32 %v1410_v55, %v7130_v0  ;;  %v1445_v0 = vrot.slane %v6998_v51, 2 }
 0xfad   :  { %v1414_v30 = vpop.permute.xlu1 %1413 }
 0xfae   :  { %v1416_v59 = vmul.f32 %v1414_v30, %v1409_v45 }
 0xfaf   :  { %v1425_v61 = vpop.permute.xlu0 %1424 }
 0xfb0   :  { %v1427_v1 = vmul.f32 %v1425_v61, %v1410_v55  ;;  %1418 = vrot.lane.b32.xlu1 %v1416_v59, %s6582_s14 }
 0xfb2   :  { %1429 = vrot.lane.b32.xlu0 %v1427_v1, %s6582_s14 }
 0xfb6   :  { %1439 = vrot.lane.b32.xlu0 %v1409_v45, %s6582_s14 }
0x1022   :  { %v1419_v10 = vpop.permute.xlu1 %1418 }
0x1023   :  { %v1421_v12 = vadd.f32 %v1419_v10, %v1411_v39 }
0x1024   :  { %v1430_v41 = vpop.permute.xlu0 %1429 }
0x1025   :  { %1434 = vrot.lane.b32.xlu1 %v1421_v12, %s6583_s19  ;;  %v1432_v5 = vadd.f32 %v1430_v41, %v1422_v14 }
0x1028   :  { %v1440_v52 = vpop.permute.xlu0 %1439 }
0x1029   :  { %v1442_v23 = vsel %vm1007_vm6, %v1440_v52, %v1425_v61 }
0x1097   :  { %v1435_v4 = vpop.permute.xlu1 %1434 }
0x1098   :  { %v1437_v18 = vsel %vm1007_vm6, %v1435_v4, %v1432_v5 }
0x1099   :  { %6059 = vtanh.f32 %v1437_v18 }
0x10a6   :  { %v6060_v20 = vpop.eup %6059 }
0x10a7   :  { %v7173_v24 = vmul.f32 %v6060_v20, %v1442_v23  ;;  %v7224_v20 = vld [vmem:[%s8616_s9 + $0x24] ss:$8 sps:$4 sm:$0xff]   ;;  %v7230_v23 = vld [vmem:[%s8616_s9 + $0x20] ss:$8 sps:$4 sm:$0xff]  }
0x10a9   :  { %v1444_v33 = vpack.c.bf16 %v7173_v24, %v7173_v24 }
0x10ab   :  { %5570 = vmatmul.mubr.msk.bf16.vlgmr.msra.gmra.mxu0 %vm227_vm3, %v1444_v33  ;;  %v7236_v33 = vld [vmem:[%s8616_s9 + $0x14] ss:$8 sps:$4 sm:$0xff]  }
0x10ac   :  { %1663 = vmatpush1.bf16.msra.mxu0 %v6888_v17  ;;  %1686 = vmatprep.mubr.bf16.mxu0 %v6580_v15  ;;  %v1447_v17 = vrot.slane %v6988_v40, 2 }
0x10ad   :  { %1664 = vmatprep.subr.bf16.mxu0 %v6897_v19  ;;  %v1448_v19 = vrot.slane %v1445_v0, 2 }
0x10b0   :  { %1665 = vmatpush1.bf16.msra.mxu0 %v6906_v21 }
0x10b1   :  { %1666 = vmatprep.subr.bf16.mxu0 %v6912_v22 }
0x10b4   :  { %1667 = vmatpush1.bf16.msra.mxu0 %v6919_v50 }
0x10b5   :  { %1668 = vmatprep.subr.bf16.mxu0 %v6928_v53 }
0x10b8   :  { %1669 = vmatpush1.bf16.msra.mxu0 %v6936_v56 }
0x10b9   :  { %1889 = vmatprep.subr.bf16.mxu0 %v6883_v16 }
0x116b   :  { %v1488_v63 = vpop.f32.mrf.mxu0 }
0x116c   :  { %v1489_v25 = vadd.f32 %v1488_v63, %v1447_v17  ;;  %v7245_v17 = vld [vmem:[%s8616_s9 + $0x34] ss:$8 sps:$4 sm:$0xff]   ;;  %v1547_v63 = vrot.slane %v6988_v40, 4 }
0x116d   :  { %v1490_v21 = vpop.f32.mrf.mxu0 }
0x116e   :  { %v5571_v43 = vmul.f32 -1.442695, %v1489_v25  ;;  %v1491_v22 = vadd.f32 %v1490_v21, %v1448_v19  ;;  %v1548_v21 = vrot.slane %v1347_v35, 4 }
0x116f   :  { %v1492_v58 = vpop.f32.mrf.mxu0 }
0x1170   :  { %6061 = vpow2.f32 %v5571_v43  ;;  %v5572_v11 = vmul.f32 -1.442695, %v1491_v22 }
0x1171   :  { %v1493_v7 = vpop.f32.mrf.mxu0 }
0x1172   :  { %6063 = vpow2.f32 %v5572_v11 }
0x117d   :  { %v6062_v9 = vpop.eup %6061 }
0x117e   :  { %v1501_v62 = vadd.f32 1.0, %v6062_v9 }
0x117f   :  { %v6064_v16 = vpop.eup %6063 }
0x1180   :  { %6065 = vrcp.f32 %v1501_v62  ;;  %v1502_v3 = vadd.f32 1.0, %v6064_v16 }
0x1182   :  { %6067 = vrcp.f32 %v1502_v3 }
0x118d   :  { %v6066_v34 = vpop.eup %6065 }
0x118e   :  { %v1507_v26 = vmul.f32 2.0, %v6066_v34 }
0x118f   :  { %v6068_v27 = vpop.eup %6067 }
0x1190   :  { %v5573_v28 = vadd.f32 -1.0, %v1507_v26  ;;  %v1508_v57 = vmul.f32 2.0, %v6068_v27 }
0x1192   :  { %v1511_v47 = vsel %vm7009_vm15, %v5573_v28, %v6066_v34  ;;  %v5574_v31 = vadd.f32 -1.0, %v1508_v57 }
0x1193   :  { %1515 = vrot.lane.b32.xlu1 %v1511_v47, %s6581_s7  ;;  %v1513_v55 = vmul.f32 %v1511_v47, %v1421_v12 }
0x1194   :  { %v1512_v32 = vsel %vm7017_vm5, %v5574_v31, %v6068_v27 }
0x1195   :  { %1526 = vrot.lane.b32.xlu0 %v1512_v32, %s6581_s7  ;;  %v1524_v1 = vmul.f32 %v1512_v32, %v1432_v5  ;;  %v7217_v5 = vld [vmem:[%s8616_s9 + $0x30] ss:$8 sps:$4 sm:$0xff]  }
0x1205   :  { %v1516_v36 = vpop.permute.xlu1 %1515 }
0x1206   :  { %v1518_v38 = vmul.f32 %v1516_v36, %v1511_v47 }
0x1207   :  { %v1527_v45 = vpop.permute.xlu0 %1526 }
0x1208   :  { %v1529_v49 = vmul.f32 %v1527_v45, %v1512_v32  ;;  %1520 = vrot.lane.b32.xlu1 %v1518_v38, %s6582_s14 }
0x120a   :  { %1531 = vrot.lane.b32.xlu0 %v1529_v49, %s6582_s14 }
0x120e   :  { %1541 = vrot.lane.b32.xlu0 %v1511_v47, %s6582_s14 }
0x127a   :  { %v1521_v30 = vpop.permute.xlu1 %1520 }
0x127b   :  { %v7200_v59 = vadd.f32 %v1521_v30, %v1513_v55 }
0x127c   :  { %v1532_v61 = vpop.permute.xlu0 %1531 }
0x127d   :  { %1536 = vrot.lane.b32.xlu1 %v7200_v59, %s6583_s19  ;;  %v7204_v39 = vadd.f32 %v1532_v61, %v1524_v1 }
0x1280   :  { %v1542_v14 = vpop.permute.xlu0 %1541 }
0x1281   :  { %v1544_v18 = vsel %vm1007_vm6, %v1542_v14, %v1527_v45 }
0x12ef   :  { %v1537_v10 = vpop.permute.xlu1 %1536 }
0x12f0   :  { %v1539_v41 = vsel %vm1007_vm6, %v1537_v10, %v7204_v39 }
0x12f1   :  { %6069 = vtanh.f32 %v1539_v41 }
0x12fe   :  { %v6070_v4 = vpop.eup %6069 }
0x12ff   :  { %v7209_v12 = vmul.f32 %v6070_v4, %v1544_v18 }
0x1301   :  { %v1546_v52 = vpack.c.bf16 %v7209_v12, %v7209_v12 }
0x1303   :  { %5575 = vmatmul.mubr.msk.bf16.vlgmr.msra.gmra.mxu1 %vm227_vm3, %v1546_v52 }
0x1304   :  { %1788 = vmatpush1.bf16.msra.mxu1 %v7217_v5  ;;  %1811 = vmatprep.mubr.bf16.mxu1 %v6580_v15 }
0x1305   :  { %1789 = vmatprep.subr.bf16.mxu1 %v7224_v20 }
0x1308   :  { %1790 = vmatpush1.bf16.msra.mxu1 %v7230_v23 }
0x1309   :  { %1791 = vmatprep.subr.bf16.mxu1 %v7236_v33 }
0x130c   :  { %1792 = vmatpush1.bf16.msra.mxu1 %v6919_v50 }
0x130d   :  { %1793 = vmatprep.subr.bf16.mxu1 %v6928_v53 }
0x1310   :  { %1794 = vmatpush1.bf16.msra.mxu1 %v6936_v56 }
0x1311   :  { %1989 = vmatprep.subr.bf16.mxu1 %v7245_v17 }
0x13c3   :  { %v1588_v25 = vpop.f32.mrf.mxu1 }
0x13c4   :  { %v1589_v19 = vadd.f32 %v1588_v25, %v1547_v63 }
0x13c5   :  { %v1590_v43 = vpop.f32.mrf.mxu1 }
0x13c6   :  { %v5576_v50 = vmul.f32 -1.442695, %v1589_v19  ;;  %v1591_v22 = vadd.f32 %v1590_v43, %v1548_v21  ;;  %v7291_v19 = vld [vmem:[%s8616_s9 + $0x10] ss:$8 sps:$4 sm:$0xff]   ;;  %v7297_v21 = vld [vmem:[%s8616_s9 + $0x4] ss:$8 sps:$4 sm:$0xff]  }
0x13c7   :  { %v1592_v53 = vpop.f32.mrf.mxu1  ;;  %v7303_v43 = vld [vmem:[%s8616_s9] ss:$8 sps:$4 sm:$0xff]  }
0x13c8   :  { %6071 = vpow2.f32 %v5576_v50  ;;  %v5577_v56 = vmul.f32 -1.442695, %v1591_v22  ;;  %v1647_v50 = vrot.slane %v6988_v40, 6 }
0x13c9   :  { %v1593_v58 = vpop.f32.mrf.mxu1 }
0x13ca   :  { %6073 = vpow2.f32 %v5577_v56  ;;  %v1648_v56 = vrot.slane %v1445_v0, 6 }
0x13d5   :  { %v6072_v11 = vpop.eup %6071 }
0x13d6   :  { %v1601_v7 = vadd.f32 1.0, %v6072_v11 }
0x13d7   :  { %v6074_v9 = vpop.eup %6073 }
0x13d8   :  { %6075 = vrcp.f32 %v1601_v7  ;;  %v1602_v62 = vadd.f32 1.0, %v6074_v9 }
0x13da   :  { %6077 = vrcp.f32 %v1602_v62 }
0x13e5   :  { %v6076_v16 = vpop.eup %6075 }
0x13e6   :  { %v1607_v3 = vmul.f32 2.0, %v6076_v16 }
0x13e7   :  { %v6078_v34 = vpop.eup %6077 }
0x13e8   :  { %v5578_v26 = vadd.f32 -1.0, %v1607_v3  ;;  %v1608_v27 = vmul.f32 2.0, %v6078_v34 }
0x13ea   :  { %v1611_v35 = vsel %vm7009_vm15, %v5578_v26, %v6076_v16  ;;  %v5579_v28 = vadd.f32 -1.0, %v1608_v27 }
0x13eb   :  { %1615 = vrot.lane.b32.xlu1 %v1611_v35, %s6581_s7  ;;  %v1613_v38 = vmul.f32 %v1611_v35, %v7200_v59  ;;  %v1747_v59 = vrot.slane %v7209_v12, 6 }
0x13ec   :  { %v1612_v57 = vsel %vm7017_vm5, %v5579_v28, %v6078_v34 }
0x13ed   :  { %1626 = vrot.lane.b32.xlu0 %v1612_v57, %s6581_s7  ;;  %v1624_v30 = vmul.f32 %v1612_v57, %v7204_v39  ;;  %v1755_v63 = vsel %vm429_vm7, %v7173_v24, %v1747_v59 }
0x145d   :  { %v1616_v47 = vpop.permute.xlu1 %1615 }
0x145e   :  { %v1618_v31 = vmul.f32 %v1616_v47, %v1611_v35 }
0x145f   :  { %v1627_v32 = vpop.permute.xlu0 %1626 }
0x1460   :  { %v1629_v36 = vmul.f32 %v1627_v32, %v1612_v57  ;;  %1620 = vrot.lane.b32.xlu1 %v1618_v31, %s6582_s14 }
0x1462   :  { %1631 = vrot.lane.b32.xlu0 %v1629_v36, %s6582_s14 }
0x1466   :  { %1641 = vrot.lane.b32.xlu0 %v1611_v35, %s6582_s14 }
0x14d2   :  { %v1621_v45 = vpop.permute.xlu1 %1620 }
0x14d3   :  { %v7261_v49 = vadd.f32 %v1621_v45, %v1613_v38 }
0x14d4   :  { %v1632_v55 = vpop.permute.xlu0 %1631 }
0x14d5   :  { %1636 = vrot.lane.b32.xlu1 %v7261_v49, %s6583_s19  ;;  %v7266_v61 = vadd.f32 %v1632_v55, %v1624_v30 }
0x14d8   :  { %v1642_v41 = vpop.permute.xlu0 %1641 }
0x14d9   :  { %v1644_v4 = vsel %vm1007_vm6, %v1642_v41, %v1627_v32 }
0x1547   :  { %v1637_v1 = vpop.permute.xlu1 %1636 }
0x1548   :  { %v1639_v10 = vsel %vm1007_vm6, %v1637_v1, %v7266_v61 }
0x1549   :  { %6079 = vtanh.f32 %v1639_v10 }
0x1556   :  { %v6080_v14 = vpop.eup %6079 }
0x1557   :  { %v7272_v18 = vmul.f32 %v6080_v14, %v1644_v4 }
0x1559   :  { %v1750_v52 = vrot.slane %v7272_v18, 4  ;;  %v1646_v39 = vpack.c.bf16 %v7272_v18, %v7272_v18 }
0x155b   :  { %v7280_v25 = vsel %vm314_vm4, %v1755_v63, %v1750_v52  ;;  %5580 = vmatmul.mubr.msk.bf16.vlgmr.msra.gmra.mxu0 %vm227_vm3, %v1646_v39  ;;  %v1759_v63 = vrot.slane %v7272_v18, 6  ;;  %v1774_v18 = vrot.slane %v6994_v46, 6 }
0x155c   :  { %1890 = vmatpush1.bf16.msra.mxu0 %v7217_v5  ;;  %1913 = vmatprep.mubr.bf16.mxu0 %v6580_v15 }
0x155d   :  { %1891 = vmatprep.subr.bf16.mxu0 %v7224_v20 }
0x1560   :  { %1892 = vmatpush1.bf16.msra.mxu0 %v7230_v23 }
0x1561   :  { %1893 = vmatprep.subr.bf16.mxu0 %v7236_v33 }
0x1564   :  { %1894 = vmatpush1.bf16.msra.mxu0 %v7291_v19 }
0x1565   :  { %1895 = vmatprep.subr.bf16.mxu0 %v7297_v21 }
0x1568   :  { %1896 = vmatpush1.bf16.msra.mxu0 %v7303_v43 }
0x1569   :  { %2089 = vmatprep.subr.bf16.mxu0 %v7245_v17 }
0x161b   :  { %v1688_v22 = vpop.f32.mrf.mxu0 }
0x161c   :  { %v1689_v53 = vadd.f32 %v1688_v22, %v1647_v50  ;;  %v1761_v22 = vrot.slane %v7209_v12, 4 }
0x161d   :  { %v1690_v58 = vpop.f32.mrf.mxu0 }
0x161e   :  { %v5581_v11 = vmul.f32 -1.442695, %v1689_v53  ;;  %v1691_v7 = vadd.f32 %v1690_v58, %v1648_v56  ;;  %v1764_v53 = vrot.slane %v7173_v24, 2 }
0x161f   :  { %v1692_v9 = vpop.f32.mrf.mxu0 }
0x1620   :  { %6081 = vpow2.f32 %v5581_v11  ;;  %v5582_v62 = vmul.f32 -1.442695, %v1691_v7 }
0x1621   :  { %v1693_v16 = vpop.f32.mrf.mxu0 }
0x1622   :  { %6083 = vpow2.f32 %v5582_v62 }
0x162d   :  { %v6082_v3 = vpop.eup %6081 }
0x162e   :  { %v1701_v34 = vadd.f32 1.0, %v6082_v3 }
0x162f   :  { %v6084_v26 = vpop.eup %6083 }
0x1630   :  { %6085 = vrcp.f32 %v1701_v34  ;;  %v1702_v27 = vadd.f32 1.0, %v6084_v26 }
0x1632   :  { %6087 = vrcp.f32 %v1702_v27 }
0x163d   :  { %v6086_v40 = vpop.eup %6085 }
0x163e   :  { %v1707_v35 = vmul.f32 2.0, %v6086_v40 }
0x163f   :  { %v6088_v28 = vpop.eup %6087 }
0x1640   :  { %v5583_v57 = vadd.f32 -1.0, %v1707_v35  ;;  %v1708_v51 = vmul.f32 2.0, %v6088_v28 }
0x1642   :  { %v1711_v0 = vsel %vm7009_vm15, %v5583_v57, %v6086_v40  ;;  %v5584_v47 = vadd.f32 -1.0, %v1708_v51 }
0x1643   :  { %1715 = vrot.lane.b32.xlu1 %v1711_v0, %s6581_s7  ;;  %v1713_v55 = vmul.f32 %v1711_v0, %v7261_v49 }
0x1644   :  { %v1712_v31 = vsel %vm7017_vm5, %v5584_v47, %v6088_v28 }
0x1645   :  { %1726 = vrot.lane.b32.xlu0 %v1712_v31, %s6581_s7  ;;  %v1724_v41 = vmul.f32 %v1712_v31, %v7266_v61 }
0x16b5   :  { %v1716_v32 = vpop.permute.xlu1 %1715 }
0x16b6   :  { %v1718_v36 = vmul.f32 %v1716_v32, %v1711_v0 }
0x16b7   :  { %v1727_v38 = vpop.permute.xlu0 %1726 }
0x16b8   :  { %v1729_v45 = vmul.f32 %v1727_v38, %v1712_v31  ;;  %1720 = vrot.lane.b32.xlu1 %v1718_v36, %s6582_s14 }
0x16ba   :  { %1731 = vrot.lane.b32.xlu0 %v1729_v45, %s6582_s14 }
0x16be   :  { %1741 = vrot.lane.b32.xlu0 %v1711_v0, %s6582_s14 }
0x172a   :  { %v1721_v30 = vpop.permute.xlu1 %1720 }
0x172b   :  { %v7320_v1 = vadd.f32 %v1721_v30, %v1713_v55 }
0x172c   :  { %v1732_v10 = vpop.permute.xlu0 %1731 }
0x172d   :  { %1736 = vrot.lane.b32.xlu1 %v7320_v1, %s6583_s19  ;;  %v7325_v14 = vadd.f32 %v1732_v10, %v1724_v41 }
0x1730   :  { %v1742_v52 = vpop.permute.xlu0 %1741 }
0x1731   :  { %v1744_v49 = vsel %vm1007_vm6, %v1742_v52, %v1727_v38 }
0x179f   :  { %v1737_v59 = vpop.permute.xlu1 %1736 }
0x17a0   :  { %v1739_v4 = vsel %vm1007_vm6, %v1737_v59, %v7325_v14 }
0x17a1   :  { %6089 = vtanh.f32 %v1739_v4 }
0x17ae   :  { %v6090_v39 = vpop.eup %6089 }
0x17af   :  { %v1745_v50 = vmul.f32 %v6090_v39, %v1744_v49 }
0x17b1   :  { %v1753_v56 = vrot.slane %v1745_v50, 2  ;;  %v1766_v61 = vsel %vm429_vm7, %v1745_v50, %v1759_v63  ;;  %v1772_v58 = vpack.c.bf16 %v1745_v50, %v1745_v50 }
0x17b2   :  { %v1767_v11 = vsel %vm314_vm4, %v1766_v61, %v1761_v22 }
0x17b3   :  { %v1757_v7 = vsel %vm1328_vm8, %v7280_v25, %v1753_v56  ;;  %v1768_v9 = vsel %vm1328_vm8, %v1767_v11, %v1764_v53  ;;  %5585 = vmatmul.mubr.msk.bf16.vlgmr.msra.gmra.mxu1 %vm227_vm3, %v1772_v58  ;;  %v1874_v58 = vrot.slane %v6992_v44, 2 }
0x17b4   :  { %1758 = vst.msk [vmem:[#allocation3 + $0x8] sm:$0xff] %vm1007_vm6, %v1757_v7  ;;  %1990 = vmatpush1.bf16.msra.mxu1 %v7217_v5  ;;  %2013 = vmatprep.mubr.bf16.mxu1 %v6580_v15 }
0x17b5   :  { %1769 = vst.msk [vmem:[#allocation3 + $0x18] sm:$0xff] %vm1341_vm9, %v1768_v9  ;;  %1991 = vmatprep.subr.bf16.mxu1 %v7224_v20 }
0x17b8   :  { %1992 = vmatpush1.bf16.msra.mxu1 %v7230_v23 }
0x17b9   :  { %1993 = vmatprep.subr.bf16.mxu1 %v7236_v33 }
0x17bc   :  { %1994 = vmatpush1.bf16.msra.mxu1 %v7291_v19 }
0x17bd   :  { %1995 = vmatprep.subr.bf16.mxu1 %v7297_v21 }
0x17c0   :  { %1996 = vmatpush1.bf16.msra.mxu1 %v7303_v43 }
0x17c1   :  { %2214 = vmatprep.subr.bf16.mxu1 %v7245_v17 }
0x1873   :  { %v1813_v24 = vpop.f32.mrf.mxu1 }
0x1874   :  { %v1814_v12 = vadd.f32 %v1813_v24, %v6992_v44 }
0x1875   :  { %v1815_v25 = vpop.f32.mrf.mxu1 }
0x1876   :  { %v5586_v62 = vmul.f32 -1.442695, %v1814_v12  ;;  %v1816_v16 = vadd.f32 %v1815_v25, %v1774_v18 }
0x1877   :  { %v1817_v3 = vpop.f32.mrf.mxu1 }
0x1878   :  { %6091 = vpow2.f32 %v5586_v62  ;;  %v5587_v34 = vmul.f32 -1.442695, %v1816_v16 }
0x1879   :  { %v1818_v26 = vpop.f32.mrf.mxu1 }
0x187a   :  { %6093 = vpow2.f32 %v5587_v34 }
0x1885   :  { %v6092_v27 = vpop.eup %6091 }
0x1886   :  { %v1826_v40 = vadd.f32 1.0, %v6092_v27 }
0x1887   :  { %v6094_v35 = vpop.eup %6093 }
0x1888   :  { %6095 = vrcp.f32 %v1826_v40  ;;  %v1827_v28 = vadd.f32 1.0, %v6094_v35 }
0x188a   :  { %6097 = vrcp.f32 %v1827_v28 }
0x1895   :  { %v6096_v57 = vpop.eup %6095 }
0x1896   :  { %v1832_v51 = vmul.f32 2.0, %v6096_v57 }
0x1897   :  { %v6098_v0 = vpop.eup %6097 }
0x1898   :  { %v5588_v47 = vadd.f32 -1.0, %v1832_v51  ;;  %v1833_v31 = vmul.f32 2.0, %v6098_v0 }
0x189a   :  { %v1836_v32 = vsel %vm7009_vm15, %v5588_v47, %v6096_v57  ;;  %v5589_v36 = vadd.f32 -1.0, %v1833_v31 }
0x189b   :  { %1840 = vrot.lane.b32.xlu1 %v1836_v32, %s6581_s7  ;;  %v1838_v41 = vmul.f32 %v1836_v32, %v7320_v1 }
0x189c   :  { %v1837_v38 = vsel %vm7017_vm5, %v5589_v36, %v6098_v0 }
0x189d   :  { %1851 = vrot.lane.b32.xlu0 %v1837_v38, %s6581_s7  ;;  %v1849_v39 = vmul.f32 %v1837_v38, %v7325_v14  ;;  %v1872_v14 = vrot.slane %v6994_v46, 2 }
0x189f   :  { %v1875_v9 = vrot.slane %v1872_v14, 2 }
0x190d   :  { %v1841_v45 = vpop.permute.xlu1 %1840 }
0x190e   :  { %v1843_v55 = vmul.f32 %v1841_v45, %v1836_v32 }
0x190f   :  { %v1852_v30 = vpop.permute.xlu0 %1851 }
0x1910   :  { %v1854_v10 = vmul.f32 %v1852_v30, %v1837_v38  ;;  %1845 = vrot.lane.b32.xlu1 %v1843_v55, %s6582_s14 }
0x1912   :  { %1856 = vrot.lane.b32.xlu0 %v1854_v10, %s6582_s14 }
0x1916   :  { %1866 = vrot.lane.b32.xlu0 %v1836_v32, %s6582_s14 }
0x1982   :  { %v1846_v59 = vpop.permute.xlu1 %1845 }
0x1983   :  { %v1848_v4 = vadd.f32 %v1846_v59, %v1838_v41 }
0x1984   :  { %v1857_v52 = vpop.permute.xlu0 %1856 }
0x1985   :  { %1861 = vrot.lane.b32.xlu1 %v1848_v4, %s6583_s19  ;;  %v1859_v49 = vadd.f32 %v1857_v52, %v1849_v39 }
0x1988   :  { %v1867_v22 = vpop.permute.xlu0 %1866 }
0x1989   :  { %v1869_v56 = vsel %vm1007_vm6, %v1867_v22, %v1852_v30 }
0x19f7   :  { %v1862_v63 = vpop.permute.xlu1 %1861 }
0x19f8   :  { %v1864_v50 = vsel %vm1007_vm6, %v1862_v63, %v1859_v49 }
0x19f9   :  { %6099 = vtanh.f32 %v1864_v50 }
0x1a06   :  { %v6100_v53 = vpop.eup %6099 }
0x1a07   :  { %v7368_v61 = vmul.f32 %v6100_v53, %v1869_v56 }
0x1a09   :  { %v1871_v1 = vpack.c.bf16 %v7368_v61, %v7368_v61 }
0x1a0b   :  { %5590 = vmatmul.mubr.msk.bf16.vlgmr.msra.gmra.mxu0 %vm227_vm3, %v1871_v1 }
0x1a0c   :  { %2090 = vmatpush1.bf16.msra.mxu0 %v7217_v5  ;;  %2113 = vmatprep.mubr.bf16.mxu0 %v6580_v15 }
0x1a0d   :  { %2091 = vmatprep.subr.bf16.mxu0 %v7224_v20 }
0x1a10   :  { %2092 = vmatpush1.bf16.msra.mxu0 %v7230_v23 }
0x1a11   :  { %2093 = vmatprep.subr.bf16.mxu0 %v7236_v33 }
0x1a14   :  { %2094 = vmatpush1.bf16.msra.mxu0 %v7291_v19 }
0x1a15   :  { %2095 = vmatprep.subr.bf16.mxu0 %v7297_v21 }
0x1a18   :  { %2096 = vmatpush1.bf16.msra.mxu0 %v7303_v43 }
0x1a19   :  { %2316 = vmatprep.subr.bf16.mxu0 %v7245_v17 }
0x1acb   :  { %v1915_v11 = vpop.f32.mrf.mxu0 }
0x1acc   :  { %v1916_v7 = vadd.f32 %v1915_v11, %v1874_v58 }
0x1acd   :  { %v1917_v24 = vpop.f32.mrf.mxu0 }
0x1ace   :  { %v5591_v12 = vmul.f32 -1.442695, %v1916_v7  ;;  %v1918_v25 = vadd.f32 %v1917_v24, %v1875_v9  ;;  %v1975_v7 = vrot.slane %v1774_v18, 4 }
0x1acf   :  { %v1919_v62 = vpop.f32.mrf.mxu0 }
0x1ad0   :  { %6101 = vpow2.f32 %v5591_v12  ;;  %v5592_v16 = vmul.f32 -1.442695, %v1918_v25 }
0x1ad1   :  { %v1920_v3 = vpop.f32.mrf.mxu0 }
0x1ad2   :  { %6103 = vpow2.f32 %v5592_v16 }
0x1add   :  { %v6102_v34 = vpop.eup %6101 }
0x1ade   :  { %v1928_v26 = vadd.f32 1.0, %v6102_v34 }
0x1adf   :  { %v6104_v27 = vpop.eup %6103 }
0x1ae0   :  { %6105 = vrcp.f32 %v1928_v26  ;;  %v1929_v40 = vadd.f32 1.0, %v6104_v27 }
0x1ae2   :  { %6107 = vrcp.f32 %v1929_v40 }
0x1aed   :  { %v6106_v35 = vpop.eup %6105 }
0x1aee   :  { %v1934_v28 = vmul.f32 2.0, %v6106_v35 }
0x1aef   :  { %v6108_v57 = vpop.eup %6107 }
0x1af0   :  { %v5593_v51 = vadd.f32 -1.0, %v1934_v28  ;;  %v1935_v0 = vmul.f32 2.0, %v6108_v57 }
0x1af2   :  { %v1938_v47 = vsel %vm7009_vm15, %v5593_v51, %v6106_v35  ;;  %v5594_v31 = vadd.f32 -1.0, %v1935_v0 }
0x1af3   :  { %1942 = vrot.lane.b32.xlu1 %v1938_v47, %s6581_s7  ;;  %v1940_v30 = vmul.f32 %v1938_v47, %v1848_v4 }
0x1af4   :  { %v1939_v32 = vsel %vm7017_vm5, %v5594_v31, %v6108_v57 }
0x1af5   :  { %1953 = vrot.lane.b32.xlu0 %v1939_v32, %s6581_s7  ;;  %v1951_v52 = vmul.f32 %v1939_v32, %v1859_v49  ;;  %v1974_v49 = vrot.slane %v6992_v44, 4 }
0x1b65   :  { %v1943_v36 = vpop.permute.xlu1 %1942 }
0x1b66   :  { %v1945_v38 = vmul.f32 %v1943_v36, %v1938_v47 }
0x1b67   :  { %v1954_v45 = vpop.permute.xlu0 %1953 }
0x1b68   :  { %v1956_v55 = vmul.f32 %v1954_v45, %v1939_v32  ;;  %1947 = vrot.lane.b32.xlu1 %v1945_v38, %s6582_s14 }
0x1b6a   :  { %1958 = vrot.lane.b32.xlu0 %v1956_v55, %s6582_s14 }
0x1b6e   :  { %1968 = vrot.lane.b32.xlu0 %v1938_v47, %s6582_s14 }
0x1bda   :  { %v1948_v10 = vpop.permute.xlu1 %1947 }
0x1bdb   :  { %v1950_v41 = vadd.f32 %v1948_v10, %v1940_v30 }
0x1bdc   :  { %v1959_v59 = vpop.permute.xlu0 %1958 }
0x1bdd   :  { %1963 = vrot.lane.b32.xlu1 %v1950_v41, %s6583_s19  ;;  %v1961_v39 = vadd.f32 %v1959_v59, %v1951_v52 }
0x1be0   :  { %v1969_v22 = vpop.permute.xlu0 %1968 }
0x1be1   :  { %v1971_v56 = vsel %vm1007_vm6, %v1969_v22, %v1954_v45 }
0x1c4f   :  { %v1964_v63 = vpop.permute.xlu1 %1963 }
0x1c50   :  { %v1966_v50 = vsel %vm1007_vm6, %v1964_v63, %v1961_v39 }
0x1c51   :  { %6109 = vtanh.f32 %v1966_v50 }
0x1c5e   :  { %v6110_v53 = vpop.eup %6109 }
0x1c5f   :  { %v7398_v1 = vmul.f32 %v6110_v53, %v1971_v56 }
0x1c61   :  { %v1973_v4 = vpack.c.bf16 %v7398_v1, %v7398_v1  ;;  %v2174_v56 = vrot.slane %v7398_v1, 6 }
0x1c63   :  { %5595 = vmatmul.mubr.msk.bf16.vlgmr.msra.gmra.mxu1 %vm227_vm3, %v1973_v4 }
0x1c64   :  { %2215 = vmatpush1.bf16.msra.mxu1 %v7217_v5  ;;  %2238 = vmatprep.mubr.bf16.mxu1 %v6580_v15 }
0x1c65   :  { %2216 = vmatprep.subr.bf16.mxu1 %v7224_v20 }
0x1c68   :  { %2217 = vmatpush1.bf16.msra.mxu1 %v7230_v23 }
0x1c69   :  { %2218 = vmatprep.subr.bf16.mxu1 %v7236_v33 }
0x1c6c   :  { %2219 = vmatpush1.bf16.msra.mxu1 %v7291_v19 }
0x1c6d   :  { %2220 = vmatprep.subr.bf16.mxu1 %v7297_v21 }
0x1c70   :  { %2221 = vmatpush1.bf16.msra.mxu1 %v7303_v43 }
0x1c71   :  { %2416 = vmatprep.subr.bf16.mxu1 %v7245_v17 }
0x1d23   :  { %v2015_v58 = vpop.f32.mrf.mxu1 }
0x1d24   :  { %v2016_v11 = vadd.f32 %v2015_v58, %v1974_v49  ;;  %v2182_v58 = vsel %vm429_vm7, %v7368_v61, %v2174_v56 }
0x1d25   :  { %v2017_v9 = vpop.f32.mrf.mxu1 }
0x1d26   :  { %v5596_v24 = vmul.f32 -1.442695, %v2016_v11  ;;  %v2018_v12 = vadd.f32 %v2017_v9, %v1975_v7  ;;  %v2074_v7 = vrot.slane %v6992_v44, 6 }
0x1d27   :  { %v2019_v25 = vpop.f32.mrf.mxu1 }
0x1d28   :  { %6111 = vpow2.f32 %v5596_v24  ;;  %v5597_v62 = vmul.f32 -1.442695, %v2018_v12  ;;  %v2075_v12 = vrot.slane %v1872_v14, 6 }
0x1d29   :  { %v2020_v16 = vpop.f32.mrf.mxu1 }
0x1d2a   :  { %6113 = vpow2.f32 %v5597_v62 }
0x1d35   :  { %v6112_v3 = vpop.eup %6111 }
0x1d36   :  { %v2028_v34 = vadd.f32 1.0, %v6112_v3 }
0x1d37   :  { %v6114_v26 = vpop.eup %6113 }
0x1d38   :  { %6115 = vrcp.f32 %v2028_v34  ;;  %v2029_v27 = vadd.f32 1.0, %v6114_v26 }
0x1d3a   :  { %6117 = vrcp.f32 %v2029_v27 }
0x1d45   :  { %v6116_v40 = vpop.eup %6115 }
0x1d46   :  { %v2034_v35 = vmul.f32 2.0, %v6116_v40 }
0x1d47   :  { %v6118_v28 = vpop.eup %6117 }
0x1d48   :  { %v5598_v57 = vadd.f32 -1.0, %v2034_v35  ;;  %v2035_v51 = vmul.f32 2.0, %v6118_v28 }
0x1d4a   :  { %v2038_v18 = vsel %vm7009_vm15, %v5598_v57, %v6116_v40  ;;  %v5599_v0 = vadd.f32 -1.0, %v2035_v51 }
0x1d4b   :  { %2042 = vrot.lane.b32.xlu1 %v2038_v18, %s6581_s7  ;;  %v2040_v45 = vmul.f32 %v2038_v18, %v1950_v41 }
0x1d4c   :  { %v2039_v47 = vsel %vm7017_vm5, %v5599_v0, %v6118_v28 }
0x1d4d   :  { %2053 = vrot.lane.b32.xlu0 %v2039_v47, %s6581_s7  ;;  %v2051_v59 = vmul.f32 %v2039_v47, %v1961_v39 }
0x1dbd   :  { %v2043_v31 = vpop.permute.xlu1 %2042 }
0x1dbe   :  { %v2045_v32 = vmul.f32 %v2043_v31, %v2038_v18 }
0x1dbf   :  { %v2054_v36 = vpop.permute.xlu0 %2053 }
0x1dc0   :  { %v2056_v38 = vmul.f32 %v2054_v36, %v2039_v47  ;;  %2047 = vrot.lane.b32.xlu1 %v2045_v32, %s6582_s14 }
0x1dc2   :  { %2058 = vrot.lane.b32.xlu0 %v2056_v38, %s6582_s14 }
0x1dc6   :  { %2068 = vrot.lane.b32.xlu0 %v2038_v18, %s6582_s14 }
0x1e32   :  { %v2048_v55 = vpop.permute.xlu1 %2047 }
0x1e33   :  { %v2050_v30 = vadd.f32 %v2048_v55, %v2040_v45 }
0x1e34   :  { %v2059_v10 = vpop.permute.xlu0 %2058 }
0x1e35   :  { %2063 = vrot.lane.b32.xlu1 %v2050_v30, %s6583_s19  ;;  %v7425_v52 = vadd.f32 %v2059_v10, %v2051_v59 }
0x1e38   :  { %v2069_v22 = vpop.permute.xlu0 %2068 }
0x1e39   :  { %v2071_v4 = vsel %vm1007_vm6, %v2069_v22, %v2054_v36 }
0x1ea7   :  { %v2064_v63 = vpop.permute.xlu1 %2063 }
0x1ea8   :  { %v2066_v50 = vsel %vm1007_vm6, %v2064_v63, %v7425_v52 }
0x1ea9   :  { %6119 = vtanh.f32 %v2066_v50 }
0x1eb6   :  { %v6120_v53 = vpop.eup %6119 }
0x1eb7   :  { %v7431_v41 = vmul.f32 %v6120_v53, %v2071_v4 }
0x1eb9   :  { %v2177_v49 = vrot.slane %v7431_v41, 4  ;;  %v2073_v39 = vpack.c.bf16 %v7431_v41, %v7431_v41 }
0x1ebb   :  { %v7439_v11 = vsel %vm314_vm4, %v2182_v58, %v2177_v49  ;;  %5600 = vmatmul.mubr.msk.bf16.vlgmr.msra.gmra.mxu0 %vm227_vm3, %v2073_v39  ;;  %v2186_v49 = vrot.slane %v7431_v41, 6  ;;  %v2188_v58 = vrot.slane %v7398_v1, 4  ;;  %v2201_v41 = vrot.slane %v6990_v42, 6 }
0x1ebc   :  { %2317 = vmatpush1.bf16.msra.mxu0 %v7217_v5  ;;  %2340 = vmatprep.mubr.bf16.mxu0 %v6580_v15 }
0x1ebd   :  { %2318 = vmatprep.subr.bf16.mxu0 %v7224_v20 }
0x1ec0   :  { %2319 = vmatpush1.bf16.msra.mxu0 %v7230_v23 }
0x1ec1   :  { %2320 = vmatprep.subr.bf16.mxu0 %v7236_v33 }
0x1ec4   :  { %2321 = vmatpush1.bf16.msra.mxu0 %v7291_v19 }
0x1ec5   :  { %2322 = vmatprep.subr.bf16.mxu0 %v7297_v21 }
0x1ec8   :  { %2323 = vmatpush1.bf16.msra.mxu0 %v7303_v43 }
0x1ec9   :  { %2516 = vmatprep.subr.bf16.mxu0 %v7245_v17 }
0x1f7b   :  { %v2115_v9 = vpop.f32.mrf.mxu0 }
0x1f7c   :  { %v2116_v24 = vadd.f32 %v2115_v9, %v2074_v7  ;;  %v2191_v7 = vrot.slane %v7368_v61, 2 }
0x1f7d   :  { %v2117_v25 = vpop.f32.mrf.mxu0 }
0x1f7e   :  { %v5601_v62 = vmul.f32 -1.442695, %v2116_v24  ;;  %v2118_v16 = vadd.f32 %v2117_v25, %v2075_v12 }
0x1f7f   :  { %v2119_v3 = vpop.f32.mrf.mxu0 }
0x1f80   :  { %6121 = vpow2.f32 %v5601_v62  ;;  %v5602_v34 = vmul.f32 -1.442695, %v2118_v16 }
0x1f81   :  { %v2120_v26 = vpop.f32.mrf.mxu0 }
0x1f82   :  { %6123 = vpow2.f32 %v5602_v34 }
0x1f8d   :  { %v6122_v27 = vpop.eup %6121 }
0x1f8e   :  { %v2128_v40 = vadd.f32 1.0, %v6122_v27 }
0x1f8f   :  { %v6124_v35 = vpop.eup %6123 }
0x1f90   :  { %6125 = vrcp.f32 %v2128_v40  ;;  %v2129_v28 = vadd.f32 1.0, %v6124_v35 }
0x1f92   :  { %6127 = vrcp.f32 %v2129_v28 }
0x1f9d   :  { %v6126_v44 = vpop.eup %6125 }
0x1f9e   :  { %v2134_v57 = vmul.f32 2.0, %v6126_v44 }
0x1f9f   :  { %v6128_v51 = vpop.eup %6127 }
0x1fa0   :  { %v5603_v18 = vadd.f32 -1.0, %v2134_v57  ;;  %v2135_v46 = vmul.f32 2.0, %v6128_v51 }
0x1fa2   :  { %v2138_v14 = vsel %vm7009_vm15, %v5603_v18, %v6126_v44  ;;  %v5604_v0 = vadd.f32 -1.0, %v2135_v46 }
0x1fa3   :  { %2142 = vrot.lane.b32.xlu1 %v2138_v14, %s6581_s7  ;;  %v2140_v45 = vmul.f32 %v2138_v14, %v2050_v30 }
0x1fa4   :  { %v2139_v47 = vsel %vm7017_vm5, %v5604_v0, %v6128_v51 }
0x1fa5   :  { %2153 = vrot.lane.b32.xlu0 %v2139_v47, %s6581_s7  ;;  %v2151_v63 = vmul.f32 %v2139_v47, %v7425_v52 }
0x2015   :  { %v2143_v31 = vpop.permute.xlu1 %2142 }
0x2016   :  { %v2145_v32 = vmul.f32 %v2143_v31, %v2138_v14 }
0x2017   :  { %v2154_v36 = vpop.permute.xlu0 %2153 }
0x2018   :  { %v2156_v38 = vmul.f32 %v2154_v36, %v2139_v47  ;;  %2147 = vrot.lane.b32.xlu1 %v2145_v32, %s6582_s14 }
0x201a   :  { %2158 = vrot.lane.b32.xlu0 %v2156_v38, %s6582_s14 }
0x201e   :  { %2168 = vrot.lane.b32.xlu0 %v2138_v14, %s6582_s14 }
0x208a   :  { %v2148_v55 = vpop.permute.xlu1 %2147 }
0x208b   :  { %v7463_v10 = vadd.f32 %v2148_v55, %v2140_v45 }
0x208c   :  { %v2159_v59 = vpop.permute.xlu0 %2158 }
0x208d   :  { %2163 = vrot.lane.b32.xlu1 %v7463_v10, %s6583_s19  ;;  %v7468_v50 = vadd.f32 %v2159_v59, %v2151_v63 }
0x2090   :  { %v2169_v56 = vpop.permute.xlu0 %2168 }
0x2091   :  { %v2171_v30 = vsel %vm1007_vm6, %v2169_v56, %v2154_v36 }
0x20ff   :  { %v2164_v22 = vpop.permute.xlu1 %2163 }
0x2100   :  { %v2166_v53 = vsel %vm1007_vm6, %v2164_v22, %v7468_v50 }
0x2101   :  { %6129 = vtanh.f32 %v2166_v53 }
0x210e   :  { %v6130_v4 = vpop.eup %6129 }
0x210f   :  { %v2172_v39 = vmul.f32 %v6130_v4, %v2171_v30 }
0x2111   :  { %v2180_v9 = vrot.slane %v2172_v39, 2  ;;  %v2193_v52 = vsel %vm429_vm7, %v2172_v39, %v2186_v49  ;;  %v2199_v24 = vpack.c.bf16 %v2172_v39, %v2172_v39 }
0x2112   :  { %v2194_v12 = vsel %vm314_vm4, %v2193_v52, %v2188_v58 }
0x2113   :  { %v2184_v25 = vsel %vm1328_vm8, %v7439_v11, %v2180_v9  ;;  %v2195_v62 = vsel %vm1328_vm8, %v2194_v12, %v2191_v7  ;;  %5605 = vmatmul.mubr.msk.bf16.vlgmr.msra.gmra.mxu1 %vm227_vm3, %v2199_v24  ;;  %v2301_v9 = vrot.slane %v6996_v48, 2 }
0x2114   :  { %2185 = vst.msk [vmem:[#allocation3 + $0x10] sm:$0xff] %vm1007_vm6, %v2184_v25  ;;  %2417 = vmatpush1.bf16.msra.mxu1 %v7217_v5  ;;  %2440 = vmatprep.mubr.bf16.mxu1 %v6580_v15 }
0x2115   :  { %2196 = vst.msk [vmem:[#allocation3 + $0x10] sm:$0xff] %vm1341_vm9, %v2195_v62  ;;  %2418 = vmatprep.subr.bf16.mxu1 %v7224_v20 }
0x2118   :  { %2419 = vmatpush1.bf16.msra.mxu1 %v7230_v23 }
0x2119   :  { %2420 = vmatprep.subr.bf16.mxu1 %v7236_v33 }
0x211c   :  { %2421 = vmatpush1.bf16.msra.mxu1 %v7291_v19 }
0x211d   :  { %2422 = vmatprep.subr.bf16.mxu1 %v7297_v21 }
0x2120   :  { %2423 = vmatpush1.bf16.msra.mxu1 %v7303_v43 }
0x2121   :  { %2641 = vmatprep.subr.bf16.mxu1 %v7245_v17 }
0x21d3   :  { %v2240_v61 = vpop.f32.mrf.mxu1 }
0x21d4   :  { %v2241_v1 = vadd.f32 %v2240_v61, %v6996_v48 }
0x21d5   :  { %v2242_v11 = vpop.f32.mrf.mxu1 }
0x21d6   :  { %v5606_v16 = vmul.f32 -1.442695, %v2241_v1  ;;  %v2243_v3 = vadd.f32 %v2242_v11, %v2201_v41 }
0x21d7   :  { %v2244_v34 = vpop.f32.mrf.mxu1 }
0x21d8   :  { %6131 = vpow2.f32 %v5606_v16  ;;  %v5607_v26 = vmul.f32 -1.442695, %v2243_v3 }
0x21d9   :  { %v2245_v27 = vpop.f32.mrf.mxu1 }
0x21da   :  { %6133 = vpow2.f32 %v5607_v26 }
0x21e5   :  { %v6132_v40 = vpop.eup %6131 }
0x21e6   :  { %v2253_v35 = vadd.f32 1.0, %v6132_v40 }
0x21e7   :  { %v6134_v28 = vpop.eup %6133 }
0x21e8   :  { %6135 = vrcp.f32 %v2253_v35  ;;  %v2254_v44 = vadd.f32 1.0, %v6134_v28 }
0x21ea   :  { %6137 = vrcp.f32 %v2254_v44 }
0x21f5   :  { %v6136_v57 = vpop.eup %6135 }
0x21f6   :  { %v2259_v51 = vmul.f32 2.0, %v6136_v57 }
0x21f7   :  { %v6138_v18 = vpop.eup %6137 }
0x21f8   :  { %v5608_v46 = vadd.f32 -1.0, %v2259_v51  ;;  %v2260_v14 = vmul.f32 2.0, %v6138_v18 }
0x21fa   :  { %v2263_v0 = vsel %vm7009_vm15, %v5608_v46, %v6136_v57  ;;  %v5609_v47 = vadd.f32 -1.0, %v2260_v14 }
0x21fb   :  { %2267 = vrot.lane.b32.xlu1 %v2263_v0, %s6581_s7  ;;  %v2265_v55 = vmul.f32 %v2263_v0, %v7463_v10 }
0x21fc   :  { %v2264_v31 = vsel %vm7017_vm5, %v5609_v47, %v6138_v18 }
0x21fd   :  { %2278 = vrot.lane.b32.xlu0 %v2264_v31, %s6581_s7  ;;  %v2276_v53 = vmul.f32 %v2264_v31, %v7468_v50  ;;  %v2299_v50 = vrot.slane %v6990_v42, 2 }
0x21ff   :  { %v2302_v12 = vrot.slane %v2299_v50, 2 }
0x226d   :  { %v2268_v32 = vpop.permute.xlu1 %2267 }
0x226e   :  { %v2270_v36 = vmul.f32 %v2268_v32, %v2263_v0 }
0x226f   :  { %v2279_v38 = vpop.permute.xlu0 %2278 }
0x2270   :  { %v2281_v45 = vmul.f32 %v2279_v38, %v2264_v31  ;;  %2272 = vrot.lane.b32.xlu1 %v2270_v36, %s6582_s14 }
0x2272   :  { %2283 = vrot.lane.b32.xlu0 %v2281_v45, %s6582_s14 }
0x2276   :  { %2293 = vrot.lane.b32.xlu0 %v2263_v0, %s6582_s14 }
0x22e2   :  { %v2273_v59 = vpop.permute.xlu1 %2272 }
0x22e3   :  { %v2275_v63 = vadd.f32 %v2273_v59, %v2265_v55 }
0x22e4   :  { %v2284_v22 = vpop.permute.xlu0 %2283 }
0x22e5   :  { %2288 = vrot.lane.b32.xlu1 %v2275_v63, %s6583_s19  ;;  %v2286_v56 = vadd.f32 %v2284_v22, %v2276_v53 }
0x22e8   :  { %v2294_v49 = vpop.permute.xlu0 %2293 }
0x22e9   :  { %v2296_v58 = vsel %vm1007_vm6, %v2294_v49, %v2279_v38 }
0x2357   :  { %v2289_v4 = vpop.permute.xlu1 %2288 }
0x2358   :  { %v2291_v30 = vsel %vm1007_vm6, %v2289_v4, %v2286_v56 }
0x2359   :  { %6139 = vtanh.f32 %v2291_v30 }
0x2366   :  { %v6140_v39 = vpop.eup %6139 }
0x2367   :  { %v7511_v7 = vmul.f32 %v6140_v39, %v2296_v58 }
0x2369   :  { %v2298_v10 = vpack.c.bf16 %v7511_v7, %v7511_v7 }
0x236b   :  { %5610 = vmatmul.mubr.msk.bf16.vlgmr.msra.gmra.mxu0 %vm227_vm3, %v2298_v10  ;;  %v2402_v10 = vrot.slane %v2201_v41, 4 }
0x236c   :  { %2517 = vmatpush1.bf16.msra.mxu0 %v7217_v5  ;;  %2540 = vmatprep.mubr.bf16.mxu0 %v6580_v15 }
0x236d   :  { %2518 = vmatprep.subr.bf16.mxu0 %v7224_v20 }
0x2370   :  { %2519 = vmatpush1.bf16.msra.mxu0 %v7230_v23 }
0x2371   :  { %2520 = vmatprep.subr.bf16.mxu0 %v7236_v33 }
0x2374   :  { %2521 = vmatpush1.bf16.msra.mxu0 %v7291_v19 }
0x2375   :  { %2522 = vmatprep.subr.bf16.mxu0 %v7297_v21 }
0x2378   :  { %2523 = vmatpush1.bf16.msra.mxu0 %v7303_v43 }
0x2379   :  { %2743 = vmatprep.subr.bf16.mxu0 %v7245_v17 }
0x242b   :  { %v2342_v52 = vpop.f32.mrf.mxu0 }
0x242c   :  { %v2343_v24 = vadd.f32 %v2342_v52, %v2301_v9 }
0x242d   :  { %v2344_v25 = vpop.f32.mrf.mxu0 }
0x242e   :  { %v5611_v62 = vmul.f32 -1.442695, %v2343_v24  ;;  %v2345_v61 = vadd.f32 %v2344_v25, %v2302_v12 }
0x242f   :  { %v2346_v1 = vpop.f32.mrf.mxu0 }
0x2430   :  { %6141 = vpow2.f32 %v5611_v62  ;;  %v5612_v11 = vmul.f32 -1.442695, %v2345_v61 }
0x2431   :  { %v2347_v16 = vpop.f32.mrf.mxu0 }
0x2432   :  { %6143 = vpow2.f32 %v5612_v11 }
0x243d   :  { %v6142_v3 = vpop.eup %6141 }
0x243e   :  { %v2355_v34 = vadd.f32 1.0, %v6142_v3 }
0x243f   :  { %v6144_v26 = vpop.eup %6143 }
0x2440   :  { %6145 = vrcp.f32 %v2355_v34  ;;  %v2356_v27 = vadd.f32 1.0, %v6144_v26 }
0x2442   :  { %6147 = vrcp.f32 %v2356_v27 }
0x244d   :  { %v6146_v40 = vpop.eup %6145 }
0x244e   :  { %v2361_v35 = vmul.f32 2.0, %v6146_v40 }
0x244f   :  { %v6148_v28 = vpop.eup %6147 }
0x2450   :  { %v5613_v44 = vadd.f32 -1.0, %v2361_v35  ;;  %v2362_v57 = vmul.f32 2.0, %v6148_v28 }
0x2452   :  { %v2365_v51 = vsel %vm7009_vm15, %v5613_v44, %v6146_v40  ;;  %v5614_v18 = vadd.f32 -1.0, %v2362_v57 }
0x2453   :  { %2369 = vrot.lane.b32.xlu1 %v2365_v51, %s6581_s7  ;;  %v2367_v32 = vmul.f32 %v2365_v51, %v2275_v63 }
0x2454   :  { %v2366_v46 = vsel %vm7017_vm5, %v5614_v18, %v6148_v28 }
0x2455   :  { %2380 = vrot.lane.b32.xlu0 %v2366_v46, %s6581_s7  ;;  %v2378_v55 = vmul.f32 %v2366_v46, %v2286_v56  ;;  %v2401_v56 = vrot.slane %v6996_v48, 4 }
0x24c5   :  { %v2370_v14 = vpop.permute.xlu1 %2369 }
0x24c6   :  { %v2372_v0 = vmul.f32 %v2370_v14, %v2365_v51 }
0x24c7   :  { %v2381_v47 = vpop.permute.xlu0 %2380 }
0x24c8   :  { %v2383_v31 = vmul.f32 %v2381_v47, %v2366_v46  ;;  %2374 = vrot.lane.b32.xlu1 %v2372_v0, %s6582_s14 }
0x24ca   :  { %2385 = vrot.lane.b32.xlu0 %v2383_v31, %s6582_s14 }
0x24ce   :  { %2395 = vrot.lane.b32.xlu0 %v2365_v51, %s6582_s14 }
0x253a   :  { %v2375_v36 = vpop.permute.xlu1 %2374 }
0x253b   :  { %v2377_v38 = vadd.f32 %v2375_v36, %v2367_v32 }
0x253c   :  { %v2386_v45 = vpop.permute.xlu0 %2385 }
0x253d   :  { %2390 = vrot.lane.b32.xlu1 %v2377_v38, %s6583_s19  ;;  %v2388_v59 = vadd.f32 %v2386_v45, %v2378_v55 }
0x2540   :  { %v2396_v4 = vpop.permute.xlu0 %2395 }
0x2541   :  { %v2398_v49 = vsel %vm1007_vm6, %v2396_v4, %v2381_v47  ;;  %v7591_v4 = vld [vmem:[%s8616_s9 + $0x30] ss:$8 sps:$4 sm:$0xff]  }
0x25af   :  { %v2391_v22 = vpop.permute.xlu1 %2390 }
0x25b0   :  { %v2393_v53 = vsel %vm1007_vm6, %v2391_v22, %v2388_v59 }
0x25b1   :  { %6149 = vtanh.f32 %v2393_v53 }
0x25be   :  { %v6150_v30 = vpop.eup %6149 }
0x25bf   :  { %v7541_v39 = vmul.f32 %v6150_v30, %v2398_v49  ;;  %v7598_v30 = vld [vmem:[%s8616_s9 + $0x24] ss:$8 sps:$4 sm:$0xff]   ;;  %v7604_v49 = vld [vmem:[%s8616_s9 + $0x20] ss:$8 sps:$4 sm:$0xff]  }
0x25c1   :  { %v2400_v63 = vpack.c.bf16 %v7541_v39, %v7541_v39  ;;  %v2601_v36 = vrot.slane %v7541_v39, 6 }
0x25c3   :  { %5615 = vmatmul.mubr.msk.bf16.vlgmr.msra.gmra.mxu1 %vm227_vm3, %v2400_v63  ;;  %v2609_v22 = vsel %vm429_vm7, %v7511_v7, %v2601_v36  ;;  %v7610_v63 = vld [vmem:[%s8616_s9 + $0x14] ss:$8 sps:$4 sm:$0xff]   ;;  %v2618_v36 = vrot.slane %v7511_v7, 2  ;;  %v6424_v7 = vld [vmem:[%s8616_s9 + $0x10] ss:$8 sps:$4 sm:$0xff]  }
0x25c4   :  { %2642 = vmatpush1.bf16.msra.mxu1 %v7217_v5  ;;  %2665 = vmatprep.mubr.bf16.mxu1 %v6580_v15 }
0x25c5   :  { %2643 = vmatprep.subr.bf16.mxu1 %v7224_v20 }
0x25c8   :  { %2644 = vmatpush1.bf16.msra.mxu1 %v7230_v23 }
0x25c9   :  { %2645 = vmatprep.subr.bf16.mxu1 %v7236_v33 }
0x25cc   :  { %2646 = vmatpush1.bf16.msra.mxu1 %v7291_v19 }
0x25cd   :  { %2647 = vmatprep.subr.bf16.mxu1 %v7297_v21 }
0x25d0   :  { %2648 = vmatpush1.bf16.msra.mxu1 %v7303_v43 }
0x25d1   :  { %2843 = vmatprep.subr.bf16.mxu1 %v7245_v17 }
0x2683   :  { %v2442_v58 = vpop.f32.mrf.mxu1 }
0x2684   :  { %v2443_v5 = vadd.f32 %v2442_v58, %v2401_v56  ;;  %v6423_v56 = vld [vmem:[%s8616_s9 + $0x34] ss:$8 sps:$4 sm:$0xff]   ;;  %v2501_v58 = vrot.slane %v6996_v48, 6 }
0x2685   :  { %v2444_v20 = vpop.f32.mrf.mxu1 }
0x2686   :  { %v5616_v9 = vmul.f32 -1.442695, %v2443_v5  ;;  %v2445_v23 = vadd.f32 %v2444_v20, %v2402_v10  ;;  %v2502_v20 = vrot.slane %v2299_v50, 6 }
0x2687   :  { %v2446_v52 = vpop.f32.mrf.mxu1 }
0x2688   :  { %6151 = vpow2.f32 %v5616_v9  ;;  %v5617_v33 = vmul.f32 -1.442695, %v2445_v23 }
0x2689   :  { %v2447_v24 = vpop.f32.mrf.mxu1 }
0x268a   :  { %6153 = vpow2.f32 %v5617_v33 }
0x2695   :  { %v6152_v12 = vpop.eup %6151 }
0x2696   :  { %v2455_v25 = vadd.f32 1.0, %v6152_v12 }
0x2697   :  { %v6154_v62 = vpop.eup %6153 }
0x2698   :  { %6155 = vrcp.f32 %v2455_v25  ;;  %v2456_v17 = vadd.f32 1.0, %v6154_v62 }
0x269a   :  { %6157 = vrcp.f32 %v2456_v17 }
0x26a5   :  { %v6156_v61 = vpop.eup %6155 }
0x26a6   :  { %v2461_v1 = vmul.f32 2.0, %v6156_v61 }
0x26a7   :  { %v6158_v11 = vpop.eup %6157 }
0x26a8   :  { %v5618_v16 = vadd.f32 -1.0, %v2461_v1  ;;  %v2462_v3 = vmul.f32 2.0, %v6158_v11 }
0x26aa   :  { %v2465_v41 = vsel %vm7009_vm15, %v5618_v16, %v6156_v61  ;;  %v5619_v34 = vadd.f32 -1.0, %v2462_v3 }
0x26ab   :  { %2469 = vrot.lane.b32.xlu1 %v2465_v41, %s6581_s7  ;;  %v2467_v44 = vmul.f32 %v2465_v41, %v2377_v38 }
0x26ac   :  { %v2466_v26 = vsel %vm7017_vm5, %v5619_v34, %v6158_v11 }
0x26ad   :  { %2480 = vrot.lane.b32.xlu0 %v2466_v26, %s6581_s7  ;;  %v2478_v46 = vmul.f32 %v2466_v26, %v2388_v59 }
0x271d   :  { %v2470_v27 = vpop.permute.xlu1 %2469 }
0x271e   :  { %v2472_v40 = vmul.f32 %v2470_v27, %v2465_v41 }
0x271f   :  { %v2481_v35 = vpop.permute.xlu0 %2480 }
0x2720   :  { %v2483_v28 = vmul.f32 %v2481_v35, %v2466_v26  ;;  %2474 = vrot.lane.b32.xlu1 %v2472_v40, %s6582_s14 }
0x2722   :  { %2485 = vrot.lane.b32.xlu0 %v2483_v28, %s6582_s14 }
0x2726   :  { %2495 = vrot.lane.b32.xlu0 %v2465_v41, %s6582_s14 }
0x2792   :  { %v2475_v57 = vpop.permute.xlu1 %2474 }
0x2793   :  { %v7567_v51 = vadd.f32 %v2475_v57, %v2467_v44 }
0x2794   :  { %v2486_v18 = vpop.permute.xlu0 %2485 }
0x2795   :  { %2490 = vrot.lane.b32.xlu1 %v7567_v51, %s6583_s19  ;;  %v7571_v14 = vadd.f32 %v2486_v18, %v2478_v46 }
0x2798   :  { %v2496_v31 = vpop.permute.xlu0 %2495 }
0x2799   :  { %v2498_v38 = vsel %vm1007_vm6, %v2496_v31, %v2481_v35 }
0x2807   :  { %v2491_v0 = vpop.permute.xlu1 %2490 }
0x2808   :  { %v2493_v47 = vsel %vm1007_vm6, %v2491_v0, %v7571_v14 }
0x2809   :  { %6159 = vtanh.f32 %v2493_v47 }
0x2816   :  { %v6160_v32 = vpop.eup %6159 }
0x2817   :  { %v7577_v45 = vmul.f32 %v6160_v32, %v2498_v38  ;;  %v2615_v32 = vrot.slane %v7541_v39, 4  ;;  %v6425_v39 = vld [vmem:[%s8616_s9 + $0x4] ss:$8 sps:$4 sm:$0xff]  }
0x2819   :  { %v2604_v55 = vrot.slane %v7577_v45, 4  ;;  %v2500_v59 = vpack.c.bf16 %v7577_v45, %v7577_v45  ;;  %v2613_v47 = vrot.slane %v7577_v45, 6  ;;  %v6426_v45 = vld [vmem:[%s8616_s9] ss:$8 sps:$4 sm:$0xff]  }
0x281b   :  { %v7585_v53 = vsel %vm314_vm4, %v2609_v22, %v2604_v55  ;;  %5620 = vmatmul.mubr.msk.bf16.vlgmr.msra.gmra.mxu0 %vm227_vm3, %v2500_v59 }
0x281c   :  { %2744 = vmatpush1.bf16.msra.mxu0 %v7591_v4  ;;  %2767 = vmatprep.mubr.bf16.mxu0 %v6580_v15 }
0x281d   :  { %2745 = vmatprep.subr.bf16.mxu0 %v7598_v30 }
0x2820   :  { %2746 = vmatpush1.bf16.msra.mxu0 %v7604_v49 }
0x2821   :  { %2747 = vmatprep.subr.bf16.mxu0 %v7610_v63 }
0x2824   :  { %2748 = vmatpush1.bf16.msra.mxu0 %v7291_v19 }
0x2825   :  { %2749 = vmatprep.subr.bf16.mxu0 %v7297_v21 }
0x2828   :  { %2750 = vmatpush1.bf16.msra.mxu0 %v7303_v43 }
0x2829   :  { %2943 = vmatprep.subr.bf16.mxu0 %v6423_v56 }
0x28db   :  { %v2542_v5 = vpop.f32.mrf.mxu0 }
0x28dc   :  { %v2543_v10 = vadd.f32 %v2542_v5, %v2501_v58  ;;  %v2628_v5 = vrot.slane %v6986_v37, 6 }
0x28dd   :  { %v2544_v9 = vpop.f32.mrf.mxu0 }
0x28de   :  { %v5621_v23 = vmul.f32 -1.442695, %v2543_v10  ;;  %v2545_v52 = vadd.f32 %v2544_v9, %v2502_v20 }
0x28df   :  { %v2546_v19 = vpop.f32.mrf.mxu0 }
0x28e0   :  { %6161 = vpow2.f32 %v5621_v23  ;;  %v5622_v21 = vmul.f32 -1.442695, %v2545_v52 }
0x28e1   :  { %v2547_v33 = vpop.f32.mrf.mxu0 }
0x28e2   :  { %6163 = vpow2.f32 %v5622_v21 }
0x28ed   :  { %v6162_v43 = vpop.eup %6161 }
0x28ee   :  { %v2555_v24 = vadd.f32 1.0, %v6162_v43 }
0x28ef   :  { %v6164_v12 = vpop.eup %6163 }
0x28f0   :  { %6165 = vrcp.f32 %v2555_v24  ;;  %v2556_v25 = vadd.f32 1.0, %v6164_v12 }
0x28f2   :  { %6167 = vrcp.f32 %v2556_v25 }
0x28fd   :  { %v6166_v48 = vpop.eup %6165 }
0x28fe   :  { %v2561_v62 = vmul.f32 2.0, %v6166_v48 }
0x28ff   :  { %v6168_v17 = vpop.eup %6167 }
0x2900   :  { %v5623_v61 = vadd.f32 -1.0, %v2561_v62  ;;  %v2562_v42 = vmul.f32 2.0, %v6168_v17 }
0x2902   :  { %v2565_v50 = vsel %vm7009_vm15, %v5623_v61, %v6166_v48  ;;  %v5624_v1 = vadd.f32 -1.0, %v2562_v42 }
0x2903   :  { %2569 = vrot.lane.b32.xlu1 %v2565_v50, %s6581_s7  ;;  %v2567_v26 = vmul.f32 %v2565_v50, %v7567_v51 }
0x2904   :  { %v2566_v11 = vsel %vm7017_vm5, %v5624_v1, %v6168_v17 }
0x2905   :  { %2580 = vrot.lane.b32.xlu0 %v2566_v11, %s6581_s7  ;;  %v2578_v28 = vmul.f32 %v2566_v11, %v7571_v14 }
0x2975   :  { %v2570_v16 = vpop.permute.xlu1 %2569 }
0x2976   :  { %v2572_v3 = vmul.f32 %v2570_v16, %v2565_v50 }
0x2977   :  { %v2581_v41 = vpop.permute.xlu0 %2580 }
0x2978   :  { %v2583_v34 = vmul.f32 %v2581_v41, %v2566_v11  ;;  %2574 = vrot.lane.b32.xlu1 %v2572_v3, %s6582_s14 }
0x297a   :  { %2585 = vrot.lane.b32.xlu0 %v2583_v34, %s6582_s14 }
0x297e   :  { %2595 = vrot.lane.b32.xlu0 %v2565_v50, %s6582_s14 }
0x29ea   :  { %v2575_v27 = vpop.permute.xlu1 %2574 }
0x29eb   :  { %v7632_v40 = vadd.f32 %v2575_v27, %v2567_v26 }
0x29ec   :  { %v2586_v35 = vpop.permute.xlu0 %2585 }
0x29ed   :  { %2590 = vrot.lane.b32.xlu1 %v7632_v40, %s6583_s19  ;;  %v7637_v44 = vadd.f32 %v2586_v35, %v2578_v28 }
0x29f0   :  { %v2596_v46 = vpop.permute.xlu0 %2595 }
0x29f1   :  { %v2598_v51 = vsel %vm1007_vm6, %v2596_v46, %v2581_v41 }
0x2a5f   :  { %v2591_v57 = vpop.permute.xlu1 %2590 }
0x2a60   :  { %v2593_v18 = vsel %vm1007_vm6, %v2591_v57, %v7637_v44 }
0x2a61   :  { %6169 = vtanh.f32 %v2593_v18 }
0x2a6e   :  { %v6170_v0 = vpop.eup %6169 }
0x2a6f   :  { %v2599_v31 = vmul.f32 %v6170_v0, %v2598_v51 }
0x2a71   :  { %v2607_v38 = vrot.slane %v2599_v31, 2  ;;  %v2620_v14 = vsel %vm429_vm7, %v2599_v31, %v2613_v47  ;;  %v2626_v55 = vpack.c.bf16 %v2599_v31, %v2599_v31  ;;  %v2728_v31 = vrot.slane %v7000_v54, 2 }
0x2a72   :  { %v2621_v59 = vsel %vm314_vm4, %v2620_v14, %v2615_v32 }
0x2a73   :  { %v2611_v22 = vsel %vm1328_vm8, %v7585_v53, %v2607_v38  ;;  %v2622_v56 = vsel %vm1328_vm8, %v2621_v59, %v2618_v36  ;;  %5625 = vmatmul.mubr.msk.bf16.vlgmr.msra.gmra.mxu1 %vm227_vm3, %v2626_v55 }
0x2a74   :  { %2612 = vst.msk [vmem:[#allocation3 + $0x18] sm:$0xff] %vm1007_vm6, %v2611_v22  ;;  %2844 = vmatpush1.bf16.msra.mxu1 %v7591_v4  ;;  %2867 = vmatprep.mubr.bf16.mxu1 %v6580_v15 }
0x2a75   :  { %2623 = vst.msk [vmem:[#allocation3 + $0x8] sm:$0xff] %vm1341_vm9, %v2622_v56  ;;  %2845 = vmatprep.subr.bf16.mxu1 %v7598_v30 }
0x2a78   :  { %2846 = vmatpush1.bf16.msra.mxu1 %v7604_v49 }
0x2a79   :  { %2847 = vmatprep.subr.bf16.mxu1 %v7610_v63 }
0x2a7c   :  { %2848 = vmatpush1.bf16.msra.mxu1 %v6424_v7 }
0x2a7d   :  { %2849 = vmatprep.subr.bf16.mxu1 %v6425_v39 }
0x2a80   :  { %2850 = vmatpush1.bf16.msra.mxu1 %v6426_v45 }
0x2b33   :  { %v2667_v53 = vpop.f32.mrf.mxu1 }
0x2b34   :  { %v2668_v58 = vadd.f32 %v2667_v53, %v7000_v54 }
0x2b35   :  { %v2669_v10 = vpop.f32.mrf.mxu1 }
0x2b36   :  { %v5626_v20 = vmul.f32 -1.442695, %v2668_v58  ;;  %v2670_v9 = vadd.f32 %v2669_v10, %v2628_v5 }
0x2b37   :  { %v2671_v23 = vpop.f32.mrf.mxu1 }
0x2b38   :  { %6171 = vpow2.f32 %v5626_v20  ;;  %v5627_v52 = vmul.f32 -1.442695, %v2670_v9 }
0x2b39   :  { %v2672_v19 = vpop.f32.mrf.mxu1 }
0x2b3a   :  { %6173 = vpow2.f32 %v5627_v52 }
0x2b45   :  { %v6172_v21 = vpop.eup %6171 }
0x2b46   :  { %v2680_v33 = vadd.f32 1.0, %v6172_v21 }
0x2b47   :  { %v6174_v43 = vpop.eup %6173 }
0x2b48   :  { %6175 = vrcp.f32 %v2680_v33  ;;  %v2681_v24 = vadd.f32 1.0, %v6174_v43 }
0x2b4a   :  { %6177 = vrcp.f32 %v2681_v24 }
0x2b55   :  { %v6176_v12 = vpop.eup %6175 }
0x2b56   :  { %v2686_v25 = vmul.f32 2.0, %v6176_v12 }
0x2b57   :  { %v6178_v48 = vpop.eup %6177 }
0x2b58   :  { %v5628_v62 = vadd.f32 -1.0, %v2686_v25  ;;  %v2687_v17 = vmul.f32 2.0, %v6178_v48 }
0x2b5a   :  { %v2690_v61 = vsel %vm7009_vm15, %v5628_v62, %v6176_v12  ;;  %v5629_v42 = vadd.f32 -1.0, %v2687_v17 }
0x2b5b   :  { %2694 = vrot.lane.b32.xlu1 %v2690_v61, %s6581_s7  ;;  %v2692_v41 = vmul.f32 %v2690_v61, %v7632_v40 }
0x2b5c   :  { %v2691_v50 = vsel %vm7017_vm5, %v5629_v42, %v6178_v48 }
0x2b5d   :  { %2705 = vrot.lane.b32.xlu0 %v2691_v50, %s6581_s7  ;;  %v2703_v35 = vmul.f32 %v2691_v50, %v7637_v44  ;;  %v2726_v44 = vrot.slane %v6986_v37, 2 }
0x2bcd   :  { %v2695_v1 = vpop.permute.xlu1 %2694 }
0x2bce   :  { %v2697_v11 = vmul.f32 %v2695_v1, %v2690_v61 }
0x2bcf   :  { %v2706_v16 = vpop.permute.xlu0 %2705 }
0x2bd0   :  { %v2708_v3 = vmul.f32 %v2706_v16, %v2691_v50  ;;  %2699 = vrot.lane.b32.xlu1 %v2697_v11, %s6582_s14 }
0x2bd2   :  { %2710 = vrot.lane.b32.xlu0 %v2708_v3, %s6582_s14  ;;  %v2828_v3 = vrot.slane %v7000_v54, 4 }
0x2bd6   :  { %2720 = vrot.lane.b32.xlu0 %v2690_v61, %s6582_s14 }
0x2c42   :  { %v2700_v34 = vpop.permute.xlu1 %2699 }
0x2c43   :  { %v2702_v26 = vadd.f32 %v2700_v34, %v2692_v41 }
0x2c44   :  { %v2711_v27 = vpop.permute.xlu0 %2710 }
0x2c45   :  { %2715 = vrot.lane.b32.xlu1 %v2702_v26, %s6583_s19  ;;  %v2713_v28 = vadd.f32 %v2711_v27, %v2703_v35 }
0x2c48   :  { %v2721_v46 = vpop.permute.xlu0 %2720 }
0x2c49   :  { %v2723_v51 = vsel %vm1007_vm6, %v2721_v46, %v2706_v16 }
0x2cb7   :  { %v2716_v57 = vpop.permute.xlu1 %2715 }
0x2cb8   :  { %v2718_v18 = vsel %vm1007_vm6, %v2716_v57, %v2713_v28 }
0x2cb9   :  { %6179 = vtanh.f32 %v2718_v18 }
0x2cc6   :  { %v6180_v0 = vpop.eup %6179 }
0x2cc7   :  { %v7685_v47 = vmul.f32 %v6180_v0, %v2723_v51 }
0x2cc9   :  { %v2725_v40 = vpack.c.bf16 %v7685_v47, %v7685_v47 }
0x2ccb   :  { %5630 = vmatmul.mubr.msk.bf16.vlgmr.msra.gmra.mxu0 %vm227_vm3, %v2725_v40 }
0x2ccc   :  { %2944 = vmatpush1.bf16.msra.mxu0 %v7591_v4  ;;  %2967 = vmatprep.mubr.bf16.mxu0 %v6580_v15  ;;  %v2729_v4 = vrot.slane %v2726_v44, 2 }
0x2ccd   :  { %2945 = vmatprep.subr.bf16.mxu0 %v7598_v30 }
0x2cd0   :  { %2946 = vmatpush1.bf16.msra.mxu0 %v7604_v49 }
0x2cd1   :  { %2947 = vmatprep.subr.bf16.mxu0 %v7610_v63 }
0x2cd4   :  { %2948 = vmatpush1.bf16.msra.mxu0 %v6424_v7 }
0x2cd5   :  { %2949 = vmatprep.subr.bf16.mxu0 %v6425_v39 }
0x2cd8   :  { %2950 = vmatpush1.bf16.msra.mxu0 %v6426_v45 }
0x2d8b   :  { %v2769_v32 = vpop.f32.mrf.mxu0 }
0x2d8c   :  { %v2770_v36 = vadd.f32 %v2769_v32, %v2728_v31 }
0x2d8d   :  { %v2771_v38 = vpop.f32.mrf.mxu0 }
0x2d8e   :  { %v5631_v14 = vmul.f32 -1.442695, %v2770_v36  ;;  %v2772_v55 = vadd.f32 %v2771_v38, %v2729_v4 }
0x2d8f   :  { %v2773_v30 = vpop.f32.mrf.mxu0 }
0x2d90   :  { %6181 = vpow2.f32 %v5631_v14  ;;  %v5632_v49 = vmul.f32 -1.442695, %v2772_v55 }
0x2d91   :  { %v2774_v59 = vpop.f32.mrf.mxu0 }
0x2d92   :  { %6183 = vpow2.f32 %v5632_v49 }
0x2d9d   :  { %v6182_v63 = vpop.eup %6181 }
0x2d9e   :  { %v2782_v22 = vadd.f32 1.0, %v6182_v63 }
0x2d9f   :  { %v6184_v56 = vpop.eup %6183 }
0x2da0   :  { %6185 = vrcp.f32 %v2782_v22  ;;  %v2783_v7 = vadd.f32 1.0, %v6184_v56 }
0x2da2   :  { %6187 = vrcp.f32 %v2783_v7 }
0x2dad   :  { %v6186_v39 = vpop.eup %6185 }
0x2dae   :  { %v2788_v45 = vmul.f32 2.0, %v6186_v39 }
0x2daf   :  { %v6188_v53 = vpop.eup %6187 }
0x2db0   :  { %v5633_v58 = vadd.f32 -1.0, %v2788_v45  ;;  %v2789_v10 = vmul.f32 2.0, %v6188_v53 }
0x2db2   :  { %v2792_v20 = vsel %vm7009_vm15, %v5633_v58, %v6186_v39  ;;  %v5634_v9 = vadd.f32 -1.0, %v2789_v10 }
0x2db3   :  { %2796 = vrot.lane.b32.xlu1 %v2792_v20, %s6581_s7  ;;  %v2794_v43 = vmul.f32 %v2792_v20, %v2702_v26  ;;  %v2829_v26 = vrot.slane %v2628_v5, 4 }
0x2db4   :  { %v2793_v23 = vsel %vm7017_vm5, %v5634_v9, %v6188_v53 }
0x2db5   :  { %2807 = vrot.lane.b32.xlu0 %v2793_v23, %s6581_s7  ;;  %v2805_v48 = vmul.f32 %v2793_v23, %v2713_v28 }
0x2e25   :  { %v2797_v52 = vpop.permute.xlu1 %2796 }
0x2e26   :  { %v2799_v19 = vmul.f32 %v2797_v52, %v2792_v20 }
0x2e27   :  { %v2808_v21 = vpop.permute.xlu0 %2807 }
0x2e28   :  { %v2810_v33 = vmul.f32 %v2808_v21, %v2793_v23  ;;  %2801 = vrot.lane.b32.xlu1 %v2799_v19, %s6582_s14 }
0x2e2a   :  { %2812 = vrot.lane.b32.xlu0 %v2810_v33, %s6582_s14 }
0x2e2e   :  { %2822 = vrot.lane.b32.xlu0 %v2792_v20, %s6582_s14 }
0x2e9a   :  { %v2802_v24 = vpop.permute.xlu1 %2801 }
0x2e9b   :  { %v2804_v12 = vadd.f32 %v2802_v24, %v2794_v43 }
0x2e9c   :  { %v2813_v25 = vpop.permute.xlu0 %2812 }
0x2e9d   :  { %2817 = vrot.lane.b32.xlu1 %v2804_v12, %s6583_s19  ;;  %v2815_v62 = vadd.f32 %v2813_v25, %v2805_v48  ;;  %v2928_v25 = vrot.slane %v7000_v54, 6 }
0x2ea0   :  { %v2823_v42 = vpop.permute.xlu0 %2822 }
0x2ea1   :  { %v2825_v1 = vsel %vm1007_vm6, %v2823_v42, %v2808_v21 }
0x2f0f   :  { %v2818_v17 = vpop.permute.xlu1 %2817 }
0x2f10   :  { %v2820_v61 = vsel %vm1007_vm6, %v2818_v17, %v2815_v62  ;;  %v2929_v17 = vrot.slane %v2726_v44, 6 }
0x2f11   :  { %6189 = vtanh.f32 %v2820_v61 }
0x2f1e   :  { %v6190_v50 = vpop.eup %6189 }
0x2f1f   :  { %v7711_v11 = vmul.f32 %v6190_v50, %v2825_v1 }
0x2f21   :  { %v2827_v16 = vpack.c.bf16 %v7711_v11, %v7711_v11  ;;  %v3028_v52 = vrot.slane %v7711_v11, 6 }
0x2f23   :  { %5635 = vmatmul.mubr.msk.bf16.vlgmr.msra.gmra.mxu1 %vm227_vm3, %v2827_v16  ;;  %v3036_v24 = vsel %vm429_vm7, %v7685_v47, %v3028_v52 }
0x2f24   :  { %3160 = vmatprep.mubr.bf16.mxu1 %v6580_v15 }
0x2fe3   :  { %v2869_v41 = vpop.f32.mrf.mxu1 }
0x2fe4   :  { %v2870_v34 = vadd.f32 %v2869_v41, %v2828_v3 }
0x2fe5   :  { %v2871_v27 = vpop.f32.mrf.mxu1 }
0x2fe6   :  { %v5636_v35 = vmul.f32 -1.442695, %v2870_v34  ;;  %v2872_v28 = vadd.f32 %v2871_v27, %v2829_v26 }
0x2fe7   :  { %v2873_v57 = vpop.f32.mrf.mxu1 }
0x2fe8   :  { %6191 = vpow2.f32 %v5636_v35  ;;  %v5637_v18 = vmul.f32 -1.442695, %v2872_v28 }
0x2fe9   :  { %v2874_v46 = vpop.f32.mrf.mxu1 }
0x2fea   :  { %6193 = vpow2.f32 %v5637_v18 }
0x2ff5   :  { %v6192_v0 = vpop.eup %6191 }
0x2ff6   :  { %v2882_v51 = vadd.f32 1.0, %v6192_v0 }
0x2ff7   :  { %v6194_v40 = vpop.eup %6193 }
0x2ff8   :  { %6195 = vrcp.f32 %v2882_v51  ;;  %v2883_v31 = vadd.f32 1.0, %v6194_v40 }
0x2ffa   :  { %6197 = vrcp.f32 %v2883_v31 }
0x3005   :  { %v6196_v32 = vpop.eup %6195 }
0x3006   :  { %v2888_v36 = vmul.f32 2.0, %v6196_v32 }
0x3007   :  { %v6198_v4 = vpop.eup %6197 }
0x3008   :  { %v5638_v38 = vadd.f32 -1.0, %v2888_v36  ;;  %v2889_v14 = vmul.f32 2.0, %v6198_v4  ;;  %v7760_v36 = vld [vmem:[#allocation12 + $0x34] ss:$8 sps:$4 sm:$0xff]  }
0x3009   :  { %3260 = vmatprep.subr.bf16.mxu0 %v7760_v36 }
0x300a   :  { %v2892_v5 = vsel %vm7009_vm15, %v5638_v38, %v6196_v32  ;;  %v5639_v55 = vadd.f32 -1.0, %v2889_v14  ;;  %v7762_v38 = vld [vmem:[#allocation12 + $0x30] ss:$8 sps:$4 sm:$0xff]  }
0x300b   :  { %2896 = vrot.lane.b32.xlu1 %v2892_v5, %s6581_s7  ;;  %v2894_v56 = vmul.f32 %v2892_v5, %v2804_v12 }
0x300c   :  { %v2893_v30 = vsel %vm7017_vm5, %v5639_v55, %v6198_v4  ;;  %v7770_v55 = vld [vmem:[#allocation12 + $0x24] ss:$8 sps:$4 sm:$0xff]  }
0x300d   :  { %2907 = vrot.lane.b32.xlu0 %v2893_v30, %s6581_s7  ;;  %v2905_v53 = vmul.f32 %v2893_v30, %v2815_v62 }
0x307d   :  { %v2897_v49 = vpop.permute.xlu1 %2896 }
0x307e   :  { %v2899_v59 = vmul.f32 %v2897_v49, %v2892_v5  ;;  %v7775_v49 = vld [vmem:[#allocation12 + $0x20] ss:$8 sps:$4 sm:$0xff]  }
0x307f   :  { %v2908_v63 = vpop.permute.xlu0 %2907 }
0x3080   :  { %v2910_v22 = vmul.f32 %v2908_v63, %v2893_v30  ;;  %2901 = vrot.lane.b32.xlu1 %v2899_v59, %s6582_s14  ;;  %v5961_v30 = vld [vmem:[%s8617_s10 + $0x30] ss:$8 sps:$4 sm:$0xff]   ;;  %v5969_v59 = vld [vmem:[%s8617_s10 + $0x24] ss:$8 sps:$4 sm:$0xff]  }
0x3082   :  { %2912 = vrot.lane.b32.xlu0 %v2910_v22, %s6582_s14  ;;  %v5967_v22 = vld [vmem:[%s8617_s10 + $0x20] ss:$8 sps:$4 sm:$0xff]  }
0x3086   :  { %2922 = vrot.lane.b32.xlu0 %v2892_v5, %s6582_s14  ;;  %v5963_v5 = vld [vmem:[%s8617_s10 + $0x34] ss:$8 sps:$4 sm:$0xff]  }
0x3087   :  { %3136 = vmatprep.subr.bf16.mxu1 %v5963_v5 }
0x3088   :  { %3137 = vmatpush1.bf16.msra.mxu1 %v5961_v30 }
0x3089   :  { %3138 = vmatprep.subr.bf16.mxu1 %v5969_v59 }
0x308c   :  { %3139 = vmatpush1.bf16.msra.mxu1 %v5967_v22 }
0x30f2   :  { %v2902_v7 = vpop.permute.xlu1 %2901 }
0x30f3   :  { %v2904_v39 = vadd.f32 %v2902_v7, %v2894_v56  ;;  %v7787_v56 = vld [vmem:[#allocation12 + $0x10] ss:$8 sps:$4 sm:$0xff]   ;;  %v5973_v7 = vld [vmem:[%s8617_s10 + $0x10] ss:$8 sps:$4 sm:$0xff]  }
0x30f4   :  { %v2913_v45 = vpop.permute.xlu0 %2912 }
0x30f5   :  { %2917 = vrot.lane.b32.xlu1 %v2904_v39, %s6583_s19  ;;  %v7730_v58 = vadd.f32 %v2913_v45, %v2905_v53  ;;  %v7797_v45 = vld [vmem:[#allocation12 + $0x4] ss:$8 sps:$4 sm:$0xff]   ;;  %v5981_v53 = vld [vmem:[%s8617_s10 + $0x4] ss:$8 sps:$4 sm:$0xff]  }
0x30f8   :  { %v2923_v9 = vpop.permute.xlu0 %2922 }
0x30f9   :  { %v2925_v19 = vsel %vm1007_vm6, %v2923_v9, %v2908_v63  ;;  %v7782_v63 = vld [vmem:[#allocation12 + $0x14] ss:$8 sps:$4 sm:$0xff]  }
0x3167   :  { %v2918_v10 = vpop.permute.xlu1 %2917 }
0x3168   :  { %v2920_v20 = vsel %vm1007_vm6, %v2918_v10, %v7730_v58  ;;  %v7802_v10 = vld [vmem:[#allocation12] ss:$8 sps:$4 sm:$0xff]  }
0x3169   :  { %6199 = vtanh.f32 %v2920_v20  ;;  %v5979_v20 = vld [vmem:[%s8617_s10] ss:$8 sps:$4 sm:$0xff]  }
0x3176   :  { %v6200_v23 = vpop.eup %6199 }
0x3177   :  { %v7736_v21 = vmul.f32 %v6200_v23, %v2925_v19 }
0x3179   :  { %v3031_v33 = vrot.slane %v7736_v21, 4  ;;  %v2927_v43 = vpack.c.bf16 %v7736_v21, %v7736_v21 }
0x317b   :  { %5640 = vmatmul.mubr.msk.bf16.vlgmr.msra.gmra.mxu0 %vm227_vm3, %v2927_v43  ;;  %v7745_v12 = vsel %vm314_vm4, %v3036_v24, %v3031_v33 }
0x317c   :  { %3284 = vmatprep.mubr.bf16.mxu0 %v6580_v15  ;;  %3261 = vmatpush1.bf16.msra.mxu0 %v7762_v38 }
0x317d   :  { %3262 = vmatprep.subr.bf16.mxu0 %v7770_v55 }
0x3180   :  { %3263 = vmatpush1.bf16.msra.mxu0 %v7775_v49 }
0x3181   :  { %3264 = vmatprep.subr.bf16.mxu0 %v7782_v63 }
0x3184   :  { %3265 = vmatpush1.bf16.msra.mxu0 %v7787_v56 }
0x3185   :  { %3266 = vmatprep.subr.bf16.mxu0 %v7797_v45 }
0x3188   :  { %3267 = vmatpush1.bf16.msra.mxu0 %v7802_v10 }
0x3189   :  { %3462 = vmatprep.subr.bf16.mxu0 %v7760_v36 }
0x318b   :  { %3285 = vmatmul.mubr.bf16.vlgmr.msra.gmra.mxu0 %v6580_v15 }
0x318c   :  { %3463 = vmatpush1.bf16.msra.mxu0 %v7762_v38  ;;  %3486 = vmatprep.mubr.bf16.mxu0 %v6580_v15 }
0x318d   :  { %3464 = vmatprep.subr.bf16.mxu0 %v7770_v55 }
0x3190   :  { %3465 = vmatpush1.bf16.msra.mxu0 %v7775_v49 }
0x3191   :  { %3466 = vmatprep.subr.bf16.mxu0 %v7782_v63 }
0x3194   :  { %3467 = vmatpush1.bf16.msra.mxu0 %v7787_v56 }
0x3195   :  { %3468 = vmatprep.subr.bf16.mxu0 %v7797_v45 }
0x3198   :  { %3469 = vmatpush1.bf16.msra.mxu0 %v7802_v10 }
0x3199   :  { %3687 = vmatprep.subr.bf16.mxu0 %v7760_v36 }
0x323b   :  { %v2969_v48 = vpop.f32.mrf.mxu0 }
0x323c   :  { %v2970_v62 = vadd.f32 %v2969_v48, %v2928_v25  ;;  %v3040_v48 = vrot.slane %v7736_v21, 6 }
0x323d   :  { %v2971_v61 = vpop.f32.mrf.mxu0 }
0x323e   :  { %v5641_v42 = vmul.f32 -1.442695, %v2970_v62  ;;  %v2972_v50 = vadd.f32 %v2971_v61, %v2929_v17  ;;  %v3042_v17 = vrot.slane %v7711_v11, 4  ;;  %v3045_v61 = vrot.slane %v7685_v47, 2  ;;  %v3054_v47 = vld [vmem:[#allocation3 + $0x18] sm:$0xff]  ;;  %v3053_v11 = vld [vmem:[#allocation3 + $0x10] sm:$0xff] }
0x323f   :  { %v2973_v1 = vpop.f32.mrf.mxu0 }
0x3240   :  { %6201 = vpow2.f32 %v5641_v42  ;;  %v5642_v16 = vmul.f32 -1.442695, %v2972_v50 }
0x3241   :  { %v2974_v3 = vpop.f32.mrf.mxu0 }
0x3242   :  { %6203 = vpow2.f32 %v5642_v16  ;;  %v3052_v3 = vld [vmem:[#allocation3 + $0x8] sm:$0xff] }
0x324d   :  { %v6202_v41 = vpop.eup %6201 }
0x324e   :  { %v2982_v34 = vadd.f32 1.0, %v6202_v41 }
0x324f   :  { %v6204_v26 = vpop.eup %6203 }
0x3250   :  { %6205 = vrcp.f32 %v2982_v34  ;;  %v2983_v27 = vadd.f32 1.0, %v6204_v26 }
0x3252   :  { %6207 = vrcp.f32 %v2983_v27  ;;  %v3286_v27 = vpop.f32.mrf.mxu0 }
0x325d   :  { %v6206_v54 = vpop.eup %6205 }
0x325e   :  { %v2988_v35 = vmul.f32 2.0, %v6206_v54 }
0x325f   :  { %v6208_v28 = vpop.eup %6207 }
0x3260   :  { %v5643_v57 = vadd.f32 -1.0, %v2988_v35  ;;  %v2989_v37 = vmul.f32 2.0, %v6208_v28 }
0x3262   :  { %v2992_v44 = vsel %vm7009_vm15, %v5643_v57, %v6206_v54  ;;  %v5644_v18 = vadd.f32 -1.0, %v2989_v37  ;;  %v3288_v54 = vpop.f32.mrf.mxu0  ;;  %v3067_v57 = vld [vmem:[#allocation10] sm:$0x3] }
0x3263   :  { %2996 = vrot.lane.b32.xlu1 %v2992_v44, %s6581_s7  ;;  %v2994_v32 = vmul.f32 %v2992_v44, %v2904_v39  ;;  %v5975_v39 = vld [vmem:[%s8617_s10 + $0x14] ss:$8 sps:$4 sm:$0xff]   ;;  %v3072_v37 = vrot.slane %v3067_v57, %v738_v29 }
0x3264   :  { %v2993_v46 = vsel %vm7017_vm5, %v5644_v18, %v6208_v28  ;;  %3140 = vmatprep.subr.bf16.mxu1 %v5975_v39  ;;  %v3290_v35 = vpop.f32.mrf.mxu0 }
0x3265   :  { %3007 = vrot.lane.b32.xlu0 %v2993_v46, %s6581_s7  ;;  %3141 = vmatpush1.bf16.msra.mxu1 %v5973_v7  ;;  %v3005_v23 = vmul.f32 %v2993_v46, %v7730_v58 }
0x3266   :  { %3142 = vmatprep.subr.bf16.mxu1 %v5981_v53  ;;  %v3291_v28 = vpop.f32.mrf.mxu0 }
0x3269   :  { %3143 = vmatpush1.bf16.msra.mxu1 %v5979_v20 }
0x326a   :  { %3362 = vmatprep.subr.bf16.mxu1 %v7760_v36 }
0x32d5   :  { %v2997_v0 = vpop.permute.xlu1 %2996 }
0x32d6   :  { %v2999_v51 = vmul.f32 %v2997_v0, %v2992_v44 }
0x32d7   :  { %v3008_v40 = vpop.permute.xlu0 %3007 }
0x32d8   :  { %v3010_v31 = vmul.f32 %v3008_v40, %v2993_v46  ;;  %3001 = vrot.lane.b32.xlu1 %v2999_v51, %s6582_s14 }
0x32da   :  { %3012 = vrot.lane.b32.xlu0 %v3010_v31, %s6582_s14 }
0x32de   :  { %3022 = vrot.lane.b32.xlu0 %v2992_v44, %s6582_s14  ;;  %v3076_v44 = vrot.slane %v3067_v57, %v742_v8 }
0x334a   :  { %v3002_v4 = vpop.permute.xlu1 %3001 }
0x334b   :  { %v3004_v14 = vadd.f32 %v3002_v4, %v2994_v32 }
0x334c   :  { %v3013_v9 = vpop.permute.xlu0 %3012 }
0x334d   :  { %3017 = vrot.lane.b32.xlu1 %v3004_v14, %s6583_s19  ;;  %v3015_v52 = vadd.f32 %v3013_v9, %v3005_v23 }
0x3350   :  { %v3023_v43 = vpop.permute.xlu0 %3022 }
0x3351   :  { %v3025_v25 = vsel %vm1007_vm6, %v3023_v43, %v3008_v40 }
0x33bf   :  { %v3018_v19 = vpop.permute.xlu1 %3017 }
0x33c0   :  { %v3020_v33 = vsel %vm1007_vm6, %v3018_v19, %v3015_v52 }
0x33c1   :  { %6209 = vtanh.f32 %v3020_v33 }
0x33ce   :  { %v6210_v24 = vpop.eup %6209 }
0x33cf   :  { %v3026_v62 = vmul.f32 %v6210_v24, %v3025_v25 }
0x33d1   :  { %v3034_v42 = vrot.slane %v3026_v62, 2  ;;  %v3047_v50 = vsel %vm429_vm7, %v3026_v62, %v3040_v48 }
0x33d2   :  { %v3048_v58 = vsel %vm314_vm4, %v3047_v50, %v3042_v17 }
0x33d3   :  { %v3038_v1 = vsel %vm1328_vm8, %v7745_v12, %v3034_v42  ;;  %v3049_v16 = vsel %vm1328_vm8, %v3048_v58, %v3045_v61  ;;  %v3057_v12 = vpack.c.bf16 %v3054_v47, %v3053_v11 }
0x33d4   :  { %3039 = vst.msk [vmem:[#allocation3 + $0x20] sm:$0xff] %vm1007_vm6, %v3038_v1 }
0x33d5   :  { %3050 = vst.msk [vmem:[#allocation3] sm:$0xff] %vm1341_vm9, %v3049_v16 }
0x33db   :  { %v3055_v34 = vld [vmem:[#allocation3 + $0x20] sm:$0xff] }
0x33dc   :  { %v3051_v21 = vld [vmem:[#allocation3] sm:$0xff]  ;;  %v3058_v26 = vpack.c.bf16 %v3055_v34, %v3055_v34 }
0x33dd   :  { %v3056_v41 = vpack.c.bf16 %v3052_v3, %v3051_v21 }
0x33df   :  { %5653 = vmatmul.mubr.msk.bf16.vlgmr.msra.gmra.mxu1 %vm227_vm3, %v3056_v41 }
0x33e0   :  { %3170 = vmatprep.mubr.bf16.mxu1 %v6580_v15  ;;  %3363 = vmatpush1.bf16.msra.mxu1 %v7762_v38 }
0x33e1   :  { %3364 = vmatprep.subr.bf16.mxu1 %v7770_v55 }
0x33e4   :  { %3365 = vmatpush1.bf16.msra.mxu1 %v7775_v49 }
0x33e5   :  { %3366 = vmatprep.subr.bf16.mxu1 %v7782_v63 }
0x33e7   :  { %5654 = vmatmul.mubr.msk.bf16.gmra.mxu1 %vm227_vm3, %v3057_v12 }
0x33e8   :  { %3180 = vmatprep.mubr.bf16.mxu1 %v6580_v15  ;;  %3367 = vmatpush1.bf16.msra.mxu1 %v7787_v56 }
0x33e9   :  { %3368 = vmatprep.subr.bf16.mxu1 %v7797_v45 }
0x33ec   :  { %3369 = vmatpush1.bf16.msra.mxu1 %v7802_v10 }
0x33ed   :  { %3562 = vmatprep.subr.bf16.mxu1 %v7760_v36 }
0x33ef   :  { %5655 = vmatmul.mubr.msk.bf16.gmra.mxu1 %vm227_vm3, %v3058_v26 }
0x33f0   :  { %3386 = vmatprep.mubr.bf16.mxu1 %v6580_v15 }
0x349f   :  { %v3162_v18 = vpop.f32.mrf.mxu1 }
0x34a0   :  { %v7852_v46 = vadd.f32 %v3162_v18, %v3072_v37 }
0x34a1   :  { %v3164_v0 = vpop.f32.mrf.mxu1 }
0x34a2   :  { %v3287_v51 = vadd.f32 %v3286_v27, %v7852_v46  ;;  %v7855_v40 = vadd.f32 %v3164_v0, %v3076_v44 }
0x34a3   :  { %v3166_v31 = vpop.f32.mrf.mxu1 }
0x34a4   :  { %v5664_v32 = vmul.f32 -1.442695, %v3287_v51  ;;  %v7857_v4 = vadd.f32 %v3166_v31, %v3072_v37 }
0x34a5   :  { %v3168_v14 = vpop.f32.mrf.mxu1 }
0x34a6   :  { %6211 = vpow2.f32 %v5664_v32  ;;  %v7859_v5 = vadd.f32 %v3168_v14, %v3076_v44  ;;  %v3347_v14 = vrot.slane %v7852_v46, 2 }
0x34a7   :  { %v3172_v29 = vpop.f32.mrf.mxu1 }
0x34a8   :  { %v7861_v30 = vadd.f32 %v3172_v29, %v3072_v37 }
0x34a9   :  { %v3174_v6 = vpop.f32.mrf.mxu1 }
0x34aa   :  { %v7863_v8 = vadd.f32 %v3174_v6, %v3076_v44 }
0x34ab   :  { %v3176_v59 = vpop.f32.mrf.mxu1 }
0x34ac   :  { %v7865_v22 = vadd.f32 %v3176_v59, %v3072_v37 }
0x34ad   :  { %v3178_v7 = vpop.f32.mrf.mxu1 }
0x34ae   :  { %v7867_v39 = vadd.f32 %v3178_v7, %v3076_v44 }
0x34af   :  { %v3182_v53 = vpop.f32.mrf.mxu1 }
0x34b0   :  { %v7869_v20 = vadd.f32 %v3182_v53, %v3072_v37 }
0x34b1   :  { %v3184_v9 = vpop.f32.mrf.mxu1 }
0x34b2   :  { %v7871_v23 = vadd.f32 %v3184_v9, %v3076_v44 }
0x34b3   :  { %v6212_v52 = vpop.eup %6211  ;;  %v3186_v19 = vpop.f32.mrf.mxu1 }
0x34b4   :  { %v3299_v33 = vadd.f32 1.0, %v6212_v52  ;;  %v3210_v43 = vrot.slane %v7871_v23, 6  ;;  %v3345_v32 = vrot.slane %v7871_v23, 2 }
0x34b5   :  { %v3187_v24 = vpop.f32.mrf.mxu1 }
0x34b6   :  { %6213 = vrcp.f32 %v3299_v33  ;;  %v3289_v25 = vadd.f32 %v3288_v54, %v3210_v43  ;;  %v3348_v59 = vrot.slane %v3345_v32, 2 }
0x34b8   :  { %v5665_v48 = vmul.f32 -1.442695, %v3289_v25 }
0x34ba   :  { %6215 = vpow2.f32 %v5665_v48 }
0x34c3   :  { %v6214_v62 = vpop.eup %6213 }
0x34c4   :  { %v3305_v17 = vmul.f32 2.0, %v6214_v62 }
0x34c6   :  { %v5666_v61 = vadd.f32 -1.0, %v3305_v17 }
0x34c7   :  { %v6216_v42 = vpop.eup %6215 }
0x34c8   :  { %v3300_v50 = vadd.f32 1.0, %v6216_v42  ;;  %v3309_v58 = vsel %vm7009_vm15, %v5666_v61, %v6214_v62 }
0x34c9   :  { %3313 = vrot.lane.b32.xlu1 %v3309_v58, %s6581_s7  ;;  %v3311_v34 = vmul.f32 0.0, %v3309_v58 }
0x34ca   :  { %6217 = vrcp.f32 %v3300_v50 }
0x34d7   :  { %v6218_v1 = vpop.eup %6217 }
0x34d8   :  { %v3306_v16 = vmul.f32 2.0, %v6218_v1 }
0x34da   :  { %v5667_v21 = vadd.f32 -1.0, %v3306_v16 }
0x34dc   :  { %v3310_v3 = vsel %vm7017_vm5, %v5667_v21, %v6218_v1 }
0x34dd   :  { %3324 = vrot.lane.b32.xlu0 %v3310_v3, %s6581_s7  ;;  %v3322_v35 = vmul.f32 0.0, %v3310_v3 }
0x353b   :  { %v3314_v41 = vpop.permute.xlu1 %3313 }
0x353c   :  { %v3316_v47 = vmul.f32 %v3314_v41, %v3309_v58 }
0x353e   :  { %3318 = vrot.lane.b32.xlu1 %v3316_v47, %s6582_s14 }
0x354f   :  { %v3325_v11 = vpop.permute.xlu0 %3324 }
0x3550   :  { %v3327_v12 = vmul.f32 %v3325_v11, %v3310_v3 }
0x3552   :  { %3329 = vrot.lane.b32.xlu0 %v3327_v12, %s6582_s14 }
0x3556   :  { %3339 = vrot.lane.b32.xlu0 %v3309_v58, %s6582_s14 }
0x35b0   :  { %v3319_v26 = vpop.permute.xlu1 %3318 }
0x35b1   :  { %v3321_v27 = vadd.f32 %v3319_v26, %v3311_v34 }
0x35b3   :  { %3334 = vrot.lane.b32.xlu1 %v3321_v27, %s6583_s19 }
0x35c4   :  { %v3330_v54 = vpop.permute.xlu0 %3329 }
0x35c5   :  { %v3332_v28 = vadd.f32 %v3330_v54, %v3322_v35 }
0x35c8   :  { %v3340_v44 = vpop.permute.xlu0 %3339 }
0x35c9   :  { %v3342_v0 = vsel %vm1007_vm6, %v3340_v44, %v3325_v11 }
0x3625   :  { %v3335_v57 = vpop.permute.xlu1 %3334 }
0x3626   :  { %v3337_v37 = vsel %vm1007_vm6, %v3335_v57, %v3332_v28 }
0x3627   :  { %6219 = vtanh.f32 %v3337_v37 }
0x3634   :  { %v6220_v18 = vpop.eup %6219 }
0x3635   :  { %v7888_v51 = vmul.f32 %v6220_v18, %v3342_v0 }
0x3637   :  { %v3344_v31 = vpack.c.bf16 %v7888_v51, %v7888_v51 }
0x3639   :  { %5668 = vmatmul.mubr.msk.bf16.vlgmr.msra.gmra.mxu1 %vm227_vm3, %v3344_v31 }
0x363a   :  { %3563 = vmatpush1.bf16.msra.mxu1 %v7762_v38  ;;  %3586 = vmatprep.mubr.bf16.mxu1 %v6580_v15 }
0x363b   :  { %3564 = vmatprep.subr.bf16.mxu1 %v7770_v55 }
0x363e   :  { %3565 = vmatpush1.bf16.msra.mxu1 %v7775_v49 }
0x363f   :  { %3566 = vmatprep.subr.bf16.mxu1 %v7782_v63 }
0x3642   :  { %3567 = vmatpush1.bf16.msra.mxu1 %v7787_v56 }
0x3643   :  { %3568 = vmatprep.subr.bf16.mxu1 %v7797_v45 }
0x3646   :  { %3569 = vmatpush1.bf16.msra.mxu1 %v7802_v10 }
0x3647   :  { %3789 = vmatprep.subr.bf16.mxu1 %v7760_v36 }
0x36f9   :  { %v3388_v29 = vpop.f32.mrf.mxu1 }
0x36fa   :  { %v3389_v6 = vadd.f32 %v3388_v29, %v3347_v14 }
0x36fb   :  { %v3390_v7 = vpop.f32.mrf.mxu1 }
0x36fc   :  { %v5669_v53 = vmul.f32 -1.442695, %v3389_v6  ;;  %v3391_v9 = vadd.f32 %v3390_v7, %v3348_v59  ;;  %v3448_v59 = vrot.slane %v3210_v43, 4 }
0x36fd   :  { %v3392_v52 = vpop.f32.mrf.mxu1 }
0x36fe   :  { %6221 = vpow2.f32 %v5669_v53  ;;  %v5670_v19 = vmul.f32 -1.442695, %v3391_v9 }
0x36ff   :  { %v3393_v33 = vpop.f32.mrf.mxu1 }
0x3700   :  { %6223 = vpow2.f32 %v5670_v19 }
0x370b   :  { %v6222_v24 = vpop.eup %6221 }
0x370c   :  { %v3401_v25 = vadd.f32 1.0, %v6222_v24 }
0x370d   :  { %v6224_v48 = vpop.eup %6223 }
0x370e   :  { %6225 = vrcp.f32 %v3401_v25  ;;  %v3402_v62 = vadd.f32 1.0, %v6224_v48 }
0x3710   :  { %6227 = vrcp.f32 %v3402_v62 }
0x371b   :  { %v6226_v17 = vpop.eup %6225 }
0x371c   :  { %v3407_v61 = vmul.f32 2.0, %v6226_v17 }
0x371d   :  { %v6228_v42 = vpop.eup %6227 }
0x371e   :  { %v5671_v50 = vadd.f32 -1.0, %v3407_v61  ;;  %v3408_v58 = vmul.f32 2.0, %v6228_v42 }
0x3720   :  { %v3411_v1 = vsel %vm7009_vm15, %v5671_v50, %v6226_v17  ;;  %v5672_v16 = vadd.f32 -1.0, %v3408_v58 }
0x3721   :  { %3415 = vrot.lane.b32.xlu1 %v3411_v1, %s6581_s7  ;;  %v3413_v12 = vmul.f32 %v3411_v1, %v3321_v27 }
0x3722   :  { %v3412_v21 = vsel %vm7017_vm5, %v5672_v16, %v6228_v42 }
0x3723   :  { %3426 = vrot.lane.b32.xlu0 %v3412_v21, %s6581_s7  ;;  %v3424_v35 = vmul.f32 %v3412_v21, %v3332_v28  ;;  %v3447_v28 = vrot.slane %v7852_v46, 4 }
0x3793   :  { %v3416_v3 = vpop.permute.xlu1 %3415 }
0x3794   :  { %v3418_v41 = vmul.f32 %v3416_v3, %v3411_v1 }
0x3795   :  { %v3427_v47 = vpop.permute.xlu0 %3426 }
0x3796   :  { %v3429_v11 = vmul.f32 %v3427_v47, %v3412_v21  ;;  %3420 = vrot.lane.b32.xlu1 %v3418_v41, %s6582_s14 }
0x3798   :  { %3431 = vrot.lane.b32.xlu0 %v3429_v11, %s6582_s14 }
0x379c   :  { %3441 = vrot.lane.b32.xlu0 %v3411_v1, %s6582_s14 }
0x3808   :  { %v3421_v34 = vpop.permute.xlu1 %3420 }
0x3809   :  { %v3423_v26 = vadd.f32 %v3421_v34, %v3413_v12 }
0x380a   :  { %v3432_v54 = vpop.permute.xlu0 %3431 }
0x380b   :  { %3436 = vrot.lane.b32.xlu1 %v3423_v26, %s6583_s19  ;;  %v3434_v57 = vadd.f32 %v3432_v54, %v3424_v35 }
0x380e   :  { %v3442_v18 = vpop.permute.xlu0 %3441 }
0x380f   :  { %v3444_v31 = vsel %vm1007_vm6, %v3442_v18, %v3427_v47 }
0x387d   :  { %v3437_v37 = vpop.permute.xlu1 %3436 }
0x387e   :  { %v3439_v44 = vsel %vm1007_vm6, %v3437_v37, %v3434_v57 }
0x387f   :  { %6229 = vtanh.f32 %v3439_v44 }
0x388c   :  { %v6230_v0 = vpop.eup %6229 }
0x388d   :  { %v7918_v14 = vmul.f32 %v6230_v0, %v3444_v31 }
0x388f   :  { %v3446_v27 = vpack.c.bf16 %v7918_v14, %v7918_v14 }
0x3891   :  { %5673 = vmatmul.mubr.msk.bf16.vlgmr.msra.gmra.mxu0 %vm227_vm3, %v3446_v27  ;;  %v3647_v27 = vrot.slane %v7918_v14, 6 }
0x3892   :  { %3688 = vmatpush1.bf16.msra.mxu0 %v7762_v38  ;;  %3711 = vmatprep.mubr.bf16.mxu0 %v6580_v15 }
0x3893   :  { %3689 = vmatprep.subr.bf16.mxu0 %v7770_v55 }
0x3896   :  { %3690 = vmatpush1.bf16.msra.mxu0 %v7775_v49 }
0x3897   :  { %3691 = vmatprep.subr.bf16.mxu0 %v7782_v63 }
0x389a   :  { %3692 = vmatpush1.bf16.msra.mxu0 %v7787_v56 }
0x389b   :  { %3693 = vmatprep.subr.bf16.mxu0 %v7797_v45 }
0x389e   :  { %3694 = vmatpush1.bf16.msra.mxu0 %v7802_v10 }
0x389f   :  { %3889 = vmatprep.subr.bf16.mxu0 %v7760_v36 }
0x3951   :  { %v3488_v29 = vpop.f32.mrf.mxu0 }
0x3952   :  { %v3489_v6 = vadd.f32 %v3488_v29, %v3447_v28 }
0x3953   :  { %v3490_v7 = vpop.f32.mrf.mxu0 }
0x3954   :  { %v5674_v53 = vmul.f32 -1.442695, %v3489_v6  ;;  %v3491_v9 = vadd.f32 %v3490_v7, %v3448_v59  ;;  %v3655_v6 = vsel %vm429_vm7, %v7888_v51, %v3647_v27  ;;  %v3547_v7 = vrot.slane %v7852_v46, 6 }
0x3955   :  { %v3492_v52 = vpop.f32.mrf.mxu0 }
0x3956   :  { %6231 = vpow2.f32 %v5674_v53  ;;  %v5675_v19 = vmul.f32 -1.442695, %v3491_v9  ;;  %v3548_v52 = vrot.slane %v3345_v32, 6 }
0x3957   :  { %v3493_v33 = vpop.f32.mrf.mxu0 }
0x3958   :  { %6233 = vpow2.f32 %v5675_v19 }
0x3963   :  { %v6232_v24 = vpop.eup %6231 }
0x3964   :  { %v3501_v25 = vadd.f32 1.0, %v6232_v24 }
0x3965   :  { %v6234_v48 = vpop.eup %6233 }
0x3966   :  { %6235 = vrcp.f32 %v3501_v25  ;;  %v3502_v62 = vadd.f32 1.0, %v6234_v48 }
0x3968   :  { %6237 = vrcp.f32 %v3502_v62 }
0x3973   :  { %v6236_v17 = vpop.eup %6235 }
0x3974   :  { %v3507_v61 = vmul.f32 2.0, %v6236_v17 }
0x3975   :  { %v6238_v42 = vpop.eup %6237 }
0x3976   :  { %v5676_v50 = vadd.f32 -1.0, %v3507_v61  ;;  %v3508_v58 = vmul.f32 2.0, %v6238_v42 }
0x3978   :  { %v3511_v43 = vsel %vm7009_vm15, %v5676_v50, %v6236_v17  ;;  %v5677_v1 = vadd.f32 -1.0, %v3508_v58 }
0x3979   :  { %3515 = vrot.lane.b32.xlu1 %v3511_v43, %s6581_s7  ;;  %v3513_v11 = vmul.f32 %v3511_v43, %v3423_v26 }
0x397a   :  { %v3512_v16 = vsel %vm7017_vm5, %v5677_v1, %v6238_v42 }
0x397b   :  { %3526 = vrot.lane.b32.xlu0 %v3512_v16, %s6581_s7  ;;  %v3524_v35 = vmul.f32 %v3512_v16, %v3434_v57 }
0x39eb   :  { %v3516_v21 = vpop.permute.xlu1 %3515 }
0x39ec   :  { %v3518_v3 = vmul.f32 %v3516_v21, %v3511_v43 }
0x39ed   :  { %v3527_v41 = vpop.permute.xlu0 %3526 }
0x39ee   :  { %v3529_v47 = vmul.f32 %v3527_v41, %v3512_v16  ;;  %3520 = vrot.lane.b32.xlu1 %v3518_v3, %s6582_s14 }
0x39f0   :  { %3531 = vrot.lane.b32.xlu0 %v3529_v47, %s6582_s14 }
0x39f4   :  { %3541 = vrot.lane.b32.xlu0 %v3511_v43, %s6582_s14 }
0x3a60   :  { %v3521_v12 = vpop.permute.xlu1 %3520 }
0x3a61   :  { %v3523_v34 = vadd.f32 %v3521_v12, %v3513_v11 }
0x3a62   :  { %v3532_v54 = vpop.permute.xlu0 %3531 }
0x3a63   :  { %3536 = vrot.lane.b32.xlu1 %v3523_v34, %s6583_s19  ;;  %v7945_v37 = vadd.f32 %v3532_v54, %v3524_v35 }
0x3a66   :  { %v3542_v0 = vpop.permute.xlu0 %3541 }
0x3a67   :  { %v3544_v28 = vsel %vm1007_vm6, %v3542_v0, %v3527_v41 }
0x3ad5   :  { %v3537_v44 = vpop.permute.xlu1 %3536 }
0x3ad6   :  { %v3539_v18 = vsel %vm1007_vm6, %v3537_v44, %v7945_v37 }
0x3ad7   :  { %6239 = vtanh.f32 %v3539_v18 }
0x3ae4   :  { %v6240_v31 = vpop.eup %6239 }
0x3ae5   :  { %v7951_v26 = vmul.f32 %v6240_v31, %v3544_v28 }
0x3ae7   :  { %v3650_v29 = vrot.slane %v7951_v26, 4  ;;  %v3546_v57 = vpack.c.bf16 %v7951_v26, %v7951_v26 }
0x3ae9   :  { %v7959_v59 = vsel %vm314_vm4, %v3655_v6, %v3650_v29  ;;  %5678 = vmatmul.mubr.msk.bf16.vlgmr.msra.gmra.mxu1 %vm227_vm3, %v3546_v57  ;;  %v3659_v57 = vrot.slane %v7951_v26, 6  ;;  %v3674_v26 = vrot.slane %v7867_v39, 6 }
0x3aea   :  { %3790 = vmatpush1.bf16.msra.mxu1 %v7762_v38  ;;  %3813 = vmatprep.mubr.bf16.mxu1 %v6580_v15 }
0x3aeb   :  { %3791 = vmatprep.subr.bf16.mxu1 %v7770_v55 }
0x3aee   :  { %3792 = vmatpush1.bf16.msra.mxu1 %v7775_v49 }
0x3aef   :  { %3793 = vmatprep.subr.bf16.mxu1 %v7782_v63 }
0x3af2   :  { %3794 = vmatpush1.bf16.msra.mxu1 %v7787_v56 }
0x3af3   :  { %3795 = vmatprep.subr.bf16.mxu1 %v7797_v45 }
0x3af6   :  { %3796 = vmatpush1.bf16.msra.mxu1 %v7802_v10 }
0x3af7   :  { %3989 = vmatprep.subr.bf16.mxu1 %v7760_v36 }
0x3ba9   :  { %v3588_v53 = vpop.f32.mrf.mxu1 }
0x3baa   :  { %v3589_v9 = vadd.f32 %v3588_v53, %v3547_v7  ;;  %v3661_v7 = vrot.slane %v7918_v14, 4  ;;  %v3664_v53 = vrot.slane %v7888_v51, 2 }
0x3bab   :  { %v3590_v19 = vpop.f32.mrf.mxu1 }
0x3bac   :  { %v5679_v33 = vmul.f32 -1.442695, %v3589_v9  ;;  %v3591_v24 = vadd.f32 %v3590_v19, %v3548_v52 }
0x3bad   :  { %v3592_v25 = vpop.f32.mrf.mxu1 }
0x3bae   :  { %6241 = vpow2.f32 %v5679_v33  ;;  %v5680_v48 = vmul.f32 -1.442695, %v3591_v24 }
0x3baf   :  { %v3593_v62 = vpop.f32.mrf.mxu1 }
0x3bb0   :  { %6243 = vpow2.f32 %v5680_v48 }
0x3bbb   :  { %v6242_v17 = vpop.eup %6241 }
0x3bbc   :  { %v3601_v61 = vadd.f32 1.0, %v6242_v17 }
0x3bbd   :  { %v6244_v42 = vpop.eup %6243 }
0x3bbe   :  { %6245 = vrcp.f32 %v3601_v61  ;;  %v3602_v50 = vadd.f32 1.0, %v6244_v42 }
0x3bc0   :  { %6247 = vrcp.f32 %v3602_v50 }
0x3bcb   :  { %v6246_v46 = vpop.eup %6245 }
0x3bcc   :  { %v3607_v58 = vmul.f32 2.0, %v6246_v46 }
0x3bcd   :  { %v6248_v43 = vpop.eup %6247 }
0x3bce   :  { %v5681_v1 = vadd.f32 -1.0, %v3607_v58  ;;  %v3608_v23 = vmul.f32 2.0, %v6248_v43 }
0x3bd0   :  { %v3611_v32 = vsel %vm7009_vm15, %v5681_v1, %v6246_v46  ;;  %v5682_v16 = vadd.f32 -1.0, %v3608_v23 }
0x3bd1   :  { %3615 = vrot.lane.b32.xlu1 %v3611_v32, %s6581_s7  ;;  %v3613_v12 = vmul.f32 %v3611_v32, %v3523_v34 }
0x3bd2   :  { %v3612_v21 = vsel %vm7017_vm5, %v5682_v16, %v6248_v43 }
0x3bd3   :  { %3626 = vrot.lane.b32.xlu0 %v3612_v21, %s6581_s7  ;;  %v3624_v18 = vmul.f32 %v3612_v21, %v7945_v37 }
0x3c43   :  { %v3616_v3 = vpop.permute.xlu1 %3615 }
0x3c44   :  { %v3618_v41 = vmul.f32 %v3616_v3, %v3611_v32 }
0x3c45   :  { %v3627_v47 = vpop.permute.xlu0 %3626 }
0x3c46   :  { %v3629_v11 = vmul.f32 %v3627_v47, %v3612_v21  ;;  %3620 = vrot.lane.b32.xlu1 %v3618_v41, %s6582_s14 }
0x3c48   :  { %3631 = vrot.lane.b32.xlu0 %v3629_v11, %s6582_s14 }
0x3c4c   :  { %3641 = vrot.lane.b32.xlu0 %v3611_v32, %s6582_s14 }
0x3cb8   :  { %v3621_v54 = vpop.permute.xlu1 %3620 }
0x3cb9   :  { %v7983_v35 = vadd.f32 %v3621_v54, %v3613_v12 }
0x3cba   :  { %v3632_v44 = vpop.permute.xlu0 %3631 }
0x3cbb   :  { %3636 = vrot.lane.b32.xlu1 %v7983_v35, %s6583_s19  ;;  %v7988_v0 = vadd.f32 %v3632_v44, %v3624_v18 }
0x3cbe   :  { %v3642_v28 = vpop.permute.xlu0 %3641 }
0x3cbf   :  { %v3644_v34 = vsel %vm1007_vm6, %v3642_v28, %v3627_v47 }
0x3d2d   :  { %v3637_v31 = vpop.permute.xlu1 %3636 }
0x3d2e   :  { %v3639_v27 = vsel %vm1007_vm6, %v3637_v31, %v7988_v0 }
0x3d2f   :  { %6249 = vtanh.f32 %v3639_v27 }
0x3d3c   :  { %v6250_v29 = vpop.eup %6249 }
0x3d3d   :  { %v3645_v6 = vmul.f32 %v6250_v29, %v3644_v34 }
0x3d3f   :  { %v3653_v9 = vrot.slane %v3645_v6, 2  ;;  %v3666_v37 = vsel %vm429_vm7, %v3645_v6, %v3659_v57  ;;  %v3672_v52 = vpack.c.bf16 %v3645_v6, %v3645_v6 }
0x3d40   :  { %v3667_v19 = vsel %vm314_vm4, %v3666_v37, %v3661_v7  ;;  %v3774_v37 = vrot.slane %v7857_v4, 2 }
0x3d41   :  { %v3657_v33 = vsel %vm1328_vm8, %v7959_v59, %v3653_v9  ;;  %v3668_v24 = vsel %vm1328_vm8, %v3667_v19, %v3664_v53  ;;  %5683 = vmatmul.mubr.msk.bf16.vlgmr.msra.gmra.mxu0 %vm227_vm3, %v3672_v52 }
0x3d42   :  { %3658 = vst.msk [vmem:[#allocation3] sm:$0xff] %vm1007_vm6, %v3657_v33  ;;  %3890 = vmatpush1.bf16.msra.mxu0 %v7762_v38  ;;  %3913 = vmatprep.mubr.bf16.mxu0 %v6580_v15 }
0x3d43   :  { %3669 = vst.msk [vmem:[#allocation3 + $0x20] sm:$0xff] %vm1341_vm9, %v3668_v24  ;;  %3891 = vmatprep.subr.bf16.mxu0 %v7770_v55 }
0x3d46   :  { %3892 = vmatpush1.bf16.msra.mxu0 %v7775_v49 }
0x3d47   :  { %3893 = vmatprep.subr.bf16.mxu0 %v7782_v63 }
0x3d4a   :  { %3894 = vmatpush1.bf16.msra.mxu0 %v7787_v56 }
0x3d4b   :  { %3895 = vmatprep.subr.bf16.mxu0 %v7797_v45 }
0x3d4e   :  { %3896 = vmatpush1.bf16.msra.mxu0 %v7802_v10 }
0x3d4f   :  { %4114 = vmatprep.subr.bf16.mxu0 %v7760_v36 }
0x3e01   :  { %v3713_v51 = vpop.f32.mrf.mxu0 }
0x3e02   :  { %v3714_v14 = vadd.f32 %v3713_v51, %v7857_v4 }
0x3e03   :  { %v3715_v59 = vpop.f32.mrf.mxu0 }
0x3e04   :  { %v5684_v25 = vmul.f32 -1.442695, %v3714_v14  ;;  %v3716_v48 = vadd.f32 %v3715_v59, %v3674_v26 }
0x3e05   :  { %v3717_v62 = vpop.f32.mrf.mxu0 }
0x3e06   :  { %6251 = vpow2.f32 %v5684_v25  ;;  %v5685_v17 = vmul.f32 -1.442695, %v3716_v48 }
0x3e07   :  { %v3718_v61 = vpop.f32.mrf.mxu0 }
0x3e08   :  { %6253 = vpow2.f32 %v5685_v17 }
0x3e13   :  { %v6252_v42 = vpop.eup %6251 }
0x3e14   :  { %v3726_v50 = vadd.f32 1.0, %v6252_v42 }
0x3e15   :  { %v6254_v46 = vpop.eup %6253 }
0x3e16   :  { %6255 = vrcp.f32 %v3726_v50  ;;  %v3727_v58 = vadd.f32 1.0, %v6254_v46 }
0x3e18   :  { %6257 = vrcp.f32 %v3727_v58 }
0x3e23   :  { %v6256_v43 = vpop.eup %6255 }
0x3e24   :  { %v3732_v1 = vmul.f32 2.0, %v6256_v43 }
0x3e25   :  { %v6258_v23 = vpop.eup %6257 }
0x3e26   :  { %v5686_v32 = vadd.f32 -1.0, %v3732_v1  ;;  %v3733_v16 = vmul.f32 2.0, %v6258_v23 }
0x3e28   :  { %v3736_v21 = vsel %vm7009_vm15, %v5686_v32, %v6256_v43  ;;  %v5687_v3 = vadd.f32 -1.0, %v3733_v16 }
0x3e29   :  { %3740 = vrot.lane.b32.xlu1 %v3736_v21, %s6581_s7  ;;  %v3738_v44 = vmul.f32 %v3736_v21, %v7983_v35 }
0x3e2a   :  { %v3737_v41 = vsel %vm7017_vm5, %v5687_v3, %v6258_v23 }
0x3e2b   :  { %3751 = vrot.lane.b32.xlu0 %v3737_v41, %s6581_s7  ;;  %v3749_v28 = vmul.f32 %v3737_v41, %v7988_v0  ;;  %v3772_v0 = vrot.slane %v7867_v39, 2 }
0x3e2d   :  { %v3775_v33 = vrot.slane %v3772_v0, 2 }
0x3e9b   :  { %v3741_v47 = vpop.permute.xlu1 %3740 }
0x3e9c   :  { %v3743_v11 = vmul.f32 %v3741_v47, %v3736_v21 }
0x3e9d   :  { %v3752_v12 = vpop.permute.xlu0 %3751 }
0x3e9e   :  { %v3754_v54 = vmul.f32 %v3752_v12, %v3737_v41  ;;  %3745 = vrot.lane.b32.xlu1 %v3743_v11, %s6582_s14 }
0x3ea0   :  { %3756 = vrot.lane.b32.xlu0 %v3754_v54, %s6582_s14 }
0x3ea4   :  { %3766 = vrot.lane.b32.xlu0 %v3736_v21, %s6582_s14 }
0x3f10   :  { %v3746_v18 = vpop.permute.xlu1 %3745 }
0x3f11   :  { %v3748_v31 = vadd.f32 %v3746_v18, %v3738_v44 }
0x3f12   :  { %v3757_v27 = vpop.permute.xlu0 %3756 }
0x3f13   :  { %3761 = vrot.lane.b32.xlu1 %v3748_v31, %s6583_s19  ;;  %v3759_v29 = vadd.f32 %v3757_v27, %v3749_v28 }
0x3f16   :  { %v3767_v6 = vpop.permute.xlu0 %3766 }
0x3f17   :  { %v3769_v53 = vsel %vm1007_vm6, %v3767_v6, %v3752_v12 }
0x3f85   :  { %v3762_v34 = vpop.permute.xlu1 %3761 }
0x3f86   :  { %v3764_v57 = vsel %vm1007_vm6, %v3762_v34, %v3759_v29 }
0x3f87   :  { %6259 = vtanh.f32 %v3764_v57 }
0x3f94   :  { %v6260_v7 = vpop.eup %6259 }
0x3f95   :  { %v8031_v9 = vmul.f32 %v6260_v7, %v3769_v53 }
0x3f97   :  { %v3771_v35 = vpack.c.bf16 %v8031_v9, %v8031_v9 }
0x3f99   :  { %5688 = vmatmul.mubr.msk.bf16.vlgmr.msra.gmra.mxu1 %vm227_vm3, %v3771_v35 }
0x3f9a   :  { %3990 = vmatpush1.bf16.msra.mxu1 %v7762_v38  ;;  %4013 = vmatprep.mubr.bf16.mxu1 %v6580_v15 }
0x3f9b   :  { %3991 = vmatprep.subr.bf16.mxu1 %v7770_v55 }
0x3f9e   :  { %3992 = vmatpush1.bf16.msra.mxu1 %v7775_v49 }
0x3f9f   :  { %3993 = vmatprep.subr.bf16.mxu1 %v7782_v63 }
0x3fa2   :  { %3994 = vmatpush1.bf16.msra.mxu1 %v7787_v56 }
0x3fa3   :  { %3995 = vmatprep.subr.bf16.mxu1 %v7797_v45 }
0x3fa6   :  { %3996 = vmatpush1.bf16.msra.mxu1 %v7802_v10 }
0x3fa7   :  { %4216 = vmatprep.subr.bf16.mxu1 %v7760_v36 }
0x4059   :  { %v3815_v52 = vpop.f32.mrf.mxu1 }
0x405a   :  { %v3816_v19 = vadd.f32 %v3815_v52, %v3774_v37  ;;  %v3875_v37 = vrot.slane %v3674_v26, 4 }
0x405b   :  { %v3817_v24 = vpop.f32.mrf.mxu1 }
0x405c   :  { %v5689_v51 = vmul.f32 -1.442695, %v3816_v19  ;;  %v3818_v14 = vadd.f32 %v3817_v24, %v3775_v33 }
0x405d   :  { %v3819_v59 = vpop.f32.mrf.mxu1 }
0x405e   :  { %6261 = vpow2.f32 %v5689_v51  ;;  %v5690_v25 = vmul.f32 -1.442695, %v3818_v14 }
0x405f   :  { %v3820_v48 = vpop.f32.mrf.mxu1 }
0x4060   :  { %6263 = vpow2.f32 %v5690_v25 }
0x406b   :  { %v6262_v62 = vpop.eup %6261 }
0x406c   :  { %v3828_v17 = vadd.f32 1.0, %v6262_v62 }
0x406d   :  { %v6264_v61 = vpop.eup %6263 }
0x406e   :  { %6265 = vrcp.f32 %v3828_v17  ;;  %v3829_v42 = vadd.f32 1.0, %v6264_v61 }
0x4070   :  { %6267 = vrcp.f32 %v3829_v42 }
0x407b   :  { %v6266_v50 = vpop.eup %6265 }
0x407c   :  { %v3834_v46 = vmul.f32 2.0, %v6266_v50 }
0x407d   :  { %v6268_v58 = vpop.eup %6267 }
0x407e   :  { %v5691_v43 = vadd.f32 -1.0, %v3834_v46  ;;  %v3835_v1 = vmul.f32 2.0, %v6268_v58 }
0x4080   :  { %v3838_v23 = vsel %vm7009_vm15, %v5691_v43, %v6266_v50  ;;  %v5692_v32 = vadd.f32 -1.0, %v3835_v1 }
0x4081   :  { %3842 = vrot.lane.b32.xlu1 %v3838_v23, %s6581_s7  ;;  %v3840_v11 = vmul.f32 %v3838_v23, %v3748_v31 }
0x4082   :  { %v3839_v16 = vsel %vm7017_vm5, %v5692_v32, %v6268_v58 }
0x4083   :  { %3853 = vrot.lane.b32.xlu0 %v3839_v16, %s6581_s7  ;;  %v3851_v18 = vmul.f32 %v3839_v16, %v3759_v29  ;;  %v3874_v29 = vrot.slane %v7857_v4, 4 }
0x40f3   :  { %v3843_v21 = vpop.permute.xlu1 %3842 }
0x40f4   :  { %v3845_v3 = vmul.f32 %v3843_v21, %v3838_v23 }
0x40f5   :  { %v3854_v41 = vpop.permute.xlu0 %3853 }
0x40f6   :  { %v3856_v47 = vmul.f32 %v3854_v41, %v3839_v16  ;;  %3847 = vrot.lane.b32.xlu1 %v3845_v3, %s6582_s14 }
0x40f8   :  { %3858 = vrot.lane.b32.xlu0 %v3856_v47, %s6582_s14 }
0x40fc   :  { %3868 = vrot.lane.b32.xlu0 %v3838_v23, %s6582_s14 }
0x4168   :  { %v3848_v12 = vpop.permute.xlu1 %3847 }
0x4169   :  { %v3850_v54 = vadd.f32 %v3848_v12, %v3840_v11 }
0x416a   :  { %v3859_v44 = vpop.permute.xlu0 %3858 }
0x416b   :  { %3863 = vrot.lane.b32.xlu1 %v3850_v54, %s6583_s19  ;;  %v3861_v27 = vadd.f32 %v3859_v44, %v3851_v18 }
0x416e   :  { %v3869_v57 = vpop.permute.xlu0 %3868 }
0x416f   :  { %v3871_v7 = vsel %vm1007_vm6, %v3869_v57, %v3854_v41  ;;  %v8115_v57 = vld [vmem:[#allocation12 + $0x20] ss:$8 sps:$4 sm:$0xff]  }
0x41dd   :  { %v3864_v28 = vpop.permute.xlu1 %3863 }
0x41de   :  { %v3866_v34 = vsel %vm1007_vm6, %v3864_v28, %v3861_v27  ;;  %v8108_v28 = vld [vmem:[#allocation12 + $0x30] ss:$8 sps:$4 sm:$0xff]  }
0x41df   :  { %6269 = vtanh.f32 %v3866_v34  ;;  %v8112_v34 = vld [vmem:[#allocation12 + $0x24] ss:$8 sps:$4 sm:$0xff]  }
0x41ec   :  { %v6270_v6 = vpop.eup %6269 }
0x41ed   :  { %v8061_v53 = vmul.f32 %v6270_v6, %v3871_v7  ;;  %v8118_v6 = vld [vmem:[#allocation12 + $0x14] ss:$8 sps:$4 sm:$0xff]   ;;  %v8121_v7 = vld [vmem:[#allocation12 + $0x10] ss:$8 sps:$4 sm:$0xff]  }
0x41ef   :  { %v3873_v31 = vpack.c.bf16 %v8061_v53, %v8061_v53  ;;  %v4074_v47 = vrot.slane %v8061_v53, 6 }
0x41f1   :  { %5693 = vmatmul.mubr.msk.bf16.vlgmr.msra.gmra.mxu0 %vm227_vm3, %v3873_v31  ;;  %v4082_v18 = vsel %vm429_vm7, %v8031_v9, %v4074_v47  ;;  %v8124_v31 = vld [vmem:[#allocation12 + $0x4] ss:$8 sps:$4 sm:$0xff]  }
0x41f2   :  { %4115 = vmatpush1.bf16.msra.mxu0 %v7762_v38  ;;  %4138 = vmatprep.mubr.bf16.mxu0 %v6580_v15 }
0x41f3   :  { %4116 = vmatprep.subr.bf16.mxu0 %v7770_v55 }
0x41f6   :  { %4117 = vmatpush1.bf16.msra.mxu0 %v7775_v49 }
0x41f7   :  { %4118 = vmatprep.subr.bf16.mxu0 %v7782_v63 }
0x41fa   :  { %4119 = vmatpush1.bf16.msra.mxu0 %v7787_v56 }
0x41fb   :  { %4120 = vmatprep.subr.bf16.mxu0 %v7797_v45 }
0x41fe   :  { %4121 = vmatpush1.bf16.msra.mxu0 %v7802_v10 }
0x41ff   :  { %4316 = vmatprep.subr.bf16.mxu0 %v7760_v36 }
0x42b1   :  { %v3915_v35 = vpop.f32.mrf.mxu0 }
0x42b2   :  { %v3916_v38 = vadd.f32 %v3915_v35, %v3874_v29  ;;  %v8127_v29 = vld [vmem:[#allocation12] ss:$8 sps:$4 sm:$0xff]   ;;  %v8130_v35 = vld [vmem:[#allocation12 + $0x34] ss:$8 sps:$4 sm:$0xff]  }
0x42b3   :  { %v3917_v55 = vpop.f32.mrf.mxu0 }
0x42b4   :  { %v5694_v52 = vmul.f32 -1.442695, %v3916_v38  ;;  %v3918_v49 = vadd.f32 %v3917_v55, %v3875_v37  ;;  %v3974_v38 = vrot.slane %v7857_v4, 6 }
0x42b5   :  { %v3919_v19 = vpop.f32.mrf.mxu0 }
0x42b6   :  { %6271 = vpow2.f32 %v5694_v52  ;;  %v5695_v63 = vmul.f32 -1.442695, %v3918_v49  ;;  %v3975_v52 = vrot.slane %v3772_v0, 6 }
0x42b7   :  { %v3920_v56 = vpop.f32.mrf.mxu0 }
0x42b8   :  { %6273 = vpow2.f32 %v5695_v63 }
0x42c3   :  { %v6272_v45 = vpop.eup %6271 }
0x42c4   :  { %v3928_v33 = vadd.f32 1.0, %v6272_v45 }
0x42c5   :  { %v6274_v10 = vpop.eup %6273 }
0x42c6   :  { %6275 = vrcp.f32 %v3928_v33  ;;  %v3929_v36 = vadd.f32 1.0, %v6274_v10 }
0x42c8   :  { %6277 = vrcp.f32 %v3929_v36 }
0x42d3   :  { %v6276_v24 = vpop.eup %6275 }
0x42d4   :  { %v3934_v51 = vmul.f32 2.0, %v6276_v24 }
0x42d5   :  { %v6278_v14 = vpop.eup %6277 }
0x42d6   :  { %v5696_v59 = vadd.f32 -1.0, %v3934_v51  ;;  %v3935_v25 = vmul.f32 2.0, %v6278_v14 }
0x42d8   :  { %v3938_v26 = vsel %vm7009_vm15, %v5696_v59, %v6276_v24  ;;  %v5697_v48 = vadd.f32 -1.0, %v3935_v25 }
0x42d9   :  { %3942 = vrot.lane.b32.xlu1 %v3938_v26, %s6581_s7  ;;  %v3940_v46 = vmul.f32 %v3938_v26, %v3850_v54 }
0x42da   :  { %v3939_v62 = vsel %vm7017_vm5, %v5697_v48, %v6278_v14 }
0x42db   :  { %3953 = vrot.lane.b32.xlu0 %v3939_v62, %s6581_s7  ;;  %v3951_v23 = vmul.f32 %v3939_v62, %v3861_v27 }
0x434b   :  { %v3943_v17 = vpop.permute.xlu1 %3942 }
0x434c   :  { %v3945_v61 = vmul.f32 %v3943_v17, %v3938_v26 }
0x434d   :  { %v3954_v42 = vpop.permute.xlu0 %3953 }
0x434e   :  { %v3956_v50 = vmul.f32 %v3954_v42, %v3939_v62  ;;  %3947 = vrot.lane.b32.xlu1 %v3945_v61, %s6582_s14 }
0x4350   :  { %3958 = vrot.lane.b32.xlu0 %v3956_v50, %s6582_s14 }
0x4354   :  { %3968 = vrot.lane.b32.xlu0 %v3938_v26, %s6582_s14 }
0x43c0   :  { %v3948_v58 = vpop.permute.xlu1 %3947 }
0x43c1   :  { %v8087_v43 = vadd.f32 %v3948_v58, %v3940_v46 }
0x43c2   :  { %v3959_v1 = vpop.permute.xlu0 %3958 }
0x43c3   :  { %3963 = vrot.lane.b32.xlu1 %v8087_v43, %s6583_s19  ;;  %v8091_v32 = vadd.f32 %v3959_v1, %v3951_v23 }
0x43c6   :  { %v3969_v3 = vpop.permute.xlu0 %3968 }
0x43c7   :  { %v3971_v11 = vsel %vm1007_vm6, %v3969_v3, %v3954_v42 }
0x4435   :  { %v3964_v16 = vpop.permute.xlu1 %3963 }
0x4436   :  { %v3966_v21 = vsel %vm1007_vm6, %v3964_v16, %v8091_v32 }
0x4437   :  { %6279 = vtanh.f32 %v3966_v21 }
0x4444   :  { %v6280_v41 = vpop.eup %6279 }
0x4445   :  { %v8097_v12 = vmul.f32 %v6280_v41, %v3971_v11 }
0x4447   :  { %v4077_v54 = vrot.slane %v8097_v12, 4  ;;  %v3973_v44 = vpack.c.bf16 %v8097_v12, %v8097_v12  ;;  %v4086_v11 = vrot.slane %v8097_v12, 6  ;;  %v4101_v12 = vrot.slane %v7863_v8, 6 }
0x4449   :  { %v8105_v27 = vsel %vm314_vm4, %v4082_v18, %v4077_v54  ;;  %5698 = vmatmul.mubr.msk.bf16.vlgmr.msra.gmra.mxu1 %vm227_vm3, %v3973_v44  ;;  %v4088_v44 = vrot.slane %v8061_v53, 4  ;;  %v4091_v18 = vrot.slane %v8031_v9, 2 }
0x444a   :  { %4217 = vmatpush1.bf16.msra.mxu1 %v8108_v28  ;;  %4240 = vmatprep.mubr.bf16.mxu1 %v6580_v15 }
0x444b   :  { %4218 = vmatprep.subr.bf16.mxu1 %v8112_v34 }
0x444e   :  { %4219 = vmatpush1.bf16.msra.mxu1 %v8115_v57 }
0x444f   :  { %4220 = vmatprep.subr.bf16.mxu1 %v8118_v6 }
0x4452   :  { %4221 = vmatpush1.bf16.msra.mxu1 %v8121_v7 }
0x4453   :  { %4222 = vmatprep.subr.bf16.mxu1 %v8124_v31 }
0x4456   :  { %4223 = vmatpush1.bf16.msra.mxu1 %v8127_v29 }
0x4457   :  { %4416 = vmatprep.subr.bf16.mxu1 %v8130_v35 }
0x4509   :  { %v4015_v37 = vpop.f32.mrf.mxu1 }
0x450a   :  { %v4016_v55 = vadd.f32 %v4015_v37, %v3974_v38 }
0x450b   :  { %v4017_v49 = vpop.f32.mrf.mxu1 }
0x450c   :  { %v5699_v19 = vmul.f32 -1.442695, %v4016_v55  ;;  %v4018_v63 = vadd.f32 %v4017_v49, %v3975_v52 }
0x450d   :  { %v4019_v56 = vpop.f32.mrf.mxu1 }
0x450e   :  { %6281 = vpow2.f32 %v5699_v19  ;;  %v5700_v45 = vmul.f32 -1.442695, %v4018_v63 }
0x450f   :  { %v4020_v33 = vpop.f32.mrf.mxu1 }
0x4510   :  { %6283 = vpow2.f32 %v5700_v45 }
0x451b   :  { %v6282_v10 = vpop.eup %6281 }
0x451c   :  { %v4028_v36 = vadd.f32 1.0, %v6282_v10 }
0x451d   :  { %v6284_v24 = vpop.eup %6283 }
0x451e   :  { %6285 = vrcp.f32 %v4028_v36  ;;  %v4029_v51 = vadd.f32 1.0, %v6284_v24 }
0x4520   :  { %6287 = vrcp.f32 %v4029_v51 }
0x452b   :  { %v6286_v4 = vpop.eup %6285 }
0x452c   :  { %v4034_v14 = vmul.f32 2.0, %v6286_v4 }
0x452d   :  { %v6288_v59 = vpop.eup %6287 }
0x452e   :  { %v5701_v25 = vadd.f32 -1.0, %v4034_v14  ;;  %v4035_v39 = vmul.f32 2.0, %v6288_v59 }
0x4530   :  { %v4038_v0 = vsel %vm7009_vm15, %v5701_v25, %v6286_v4  ;;  %v5702_v26 = vadd.f32 -1.0, %v4035_v39 }
0x4531   :  { %4042 = vrot.lane.b32.xlu1 %v4038_v0, %s6581_s7  ;;  %v4040_v50 = vmul.f32 %v4038_v0, %v8087_v43 }
0x4532   :  { %v4039_v48 = vsel %vm7017_vm5, %v5702_v26, %v6288_v59 }
0x4533   :  { %4053 = vrot.lane.b32.xlu0 %v4039_v48, %s6581_s7  ;;  %v4051_v23 = vmul.f32 %v4039_v48, %v8091_v32 }
0x45a3   :  { %v4043_v62 = vpop.permute.xlu1 %4042 }
0x45a4   :  { %v4045_v17 = vmul.f32 %v4043_v62, %v4038_v0 }
0x45a5   :  { %v4054_v61 = vpop.permute.xlu0 %4053 }
0x45a6   :  { %v4056_v42 = vmul.f32 %v4054_v61, %v4039_v48  ;;  %4047 = vrot.lane.b32.xlu1 %v4045_v17, %s6582_s14 }
0x45a8   :  { %4058 = vrot.lane.b32.xlu0 %v4056_v42, %s6582_s14 }
0x45ac   :  { %4068 = vrot.lane.b32.xlu0 %v4038_v0, %s6582_s14 }
0x4618   :  { %v4048_v46 = vpop.permute.xlu1 %4047 }
0x4619   :  { %v8146_v58 = vadd.f32 %v4048_v46, %v4040_v50 }
0x461a   :  { %v4059_v1 = vpop.permute.xlu0 %4058 }
0x461b   :  { %4063 = vrot.lane.b32.xlu1 %v8146_v58, %s6583_s19  ;;  %v8151_v16 = vadd.f32 %v4059_v1, %v4051_v23 }
0x461e   :  { %v4069_v41 = vpop.permute.xlu0 %4068 }
0x461f   :  { %v4071_v43 = vsel %vm1007_vm6, %v4069_v41, %v4054_v61 }
0x468d   :  { %v4064_v21 = vpop.permute.xlu1 %4063 }
0x468e   :  { %v4066_v3 = vsel %vm1007_vm6, %v4064_v21, %v8151_v16 }
0x468f   :  { %6289 = vtanh.f32 %v4066_v3 }
0x469c   :  { %v6290_v47 = vpop.eup %6289 }
0x469d   :  { %v4072_v54 = vmul.f32 %v6290_v47, %v4071_v43 }
0x469f   :  { %v4080_v38 = vrot.slane %v4072_v54, 2  ;;  %v4093_v32 = vsel %vm429_vm7, %v4072_v54, %v4086_v11  ;;  %v4099_v37 = vpack.c.bf16 %v4072_v54, %v4072_v54 }
0x46a0   :  { %v4094_v55 = vsel %vm314_vm4, %v4093_v32, %v4088_v44 }
0x46a1   :  { %v4084_v52 = vsel %vm1328_vm8, %v8105_v27, %v4080_v38  ;;  %v4095_v49 = vsel %vm1328_vm8, %v4094_v55, %v4091_v18  ;;  %5703 = vmatmul.mubr.msk.bf16.vlgmr.msra.gmra.mxu0 %vm227_vm3, %v4099_v37  ;;  %v4201_v18 = vrot.slane %v7861_v30, 2 }
0x46a2   :  { %4085 = vst.msk [vmem:[#allocation3 + $0x8] sm:$0xff] %vm1007_vm6, %v4084_v52  ;;  %4317 = vmatpush1.bf16.msra.mxu0 %v8108_v28  ;;  %4340 = vmatprep.mubr.bf16.mxu0 %v6580_v15 }
0x46a3   :  { %4096 = vst.msk [vmem:[#allocation3 + $0x18] sm:$0xff] %vm1341_vm9, %v4095_v49  ;;  %4318 = vmatprep.subr.bf16.mxu0 %v8112_v34 }
0x46a6   :  { %4319 = vmatpush1.bf16.msra.mxu0 %v8115_v57 }
0x46a7   :  { %4320 = vmatprep.subr.bf16.mxu0 %v8118_v6 }
0x46aa   :  { %4321 = vmatpush1.bf16.msra.mxu0 %v8121_v7 }
0x46ab   :  { %4322 = vmatprep.subr.bf16.mxu0 %v8124_v31 }
0x46ae   :  { %4323 = vmatpush1.bf16.msra.mxu0 %v8127_v29 }
0x46af   :  { %4541 = vmatprep.subr.bf16.mxu0 %v8130_v35 }
0x4761   :  { %v4140_v9 = vpop.f32.mrf.mxu0 }
0x4762   :  { %v4141_v53 = vadd.f32 %v4140_v9, %v7861_v30 }
0x4763   :  { %v4142_v27 = vpop.f32.mrf.mxu0 }
0x4764   :  { %v5704_v19 = vmul.f32 -1.442695, %v4141_v53  ;;  %v4143_v63 = vadd.f32 %v4142_v27, %v4101_v12 }
0x4765   :  { %v4144_v56 = vpop.f32.mrf.mxu0 }
0x4766   :  { %6291 = vpow2.f32 %v5704_v19  ;;  %v5705_v45 = vmul.f32 -1.442695, %v4143_v63 }
0x4767   :  { %v4145_v33 = vpop.f32.mrf.mxu0 }
0x4768   :  { %6293 = vpow2.f32 %v5705_v45 }
0x4773   :  { %v6292_v10 = vpop.eup %6291 }
0x4774   :  { %v4153_v36 = vadd.f32 1.0, %v6292_v10 }
0x4775   :  { %v6294_v24 = vpop.eup %6293 }
0x4776   :  { %6295 = vrcp.f32 %v4153_v36  ;;  %v4154_v51 = vadd.f32 1.0, %v6294_v24 }
0x4778   :  { %6297 = vrcp.f32 %v4154_v51 }
0x4783   :  { %v6296_v4 = vpop.eup %6295 }
0x4784   :  { %v4159_v14 = vmul.f32 2.0, %v6296_v4 }
0x4785   :  { %v6298_v59 = vpop.eup %6297 }
0x4786   :  { %v5706_v25 = vadd.f32 -1.0, %v4159_v14  ;;  %v4160_v39 = vmul.f32 2.0, %v6298_v59 }
0x4788   :  { %v4163_v0 = vsel %vm7009_vm15, %v5706_v25, %v6296_v4  ;;  %v5707_v26 = vadd.f32 -1.0, %v4160_v39 }
0x4789   :  { %4167 = vrot.lane.b32.xlu1 %v4163_v0, %s6581_s7  ;;  %v4165_v50 = vmul.f32 %v4163_v0, %v8146_v58 }
0x478a   :  { %v4164_v48 = vsel %vm7017_vm5, %v5707_v26, %v6298_v59 }
0x478b   :  { %4178 = vrot.lane.b32.xlu0 %v4164_v48, %s6581_s7  ;;  %v4176_v21 = vmul.f32 %v4164_v48, %v8151_v16  ;;  %v4199_v16 = vrot.slane %v7863_v8, 2 }
0x478d   :  { %v4202_v37 = vrot.slane %v4199_v16, 2 }
0x47fb   :  { %v4168_v62 = vpop.permute.xlu1 %4167 }
0x47fc   :  { %v4170_v17 = vmul.f32 %v4168_v62, %v4163_v0 }
0x47fd   :  { %v4179_v61 = vpop.permute.xlu0 %4178 }
0x47fe   :  { %v4181_v42 = vmul.f32 %v4179_v61, %v4164_v48  ;;  %4172 = vrot.lane.b32.xlu1 %v4170_v17, %s6582_s14 }
0x4800   :  { %4183 = vrot.lane.b32.xlu0 %v4181_v42, %s6582_s14 }
0x4804   :  { %4193 = vrot.lane.b32.xlu0 %v4163_v0, %s6582_s14 }
0x4870   :  { %v4173_v46 = vpop.permute.xlu1 %4172 }
0x4871   :  { %v4175_v1 = vadd.f32 %v4173_v46, %v4165_v50 }
0x4872   :  { %v4184_v23 = vpop.permute.xlu0 %4183 }
0x4873   :  { %4188 = vrot.lane.b32.xlu1 %v4175_v1, %s6583_s19  ;;  %v4186_v3 = vadd.f32 %v4184_v23, %v4176_v21 }
0x4876   :  { %v4194_v43 = vpop.permute.xlu0 %4193 }
0x4877   :  { %v4196_v54 = vsel %vm1007_vm6, %v4194_v43, %v4179_v61 }
0x48e5   :  { %v4189_v41 = vpop.permute.xlu1 %4188 }
0x48e6   :  { %v4191_v47 = vsel %vm1007_vm6, %v4189_v41, %v4186_v3 }
0x48e7   :  { %6299 = vtanh.f32 %v4191_v47 }
0x48f4   :  { %v6300_v11 = vpop.eup %6299 }
0x48f5   :  { %v8194_v44 = vmul.f32 %v6300_v11, %v4196_v54 }
0x48f7   :  { %v4198_v58 = vpack.c.bf16 %v8194_v44, %v8194_v44 }
0x48f9   :  { %5708 = vmatmul.mubr.msk.bf16.vlgmr.msra.gmra.mxu1 %vm227_vm3, %v4198_v58  ;;  %v4302_v58 = vrot.slane %v4101_v12, 4 }
0x48fa   :  { %4417 = vmatpush1.bf16.msra.mxu1 %v8108_v28  ;;  %4440 = vmatprep.mubr.bf16.mxu1 %v6580_v15 }
0x48fb   :  { %4418 = vmatprep.subr.bf16.mxu1 %v8112_v34 }
0x48fe   :  { %4419 = vmatpush1.bf16.msra.mxu1 %v8115_v57 }
0x48ff   :  { %4420 = vmatprep.subr.bf16.mxu1 %v8118_v6 }
0x4902   :  { %4421 = vmatpush1.bf16.msra.mxu1 %v8121_v7 }
0x4903   :  { %4422 = vmatprep.subr.bf16.mxu1 %v8124_v31 }
0x4906   :  { %4423 = vmatpush1.bf16.msra.mxu1 %v8127_v29 }
0x4907   :  { %4643 = vmatprep.subr.bf16.mxu1 %v8130_v35 }
0x49b9   :  { %v4242_v38 = vpop.f32.mrf.mxu1 }
0x49ba   :  { %v4243_v32 = vadd.f32 %v4242_v38, %v4201_v18 }
0x49bb   :  { %v4244_v55 = vpop.f32.mrf.mxu1 }
0x49bc   :  { %v5709_v52 = vmul.f32 -1.442695, %v4243_v32  ;;  %v4245_v49 = vadd.f32 %v4244_v55, %v4202_v37 }
0x49bd   :  { %v4246_v9 = vpop.f32.mrf.mxu1 }
0x49be   :  { %6301 = vpow2.f32 %v5709_v52  ;;  %v5710_v53 = vmul.f32 -1.442695, %v4245_v49 }
0x49bf   :  { %v4247_v27 = vpop.f32.mrf.mxu1 }
0x49c0   :  { %6303 = vpow2.f32 %v5710_v53 }
0x49cb   :  { %v6302_v19 = vpop.eup %6301 }
0x49cc   :  { %v4255_v63 = vadd.f32 1.0, %v6302_v19 }
0x49cd   :  { %v6304_v56 = vpop.eup %6303 }
0x49ce   :  { %6305 = vrcp.f32 %v4255_v63  ;;  %v4256_v45 = vadd.f32 1.0, %v6304_v56 }
0x49d0   :  { %6307 = vrcp.f32 %v4256_v45 }
0x49db   :  { %v6306_v33 = vpop.eup %6305 }
0x49dc   :  { %v4261_v10 = vmul.f32 2.0, %v6306_v33 }
0x49dd   :  { %v6308_v36 = vpop.eup %6307 }
0x49de   :  { %v5711_v24 = vadd.f32 -1.0, %v4261_v10  ;;  %v4262_v51 = vmul.f32 2.0, %v6308_v36 }
0x49e0   :  { %v4265_v4 = vsel %vm7009_vm15, %v5711_v24, %v6306_v33  ;;  %v5712_v14 = vadd.f32 -1.0, %v4262_v51 }
0x49e1   :  { %4269 = vrot.lane.b32.xlu1 %v4265_v4, %s6581_s7  ;;  %v4267_v48 = vmul.f32 %v4265_v4, %v4175_v1 }
0x49e2   :  { %v4266_v59 = vsel %vm7017_vm5, %v5712_v14, %v6308_v36 }
0x49e3   :  { %4280 = vrot.lane.b32.xlu0 %v4266_v59, %s6581_s7  ;;  %v4278_v42 = vmul.f32 %v4266_v59, %v4186_v3  ;;  %v4301_v3 = vrot.slane %v7861_v30, 4 }
0x4a53   :  { %v4270_v25 = vpop.permute.xlu1 %4269 }
0x4a54   :  { %v4272_v39 = vmul.f32 %v4270_v25, %v4265_v4 }
0x4a55   :  { %v4281_v0 = vpop.permute.xlu0 %4280 }
0x4a56   :  { %v4283_v26 = vmul.f32 %v4281_v0, %v4266_v59  ;;  %4274 = vrot.lane.b32.xlu1 %v4272_v39, %s6582_s14 }
0x4a58   :  { %4285 = vrot.lane.b32.xlu0 %v4283_v26, %s6582_s14 }
0x4a5c   :  { %4295 = vrot.lane.b32.xlu0 %v4265_v4, %s6582_s14 }
0x4ac8   :  { %v4275_v62 = vpop.permute.xlu1 %4274 }
0x4ac9   :  { %v4277_v17 = vadd.f32 %v4275_v62, %v4267_v48 }
0x4aca   :  { %v4286_v61 = vpop.permute.xlu0 %4285 }
0x4acb   :  { %4290 = vrot.lane.b32.xlu1 %v4277_v17, %s6583_s19  ;;  %v4288_v50 = vadd.f32 %v4286_v61, %v4278_v42 }
0x4ace   :  { %v4296_v21 = vpop.permute.xlu0 %4295 }
0x4acf   :  { %v4298_v47 = vsel %vm1007_vm6, %v4296_v21, %v4281_v0 }
0x4b3d   :  { %v4291_v46 = vpop.permute.xlu1 %4290 }
0x4b3e   :  { %v4293_v23 = vsel %vm1007_vm6, %v4291_v46, %v4288_v50 }
0x4b3f   :  { %6309 = vtanh.f32 %v4293_v23 }
0x4b4c   :  { %v6310_v41 = vpop.eup %6309 }
0x4b4d   :  { %v8224_v43 = vmul.f32 %v6310_v41, %v4298_v47 }
0x4b4f   :  { %v4300_v1 = vpack.c.bf16 %v8224_v43, %v8224_v43  ;;  %v4501_v23 = vrot.slane %v8224_v43, 6 }
0x4b51   :  { %5713 = vmatmul.mubr.msk.bf16.vlgmr.msra.gmra.mxu0 %vm227_vm3, %v4300_v1  ;;  %v4509_v47 = vsel %vm429_vm7, %v8194_v44, %v4501_v23 }
0x4b52   :  { %4542 = vmatpush1.bf16.msra.mxu0 %v8108_v28  ;;  %4565 = vmatprep.mubr.bf16.mxu0 %v6580_v15 }
0x4b53   :  { %4543 = vmatprep.subr.bf16.mxu0 %v8112_v34 }
0x4b56   :  { %4544 = vmatpush1.bf16.msra.mxu0 %v8115_v57 }
0x4b57   :  { %4545 = vmatprep.subr.bf16.mxu0 %v8118_v6 }
0x4b5a   :  { %4546 = vmatpush1.bf16.msra.mxu0 %v8121_v7 }
0x4b5b   :  { %4547 = vmatprep.subr.bf16.mxu0 %v8124_v31 }
0x4b5e   :  { %4548 = vmatpush1.bf16.msra.mxu0 %v8127_v29 }
0x4b5f   :  { %4743 = vmatprep.subr.bf16.mxu0 %v8130_v35 }
0x4c11   :  { %v4342_v11 = vpop.f32.mrf.mxu0 }
0x4c12   :  { %v4343_v54 = vadd.f32 %v4342_v11, %v4301_v3  ;;  %v4401_v3 = vrot.slane %v7861_v30, 6 }
0x4c13   :  { %v4344_v18 = vpop.f32.mrf.mxu0 }
0x4c14   :  { %v5714_v38 = vmul.f32 -1.442695, %v4343_v54  ;;  %v4345_v32 = vadd.f32 %v4344_v18, %v4302_v58  ;;  %v4402_v58 = vrot.slane %v4199_v16, 6 }
0x4c15   :  { %v4346_v37 = vpop.f32.mrf.mxu0 }
0x4c16   :  { %6311 = vpow2.f32 %v5714_v38  ;;  %v5715_v55 = vmul.f32 -1.442695, %v4345_v32 }
0x4c17   :  { %v4347_v52 = vpop.f32.mrf.mxu0 }
0x4c18   :  { %6313 = vpow2.f32 %v5715_v55 }
0x4c23   :  { %v6312_v49 = vpop.eup %6311 }
0x4c24   :  { %v4355_v9 = vadd.f32 1.0, %v6312_v49 }
0x4c25   :  { %v6314_v53 = vpop.eup %6313 }
0x4c26   :  { %6315 = vrcp.f32 %v4355_v9  ;;  %v4356_v27 = vadd.f32 1.0, %v6314_v53 }
0x4c28   :  { %6317 = vrcp.f32 %v4356_v27 }
0x4c33   :  { %v6316_v19 = vpop.eup %6315 }
0x4c34   :  { %v4361_v63 = vmul.f32 2.0, %v6316_v19 }
0x4c35   :  { %v6318_v56 = vpop.eup %6317 }
0x4c36   :  { %v5716_v45 = vadd.f32 -1.0, %v4361_v63  ;;  %v4362_v33 = vmul.f32 2.0, %v6318_v56 }
0x4c38   :  { %v4365_v12 = vsel %vm7009_vm15, %v5716_v45, %v6316_v19  ;;  %v5717_v10 = vadd.f32 -1.0, %v4362_v33 }
0x4c39   :  { %4369 = vrot.lane.b32.xlu1 %v4365_v12, %s6581_s7  ;;  %v4367_v59 = vmul.f32 %v4365_v12, %v4277_v17 }
0x4c3a   :  { %v4366_v36 = vsel %vm7017_vm5, %v5717_v10, %v6318_v56 }
0x4c3b   :  { %4380 = vrot.lane.b32.xlu0 %v4366_v36, %s6581_s7  ;;  %v4378_v26 = vmul.f32 %v4366_v36, %v4288_v50 }
0x4cab   :  { %v4370_v24 = vpop.permute.xlu1 %4369 }
0x4cac   :  { %v4372_v51 = vmul.f32 %v4370_v24, %v4365_v12 }
0x4cad   :  { %v4381_v4 = vpop.permute.xlu0 %4380 }
0x4cae   :  { %v4383_v14 = vmul.f32 %v4381_v4, %v4366_v36  ;;  %4374 = vrot.lane.b32.xlu1 %v4372_v51, %s6582_s14 }
0x4cb0   :  { %4385 = vrot.lane.b32.xlu0 %v4383_v14, %s6582_s14 }
0x4cb4   :  { %4395 = vrot.lane.b32.xlu0 %v4365_v12, %s6582_s14 }
0x4d20   :  { %v4375_v25 = vpop.permute.xlu1 %4374 }
0x4d21   :  { %v4377_v39 = vadd.f32 %v4375_v25, %v4367_v59 }
0x4d22   :  { %v4386_v0 = vpop.permute.xlu0 %4385 }
0x4d23   :  { %4390 = vrot.lane.b32.xlu1 %v4377_v39, %s6583_s19  ;;  %v8251_v48 = vadd.f32 %v4386_v0, %v4378_v26 }
0x4d26   :  { %v4396_v42 = vpop.permute.xlu0 %4395 }
0x4d27   :  { %v4398_v21 = vsel %vm1007_vm6, %v4396_v42, %v4381_v4 }
0x4d95   :  { %v4391_v62 = vpop.permute.xlu1 %4390 }
0x4d96   :  { %v4393_v61 = vsel %vm1007_vm6, %v4391_v62, %v8251_v48 }
0x4d97   :  { %6319 = vtanh.f32 %v4393_v61 }
0x4da4   :  { %v6320_v46 = vpop.eup %6319 }
0x4da5   :  { %v8257_v17 = vmul.f32 %v6320_v46, %v4398_v21  ;;  %v4515_v21 = vrot.slane %v8224_v43, 4 }
0x4da7   :  { %v4504_v41 = vrot.slane %v8257_v17, 4  ;;  %v4400_v50 = vpack.c.bf16 %v8257_v17, %v8257_v17  ;;  %v4513_v46 = vrot.slane %v8257_v17, 6  ;;  %v4528_v17 = vrot.slane %v7859_v5, 6 }
0x4da9   :  { %v8265_v1 = vsel %vm314_vm4, %v4509_v47, %v4504_v41  ;;  %5718 = vmatmul.mubr.msk.bf16.vlgmr.msra.gmra.mxu1 %vm227_vm3, %v4400_v50  ;;  %v4518_v41 = vrot.slane %v8194_v44, 2 }
0x4daa   :  { %4644 = vmatpush1.bf16.msra.mxu1 %v8108_v28  ;;  %4667 = vmatprep.mubr.bf16.mxu1 %v6580_v15 }
0x4dab   :  { %4645 = vmatprep.subr.bf16.mxu1 %v8112_v34 }
0x4dae   :  { %4646 = vmatpush1.bf16.msra.mxu1 %v8115_v57 }
0x4daf   :  { %4647 = vmatprep.subr.bf16.mxu1 %v8118_v6 }
0x4db2   :  { %4648 = vmatpush1.bf16.msra.mxu1 %v8121_v7 }
0x4db3   :  { %4649 = vmatprep.subr.bf16.mxu1 %v8124_v31 }
0x4db6   :  { %4650 = vmatpush1.bf16.msra.mxu1 %v8127_v29 }
0x4db7   :  { %4843 = vmatprep.subr.bf16.mxu1 %v8130_v35 }
0x4e69   :  { %v4442_v11 = vpop.f32.mrf.mxu1 }
0x4e6a   :  { %v4443_v54 = vadd.f32 %v4442_v11, %v4401_v3 }
0x4e6b   :  { %v4444_v18 = vpop.f32.mrf.mxu1 }
0x4e6c   :  { %v5719_v38 = vmul.f32 -1.442695, %v4443_v54  ;;  %v4445_v32 = vadd.f32 %v4444_v18, %v4402_v58 }
0x4e6d   :  { %v4446_v37 = vpop.f32.mrf.mxu1 }
0x4e6e   :  { %6321 = vpow2.f32 %v5719_v38  ;;  %v5720_v55 = vmul.f32 -1.442695, %v4445_v32 }
0x4e6f   :  { %v4447_v52 = vpop.f32.mrf.mxu1 }
0x4e70   :  { %6323 = vpow2.f32 %v5720_v55 }
0x4e7b   :  { %v6322_v49 = vpop.eup %6321 }
0x4e7c   :  { %v4455_v9 = vadd.f32 1.0, %v6322_v49 }
0x4e7d   :  { %v6324_v53 = vpop.eup %6323 }
0x4e7e   :  { %6325 = vrcp.f32 %v4455_v9  ;;  %v4456_v27 = vadd.f32 1.0, %v6324_v53 }
0x4e80   :  { %6327 = vrcp.f32 %v4456_v27 }
0x4e8b   :  { %v6326_v30 = vpop.eup %6325 }
0x4e8c   :  { %v4461_v19 = vmul.f32 2.0, %v6326_v30 }
0x4e8d   :  { %v6328_v63 = vpop.eup %6327 }
0x4e8e   :  { %v5721_v56 = vadd.f32 -1.0, %v4461_v19  ;;  %v4462_v8 = vmul.f32 2.0, %v6328_v63 }
0x4e90   :  { %v4465_v16 = vsel %vm7009_vm15, %v5721_v56, %v6326_v30  ;;  %v5722_v45 = vadd.f32 -1.0, %v4462_v8 }
0x4e91   :  { %4469 = vrot.lane.b32.xlu1 %v4465_v16, %s6581_s7  ;;  %v4467_v51 = vmul.f32 %v4465_v16, %v4377_v39 }
0x4e92   :  { %v4466_v33 = vsel %vm7017_vm5, %v5722_v45, %v6328_v63 }
0x4e93   :  { %4480 = vrot.lane.b32.xlu0 %v4466_v33, %s6581_s7  ;;  %v4478_v25 = vmul.f32 %v4466_v33, %v8251_v48 }
0x4f03   :  { %v4470_v12 = vpop.permute.xlu1 %4469 }
0x4f04   :  { %v4472_v10 = vmul.f32 %v4470_v12, %v4465_v16 }
0x4f05   :  { %v4481_v36 = vpop.permute.xlu0 %4480 }
0x4f06   :  { %v4483_v24 = vmul.f32 %v4481_v36, %v4466_v33  ;;  %4474 = vrot.lane.b32.xlu1 %v4472_v10, %s6582_s14 }
0x4f08   :  { %4485 = vrot.lane.b32.xlu0 %v4483_v24, %s6582_s14 }
0x4f0c   :  { %4495 = vrot.lane.b32.xlu0 %v4465_v16, %s6582_s14 }
0x4f78   :  { %v4475_v4 = vpop.permute.xlu1 %4474 }
0x4f79   :  { %v8289_v14 = vadd.f32 %v4475_v4, %v4467_v51 }
0x4f7a   :  { %v4486_v59 = vpop.permute.xlu0 %4485 }
0x4f7b   :  { %4490 = vrot.lane.b32.xlu1 %v8289_v14, %s6583_s19  ;;  %v8294_v0 = vadd.f32 %v4486_v59, %v4478_v25 }
0x4f7e   :  { %v4496_v61 = vpop.permute.xlu0 %4495 }
0x4f7f   :  { %v4498_v39 = vsel %vm1007_vm6, %v4496_v61, %v4481_v36 }
0x4fed   :  { %v4491_v26 = vpop.permute.xlu1 %4490 }
0x4fee   :  { %v4493_v62 = vsel %vm1007_vm6, %v4491_v26, %v8294_v0 }
0x4fef   :  { %6329 = vtanh.f32 %v4493_v62 }
0x4ffc   :  { %v6330_v42 = vpop.eup %6329 }
0x4ffd   :  { %v4499_v23 = vmul.f32 %v6330_v42, %v4498_v39 }
0x4fff   :  { %v4507_v50 = vrot.slane %v4499_v23, 2  ;;  %v4520_v48 = vsel %vm429_vm7, %v4499_v23, %v4513_v46  ;;  %v4526_v47 = vpack.c.bf16 %v4499_v23, %v4499_v23  ;;  %v4628_v23 = vrot.slane %v7865_v22, 2 }
0x5000   :  { %v4521_v3 = vsel %vm314_vm4, %v4520_v48, %v4515_v21 }
0x5001   :  { %v4511_v11 = vsel %vm1328_vm8, %v8265_v1, %v4507_v50  ;;  %v4522_v54 = vsel %vm1328_vm8, %v4521_v3, %v4518_v41  ;;  %5723 = vmatmul.mubr.msk.bf16.vlgmr.msra.gmra.mxu0 %vm227_vm3, %v4526_v47 }
0x5002   :  { %4512 = vst.msk [vmem:[#allocation3 + $0x10] sm:$0xff] %vm1007_vm6, %v4511_v11  ;;  %4744 = vmatpush1.bf16.msra.mxu0 %v8108_v28  ;;  %4767 = vmatprep.mubr.bf16.mxu0 %v6580_v15 }
0x5003   :  { %4523 = vst.msk [vmem:[#allocation3 + $0x10] sm:$0xff] %vm1341_vm9, %v4522_v54  ;;  %4745 = vmatprep.subr.bf16.mxu0 %v8112_v34 }
0x5006   :  { %4746 = vmatpush1.bf16.msra.mxu0 %v8115_v57 }
0x5007   :  { %4747 = vmatprep.subr.bf16.mxu0 %v8118_v6 }
0x500a   :  { %4748 = vmatpush1.bf16.msra.mxu0 %v8121_v7 }
0x500b   :  { %4749 = vmatprep.subr.bf16.mxu0 %v8124_v31 }
0x500e   :  { %4750 = vmatpush1.bf16.msra.mxu0 %v8127_v29 }
0x500f   :  { %4968 = vmatprep.subr.bf16.mxu0 %v8130_v35 }
0x50c1   :  { %v4567_v44 = vpop.f32.mrf.mxu0 }
0x50c2   :  { %v4568_v43 = vadd.f32 %v4567_v44, %v7865_v22 }
0x50c3   :  { %v4569_v1 = vpop.f32.mrf.mxu0 }
0x50c4   :  { %v5724_v58 = vmul.f32 -1.442695, %v4568_v43  ;;  %v4570_v18 = vadd.f32 %v4569_v1, %v4528_v17 }
0x50c5   :  { %v4571_v38 = vpop.f32.mrf.mxu0 }
0x50c6   :  { %6331 = vpow2.f32 %v5724_v58  ;;  %v5725_v32 = vmul.f32 -1.442695, %v4570_v18 }
0x50c7   :  { %v4572_v37 = vpop.f32.mrf.mxu0 }
0x50c8   :  { %6333 = vpow2.f32 %v5725_v32 }
0x50d3   :  { %v6332_v55 = vpop.eup %6331 }
0x50d4   :  { %v4580_v52 = vadd.f32 1.0, %v6332_v55 }
0x50d5   :  { %v6334_v49 = vpop.eup %6333 }
0x50d6   :  { %6335 = vrcp.f32 %v4580_v52  ;;  %v4581_v9 = vadd.f32 1.0, %v6334_v49 }
0x50d8   :  { %6337 = vrcp.f32 %v4581_v9 }
0x50e3   :  { %v6336_v53 = vpop.eup %6335 }
0x50e4   :  { %v4586_v27 = vmul.f32 2.0, %v6336_v53 }
0x50e5   :  { %v6338_v30 = vpop.eup %6337 }
0x50e6   :  { %v5726_v19 = vadd.f32 -1.0, %v4586_v27  ;;  %v4587_v63 = vmul.f32 2.0, %v6338_v30 }
0x50e8   :  { %v4590_v56 = vsel %vm7009_vm15, %v5726_v19, %v6336_v53  ;;  %v5727_v8 = vadd.f32 -1.0, %v4587_v63 }
0x50e9   :  { %4594 = vrot.lane.b32.xlu1 %v4590_v56, %s6581_s7  ;;  %v4592_v36 = vmul.f32 %v4590_v56, %v8289_v14 }
0x50ea   :  { %v4591_v16 = vsel %vm7017_vm5, %v5727_v8, %v6338_v30 }
0x50eb   :  { %4605 = vrot.lane.b32.xlu0 %v4591_v16, %s6581_s7  ;;  %v4603_v59 = vmul.f32 %v4591_v16, %v8294_v0  ;;  %v4626_v0 = vrot.slane %v7859_v5, 2 }
0x50ed   :  { %v4629_v50 = vrot.slane %v4626_v0, 2 }
0x515b   :  { %v4595_v45 = vpop.permute.xlu1 %4594 }
0x515c   :  { %v4597_v33 = vmul.f32 %v4595_v45, %v4590_v56 }
0x515d   :  { %v4606_v12 = vpop.permute.xlu0 %4605 }
0x515e   :  { %v4608_v10 = vmul.f32 %v4606_v12, %v4591_v16  ;;  %4599 = vrot.lane.b32.xlu1 %v4597_v33, %s6582_s14 }
0x5160   :  { %4610 = vrot.lane.b32.xlu0 %v4608_v10, %s6582_s14 }
0x5164   :  { %4620 = vrot.lane.b32.xlu0 %v4590_v56, %s6582_s14 }
0x51d0   :  { %v4600_v24 = vpop.permute.xlu1 %4599 }
0x51d1   :  { %v4602_v51 = vadd.f32 %v4600_v24, %v4592_v36 }
0x51d2   :  { %v4611_v4 = vpop.permute.xlu0 %4610 }
0x51d3   :  { %4615 = vrot.lane.b32.xlu1 %v4602_v51, %s6583_s19  ;;  %v4613_v25 = vadd.f32 %v4611_v4, %v4603_v59 }
0x51d6   :  { %v4621_v61 = vpop.permute.xlu0 %4620 }
0x51d7   :  { %v4623_v39 = vsel %vm1007_vm6, %v4621_v61, %v4606_v12 }
0x5245   :  { %v4616_v26 = vpop.permute.xlu1 %4615 }
0x5246   :  { %v4618_v62 = vsel %vm1007_vm6, %v4616_v26, %v4613_v25 }
0x5247   :  { %6339 = vtanh.f32 %v4618_v62 }
0x5254   :  { %v6340_v42 = vpop.eup %6339 }
0x5255   :  { %v8337_v46 = vmul.f32 %v6340_v42, %v4623_v39  ;;  %v4729_v42 = vrot.slane %v4528_v17, 4 }
0x5257   :  { %v4625_v14 = vpack.c.bf16 %v8337_v46, %v8337_v46 }
0x5259   :  { %5728 = vmatmul.mubr.msk.bf16.vlgmr.msra.gmra.mxu1 %vm227_vm3, %v4625_v14 }
0x525a   :  { %4844 = vmatpush1.bf16.msra.mxu1 %v8108_v28  ;;  %4867 = vmatprep.mubr.bf16.mxu1 %v6580_v15 }
0x525b   :  { %4845 = vmatprep.subr.bf16.mxu1 %v8112_v34 }
0x525e   :  { %4846 = vmatpush1.bf16.msra.mxu1 %v8115_v57 }
0x525f   :  { %4847 = vmatprep.subr.bf16.mxu1 %v8118_v6 }
0x5262   :  { %4848 = vmatpush1.bf16.msra.mxu1 %v8121_v7 }
0x5263   :  { %4849 = vmatprep.subr.bf16.mxu1 %v8124_v31 }
0x5266   :  { %4850 = vmatpush1.bf16.msra.mxu1 %v8127_v29 }
0x5267   :  { %5070 = vmatprep.subr.bf16.mxu1 %v8130_v35 }
0x5319   :  { %v4669_v21 = vpop.f32.mrf.mxu1 }
0x531a   :  { %v4670_v41 = vadd.f32 %v4669_v21, %v4628_v23 }
0x531b   :  { %v4671_v48 = vpop.f32.mrf.mxu1 }
0x531c   :  { %v5729_v47 = vmul.f32 -1.442695, %v4670_v41  ;;  %v4672_v3 = vadd.f32 %v4671_v48, %v4629_v50 }
0x531d   :  { %v4673_v11 = vpop.f32.mrf.mxu1 }
0x531e   :  { %6341 = vpow2.f32 %v5729_v47  ;;  %v5730_v54 = vmul.f32 -1.442695, %v4672_v3 }
0x531f   :  { %v4674_v44 = vpop.f32.mrf.mxu1 }
0x5320   :  { %6343 = vpow2.f32 %v5730_v54 }
0x532b   :  { %v6342_v43 = vpop.eup %6341 }
0x532c   :  { %v4682_v1 = vadd.f32 1.0, %v6342_v43 }
0x532d   :  { %v6344_v58 = vpop.eup %6343 }
0x532e   :  { %6345 = vrcp.f32 %v4682_v1  ;;  %v4683_v18 = vadd.f32 1.0, %v6344_v58 }
0x5330   :  { %6347 = vrcp.f32 %v4683_v18 }
0x533b   :  { %v6346_v38 = vpop.eup %6345 }
0x533c   :  { %v4688_v32 = vmul.f32 2.0, %v6346_v38 }
0x533d   :  { %v6348_v37 = vpop.eup %6347 }
0x533e   :  { %v5731_v55 = vadd.f32 -1.0, %v4688_v32  ;;  %v4689_v52 = vmul.f32 2.0, %v6348_v37 }
0x5340   :  { %v4692_v49 = vsel %vm7009_vm15, %v5731_v55, %v6346_v38  ;;  %v5732_v9 = vadd.f32 -1.0, %v4689_v52 }
0x5341   :  { %4696 = vrot.lane.b32.xlu1 %v4692_v49, %s6581_s7  ;;  %v4694_v56 = vmul.f32 %v4692_v49, %v4602_v51 }
0x5342   :  { %v4693_v53 = vsel %vm7017_vm5, %v5732_v9, %v6348_v37 }
0x5343   :  { %4707 = vrot.lane.b32.xlu0 %v4693_v53, %s6581_s7  ;;  %v4705_v33 = vmul.f32 %v4693_v53, %v4613_v25  ;;  %v4728_v25 = vrot.slane %v7865_v22, 4 }
0x53b3   :  { %v4697_v27 = vpop.permute.xlu1 %4696 }
0x53b4   :  { %v4699_v30 = vmul.f32 %v4697_v27, %v4692_v49 }
0x53b5   :  { %v4708_v19 = vpop.permute.xlu0 %4707 }
0x53b6   :  { %v4710_v63 = vmul.f32 %v4708_v19, %v4693_v53  ;;  %4701 = vrot.lane.b32.xlu1 %v4699_v30, %s6582_s14 }
0x53b8   :  { %4712 = vrot.lane.b32.xlu0 %v4710_v63, %s6582_s14 }
0x53bc   :  { %4722 = vrot.lane.b32.xlu0 %v4692_v49, %s6582_s14 }
0x5428   :  { %v4702_v8 = vpop.permute.xlu1 %4701 }
0x5429   :  { %v4704_v16 = vadd.f32 %v4702_v8, %v4694_v56 }
0x542a   :  { %v4713_v45 = vpop.permute.xlu0 %4712 }
0x542b   :  { %4717 = vrot.lane.b32.xlu1 %v4704_v16, %s6583_s19  ;;  %v4715_v12 = vadd.f32 %v4713_v45, %v4705_v33 }
0x542e   :  { %v4723_v24 = vpop.permute.xlu0 %4722 }
0x542f   :  { %v4725_v59 = vsel %vm1007_vm6, %v4723_v24, %v4708_v19 }
0x549d   :  { %v4718_v10 = vpop.permute.xlu1 %4717 }
0x549e   :  { %v4720_v36 = vsel %vm1007_vm6, %v4718_v10, %v4715_v12 }
0x549f   :  { %6349 = vtanh.f32 %v4720_v36 }
0x54ac   :  { %v6350_v4 = vpop.eup %6349 }
0x54ad   :  { %v8367_v26 = vmul.f32 %v6350_v4, %v4725_v59  ;;  %v4828_v59 = vrot.slane %v7865_v22, 6 }
0x54af   :  { %v4727_v51 = vpack.c.bf16 %v8367_v26, %v8367_v26  ;;  %v4928_v33 = vrot.slane %v8367_v26, 6 }
0x54b1   :  { %5733 = vmatmul.mubr.msk.bf16.vlgmr.msra.gmra.mxu0 %vm227_vm3, %v4727_v51  ;;  %v4936_v24 = vsel %vm429_vm7, %v8337_v46, %v4928_v33  ;;  %v6439_v33 = vld [vmem:[#allocation12 + $0x10] ss:$8 sps:$4 sm:$0xff]  }
0x54b2   :  { %4969 = vmatpush1.bf16.msra.mxu0 %v8108_v28  ;;  %4992 = vmatprep.mubr.bf16.mxu0 %v6580_v15 }
0x54b3   :  { %4970 = vmatprep.subr.bf16.mxu0 %v8112_v34 }
0x54b6   :  { %4971 = vmatpush1.bf16.msra.mxu0 %v8115_v57 }
0x54b7   :  { %4972 = vmatprep.subr.bf16.mxu0 %v8118_v6 }
0x54ba   :  { %4973 = vmatpush1.bf16.msra.mxu0 %v8121_v7 }
0x54bb   :  { %4974 = vmatprep.subr.bf16.mxu0 %v8124_v31 }
0x54be   :  { %4975 = vmatpush1.bf16.msra.mxu0 %v8127_v29 }
0x54bf   :  { %5170 = vmatprep.subr.bf16.mxu0 %v8130_v35 }
0x5571   :  { %v4769_v62 = vpop.f32.mrf.mxu0 }
0x5572   :  { %v4770_v61 = vadd.f32 %v4769_v62, %v4728_v25  ;;  %v4829_v25 = vrot.slane %v4626_v0, 6 }
0x5573   :  { %v4771_v39 = vpop.f32.mrf.mxu0 }
0x5574   :  { %v5734_v14 = vmul.f32 -1.442695, %v4770_v61  ;;  %v4772_v23 = vadd.f32 %v4771_v39, %v4729_v42 }
0x5575   :  { %v4773_v21 = vpop.f32.mrf.mxu0 }
0x5576   :  { %6351 = vpow2.f32 %v5734_v14  ;;  %v5735_v41 = vmul.f32 -1.442695, %v4772_v23 }
0x5577   :  { %v4774_v50 = vpop.f32.mrf.mxu0 }
0x5578   :  { %6353 = vpow2.f32 %v5735_v41 }
0x5583   :  { %v6352_v48 = vpop.eup %6351 }
0x5584   :  { %v4782_v47 = vadd.f32 1.0, %v6352_v48 }
0x5585   :  { %v6354_v3 = vpop.eup %6353 }
0x5586   :  { %6355 = vrcp.f32 %v4782_v47  ;;  %v4783_v11 = vadd.f32 1.0, %v6354_v3 }
0x5588   :  { %6357 = vrcp.f32 %v4783_v11 }
0x5593   :  { %v6356_v54 = vpop.eup %6355 }
0x5594   :  { %v4788_v44 = vmul.f32 2.0, %v6356_v54 }
0x5595   :  { %v6358_v43 = vpop.eup %6357 }
0x5596   :  { %v5736_v1 = vadd.f32 -1.0, %v4788_v44  ;;  %v4789_v58 = vmul.f32 2.0, %v6358_v43 }
0x5598   :  { %v4792_v17 = vsel %vm7009_vm15, %v5736_v1, %v6356_v54  ;;  %v5737_v18 = vadd.f32 -1.0, %v4789_v58 }
0x5599   :  { %4796 = vrot.lane.b32.xlu1 %v4792_v17, %s6581_s7  ;;  %v4794_v49 = vmul.f32 %v4792_v17, %v4704_v16 }
0x559a   :  { %v4793_v38 = vsel %vm7017_vm5, %v5737_v18, %v6358_v43 }
0x559b   :  { %4807 = vrot.lane.b32.xlu0 %v4793_v38, %s6581_s7  ;;  %v4805_v30 = vmul.f32 %v4793_v38, %v4715_v12 }
0x560b   :  { %v4797_v32 = vpop.permute.xlu1 %4796 }
0x560c   :  { %v4799_v37 = vmul.f32 %v4797_v32, %v4792_v17 }
0x560d   :  { %v4808_v55 = vpop.permute.xlu0 %4807 }
0x560e   :  { %v4810_v52 = vmul.f32 %v4808_v55, %v4793_v38  ;;  %4801 = vrot.lane.b32.xlu1 %v4799_v37, %s6582_s14 }
0x5610   :  { %4812 = vrot.lane.b32.xlu0 %v4810_v52, %s6582_s14 }
0x5614   :  { %4822 = vrot.lane.b32.xlu0 %v4792_v17, %s6582_s14 }
0x5680   :  { %v4802_v9 = vpop.permute.xlu1 %4801 }
0x5681   :  { %v4804_v53 = vadd.f32 %v4802_v9, %v4794_v49  ;;  %v4942_v49 = vrot.slane %v8367_v26, 4  ;;  %v4945_v9 = vrot.slane %v8337_v46, 2  ;;  %v8453_v26 = vld [vmem:[#allocation12 + $0x30] ss:$8 sps:$4 sm:$0xff]   ;;  %v8457_v46 = vld [vmem:[#allocation12 + $0x24] ss:$8 sps:$4 sm:$0xff]  }
0x5682   :  { %v4813_v27 = vpop.permute.xlu0 %4812 }
0x5683   :  { %4817 = vrot.lane.b32.xlu1 %v4804_v53, %s6583_s19  ;;  %v8394_v19 = vadd.f32 %v4813_v27, %v4805_v30 }
0x5686   :  { %v4823_v8 = vpop.permute.xlu0 %4822 }
0x5687   :  { %v4825_v10 = vsel %vm1007_vm6, %v4823_v8, %v4808_v55  ;;  %v8460_v8 = vld [vmem:[#allocation12 + $0x20] ss:$8 sps:$4 sm:$0xff]  }
0x56f5   :  { %v4818_v63 = vpop.permute.xlu1 %4817 }
0x56f6   :  { %v4820_v56 = vsel %vm1007_vm6, %v4818_v63, %v8394_v19 }
0x56f7   :  { %6359 = vtanh.f32 %v4820_v56 }
0x5704   :  { %v6360_v45 = vpop.eup %6359 }
0x5705   :  { %v8400_v16 = vmul.f32 %v6360_v45, %v4825_v10  ;;  %v6438_v45 = vld [vmem:[#allocation12 + $0x14] ss:$8 sps:$4 sm:$0xff]   ;;  %v6440_v10 = vld [vmem:[#allocation12 + $0x4] ss:$8 sps:$4 sm:$0xff]  }
0x5707   :  { %v4931_v36 = vrot.slane %v8400_v16, 4  ;;  %v4827_v12 = vpack.c.bf16 %v8400_v16, %v8400_v16  ;;  %v4940_v55 = vrot.slane %v8400_v16, 6  ;;  %v6441_v16 = vld [vmem:[#allocation12] ss:$8 sps:$4 sm:$0xff]  }
0x5709   :  { %v8408_v4 = vsel %vm314_vm4, %v4936_v24, %v4931_v36  ;;  %5738 = vmatmul.mubr.msk.bf16.vlgmr.msra.gmra.mxu1 %vm227_vm3, %v4827_v12  ;;  %v4955_v24 = vrot.slane %v7855_v40, 6 }
0x570a   :  { %5071 = vmatpush1.bf16.msra.mxu1 %v8108_v28  ;;  %5094 = vmatprep.mubr.bf16.mxu1 %v6580_v15 }
0x570b   :  { %5072 = vmatprep.subr.bf16.mxu1 %v8112_v34 }
0x570e   :  { %5073 = vmatpush1.bf16.msra.mxu1 %v8115_v57 }
0x570f   :  { %5074 = vmatprep.subr.bf16.mxu1 %v8118_v6 }
0x5712   :  { %5075 = vmatpush1.bf16.msra.mxu1 %v8121_v7 }
0x5713   :  { %5076 = vmatprep.subr.bf16.mxu1 %v8124_v31 }
0x5716   :  { %5077 = vmatpush1.bf16.msra.mxu1 %v8127_v29 }
0x5717   :  { %5270 = vmatprep.subr.bf16.mxu1 %v8130_v35 }
0x57c9   :  { %v4869_v51 = vpop.f32.mrf.mxu1 }
0x57ca   :  { %v4870_v28 = vadd.f32 %v4869_v51, %v4828_v59 }
0x57cb   :  { %v4871_v34 = vpop.f32.mrf.mxu1 }
0x57cc   :  { %v5739_v62 = vmul.f32 -1.442695, %v4870_v28  ;;  %v4872_v57 = vadd.f32 %v4871_v34, %v4829_v25 }
0x57cd   :  { %v4873_v61 = vpop.f32.mrf.mxu1 }
0x57ce   :  { %6361 = vpow2.f32 %v5739_v62  ;;  %v5740_v6 = vmul.f32 -1.442695, %v4872_v57 }
0x57cf   :  { %v4874_v7 = vpop.f32.mrf.mxu1 }
0x57d0   :  { %6363 = vpow2.f32 %v5740_v6 }
0x57db   :  { %v6362_v31 = vpop.eup %6361 }
0x57dc   :  { %v4882_v42 = vadd.f32 1.0, %v6362_v31 }
0x57dd   :  { %v6364_v29 = vpop.eup %6363 }
0x57de   :  { %6365 = vrcp.f32 %v4882_v42  ;;  %v4883_v35 = vadd.f32 1.0, %v6364_v29 }
0x57e0   :  { %6367 = vrcp.f32 %v4883_v35 }
0x57eb   :  { %v6366_v22 = vpop.eup %6365 }
0x57ec   :  { %v4888_v39 = vmul.f32 2.0, %v6366_v22 }
0x57ed   :  { %v6368_v14 = vpop.eup %6367 }
0x57ee   :  { %v5741_v23 = vadd.f32 -1.0, %v4888_v39  ;;  %v4889_v5 = vmul.f32 2.0, %v6368_v14 }
0x57f0   :  { %v4892_v0 = vsel %vm7009_vm15, %v5741_v23, %v6366_v22  ;;  %v5742_v21 = vadd.f32 -1.0, %v4889_v5 }
0x57f1   :  { %4896 = vrot.lane.b32.xlu1 %v4892_v0, %s6581_s7  ;;  %v4894_v11 = vmul.f32 %v4892_v0, %v4804_v53 }
0x57f2   :  { %v4893_v41 = vsel %vm7017_vm5, %v5742_v21, %v6368_v14 }
0x57f3   :  { %4907 = vrot.lane.b32.xlu0 %v4893_v41, %s6581_s7  ;;  %v4905_v1 = vmul.f32 %v4893_v41, %v8394_v19 }
0x5863   :  { %v4897_v50 = vpop.permute.xlu1 %4896 }
0x5864   :  { %v4899_v48 = vmul.f32 %v4897_v50, %v4892_v0 }
0x5865   :  { %v4908_v47 = vpop.permute.xlu0 %4907 }
0x5866   :  { %v4910_v3 = vmul.f32 %v4908_v47, %v4893_v41  ;;  %4901 = vrot.lane.b32.xlu1 %v4899_v48, %s6582_s14 }
0x5868   :  { %4912 = vrot.lane.b32.xlu0 %v4910_v3, %s6582_s14 }
0x586c   :  { %4922 = vrot.lane.b32.xlu0 %v4892_v0, %s6582_s14 }
0x58d8   :  { %v4902_v54 = vpop.permute.xlu1 %4901 }
0x58d9   :  { %v8432_v44 = vadd.f32 %v4902_v54, %v4894_v11 }
0x58da   :  { %v4913_v43 = vpop.permute.xlu0 %4912 }
0x58db   :  { %4917 = vrot.lane.b32.xlu1 %v8432_v44, %s6583_s19  ;;  %v8437_v58 = vadd.f32 %v4913_v43, %v4905_v1 }
0x58de   :  { %v4923_v38 = vpop.permute.xlu0 %4922 }
0x58df   :  { %v4925_v37 = vsel %vm1007_vm6, %v4923_v38, %v4908_v47 }
0x594d   :  { %v4918_v17 = vpop.permute.xlu1 %4917 }
0x594e   :  { %v4920_v18 = vsel %vm1007_vm6, %v4918_v17, %v8437_v58 }
0x594f   :  { %6369 = vtanh.f32 %v4920_v18 }
0x595c   :  { %v6370_v32 = vpop.eup %6369 }
0x595d   :  { %v4926_v52 = vmul.f32 %v6370_v32, %v4925_v37  ;;  %v5055_v32 = vrot.slane %v7869_v20, 2 }
0x595f   :  { %v4934_v53 = vrot.slane %v4926_v52, 2  ;;  %v4947_v27 = vsel %vm429_vm7, %v4926_v52, %v4940_v55  ;;  %v4953_v30 = vpack.c.bf16 %v4926_v52, %v4926_v52 }
0x5960   :  { %v4948_v19 = vsel %vm314_vm4, %v4947_v27, %v4942_v49 }
0x5961   :  { %v4938_v63 = vsel %vm1328_vm8, %v8408_v4, %v4934_v53  ;;  %v4949_v56 = vsel %vm1328_vm8, %v4948_v19, %v4945_v9  ;;  %5743 = vmatmul.mubr.msk.bf16.vlgmr.msra.gmra.mxu0 %vm227_vm3, %v4953_v30 }
0x5962   :  { %4939 = vst.msk [vmem:[#allocation3 + $0x18] sm:$0xff] %vm1007_vm6, %v4938_v63  ;;  %5171 = vmatpush1.bf16.msra.mxu0 %v8453_v26  ;;  %5194 = vmatprep.mubr.bf16.mxu0 %v6580_v15 }
0x5963   :  { %4950 = vst.msk [vmem:[#allocation3 + $0x8] sm:$0xff] %vm1341_vm9, %v4949_v56  ;;  %5172 = vmatprep.subr.bf16.mxu0 %v8457_v46 }
0x5966   :  { %5173 = vmatpush1.bf16.msra.mxu0 %v8460_v8 }
0x5967   :  { %5174 = vmatprep.subr.bf16.mxu0 %v6438_v45 }
0x596a   :  { %5175 = vmatpush1.bf16.msra.mxu0 %v6439_v33 }
0x596b   :  { %5176 = vmatprep.subr.bf16.mxu0 %v6440_v10 }
0x596e   :  { %5177 = vmatpush1.bf16.msra.mxu0 %v6441_v16 }
0x596f   :  { %5899 = vmatprep.subr.bf16.mxu0 %v6578_v2 }
0x5a21   :  { %v4994_v36 = vpop.f32.mrf.mxu0 }
0x5a22   :  { %v4995_v12 = vadd.f32 %v4994_v36, %v7869_v20 }
0x5a23   :  { %v4996_v4 = vpop.f32.mrf.mxu0 }
0x5a24   :  { %v5744_v59 = vmul.f32 -1.442695, %v4995_v12  ;;  %v4997_v51 = vadd.f32 %v4996_v4, %v4955_v24 }
0x5a25   :  { %v4998_v28 = vpop.f32.mrf.mxu0 }
0x5a26   :  { %6371 = vpow2.f32 %v5744_v59  ;;  %v5745_v25 = vmul.f32 -1.442695, %v4997_v51 }
0x5a27   :  { %v4999_v34 = vpop.f32.mrf.mxu0 }
0x5a28   :  { %6373 = vpow2.f32 %v5745_v25 }
0x5a33   :  { %v6372_v62 = vpop.eup %6371 }
0x5a34   :  { %v5007_v57 = vadd.f32 1.0, %v6372_v62 }
0x5a35   :  { %v6374_v61 = vpop.eup %6373 }
0x5a36   :  { %6375 = vrcp.f32 %v5007_v57  ;;  %v5008_v6 = vadd.f32 1.0, %v6374_v61 }
0x5a38   :  { %6377 = vrcp.f32 %v5008_v6 }
0x5a43   :  { %v6376_v7 = vpop.eup %6375 }
0x5a44   :  { %v5013_v31 = vmul.f32 2.0, %v6376_v7 }
0x5a45   :  { %v6378_v42 = vpop.eup %6377 }
0x5a46   :  { %v5746_v29 = vadd.f32 -1.0, %v5013_v31  ;;  %v5014_v35 = vmul.f32 2.0, %v6378_v42 }
0x5a48   :  { %v5017_v22 = vsel %vm7009_vm15, %v5746_v29, %v6376_v7  ;;  %v5747_v39 = vadd.f32 -1.0, %v5014_v35 }
0x5a49   :  { %5021 = vrot.lane.b32.xlu1 %v5017_v22, %s6581_s7  ;;  %v5019_v41 = vmul.f32 %v5017_v22, %v8432_v44 }
0x5a4a   :  { %v5018_v14 = vsel %vm7017_vm5, %v5747_v39, %v6378_v42 }
0x5a4b   :  { %5032 = vrot.lane.b32.xlu0 %v5018_v14, %s6581_s7  ;;  %v5030_v3 = vmul.f32 %v5018_v14, %v8437_v58  ;;  %v5053_v58 = vrot.slane %v7855_v40, 2 }
0x5a4d   :  { %v5056_v52 = vrot.slane %v5053_v58, 2 }
0x5abb   :  { %v5022_v23 = vpop.permute.xlu1 %5021 }
0x5abc   :  { %v5024_v5 = vmul.f32 %v5022_v23, %v5017_v22 }
0x5abd   :  { %v5033_v0 = vpop.permute.xlu0 %5032 }
0x5abe   :  { %v5035_v21 = vmul.f32 %v5033_v0, %v5018_v14  ;;  %5026 = vrot.lane.b32.xlu1 %v5024_v5, %s6582_s14  ;;  %v5155_v14 = vrot.slane %v7869_v20, 4 }
0x5ac0   :  { %5037 = vrot.lane.b32.xlu0 %v5035_v21, %s6582_s14 }
0x5ac4   :  { %5047 = vrot.lane.b32.xlu0 %v5017_v22, %s6582_s14 }
0x5b30   :  { %v5027_v50 = vpop.permute.xlu1 %5026 }
0x5b31   :  { %v5029_v48 = vadd.f32 %v5027_v50, %v5019_v41 }
0x5b32   :  { %v5038_v47 = vpop.permute.xlu0 %5037 }
0x5b33   :  { %5042 = vrot.lane.b32.xlu1 %v5029_v48, %s6583_s19  ;;  %v5040_v11 = vadd.f32 %v5038_v47, %v5030_v3 }
0x5b36   :  { %v5048_v1 = vpop.permute.xlu0 %5047 }
0x5b37   :  { %v5050_v18 = vsel %vm1007_vm6, %v5048_v1, %v5033_v0  ;;  %v5156_v0 = vrot.slane %v4955_v24, 4 }
0x5ba5   :  { %v5043_v54 = vpop.permute.xlu1 %5042 }
0x5ba6   :  { %v5045_v43 = vsel %vm1007_vm6, %v5043_v54, %v5040_v11 }
0x5ba7   :  { %6379 = vtanh.f32 %v5045_v43 }
0x5bb4   :  { %v6380_v17 = vpop.eup %6379 }
0x5bb5   :  { %v8482_v38 = vmul.f32 %v6380_v17, %v5050_v18 }
0x5bb7   :  { %v5052_v44 = vpack.c.bf16 %v8482_v38, %v8482_v38 }
0x5bb9   :  { %5748 = vmatmul.mubr.msk.bf16.vlgmr.msra.gmra.mxu1 %vm227_vm3, %v5052_v44 }
0x5bba   :  { %5271 = vmatpush1.bf16.msra.mxu1 %v8453_v26  ;;  %5294 = vmatprep.mubr.bf16.mxu1 %v6580_v15 }
0x5bbb   :  { %5272 = vmatprep.subr.bf16.mxu1 %v8457_v46 }
0x5bbe   :  { %5273 = vmatpush1.bf16.msra.mxu1 %v8460_v8 }
0x5bbf   :  { %5274 = vmatprep.subr.bf16.mxu1 %v6438_v45 }
0x5bc2   :  { %5275 = vmatpush1.bf16.msra.mxu1 %v6439_v33 }
0x5bc3   :  { %5276 = vmatprep.subr.bf16.mxu1 %v6440_v10 }
0x5bc6   :  { %5277 = vmatpush1.bf16.msra.mxu1 %v6441_v16 }
0x5c79   :  { %v5096_v37 = vpop.f32.mrf.mxu1 }
0x5c7a   :  { %v5097_v55 = vadd.f32 %v5096_v37, %v5055_v32 }
0x5c7b   :  { %v5098_v49 = vpop.f32.mrf.mxu1 }
0x5c7c   :  { %v5749_v9 = vmul.f32 -1.442695, %v5097_v55  ;;  %v5099_v15 = vadd.f32 %v5098_v49, %v5056_v52 }
0x5c7d   :  { %v5100_v53 = vpop.f32.mrf.mxu1 }
0x5c7e   :  { %6381 = vpow2.f32 %v5749_v9  ;;  %v5750_v27 = vmul.f32 -1.442695, %v5099_v15 }
0x5c7f   :  { %v5101_v30 = vpop.f32.mrf.mxu1 }
0x5c80   :  { %6383 = vpow2.f32 %v5750_v27 }
0x5c8b   :  { %v6382_v19 = vpop.eup %6381 }
0x5c8c   :  { %v5109_v63 = vadd.f32 1.0, %v6382_v19 }
0x5c8d   :  { %v6384_v56 = vpop.eup %6383 }
0x5c8e   :  { %6385 = vrcp.f32 %v5109_v63  ;;  %v5110_v26 = vadd.f32 1.0, %v6384_v56 }
0x5c90   :  { %6387 = vrcp.f32 %v5110_v26 }
0x5c9b   :  { %v6386_v46 = vpop.eup %6385 }
0x5c9c   :  { %v5115_v8 = vmul.f32 2.0, %v6386_v46 }
0x5c9d   :  { %v6388_v45 = vpop.eup %6387 }
0x5c9e   :  { %v5751_v33 = vadd.f32 -1.0, %v5115_v8  ;;  %v5116_v10 = vmul.f32 2.0, %v6388_v45 }
0x5ca0   :  { %v5119_v16 = vsel %vm7009_vm15, %v5751_v33, %v6386_v46  ;;  %v5752_v36 = vadd.f32 -1.0, %v5116_v10 }
0x5ca1   :  { %5123 = vrot.lane.b32.xlu1 %v5119_v16, %s6581_s7  ;;  %v5121_v25 = vmul.f32 %v5119_v16, %v5029_v48 }
0x5ca2   :  { %v5120_v12 = vsel %vm7017_vm5, %v5752_v36, %v6388_v45 }
0x5ca3   :  { %5134 = vrot.lane.b32.xlu0 %v5120_v12, %s6581_s7  ;;  %v5132_v61 = vmul.f32 %v5120_v12, %v5040_v11 }
0x5d13   :  { %v5124_v4 = vpop.permute.xlu1 %5123 }
0x5d14   :  { %v5126_v59 = vmul.f32 %v5124_v4, %v5119_v16 }
0x5d15   :  { %v5135_v51 = vpop.permute.xlu0 %5134 }
0x5d16   :  { %v5137_v28 = vmul.f32 %v5135_v51, %v5120_v12  ;;  %5128 = vrot.lane.b32.xlu1 %v5126_v59, %s6582_s14 }
0x5d18   :  { %5139 = vrot.lane.b32.xlu0 %v5137_v28, %s6582_s14  ;;  %v5255_v28 = vrot.slane %v7869_v20, 6 }
0x5d1c   :  { %5149 = vrot.lane.b32.xlu0 %v5119_v16, %s6582_s14 }
0x5d88   :  { %v5129_v34 = vpop.permute.xlu1 %5128 }
0x5d89   :  { %v5131_v62 = vadd.f32 %v5129_v34, %v5121_v25 }
0x5d8a   :  { %v5140_v57 = vpop.permute.xlu0 %5139 }
0x5d8b   :  { %5144 = vrot.lane.b32.xlu1 %v5131_v62, %s6583_s19  ;;  %v5142_v6 = vadd.f32 %v5140_v57, %v5132_v61 }
0x5d8e   :  { %v5150_v42 = vpop.permute.xlu0 %5149 }
0x5d8f   :  { %v5152_v35 = vsel %vm1007_vm6, %v5150_v42, %v5135_v51 }
0x5dfd   :  { %v5145_v7 = vpop.permute.xlu1 %5144 }
0x5dfe   :  { %v5147_v31 = vsel %vm1007_vm6, %v5145_v7, %v5142_v6 }
0x5dff   :  { %6389 = vtanh.f32 %v5147_v31 }
0x5e0c   :  { %v6390_v29 = vpop.eup %6389 }
0x5e0d   :  { %v8507_v22 = vmul.f32 %v6390_v29, %v5152_v35 }
0x5e0f   :  { %v5154_v39 = vpack.c.bf16 %v8507_v22, %v8507_v22  ;;  %v5355_v10 = vrot.slane %v8507_v22, 6 }
0x5e11   :  { %5753 = vmatmul.mubr.msk.bf16.vlgmr.msra.gmra.mxu0 %vm227_vm3, %v5154_v39  ;;  %v5363_v59 = vsel %vm429_vm7, %v8482_v38, %v5355_v10 }
0x5e12   :  { %5907 = vmatprep.mubr.msk.bf16.mxu0 %vm6579_vm0, %v6578_v2  ;;  %5900 = vmatpush3.bf16.msra.mxu0 %v5983_v60 }
0x5e13   :  { %5901 = vmatprep.subr.bf16.mxu0 %v6578_v2 }
0x5ed1   :  { %v5196_v23 = vpop.f32.mrf.mxu0 }
0x5ed2   :  { %v5197_v5 = vadd.f32 %v5196_v23, %v5155_v14 }
0x5ed3   :  { %v5198_v21 = vpop.f32.mrf.mxu0 }
0x5ed4   :  { %v5754_v41 = vmul.f32 -1.442695, %v5197_v5  ;;  %v5199_v50 = vadd.f32 %v5198_v21, %v5156_v0 }
0x5ed5   :  { %v5200_v48 = vpop.f32.mrf.mxu0 }
0x5ed6   :  { %6391 = vpow2.f32 %v5754_v41  ;;  %v5755_v47 = vmul.f32 -1.442695, %v5199_v50 }
0x5ed7   :  { %v5201_v3 = vpop.f32.mrf.mxu0 }
0x5ed8   :  { %6393 = vpow2.f32 %v5755_v47 }
0x5ee3   :  { %v6392_v11 = vpop.eup %6391 }
0x5ee4   :  { %v5209_v54 = vadd.f32 1.0, %v6392_v11 }
0x5ee5   :  { %v6394_v43 = vpop.eup %6393 }
0x5ee6   :  { %6395 = vrcp.f32 %v5209_v54  ;;  %v5210_v1 = vadd.f32 1.0, %v6394_v43  ;;  %v5984_v43 = vld [vmem:[%s8620_s13 + $0x10] sm:$0xff]  }
0x5ee7   :  { %5902 = vmatpush3.bf16.msra.mxu0 %v5984_v43 }
0x5ee8   :  { %6397 = vrcp.f32 %v5210_v1  ;;  %v5985_v1 = vld [vmem:[%s8620_s13 + $0x8] sm:$0xff]   ;;  %5903 = vmatprep.subr.bf16.mxu0 %v6578_v2 }
0x5eeb   :  { %5904 = vmatpush3.bf16.msra.mxu0 %v5985_v1 }
0x5eec   :  { %5905 = vmatprep.subr.bf16.mxu0 %v6578_v2 }
0x5ef3   :  { %v6396_v17 = vpop.eup %6395 }
0x5ef4   :  { %v5215_v18 = vmul.f32 2.0, %v6396_v17 }
0x5ef5   :  { %v6398_v44 = vpop.eup %6397 }
0x5ef6   :  { %v5756_v32 = vadd.f32 -1.0, %v5215_v18  ;;  %v5216_v37 = vmul.f32 2.0, %v6398_v44 }
0x5ef8   :  { %v5219_v24 = vsel %vm7009_vm15, %v5756_v32, %v6396_v17  ;;  %v5757_v55 = vadd.f32 -1.0, %v5216_v37  ;;  %v5986_v17 = vld [vmem:[%s8620_s13] sm:$0xff]  }
0x5ef9   :  { %5223 = vrot.lane.b32.xlu1 %v5219_v24, %s6581_s7  ;;  %v5221_v27 = vmul.f32 %v5219_v24, %v5131_v62  ;;  %v5256_v62 = vrot.slane %v5053_v58, 6  ;;  %5906 = vmatpush3.bf16.msra.mxu0 %v5986_v17 }
0x5efa   :  { %v5220_v52 = vsel %vm7017_vm5, %v5757_v55, %v6398_v44 }
0x5efb   :  { %5234 = vrot.lane.b32.xlu0 %v5220_v52, %s6581_s7  ;;  %v5232_v56 = vmul.f32 %v5220_v52, %v5142_v6 }
0x5f6b   :  { %v5224_v49 = vpop.permute.xlu1 %5223 }
0x5f6c   :  { %v5226_v9 = vmul.f32 %v5224_v49, %v5219_v24 }
0x5f6d   :  { %v5235_v15 = vpop.permute.xlu0 %5234 }
0x5f6e   :  { %v5237_v53 = vmul.f32 %v5235_v15, %v5220_v52  ;;  %5228 = vrot.lane.b32.xlu1 %v5226_v9, %s6582_s14 }
0x5f70   :  { %5239 = vrot.lane.b32.xlu0 %v5237_v53, %s6582_s14  ;;  %v5369_v53 = vrot.slane %v8507_v22, 4  ;;  %v5380_v22 = vld [vmem:[#allocation3 + $0x10] sm:$0xff] }
0x5f74   :  { %5249 = vrot.lane.b32.xlu0 %v5219_v24, %s6582_s14 }
0x5fe0   :  { %v5229_v30 = vpop.permute.xlu1 %5228 }
0x5fe1   :  { %v5231_v19 = vadd.f32 %v5229_v30, %v5221_v27  ;;  %v5372_v27 = vrot.slane %v8482_v38, 2  ;;  %v5381_v38 = vld [vmem:[#allocation3 + $0x18] sm:$0xff] }
0x5fe2   :  { %v5240_v63 = vpop.permute.xlu0 %5239 }
0x5fe3   :  { %5244 = vrot.lane.b32.xlu1 %v5231_v19, %s6583_s19  ;;  %v8527_v26 = vadd.f32 %v5240_v63, %v5232_v56 }
0x5fe6   :  { %v5250_v45 = vpop.permute.xlu0 %5249 }
0x5fe7   :  { %v5252_v16 = vsel %vm1007_vm6, %v5250_v45, %v5235_v15 }
0x6055   :  { %v5245_v46 = vpop.permute.xlu1 %5244 }
0x6056   :  { %v5247_v8 = vsel %vm1007_vm6, %v5245_v46, %v8527_v26 }
0x6057   :  { %6399 = vtanh.f32 %v5247_v8  ;;  %v5379_v8 = vld [vmem:[#allocation3 + $0x8] sm:$0xff] }
0x6064   :  { %v6400_v33 = vpop.eup %6399 }
0x6065   :  { %v8533_v36 = vmul.f32 %v6400_v33, %v5252_v16  ;;  %v5384_v33 = vpack.c.bf16 %v5381_v38, %v5380_v22 }
0x6067   :  { %v5358_v12 = vrot.slane %v8533_v36, 4  ;;  %v5254_v4 = vpack.c.bf16 %v8533_v36, %v8533_v36  ;;  %v5367_v9 = vrot.slane %v8533_v36, 6  ;;  %v5763_v36 = vld [vmem:[#allocation13] ss:$0 sm:$0xff] }
0x6069   :  { %5758 = vmatmul.mubr.msk.bf16.vlgmr.msra.gmra.mxu1 %vm227_vm3, %v5254_v4  ;;  %v8542_v51 = vsel %vm314_vm4, %v5363_v59, %v5358_v12 }
0x6129   :  { %v5296_v25 = vpop.f32.mrf.mxu1 }
0x612a   :  { %v5297_v34 = vadd.f32 %v5296_v25, %v5255_v28 }
0x612b   :  { %v5298_v57 = vpop.f32.mrf.mxu1 }
0x612c   :  { %v5759_v61 = vmul.f32 -1.442695, %v5297_v34  ;;  %v5299_v6 = vadd.f32 %v5298_v57, %v5256_v62 }
0x612d   :  { %v5300_v7 = vpop.f32.mrf.mxu1 }
0x612e   :  { %6401 = vpow2.f32 %v5759_v61  ;;  %v5760_v31 = vmul.f32 -1.442695, %v5299_v6 }
0x612f   :  { %v5301_v42 = vpop.f32.mrf.mxu1 }
0x6130   :  { %6403 = vpow2.f32 %v5760_v31 }
0x613b   :  { %v6402_v29 = vpop.eup %6401 }
0x613c   :  { %v5309_v35 = vadd.f32 1.0, %v6402_v29 }
0x613d   :  { %v6404_v39 = vpop.eup %6403 }
0x613e   :  { %6405 = vrcp.f32 %v5309_v35  ;;  %v5310_v14 = vadd.f32 1.0, %v6404_v39 }
0x6140   :  { %6407 = vrcp.f32 %v5310_v14 }
0x614b   :  { %v6406_v20 = vpop.eup %6405 }
0x614c   :  { %v5315_v23 = vmul.f32 2.0, %v6406_v20 }
0x614d   :  { %v6408_v5 = vpop.eup %6407 }
0x614e   :  { %v5761_v0 = vadd.f32 -1.0, %v5315_v23  ;;  %v5316_v40 = vmul.f32 2.0, %v6408_v5 }
0x6150   :  { %v5319_v58 = vsel %vm7009_vm15, %v5761_v0, %v6406_v20  ;;  %v5762_v21 = vadd.f32 -1.0, %v5316_v40 }
0x6151   :  { %5323 = vrot.lane.b32.xlu1 %v5319_v58, %s6581_s7  ;;  %v5321_v13 = vmul.f32 %v5319_v58, %v5231_v19 }
0x6152   :  { %v5320_v41 = vsel %vm7017_vm5, %v5762_v21, %v6408_v5 }
0x6153   :  { %5334 = vrot.lane.b32.xlu0 %v5320_v41, %s6581_s7  ;;  %v5332_v44 = vmul.f32 %v5320_v41, %v8527_v26 }
0x61c3   :  { %v5324_v50 = vpop.permute.xlu1 %5323 }
0x61c4   :  { %v5326_v48 = vmul.f32 %v5324_v50, %v5319_v58 }
0x61c5   :  { %v5335_v47 = vpop.permute.xlu0 %5334 }
0x61c6   :  { %v5337_v3 = vmul.f32 %v5335_v47, %v5320_v41  ;;  %5328 = vrot.lane.b32.xlu1 %v5326_v48, %s6582_s14 }
0x61c8   :  { %5339 = vrot.lane.b32.xlu0 %v5337_v3, %s6582_s14 }
0x61cc   :  { %5349 = vrot.lane.b32.xlu0 %v5319_v58, %s6582_s14 }
0x6238   :  { %v5329_v11 = vpop.permute.xlu1 %5328 }
0x6239   :  { %v5331_v54 = vadd.f32 %v5329_v11, %v5321_v13 }
0x623a   :  { %v5340_v18 = vpop.permute.xlu0 %5339 }
0x623b   :  { %5344 = vrot.lane.b32.xlu1 %v5331_v54, %s6583_s19  ;;  %v5342_v32 = vadd.f32 %v5340_v18, %v5332_v44 }
0x623e   :  { %v5350_v55 = vpop.permute.xlu0 %5349 }
0x623f   :  { %v5352_v49 = vsel %vm1007_vm6, %v5350_v55, %v5335_v47 }
0x62ad   :  { %v5345_v37 = vpop.permute.xlu1 %5344 }
0x62ae   :  { %v5347_v24 = vsel %vm1007_vm6, %v5345_v37, %v5342_v32 }
0x62af   :  { %6409 = vtanh.f32 %v5347_v24 }
0x62bc   :  { %v6410_v52 = vpop.eup %6409 }
0x62bd   :  { %v5353_v15 = vmul.f32 %v6410_v52, %v5352_v49 }
0x62bf   :  { %v5361_v30 = vrot.slane %v5353_v15, 2  ;;  %v5374_v19 = vsel %vm429_vm7, %v5353_v15, %v5367_v9 }
0x62c0   :  { %v5375_v63 = vsel %vm314_vm4, %v5374_v19, %v5369_v53 }
0x62c1   :  { %v5365_v56 = vsel %vm1328_vm8, %v8542_v51, %v5361_v30  ;;  %v5376_v26 = vsel %vm1328_vm8, %v5375_v63, %v5372_v27 }
0x62c2   :  { %5366 = vst.msk [vmem:[#allocation3 + $0x20] sm:$0xff] %vm1007_vm6, %v5365_v56 }
0x62c3   :  { %5377 = vst.msk [vmem:[#allocation3] sm:$0xff] %vm1341_vm9, %v5376_v26 }
0x62c9   :  { %v5382_v10 = vld [vmem:[#allocation3 + $0x20] sm:$0xff] }
0x62ca   :  { %v5378_v46 = vld [vmem:[#allocation3] sm:$0xff]  ;;  %v5385_v16 = vpack.c.bf16 %v5382_v10, %v5382_v10 }
0x62cb   :  { %v5383_v45 = vpack.c.bf16 %v5379_v8, %v5378_v46 }
0x62cd   :  { %5908 = vmatmul.mubr.msk.bf16.vlgmr.msra.gmra.mxu0 %vm227_vm3, %v5383_v45 }
0x62ce   :  { %5911 = vmatprep.mubr.msk.bf16.mxu0 %vm6579_vm0, %v6578_v2 }
0x62d5   :  { %5912 = vmatmul.mubr.msk.bf16.gmra.mxu0 %vm227_vm3, %v5384_v33 }
0x62d6   :  { %5915 = vmatprep.mubr.msk.bf16.mxu0 %vm6579_vm0, %v6578_v2 }
0x62dd   :  { %5916 = vmatmul.mubr.msk.bf16.gmra.mxu0 %vm227_vm3, %v5385_v16 }
0x638d   :  { %v5468_v12 = vpop.f32.mrf.mxu0 }
0x638e   :  { %v5469_v4 = vadd.f32 %v5763_v36, %v5468_v12 }
0x638f   :  { %v5909_v59 = vpop.f32.mrf.mxu0 }
0x6390   :  { %5490 = vst [vmem:[%s8622_s15] sm:$0xff] %v5469_v4 }
0x6391   :  { %v5471_v51 = vpop.f32.mrf.mxu0 }
0x6392   :  { %v5472_v28 = vadd.f32 %v5763_v36, %v5471_v51 }
0x6393   :  { %v5910_v25 = vpop.f32.mrf.mxu0 }
0x6394   :  { %5491 = vst [vmem:[%s8622_s15 + $0x8] sm:$0xff] %v5472_v28 }
0x6395   :  { %v5476_v2 = vpop.f32.mrf.mxu0 }
0x6396   :  { %v5477_v34 = vadd.f32 %v5763_v36, %v5476_v2 }
0x6397   :  { %v5913_v62 = vpop.f32.mrf.mxu0 }
0x6398   :  { %5492 = vst [vmem:[%s8622_s15 + $0x10] sm:$0xff] %v5477_v34 }
0x6399   :  { %v5479_v57 = vpop.f32.mrf.mxu0 }
0x639a   :  { %v5480_v61 = vadd.f32 %v5763_v36, %v5479_v57 }
0x639b   :  { %v5914_v6 = vpop.f32.mrf.mxu0 }
0x639c   :  { %5493 = vst [vmem:[%s8622_s15 + $0x18] sm:$0xff] %v5480_v61 }
0x639d   :  { %v5484_v7 = vpop.f32.mrf.mxu0 }
0x639e   :  { %v5485_v31 = vadd.f32 %v5763_v36, %v5484_v7 }
0x639f   :  { %v5917_v42 = vpop.f32.mrf.mxu0 }
0x63a0   :  { %5494 = vst [vmem:[%s8622_s15 + $0x20] sm:$0xff] %v5485_v31 }
0x63a1   :  { %v5487_v29 = vpop.f32.mrf.mxu0 }
0x63a3   :  { %v5918_v35 = vpop.f32.mrf.mxu0 }
0x63a4   :  { %5499 = vsyncpa [#allocation6], 1 }
0x63a5   :  { %5500 = vsyncpa [#allocation8], 1 }
0x63a6   :  { %5501 = vsyncpa [#allocation11], 1 }
0x63a7   :  { %5502 = vsyncpa [#allocation14], 1 }

</bundles_post_ra>
